<compile_context>
chip_gen: v5e
topology: v5e:2x2
jax: 0.10.0
libtpu: 0.0.40
codegen_flags: <defaults>
</compile_context>

<pallas_src>
import jax
import jax.numpy as jnp
import numpy as np
from jax.experimental import pallas as pl
from jax.experimental.pallas import tpu as pltpu


def _make_kernel(hp, seq_len, unroll):
    HP = hp            # lane-padded hidden size (multiple of 128)
    GP = 4 * HP        # padded gate width
    T = seq_len

    def kernel(xproj_ref, wf_ref, b1_ref, wemb_ref, bemb_ref, out_ref):
        B = xproj_ref.shape[1]

        wf = wf_ref[...]                                   # (2*HP, 2*GP) f32
        b1b = jnp.broadcast_to(b1_ref[...], (B, GP))       # hoisted broadcast

        def gate_update(gates, c):
            # Full-width EUP ops once, then lane-aligned full-vreg slices.
            s = jax.nn.sigmoid(gates)                      # (B, GP)
            tg = jnp.tanh(gates)                           # (B, GP)
            i = s[:, 0 * HP:1 * HP]
            f = s[:, 1 * HP:2 * HP]
            g = tg[:, 2 * HP:3 * HP]
            o = s[:, 3 * HP:4 * HP]
            c_new = f * c + i * g
            h_new = o * jnp.tanh(c_new)
            return h_new, c_new

        def step(t, carry):
            # r0 = h0_{t-1} @ Whh0 (padded), computed by the previous step's
            # fused matmul (wavefront fusion).
            h1, c0, c1, r0 = carry

            # Layer 0 gates: xproj[t] already contains x_t @ W_ih0 + b0.
            g0 = xproj_ref[t] + r0                          # (B, GP)
            h0, c0 = gate_update(g0, c0)

            # ONE MXU call per step:
            #   [h0_t, h1_{t-1}] @ [[Whh0, Wih1], [0, Whh1]]
            # -> cols [0, GP):   h0_t @ Whh0            (= r0 for step t+1)
            # -> cols [GP, 2GP): h0_t @ Wih1 + h1 @ Whh1 (= layer-1 gates)
            lhs = jnp.concatenate([h0, h1], axis=1)         # (B, 2*HP), aligned
            fused = jnp.dot(lhs, wf, preferred_element_type=jnp.float32)
            r0_next = fused[:, :GP]
            g1 = fused[:, GP:] + b1b
            h1, c1 = gate_update(g1, c1)
            return h1, c0, c1, r0_next

        zH = jnp.zeros((B, HP), jnp.float32)
        zG = jnp.zeros((B, GP), jnp.float32)
        h1, _, _, _ = jax.lax.fori_loop(0, T, step, (zH, zH, zH, zG),
                                        unroll=unroll)

        # Final Linear on the last step's top-layer hidden state.
        out_ref[...] = (jnp.dot(h1, wemb_ref[...],
                                preferred_element_type=jnp.float32)
                        + bemb_ref[...])

    return kernel


def _pad_gate_cols(w, H, HP):
    """(..., 4H) -> (..., 4*HP): gate g placed at columns [g*HP, g*HP+H)."""
    if HP == H:
        return w
    pad = HP - H
    parts = []
    for g in range(4):
        blk = w[..., g * H:(g + 1) * H]
        blk = jnp.pad(blk, [(0, 0)] * (w.ndim - 1) + [(0, pad)])
        parts.append(blk)
    return jnp.concatenate(parts, axis=-1)


def _pad_rows(w, H, HP):
    """(H, N) -> (HP, N) with zero rows H..HP-1."""
    if HP == H:
        return w
    return jnp.pad(w, [(0, HP - H), (0, 0)])


@jax.jit
def rnn_embedding_forward(x, wih0, whh0, b0, wih1, whh1, b1, wemb, bemb):
    """x: (B, T, D) float32, batch_first like the PyTorch module.

    Weights are pre-transposed to (in, out); b0/b1 are the combined
    (b_ih + b_hh) biases of each LSTM layer.
    """
    B, T, D = x.shape
    H = whh0.shape[0]
    O = wemb.shape[1]
    HP = ((H + 127) // 128) * 128          # lane-aligned per-gate width
    GP = 4 * HP
    BP = max(8, ((B + 7) // 8) * 8)        # fill f32 sublanes

    if BP != B:
        x = jnp.pad(x, ((0, BP - B), (0, 0), (0, 0)))

    # Hoisted layer-0 input projection for all T steps as one matmul, emitted
    # time-major (T, B, GP) and already gate-padded + biased.
    wih0_p = _pad_gate_cols(wih0, H, HP)                       # (D, GP)
    b0_p = _pad_gate_cols(b0, H, HP)                           # (1, GP)
    xproj = jnp.einsum('btd,dg->tbg', x, wih0_p) + b0_p        # (T, BP, GP) f32

    # Wavefront-fused recurrent weights: [[Whh0, Wih1], [0, Whh1]].
    whh0_p = _pad_rows(_pad_gate_cols(whh0, H, HP), H, HP)     # (HP, GP)
    wih1_p = _pad_rows(_pad_gate_cols(wih1, H, HP), H, HP)     # (HP, GP)
    whh1_p = _pad_rows(_pad_gate_cols(whh1, H, HP), H, HP)     # (HP, GP)
    wf = jnp.concatenate([
        jnp.concatenate([whh0_p, wih1_p], axis=1),
        jnp.concatenate([jnp.zeros_like(whh0_p), whh1_p], axis=1),
    ], axis=0)                                                 # (2*HP, 2*GP)

    b1_p = _pad_gate_cols(b1, H, HP)                           # (1, GP)
    wemb_p = _pad_rows(wemb, H, HP)                            # (HP, O)

    unroll = T if T <= 16 else 8
    kernel = _make_kernel(HP, T, unroll)
    vmem = pl.BlockSpec(memory_space=pltpu.MemorySpace.VMEM)
    out = pl.pallas_call(
        kernel,
        out_shape=jax.ShapeDtypeStruct((BP, O), jnp.float32),
        in_specs=[vmem, vmem, vmem, vmem, vmem],
        out_specs=vmem,
    )(xproj, wf, b1_p, wemb_p, bemb)
    return out[:B]


def _ref_forward(x, wih0, whh0, b0, wih1, whh1, b1, wemb, bemb):
    """Plain-JAX f32 reference of the same forward pass (eval mode)."""
    B, T, D = x.shape
    H = whh0.shape[0]

    def cell(x_t, h, c, w_ih, w_hh, b):
        gates = x_t @ w_ih + h @ w_hh + b
        i, f, g, o = jnp.split(gates, 4, axis=-1)
        c = jax.nn.sigmoid(f) * c + jax.nn.sigmoid(i) * jnp.tanh(g)
        h = jax.nn.sigmoid(o) * jnp.tanh(c)
        return h, c

    h0 = c0 = h1 = c1 = jnp.zeros((B, H), jnp.float32)
    for t in range(T):
        h0, c0 = cell(x[:, t, :], h0, c0, wih0, whh0, b0)
        h1, c1 = cell(h0, h1, c1, wih1, whh1, b1)
    return h1 @ wemb + bemb


if __name__ == "__main__":
    # Small shapes consistent with the module.
    B, T = 2, 8
    in_features, hidden_size, out_features = 16, 32, 8
    H = hidden_size

    key = jax.random.PRNGKey(0)
    keys = jax.random.split(key, 12)
    bound = 1.0 / np.sqrt(H)
    u = lambda k, shape: jax.random.uniform(k, shape, jnp.float32, -bound, bound)

    # PyTorch LSTM params (gate order i,f,g,o), stored pre-transposed (in, out).
    wih0 = u(keys[0], (in_features, 4 * H))
    whh0 = u(keys[1], (H, 4 * H))
    b0 = u(keys[2], (1, 4 * H)) + u(keys[3], (1, 4 * H))   # b_ih + b_hh
    wih1 = u(keys[4], (H, 4 * H))
    whh1 = u(keys[5], (H, 4 * H))
    b1 = u(keys[6], (1, 4 * H)) + u(keys[7], (1, 4 * H))
    # Linear(hidden_size -> out_features)
    wemb = u(keys[8], (H, out_features))
    bemb = u(keys[9], (1, out_features))

    x = jax.random.normal(keys[10], (B, T, in_features), jnp.float32)

    out = rnn_embedding_forward(x, wih0, whh0, b0, wih1, whh1, b1, wemb, bemb)
    out = jax.block_until_ready(out)

    ref = _ref_forward(x, wih0, whh0, b0, wih1, whh1, b1, wemb, bemb)
    np.testing.assert_allclose(np.asarray(out), np.asarray(ref),
                               rtol=1e-4, atol=1e-4)

    assert out.shape == (B, out_features)
    print("KERNEL_OK")
</pallas_src>

<mosaic_0001>
module attributes {stable_mosaic.version = 11 : i64} {
  func.func @kernel(%arg0: memref<8x8x512xf32, #tpu.memory_space<vmem>>, %arg1: memref<256x1024xf32, #tpu.memory_space<vmem>>, %arg2: memref<1x512xf32, #tpu.memory_space<vmem>>, %arg3: memref<128x8xf32, #tpu.memory_space<vmem>>, %arg4: memref<1x8xf32, #tpu.memory_space<vmem>>, %arg5: memref<8x8xf32, #tpu.memory_space<vmem>>) attributes {dimension_semantics = [], scalar_prefetch = 0 : i64, scratch_operands = 0 : i64, tpu.core_type = #tpu.core_type<tc>} {
    %c0 = arith.constant 0 : index
    %c0_0 = arith.constant 0 : index
    %0 = vector.load %arg1[%c0, %c0_0] : memref<256x1024xf32, #tpu.memory_space<vmem>>, vector<256x1024xf32>
    %c0_1 = arith.constant 0 : index
    %c0_2 = arith.constant 0 : index
    %1 = vector.load %arg2[%c0_1, %c0_2] : memref<1x512xf32, #tpu.memory_space<vmem>>, vector<1x512xf32>
    %2 = vector.shape_cast %1 : vector<1x512xf32> to vector<1x512xf32>
    %3 = vector.broadcast %2 : vector<1x512xf32> to vector<8x512xf32>
    %cst = arith.constant 0.000000e+00 : f32
    %4 = vector.broadcast %cst : f32 to vector<8x128xf32>
    %cst_3 = arith.constant 0.000000e+00 : f32
    %5 = vector.broadcast %cst_3 : f32 to vector<8x512xf32>
    %c0_i32 = arith.constant 0 : i32
    %6 = arith.index_cast %c0_i32 : i32 to index
    %c0_4 = arith.constant 0 : index
    %c0_5 = arith.constant 0 : index
    %7 = vector.load %arg0[%6, %c0_4, %c0_5] : memref<8x8x512xf32, #tpu.memory_space<vmem>>, vector<1x8x512xf32>
    %8 = vector.shape_cast %7 : vector<1x8x512xf32> to vector<8x512xf32>
    %9 = arith.addf %8, %5 : vector<8x512xf32>
    %10 = arith.negf %9 : vector<8x512xf32>
    %11 = math.exp %10 : vector<8x512xf32>
    %cst_6 = arith.constant 1.000000e+00 : f32
    %12 = vector.broadcast %cst_6 : f32 to vector<8x512xf32>
    %13 = arith.addf %12, %11 : vector<8x512xf32>
    %14 = arith.divf %12, %13 : vector<8x512xf32>
    %15 = math.tanh %9 : vector<8x512xf32>
    %16 = vector.extract_strided_slice %14 {offsets = [0, 0], sizes = [8, 128], strides = [1, 1]} : vector<8x512xf32> to vector<8x128xf32>
    %17 = vector.extract_strided_slice %14 {offsets = [0, 128], sizes = [8, 128], strides = [1, 1]} : vector<8x512xf32> to vector<8x128xf32>
    %18 = vector.extract_strided_slice %15 {offsets = [0, 256], sizes = [8, 128], strides = [1, 1]} : vector<8x512xf32> to vector<8x128xf32>
    %19 = vector.extract_strided_slice %14 {offsets = [0, 384], sizes = [8, 128], strides = [1, 1]} : vector<8x512xf32> to vector<8x128xf32>
    %20 = arith.mulf %17, %4 : vector<8x128xf32>
    %21 = arith.mulf %16, %18 : vector<8x128xf32>
    %22 = arith.addf %20, %21 : vector<8x128xf32>
    %23 = math.tanh %22 : vector<8x128xf32>
    %24 = arith.mulf %19, %23 : vector<8x128xf32>
    %25 = tpu.concatenate %24, %4 in 1 : vector<8x128xf32>, vector<8x128xf32> -> vector<8x256xf32>
    %cst_7 = arith.constant dense<0.000000e+00> : vector<8x1024xf32>
    %26 = tpu.matmul %25, %0, %cst_7 {dimension_numbers = #tpu.dot_dimension_numbers<[1], [0], [0], [1], [0, 0, 1, 1], [], []>} : vector<8x256xf32>, vector<256x1024xf32>, vector<8x1024xf32> -> vector<8x1024xf32>
    %27 = vector.extract_strided_slice %26 {offsets = [0, 0], sizes = [8, 512], strides = [1, 1]} : vector<8x1024xf32> to vector<8x512xf32>
    %28 = vector.extract_strided_slice %26 {offsets = [0, 512], sizes = [8, 512], strides = [1, 1]} : vector<8x1024xf32> to vector<8x512xf32>
    %29 = arith.addf %28, %3 : vector<8x512xf32>
    %30 = arith.negf %29 : vector<8x512xf32>
    %31 = math.exp %30 : vector<8x512xf32>
    %cst_8 = arith.constant 1.000000e+00 : f32
    %32 = vector.broadcast %cst_8 : f32 to vector<8x512xf32>
    %33 = arith.addf %32, %31 : vector<8x512xf32>
    %34 = arith.divf %32, %33 : vector<8x512xf32>
    %35 = math.tanh %29 : vector<8x512xf32>
    %36 = vector.extract_strided_slice %34 {offsets = [0, 0], sizes = [8, 128], strides = [1, 1]} : vector<8x512xf32> to vector<8x128xf32>
    %37 = vector.extract_strided_slice %34 {offsets = [0, 128], sizes = [8, 128], strides = [1, 1]} : vector<8x512xf32> to vector<8x128xf32>
    %38 = vector.extract_strided_slice %35 {offsets = [0, 256], sizes = [8, 128], strides = [1, 1]} : vector<8x512xf32> to vector<8x128xf32>
    %39 = vector.extract_strided_slice %34 {offsets = [0, 384], sizes = [8, 128], strides = [1, 1]} : vector<8x512xf32> to vector<8x128xf32>
    %40 = arith.mulf %37, %4 : vector<8x128xf32>
    %41 = arith.mulf %36, %38 : vector<8x128xf32>
    %42 = arith.addf %40, %41 : vector<8x128xf32>
    %43 = math.tanh %42 : vector<8x128xf32>
    %44 = arith.mulf %39, %43 : vector<8x128xf32>
    %c1_i32 = arith.constant 1 : i32
    %45 = arith.index_cast %c1_i32 : i32 to index
    %c0_9 = arith.constant 0 : index
    %c0_10 = arith.constant 0 : index
    %46 = vector.load %arg0[%45, %c0_9, %c0_10] : memref<8x8x512xf32, #tpu.memory_space<vmem>>, vector<1x8x512xf32>
    %47 = vector.shape_cast %46 : vector<1x8x512xf32> to vector<8x512xf32>
    %48 = arith.addf %47, %27 : vector<8x512xf32>
    %49 = arith.negf %48 : vector<8x512xf32>
    %50 = math.exp %49 : vector<8x512xf32>
    %cst_11 = arith.constant 1.000000e+00 : f32
    %51 = vector.broadcast %cst_11 : f32 to vector<8x512xf32>
    %52 = arith.addf %51, %50 : vector<8x512xf32>
    %53 = arith.divf %51, %52 : vector<8x512xf32>
    %54 = math.tanh %48 : vector<8x512xf32>
    %55 = vector.extract_strided_slice %53 {offsets = [0, 0], sizes = [8, 128], strides = [1, 1]} : vector<8x512xf32> to vector<8x128xf32>
    %56 = vector.extract_strided_slice %53 {offsets = [0, 128], sizes = [8, 128], strides = [1, 1]} : vector<8x512xf32> to vector<8x128xf32>
    %57 = vector.extract_strided_slice %54 {offsets = [0, 256], sizes = [8, 128], strides = [1, 1]} : vector<8x512xf32> to vector<8x128xf32>
    %58 = vector.extract_strided_slice %53 {offsets = [0, 384], sizes = [8, 128], strides = [1, 1]} : vector<8x512xf32> to vector<8x128xf32>
    %59 = arith.mulf %56, %22 : vector<8x128xf32>
    %60 = arith.mulf %55, %57 : vector<8x128xf32>
    %61 = arith.addf %59, %60 : vector<8x128xf32>
    %62 = math.tanh %61 : vector<8x128xf32>
    %63 = arith.mulf %58, %62 : vector<8x128xf32>
    %64 = tpu.concatenate %63, %44 in 1 : vector<8x128xf32>, vector<8x128xf32> -> vector<8x256xf32>
    %cst_12 = arith.constant dense<0.000000e+00> : vector<8x1024xf32>
    %65 = tpu.matmul %64, %0, %cst_12 {dimension_numbers = #tpu.dot_dimension_numbers<[1], [0], [0], [1], [0, 0, 1, 1], [], []>} : vector<8x256xf32>, vector<256x1024xf32>, vector<8x1024xf32> -> vector<8x1024xf32>
    %66 = vector.extract_strided_slice %65 {offsets = [0, 0], sizes = [8, 512], strides = [1, 1]} : vector<8x1024xf32> to vector<8x512xf32>
    %67 = vector.extract_strided_slice %65 {offsets = [0, 512], sizes = [8, 512], strides = [1, 1]} : vector<8x1024xf32> to vector<8x512xf32>
    %68 = arith.addf %67, %3 : vector<8x512xf32>
    %69 = arith.negf %68 : vector<8x512xf32>
    %70 = math.exp %69 : vector<8x512xf32>
    %cst_13 = arith.constant 1.000000e+00 : f32
    %71 = vector.broadcast %cst_13 : f32 to vector<8x512xf32>
    %72 = arith.addf %71, %70 : vector<8x512xf32>
    %73 = arith.divf %71, %72 : vector<8x512xf32>
    %74 = math.tanh %68 : vector<8x512xf32>
    %75 = vector.extract_strided_slice %73 {offsets = [0, 0], sizes = [8, 128], strides = [1, 1]} : vector<8x512xf32> to vector<8x128xf32>
    %76 = vector.extract_strided_slice %73 {offsets = [0, 128], sizes = [8, 128], strides = [1, 1]} : vector<8x512xf32> to vector<8x128xf32>
    %77 = vector.extract_strided_slice %74 {offsets = [0, 256], sizes = [8, 128], strides = [1, 1]} : vector<8x512xf32> to vector<8x128xf32>
    %78 = vector.extract_strided_slice %73 {offsets = [0, 384], sizes = [8, 128], strides = [1, 1]} : vector<8x512xf32> to vector<8x128xf32>
    %79 = arith.mulf %76, %42 : vector<8x128xf32>
    %80 = arith.mulf %75, %77 : vector<8x128xf32>
    %81 = arith.addf %79, %80 : vector<8x128xf32>
    %82 = math.tanh %81 : vector<8x128xf32>
    %83 = arith.mulf %78, %82 : vector<8x128xf32>
    %c2_i32 = arith.constant 2 : i32
    %84 = arith.index_cast %c2_i32 : i32 to index
    %c0_14 = arith.constant 0 : index
    %c0_15 = arith.constant 0 : index
    %85 = vector.load %arg0[%84, %c0_14, %c0_15] : memref<8x8x512xf32, #tpu.memory_space<vmem>>, vector<1x8x512xf32>
    %86 = vector.shape_cast %85 : vector<1x8x512xf32> to vector<8x512xf32>
    %87 = arith.addf %86, %66 : vector<8x512xf32>
    %88 = arith.negf %87 : vector<8x512xf32>
    %89 = math.exp %88 : vector<8x512xf32>
    %cst_16 = arith.constant 1.000000e+00 : f32
    %90 = vector.broadcast %cst_16 : f32 to vector<8x512xf32>
    %91 = arith.addf %90, %89 : vector<8x512xf32>
    %92 = arith.divf %90, %91 : vector<8x512xf32>
    %93 = math.tanh %87 : vector<8x512xf32>
    %94 = vector.extract_strided_slice %92 {offsets = [0, 0], sizes = [8, 128], strides = [1, 1]} : vector<8x512xf32> to vector<8x128xf32>
    %95 = vector.extract_strided_slice %92 {offsets = [0, 128], sizes = [8, 128], strides = [1, 1]} : vector<8x512xf32> to vector<8x128xf32>
    %96 = vector.extract_strided_slice %93 {offsets = [0, 256], sizes = [8, 128], strides = [1, 1]} : vector<8x512xf32> to vector<8x128xf32>
    %97 = vector.extract_strided_slice %92 {offsets = [0, 384], sizes = [8, 128], strides = [1, 1]} : vector<8x512xf32> to vector<8x128xf32>
    %98 = arith.mulf %95, %61 : vector<8x128xf32>
    %99 = arith.mulf %94, %96 : vector<8x128xf32>
    %100 = arith.addf %98, %99 : vector<8x128xf32>
    %101 = math.tanh %100 : vector<8x128xf32>
    %102 = arith.mulf %97, %101 : vector<8x128xf32>
    %103 = tpu.concatenate %102, %83 in 1 : vector<8x128xf32>, vector<8x128xf32> -> vector<8x256xf32>
    %cst_17 = arith.constant dense<0.000000e+00> : vector<8x1024xf32>
    %104 = tpu.matmul %103, %0, %cst_17 {dimension_numbers = #tpu.dot_dimension_numbers<[1], [0], [0], [1], [0, 0, 1, 1], [], []>} : vector<8x256xf32>, vector<256x1024xf32>, vector<8x1024xf32> -> vector<8x1024xf32>
    %105 = vector.extract_strided_slice %104 {offsets = [0, 0], sizes = [8, 512], strides = [1, 1]} : vector<8x1024xf32> to vector<8x512xf32>
    %106 = vector.extract_strided_slice %104 {offsets = [0, 512], sizes = [8, 512], strides = [1, 1]} : vector<8x1024xf32> to vector<8x512xf32>
    %107 = arith.addf %106, %3 : vector<8x512xf32>
    %108 = arith.negf %107 : vector<8x512xf32>
    %109 = math.exp %108 : vector<8x512xf32>
    %cst_18 = arith.constant 1.000000e+00 : f32
    %110 = vector.broadcast %cst_18 : f32 to vector<8x512xf32>
    %111 = arith.addf %110, %109 : vector<8x512xf32>
    %112 = arith.divf %110, %111 : vector<8x512xf32>
    %113 = math.tanh %107 : vector<8x512xf32>
    %114 = vector.extract_strided_slice %112 {offsets = [0, 0], sizes = [8, 128], strides = [1, 1]} : vector<8x512xf32> to vector<8x128xf32>
    %115 = vector.extract_strided_slice %112 {offsets = [0, 128], sizes = [8, 128], strides = [1, 1]} : vector<8x512xf32> to vector<8x128xf32>
    %116 = vector.extract_strided_slice %113 {offsets = [0, 256], sizes = [8, 128], strides = [1, 1]} : vector<8x512xf32> to vector<8x128xf32>
    %117 = vector.extract_strided_slice %112 {offsets = [0, 384], sizes = [8, 128], strides = [1, 1]} : vector<8x512xf32> to vector<8x128xf32>
    %118 = arith.mulf %115, %81 : vector<8x128xf32>
    %119 = arith.mulf %114, %116 : vector<8x128xf32>
    %120 = arith.addf %118, %119 : vector<8x128xf32>
    %121 = math.tanh %120 : vector<8x128xf32>
    %122 = arith.mulf %117, %121 : vector<8x128xf32>
    %c3_i32 = arith.constant 3 : i32
    %123 = arith.index_cast %c3_i32 : i32 to index
    %c0_19 = arith.constant 0 : index
    %c0_20 = arith.constant 0 : index
    %124 = vector.load %arg0[%123, %c0_19, %c0_20] : memref<8x8x512xf32, #tpu.memory_space<vmem>>, vector<1x8x512xf32>
    %125 = vector.shape_cast %124 : vector<1x8x512xf32> to vector<8x512xf32>
    %126 = arith.addf %125, %105 : vector<8x512xf32>
    %127 = arith.negf %126 : vector<8x512xf32>
    %128 = math.exp %127 : vector<8x512xf32>
    %cst_21 = arith.constant 1.000000e+00 : f32
    %129 = vector.broadcast %cst_21 : f32 to vector<8x512xf32>
    %130 = arith.addf %129, %128 : vector<8x512xf32>
    %131 = arith.divf %129, %130 : vector<8x512xf32>
    %132 = math.tanh %126 : vector<8x512xf32>
    %133 = vector.extract_strided_slice %131 {offsets = [0, 0], sizes = [8, 128], strides = [1, 1]} : vector<8x512xf32> to vector<8x128xf32>
    %134 = vector.extract_strided_slice %131 {offsets = [0, 128], sizes = [8, 128], strides = [1, 1]} : vector<8x512xf32> to vector<8x128xf32>
    %135 = vector.extract_strided_slice %132 {offsets = [0, 256], sizes = [8, 128], strides = [1, 1]} : vector<8x512xf32> to vector<8x128xf32>
    %136 = vector.extract_strided_slice %131 {offsets = [0, 384], sizes = [8, 128], strides = [1, 1]} : vector<8x512xf32> to vector<8x128xf32>
    %137 = arith.mulf %134, %100 : vector<8x128xf32>
    %138 = arith.mulf %133, %135 : vector<8x128xf32>
    %139 = arith.addf %137, %138 : vector<8x128xf32>
    %140 = math.tanh %139 : vector<8x128xf32>
    %141 = arith.mulf %136, %140 : vector<8x128xf32>
    %142 = tpu.concatenate %141, %122 in 1 : vector<8x128xf32>, vector<8x128xf32> -> vector<8x256xf32>
    %cst_22 = arith.constant dense<0.000000e+00> : vector<8x1024xf32>
    %143 = tpu.matmul %142, %0, %cst_22 {dimension_numbers = #tpu.dot_dimension_numbers<[1], [0], [0], [1], [0, 0, 1, 1], [], []>} : vector<8x256xf32>, vector<256x1024xf32>, vector<8x1024xf32> -> vector<8x1024xf32>
    %144 = vector.extract_strided_slice %143 {offsets = [0, 0], sizes = [8, 512], strides = [1, 1]} : vector<8x1024xf32> to vector<8x512xf32>
    %145 = vector.extract_strided_slice %143 {offsets = [0, 512], sizes = [8, 512], strides = [1, 1]} : vector<8x1024xf32> to vector<8x512xf32>
    %146 = arith.addf %145, %3 : vector<8x512xf32>
    %147 = arith.negf %146 : vector<8x512xf32>
    %148 = math.exp %147 : vector<8x512xf32>
    %cst_23 = arith.constant 1.000000e+00 : f32
    %149 = vector.broadcast %cst_23 : f32 to vector<8x512xf32>
    %150 = arith.addf %149, %148 : vector<8x512xf32>
    %151 = arith.divf %149, %150 : vector<8x512xf32>
    %152 = math.tanh %146 : vector<8x512xf32>
    %153 = vector.extract_strided_slice %151 {offsets = [0, 0], sizes = [8, 128], strides = [1, 1]} : vector<8x512xf32> to vector<8x128xf32>
    %154 = vector.extract_strided_slice %151 {offsets = [0, 128], sizes = [8, 128], strides = [1, 1]} : vector<8x512xf32> to vector<8x128xf32>
    %155 = vector.extract_strided_slice %152 {offsets = [0, 256], sizes = [8, 128], strides = [1, 1]} : vector<8x512xf32> to vector<8x128xf32>
    %156 = vector.extract_strided_slice %151 {offsets = [0, 384], sizes = [8, 128], strides = [1, 1]} : vector<8x512xf32> to vector<8x128xf32>
    %157 = arith.mulf %154, %120 : vector<8x128xf32>
    %158 = arith.mulf %153, %155 : vector<8x128xf32>
    %159 = arith.addf %157, %158 : vector<8x128xf32>
    %160 = math.tanh %159 : vector<8x128xf32>
    %161 = arith.mulf %156, %160 : vector<8x128xf32>
    %c4_i32 = arith.constant 4 : i32
    %162 = arith.index_cast %c4_i32 : i32 to index
    %c0_24 = arith.constant 0 : index
    %c0_25 = arith.constant 0 : index
    %163 = vector.load %arg0[%162, %c0_24, %c0_25] : memref<8x8x512xf32, #tpu.memory_space<vmem>>, vector<1x8x512xf32>
    %164 = vector.shape_cast %163 : vector<1x8x512xf32> to vector<8x512xf32>
    %165 = arith.addf %164, %144 : vector<8x512xf32>
    %166 = arith.negf %165 : vector<8x512xf32>
    %167 = math.exp %166 : vector<8x512xf32>
    %cst_26 = arith.constant 1.000000e+00 : f32
    %168 = vector.broadcast %cst_26 : f32 to vector<8x512xf32>
    %169 = arith.addf %168, %167 : vector<8x512xf32>
    %170 = arith.divf %168, %169 : vector<8x512xf32>
    %171 = math.tanh %165 : vector<8x512xf32>
    %172 = vector.extract_strided_slice %170 {offsets = [0, 0], sizes = [8, 128], strides = [1, 1]} : vector<8x512xf32> to vector<8x128xf32>
    %173 = vector.extract_strided_slice %170 {offsets = [0, 128], sizes = [8, 128], strides = [1, 1]} : vector<8x512xf32> to vector<8x128xf32>
    %174 = vector.extract_strided_slice %171 {offsets = [0, 256], sizes = [8, 128], strides = [1, 1]} : vector<8x512xf32> to vector<8x128xf32>
    %175 = vector.extract_strided_slice %170 {offsets = [0, 384], sizes = [8, 128], strides = [1, 1]} : vector<8x512xf32> to vector<8x128xf32>
    %176 = arith.mulf %173, %139 : vector<8x128xf32>
    %177 = arith.mulf %172, %174 : vector<8x128xf32>
    %178 = arith.addf %176, %177 : vector<8x128xf32>
    %179 = math.tanh %178 : vector<8x128xf32>
    %180 = arith.mulf %175, %179 : vector<8x128xf32>
    %181 = tpu.concatenate %180, %161 in 1 : vector<8x128xf32>, vector<8x128xf32> -> vector<8x256xf32>
    %cst_27 = arith.constant dense<0.000000e+00> : vector<8x1024xf32>
    %182 = tpu.matmul %181, %0, %cst_27 {dimension_numbers = #tpu.dot_dimension_numbers<[1], [0], [0], [1], [0, 0, 1, 1], [], []>} : vector<8x256xf32>, vector<256x1024xf32>, vector<8x1024xf32> -> vector<8x1024xf32>
    %183 = vector.extract_strided_slice %182 {offsets = [0, 0], sizes = [8, 512], strides = [1, 1]} : vector<8x1024xf32> to vector<8x512xf32>
    %184 = vector.extract_strided_slice %182 {offsets = [0, 512], sizes = [8, 512], strides = [1, 1]} : vector<8x1024xf32> to vector<8x512xf32>
    %185 = arith.addf %184, %3 : vector<8x512xf32>
    %186 = arith.negf %185 : vector<8x512xf32>
    %187 = math.exp %186 : vector<8x512xf32>
    %cst_28 = arith.constant 1.000000e+00 : f32
    %188 = vector.broadcast %cst_28 : f32 to vector<8x512xf32>
    %189 = arith.addf %188, %187 : vector<8x512xf32>
    %190 = arith.divf %188, %189 : vector<8x512xf32>
    %191 = math.tanh %185 : vector<8x512xf32>
    %192 = vector.extract_strided_slice %190 {offsets = [0, 0], sizes = [8, 128], strides = [1, 1]} : vector<8x512xf32> to vector<8x128xf32>
    %193 = vector.extract_strided_slice %190 {offsets = [0, 128], sizes = [8, 128], strides = [1, 1]} : vector<8x512xf32> to vector<8x128xf32>
    %194 = vector.extract_strided_slice %191 {offsets = [0, 256], sizes = [8, 128], strides = [1, 1]} : vector<8x512xf32> to vector<8x128xf32>
    %195 = vector.extract_strided_slice %190 {offsets = [0, 384], sizes = [8, 128], strides = [1, 1]} : vector<8x512xf32> to vector<8x128xf32>
    %196 = arith.mulf %193, %159 : vector<8x128xf32>
    %197 = arith.mulf %192, %194 : vector<8x128xf32>
    %198 = arith.addf %196, %197 : vector<8x128xf32>
    %199 = math.tanh %198 : vector<8x128xf32>
    %200 = arith.mulf %195, %199 : vector<8x128xf32>
    %c5_i32 = arith.constant 5 : i32
    %201 = arith.index_cast %c5_i32 : i32 to index
    %c0_29 = arith.constant 0 : index
    %c0_30 = arith.constant 0 : index
    %202 = vector.load %arg0[%201, %c0_29, %c0_30] : memref<8x8x512xf32, #tpu.memory_space<vmem>>, vector<1x8x512xf32>
    %203 = vector.shape_cast %202 : vector<1x8x512xf32> to vector<8x512xf32>
    %204 = arith.addf %203, %183 : vector<8x512xf32>
    %205 = arith.negf %204 : vector<8x512xf32>
    %206 = math.exp %205 : vector<8x512xf32>
    %cst_31 = arith.constant 1.000000e+00 : f32
    %207 = vector.broadcast %cst_31 : f32 to vector<8x512xf32>
    %208 = arith.addf %207, %206 : vector<8x512xf32>
    %209 = arith.divf %207, %208 : vector<8x512xf32>
    %210 = math.tanh %204 : vector<8x512xf32>
    %211 = vector.extract_strided_slice %209 {offsets = [0, 0], sizes = [8, 128], strides = [1, 1]} : vector<8x512xf32> to vector<8x128xf32>
    %212 = vector.extract_strided_slice %209 {offsets = [0, 128], sizes = [8, 128], strides = [1, 1]} : vector<8x512xf32> to vector<8x128xf32>
    %213 = vector.extract_strided_slice %210 {offsets = [0, 256], sizes = [8, 128], strides = [1, 1]} : vector<8x512xf32> to vector<8x128xf32>
    %214 = vector.extract_strided_slice %209 {offsets = [0, 384], sizes = [8, 128], strides = [1, 1]} : vector<8x512xf32> to vector<8x128xf32>
    %215 = arith.mulf %212, %178 : vector<8x128xf32>
    %216 = arith.mulf %211, %213 : vector<8x128xf32>
    %217 = arith.addf %215, %216 : vector<8x128xf32>
    %218 = math.tanh %217 : vector<8x128xf32>
    %219 = arith.mulf %214, %218 : vector<8x128xf32>
    %220 = tpu.concatenate %219, %200 in 1 : vector<8x128xf32>, vector<8x128xf32> -> vector<8x256xf32>
    %cst_32 = arith.constant dense<0.000000e+00> : vector<8x1024xf32>
    %221 = tpu.matmul %220, %0, %cst_32 {dimension_numbers = #tpu.dot_dimension_numbers<[1], [0], [0], [1], [0, 0, 1, 1], [], []>} : vector<8x256xf32>, vector<256x1024xf32>, vector<8x1024xf32> -> vector<8x1024xf32>
    %222 = vector.extract_strided_slice %221 {offsets = [0, 0], sizes = [8, 512], strides = [1, 1]} : vector<8x1024xf32> to vector<8x512xf32>
    %223 = vector.extract_strided_slice %221 {offsets = [0, 512], sizes = [8, 512], strides = [1, 1]} : vector<8x1024xf32> to vector<8x512xf32>
    %224 = arith.addf %223, %3 : vector<8x512xf32>
    %225 = arith.negf %224 : vector<8x512xf32>
    %226 = math.exp %225 : vector<8x512xf32>
    %cst_33 = arith.constant 1.000000e+00 : f32
    %227 = vector.broadcast %cst_33 : f32 to vector<8x512xf32>
    %228 = arith.addf %227, %226 : vector<8x512xf32>
    %229 = arith.divf %227, %228 : vector<8x512xf32>
    %230 = math.tanh %224 : vector<8x512xf32>
    %231 = vector.extract_strided_slice %229 {offsets = [0, 0], sizes = [8, 128], strides = [1, 1]} : vector<8x512xf32> to vector<8x128xf32>
    %232 = vector.extract_strided_slice %229 {offsets = [0, 128], sizes = [8, 128], strides = [1, 1]} : vector<8x512xf32> to vector<8x128xf32>
    %233 = vector.extract_strided_slice %230 {offsets = [0, 256], sizes = [8, 128], strides = [1, 1]} : vector<8x512xf32> to vector<8x128xf32>
    %234 = vector.extract_strided_slice %229 {offsets = [0, 384], sizes = [8, 128], strides = [1, 1]} : vector<8x512xf32> to vector<8x128xf32>
    %235 = arith.mulf %232, %198 : vector<8x128xf32>
    %236 = arith.mulf %231, %233 : vector<8x128xf32>
    %237 = arith.addf %235, %236 : vector<8x128xf32>
    %238 = math.tanh %237 : vector<8x128xf32>
    %239 = arith.mulf %234, %238 : vector<8x128xf32>
    %c6_i32 = arith.constant 6 : i32
    %240 = arith.index_cast %c6_i32 : i32 to index
    %c0_34 = arith.constant 0 : index
    %c0_35 = arith.constant 0 : index
    %241 = vector.load %arg0[%240, %c0_34, %c0_35] : memref<8x8x512xf32, #tpu.memory_space<vmem>>, vector<1x8x512xf32>
    %242 = vector.shape_cast %241 : vector<1x8x512xf32> to vector<8x512xf32>
    %243 = arith.addf %242, %222 : vector<8x512xf32>
    %244 = arith.negf %243 : vector<8x512xf32>
    %245 = math.exp %244 : vector<8x512xf32>
    %cst_36 = arith.constant 1.000000e+00 : f32
    %246 = vector.broadcast %cst_36 : f32 to vector<8x512xf32>
    %247 = arith.addf %246, %245 : vector<8x512xf32>
    %248 = arith.divf %246, %247 : vector<8x512xf32>
    %249 = math.tanh %243 : vector<8x512xf32>
    %250 = vector.extract_strided_slice %248 {offsets = [0, 0], sizes = [8, 128], strides = [1, 1]} : vector<8x512xf32> to vector<8x128xf32>
    %251 = vector.extract_strided_slice %248 {offsets = [0, 128], sizes = [8, 128], strides = [1, 1]} : vector<8x512xf32> to vector<8x128xf32>
    %252 = vector.extract_strided_slice %249 {offsets = [0, 256], sizes = [8, 128], strides = [1, 1]} : vector<8x512xf32> to vector<8x128xf32>
    %253 = vector.extract_strided_slice %248 {offsets = [0, 384], sizes = [8, 128], strides = [1, 1]} : vector<8x512xf32> to vector<8x128xf32>
    %254 = arith.mulf %251, %217 : vector<8x128xf32>
    %255 = arith.mulf %250, %252 : vector<8x128xf32>
    %256 = arith.addf %254, %255 : vector<8x128xf32>
    %257 = math.tanh %256 : vector<8x128xf32>
    %258 = arith.mulf %253, %257 : vector<8x128xf32>
    %259 = tpu.concatenate %258, %239 in 1 : vector<8x128xf32>, vector<8x128xf32> -> vector<8x256xf32>
    %cst_37 = arith.constant dense<0.000000e+00> : vector<8x1024xf32>
    %260 = tpu.matmul %259, %0, %cst_37 {dimension_numbers = #tpu.dot_dimension_numbers<[1], [0], [0], [1], [0, 0, 1, 1], [], []>} : vector<8x256xf32>, vector<256x1024xf32>, vector<8x1024xf32> -> vector<8x1024xf32>
    %261 = vector.extract_strided_slice %260 {offsets = [0, 0], sizes = [8, 512], strides = [1, 1]} : vector<8x1024xf32> to vector<8x512xf32>
    %262 = vector.extract_strided_slice %260 {offsets = [0, 512], sizes = [8, 512], strides = [1, 1]} : vector<8x1024xf32> to vector<8x512xf32>
    %263 = arith.addf %262, %3 : vector<8x512xf32>
    %264 = arith.negf %263 : vector<8x512xf32>
    %265 = math.exp %264 : vector<8x512xf32>
    %cst_38 = arith.constant 1.000000e+00 : f32
    %266 = vector.broadcast %cst_38 : f32 to vector<8x512xf32>
    %267 = arith.addf %266, %265 : vector<8x512xf32>
    %268 = arith.divf %266, %267 : vector<8x512xf32>
    %269 = math.tanh %263 : vector<8x512xf32>
    %270 = vector.extract_strided_slice %268 {offsets = [0, 0], sizes = [8, 128], strides = [1, 1]} : vector<8x512xf32> to vector<8x128xf32>
    %271 = vector.extract_strided_slice %268 {offsets = [0, 128], sizes = [8, 128], strides = [1, 1]} : vector<8x512xf32> to vector<8x128xf32>
    %272 = vector.extract_strided_slice %269 {offsets = [0, 256], sizes = [8, 128], strides = [1, 1]} : vector<8x512xf32> to vector<8x128xf32>
    %273 = vector.extract_strided_slice %268 {offsets = [0, 384], sizes = [8, 128], strides = [1, 1]} : vector<8x512xf32> to vector<8x128xf32>
    %274 = arith.mulf %271, %237 : vector<8x128xf32>
    %275 = arith.mulf %270, %272 : vector<8x128xf32>
    %276 = arith.addf %274, %275 : vector<8x128xf32>
    %277 = math.tanh %276 : vector<8x128xf32>
    %278 = arith.mulf %273, %277 : vector<8x128xf32>
    %c7_i32 = arith.constant 7 : i32
    %279 = arith.index_cast %c7_i32 : i32 to index
    %c0_39 = arith.constant 0 : index
    %c0_40 = arith.constant 0 : index
    %280 = vector.load %arg0[%279, %c0_39, %c0_40] : memref<8x8x512xf32, #tpu.memory_space<vmem>>, vector<1x8x512xf32>
    %281 = vector.shape_cast %280 : vector<1x8x512xf32> to vector<8x512xf32>
    %282 = arith.addf %281, %261 : vector<8x512xf32>
    %283 = arith.negf %282 : vector<8x512xf32>
    %284 = math.exp %283 : vector<8x512xf32>
    %cst_41 = arith.constant 1.000000e+00 : f32
    %285 = vector.broadcast %cst_41 : f32 to vector<8x512xf32>
    %286 = arith.addf %285, %284 : vector<8x512xf32>
    %287 = arith.divf %285, %286 : vector<8x512xf32>
    %288 = math.tanh %282 : vector<8x512xf32>
    %289 = vector.extract_strided_slice %287 {offsets = [0, 0], sizes = [8, 128], strides = [1, 1]} : vector<8x512xf32> to vector<8x128xf32>
    %290 = vector.extract_strided_slice %287 {offsets = [0, 128], sizes = [8, 128], strides = [1, 1]} : vector<8x512xf32> to vector<8x128xf32>
    %291 = vector.extract_strided_slice %288 {offsets = [0, 256], sizes = [8, 128], strides = [1, 1]} : vector<8x512xf32> to vector<8x128xf32>
    %292 = vector.extract_strided_slice %287 {offsets = [0, 384], sizes = [8, 128], strides = [1, 1]} : vector<8x512xf32> to vector<8x128xf32>
    %293 = arith.mulf %290, %256 : vector<8x128xf32>
    %294 = arith.mulf %289, %291 : vector<8x128xf32>
    %295 = arith.addf %293, %294 : vector<8x128xf32>
    %296 = math.tanh %295 : vector<8x128xf32>
    %297 = arith.mulf %292, %296 : vector<8x128xf32>
    %298 = tpu.concatenate %297, %278 in 1 : vector<8x128xf32>, vector<8x128xf32> -> vector<8x256xf32>
    %cst_42 = arith.constant dense<0.000000e+00> : vector<8x1024xf32>
    %299 = tpu.matmul %298, %0, %cst_42 {dimension_numbers = #tpu.dot_dimension_numbers<[1], [0], [0], [1], [0, 0, 1, 1], [], []>} : vector<8x256xf32>, vector<256x1024xf32>, vector<8x1024xf32> -> vector<8x1024xf32>
    %300 = vector.extract_strided_slice %299 {offsets = [0, 0], sizes = [8, 512], strides = [1, 1]} : vector<8x1024xf32> to vector<8x512xf32>
    %301 = vector.extract_strided_slice %299 {offsets = [0, 512], sizes = [8, 512], strides = [1, 1]} : vector<8x1024xf32> to vector<8x512xf32>
    %302 = arith.addf %301, %3 : vector<8x512xf32>
    %303 = arith.negf %302 : vector<8x512xf32>
    %304 = math.exp %303 : vector<8x512xf32>
    %cst_43 = arith.constant 1.000000e+00 : f32
    %305 = vector.broadcast %cst_43 : f32 to vector<8x512xf32>
    %306 = arith.addf %305, %304 : vector<8x512xf32>
    %307 = arith.divf %305, %306 : vector<8x512xf32>
    %308 = math.tanh %302 : vector<8x512xf32>
    %309 = vector.extract_strided_slice %307 {offsets = [0, 0], sizes = [8, 128], strides = [1, 1]} : vector<8x512xf32> to vector<8x128xf32>
    %310 = vector.extract_strided_slice %307 {offsets = [0, 128], sizes = [8, 128], strides = [1, 1]} : vector<8x512xf32> to vector<8x128xf32>
    %311 = vector.extract_strided_slice %308 {offsets = [0, 256], sizes = [8, 128], strides = [1, 1]} : vector<8x512xf32> to vector<8x128xf32>
    %312 = vector.extract_strided_slice %307 {offsets = [0, 384], sizes = [8, 128], strides = [1, 1]} : vector<8x512xf32> to vector<8x128xf32>
    %313 = arith.mulf %310, %276 : vector<8x128xf32>
    %314 = arith.mulf %309, %311 : vector<8x128xf32>
    %315 = arith.addf %313, %314 : vector<8x128xf32>
    %316 = math.tanh %315 : vector<8x128xf32>
    %317 = arith.mulf %312, %316 : vector<8x128xf32>
    %c8_i32 = arith.constant 8 : i32
    %c0_44 = arith.constant 0 : index
    %c0_45 = arith.constant 0 : index
    %318 = vector.load %arg3[%c0_44, %c0_45] : memref<128x8xf32, #tpu.memory_space<vmem>>, vector<128x8xf32>
    %cst_46 = arith.constant dense<0.000000e+00> : vector<8x8xf32>
    %319 = tpu.matmul %317, %318, %cst_46 {dimension_numbers = #tpu.dot_dimension_numbers<[1], [0], [0], [1], [0, 0, 1, 1], [], []>} : vector<8x128xf32>, vector<128x8xf32>, vector<8x8xf32> -> vector<8x8xf32>
    %c0_47 = arith.constant 0 : index
    %c0_48 = arith.constant 0 : index
    %320 = vector.load %arg4[%c0_47, %c0_48] : memref<1x8xf32, #tpu.memory_space<vmem>>, vector<1x8xf32>
    %321 = vector.broadcast %320 : vector<1x8xf32> to vector<8x8xf32>
    %322 = arith.addf %319, %321 : vector<8x8xf32>
    %c0_49 = arith.constant 0 : index
    %c0_50 = arith.constant 0 : index
    %323 = vector.load %arg5[%c0_49, %c0_50] : memref<8x8xf32, #tpu.memory_space<vmem>>, vector<8x8xf32>
    tpu.vector_store %arg5[%c0_49, %c0_50], %322 {strides = array<i32>} : memref<8x8xf32, #tpu.memory_space<vmem>>, vector<8x8xf32>,
    return
  }
}

</mosaic_0001>

<bundles_post_ra>
// kernel: rnn_embedding_forward.1
= control target key start
LH: loop header
LB: loop body
LE: loop exit
PB: predicated region body
PF: predicated region fallthrough
CT: control target
= control target key end

     0   :  { %s12397_s1 = inlined_call_operand.vmem [shape: f32[256,1024], index: 1, kind: input, shape index: {}]   ;;  %s12398_s0 = inlined_call_operand.vmem [shape: f32[8,8,512], index: 0, kind: input, shape index: {}]   ;;  %s12399_s2 = inlined_call_operand.vmem [shape: f32[1,512], index: 2, kind: input, shape index: {}]   ;;  %s12400_s4 = inlined_call_operand.vmem [shape: f32[1,8], index: 4, kind: input, shape index: {}]   ;;  %s12401_s3 = inlined_call_operand.vmem [shape: f32[128,8], index: 3, kind: input, shape index: {}]   ;;  %s12402_s5 = inlined_call_operand.vmem [shape: f32[8,8], index: 5, kind: output, shape index: {}]  }
   0x1   :  { %v141_v0 = vld [vmem:[%s12397_s1 + $0x3c8] sm:$0xff]  ;;  %v140_v4 = vld [vmem:[%s12397_s1 + $0x3c0] sm:$0xff]  ;;  %v143_v62 = vld [vmem:[%s12397_s1 + $0x3d8] sm:$0xff] }
   0x2   :  { %v269_v1 = vld [vmem:[%s12397_s1 + $0x7c8] sm:$0xff]  ;;  %397 = vmatpush.msra.mxu2 %v141_v0  ;;  %v268_v5 = vld [vmem:[%s12397_s1 + $0x7c0] sm:$0xff]  ;;  %357 = vmatpush.msra.mxu0 %v140_v4  ;;  %v271_v63 = vld [vmem:[%s12397_s1 + $0x7d8] sm:$0xff] }
   0x3   :  { %v133_v2 = vld [vmem:[%s12397_s1 + $0x388] sm:$0xff]  ;;  %417 = vmatpush.msra.mxu3 %v269_v1  ;;  %377 = vmatpush.msra.mxu1 %v268_v5  ;;  %v132_v8 = vld [vmem:[%s12397_s1 + $0x380] sm:$0xff]  ;;  %v142_v4 = vld [vmem:[%s12397_s1 + $0x3d0] sm:$0xff] }
   0x4   :  { %v261_v3 = vld [vmem:[%s12397_s1 + $0x788] sm:$0xff]  ;;  %398 = vmatpush.msra.mxu2 %v133_v2  ;;  %v260_v9 = vld [vmem:[%s12397_s1 + $0x780] sm:$0xff]  ;;  %358 = vmatpush.msra.mxu0 %v132_v8  ;;  %v135_v2 = vld [vmem:[%s12397_s1 + $0x398] sm:$0xff] }
   0x5   :  { %v125_v6 = vld [vmem:[%s12397_s1 + $0x348] sm:$0xff]  ;;  %418 = vmatpush.msra.mxu3 %v261_v3  ;;  %378 = vmatpush.msra.mxu1 %v260_v9  ;;  %v124_v12 = vld [vmem:[%s12397_s1 + $0x340] sm:$0xff]  ;;  %v263_v3 = vld [vmem:[%s12397_s1 + $0x798] sm:$0xff] }
   0x6   :  { %v253_v7 = vld [vmem:[%s12397_s1 + $0x748] sm:$0xff]  ;;  %v252_v13 = vld [vmem:[%s12397_s1 + $0x740] sm:$0xff]  ;;  %399 = vmatpush.msra.mxu2 %v125_v6  ;;  %359 = vmatpush.msra.mxu0 %v124_v12  ;;  %v270_v5 = vld [vmem:[%s12397_s1 + $0x7d0] sm:$0xff] }
   0x7   :  { %v117_v10 = vld [vmem:[%s12397_s1 + $0x308] sm:$0xff]  ;;  %419 = vmatpush.msra.mxu3 %v253_v7  ;;  %v116_v14 = vld [vmem:[%s12397_s1 + $0x300] sm:$0xff]  ;;  %379 = vmatpush.msra.mxu1 %v252_v13  ;;  %v127_v6 = vld [vmem:[%s12397_s1 + $0x358] sm:$0xff] }
   0x8   :  { %v245_v11 = vld [vmem:[%s12397_s1 + $0x708] sm:$0xff]  ;;  %v244_v15 = vld [vmem:[%s12397_s1 + $0x700] sm:$0xff]  ;;  %400 = vmatpush.msra.mxu2 %v117_v10  ;;  %360 = vmatpush.msra.mxu0 %v116_v14  ;;  %v255_v8 = vld [vmem:[%s12397_s1 + $0x758] sm:$0xff] }
   0x9   :  { %v109_v16 = vld [vmem:[%s12397_s1 + $0x2c8] sm:$0xff]  ;;  %420 = vmatpush.msra.mxu3 %v245_v11  ;;  %v108_v18 = vld [vmem:[%s12397_s1 + $0x2c0] sm:$0xff]  ;;  %380 = vmatpush.msra.mxu1 %v244_v15  ;;  %v289_v10 = vld [vmem:[%s12398_s0 + $0x18] sm:$0xff] }
   0xa   :  { %v237_v17 = vld [vmem:[%s12397_s1 + $0x6c8] sm:$0xff]  ;;  %v236_v19 = vld [vmem:[%s12397_s1 + $0x6c0] sm:$0xff]  ;;  %401 = vmatpush.msra.mxu2 %v109_v16  ;;  %361 = vmatpush.msra.mxu0 %v108_v18  ;;  %v134_v12 = vld [vmem:[%s12397_s1 + $0x390] sm:$0xff]  ;;  %v3845_v15 = vmul.f32 -1.442695, %v289_v10 }
   0xb   :  { %v101_v20 = vld [vmem:[%s12397_s1 + $0x288] sm:$0xff]  ;;  %421 = vmatpush.msra.mxu3 %v237_v17  ;;  %v100_v22 = vld [vmem:[%s12397_s1 + $0x280] sm:$0xff]  ;;  %381 = vmatpush.msra.mxu1 %v236_v19  ;;  %v262_v13 = vld [vmem:[%s12397_s1 + $0x790] sm:$0xff] }
   0xc   :  { %v229_v21 = vld [vmem:[%s12397_s1 + $0x688] sm:$0xff]  ;;  %v228_v23 = vld [vmem:[%s12397_s1 + $0x680] sm:$0xff]  ;;  %402 = vmatpush.msra.mxu2 %v101_v20  ;;  %362 = vmatpush.msra.mxu0 %v100_v22  ;;  %v119_v16 = vld [vmem:[%s12397_s1 + $0x318] sm:$0xff] }
   0xd   :  { %v93_v24 = vld [vmem:[%s12397_s1 + $0x248] sm:$0xff]  ;;  %422 = vmatpush.msra.mxu3 %v229_v21  ;;  %v92_v26 = vld [vmem:[%s12397_s1 + $0x240] sm:$0xff]  ;;  %382 = vmatpush.msra.mxu1 %v228_v23  ;;  %v247_v17 = vld [vmem:[%s12397_s1 + $0x718] sm:$0xff] }
   0xe   :  { %v221_v25 = vld [vmem:[%s12397_s1 + $0x648] sm:$0xff]  ;;  %v220_v27 = vld [vmem:[%s12397_s1 + $0x640] sm:$0xff]  ;;  %403 = vmatpush.msra.mxu2 %v93_v24  ;;  %363 = vmatpush.msra.mxu0 %v92_v26  ;;  %v126_v18 = vld [vmem:[%s12397_s1 + $0x350] sm:$0xff] }
   0xf   :  { %v85_v28 = vld [vmem:[%s12397_s1 + $0x208] sm:$0xff]  ;;  %423 = vmatpush.msra.mxu3 %v221_v25  ;;  %v84_v30 = vld [vmem:[%s12397_s1 + $0x200] sm:$0xff]  ;;  %383 = vmatpush.msra.mxu1 %v220_v27  ;;  %v254_v19 = vld [vmem:[%s12397_s1 + $0x750] sm:$0xff] }
  0x10   :  { %v213_v29 = vld [vmem:[%s12397_s1 + $0x608] sm:$0xff]  ;;  %v212_v31 = vld [vmem:[%s12397_s1 + $0x600] sm:$0xff]  ;;  %404 = vmatpush.msra.mxu2 %v85_v28  ;;  %364 = vmatpush.msra.mxu0 %v84_v30  ;;  %v111_v20 = vld [vmem:[%s12397_s1 + $0x2d8] sm:$0xff] }
  0x11   :  { %v77_v32 = vld [vmem:[%s12397_s1 + $0x1c8] sm:$0xff]  ;;  %424 = vmatpush.msra.mxu3 %v213_v29  ;;  %v76_v34 = vld [vmem:[%s12397_s1 + $0x1c0] sm:$0xff]  ;;  %384 = vmatpush.msra.mxu1 %v212_v31  ;;  %v239_v21 = vld [vmem:[%s12397_s1 + $0x6d8] sm:$0xff] }
  0x12   :  { %v205_v33 = vld [vmem:[%s12397_s1 + $0x5c8] sm:$0xff]  ;;  %v204_v35 = vld [vmem:[%s12397_s1 + $0x5c0] sm:$0xff]  ;;  %405 = vmatpush.msra.mxu2 %v77_v32  ;;  %365 = vmatpush.msra.mxu0 %v76_v34  ;;  %v5289_v22 = vld [vmem:[%s12397_s1 + $0x310] sm:$0xff] }
  0x13   :  { %v69_v36 = vld [vmem:[%s12397_s1 + $0x188] sm:$0xff]  ;;  %425 = vmatpush.msra.mxu3 %v205_v33  ;;  %v68_v38 = vld [vmem:[%s12397_s1 + $0x180] sm:$0xff]  ;;  %385 = vmatpush.msra.mxu1 %v204_v35  ;;  %v246_v23 = vld [vmem:[%s12397_s1 + $0x710] sm:$0xff] }
  0x14   :  { %v197_v37 = vld [vmem:[%s12397_s1 + $0x588] sm:$0xff]  ;;  %v196_v39 = vld [vmem:[%s12397_s1 + $0x580] sm:$0xff]  ;;  %406 = vmatpush.msra.mxu2 %v69_v36  ;;  %366 = vmatpush.msra.mxu0 %v68_v38  ;;  %v103_v24 = vld [vmem:[%s12397_s1 + $0x298] sm:$0xff] }
  0x15   :  { %v61_v40 = vld [vmem:[%s12397_s1 + $0x148] sm:$0xff]  ;;  %426 = vmatpush.msra.mxu3 %v197_v37  ;;  %v60_v42 = vld [vmem:[%s12397_s1 + $0x140] sm:$0xff]  ;;  %386 = vmatpush.msra.mxu1 %v196_v39  ;;  %v231_v25 = vld [vmem:[%s12397_s1 + $0x698] sm:$0xff] }
  0x16   :  { %v189_v41 = vld [vmem:[%s12397_s1 + $0x548] sm:$0xff]  ;;  %v188_v43 = vld [vmem:[%s12397_s1 + $0x540] sm:$0xff]  ;;  %407 = vmatpush.msra.mxu2 %v61_v40  ;;  %367 = vmatpush.msra.mxu0 %v60_v42  ;;  %v5303_v26 = vld [vmem:[%s12397_s1 + $0x2d0] sm:$0xff] }
  0x17   :  { %v53_v44 = vld [vmem:[%s12397_s1 + $0x108] sm:$0xff]  ;;  %427 = vmatpush.msra.mxu3 %v189_v41  ;;  %v52_v46 = vld [vmem:[%s12397_s1 + $0x100] sm:$0xff]  ;;  %387 = vmatpush.msra.mxu1 %v188_v43  ;;  %v5308_v27 = vld [vmem:[%s12397_s1 + $0x6d0] sm:$0xff] }
  0x18   :  { %v181_v45 = vld [vmem:[%s12397_s1 + $0x508] sm:$0xff]  ;;  %v180_v47 = vld [vmem:[%s12397_s1 + $0x500] sm:$0xff]  ;;  %408 = vmatpush.msra.mxu2 %v53_v44  ;;  %368 = vmatpush.msra.mxu0 %v52_v46  ;;  %v5314_v29 = vld [vmem:[%s12397_s1 + $0x258] sm:$0xff] }
  0x19   :  { %v45_v48 = vld [vmem:[%s12397_s1 + $0xc8] sm:$0xff]  ;;  %428 = vmatpush.msra.mxu3 %v181_v45  ;;  %v44_v50 = vld [vmem:[%s12397_s1 + $0xc0] sm:$0xff]  ;;  %388 = vmatpush.msra.mxu1 %v180_v47  ;;  %v223_v30 = vld [vmem:[%s12397_s1 + $0x658] sm:$0xff] }
  0x1a   :  { %v173_v49 = vld [vmem:[%s12397_s1 + $0x4c8] sm:$0xff]  ;;  %v172_v51 = vld [vmem:[%s12397_s1 + $0x4c0] sm:$0xff]  ;;  %409 = vmatpush.msra.mxu2 %v45_v48  ;;  %369 = vmatpush.msra.mxu0 %v44_v50  ;;  %v5322_v32 = vld [vmem:[%s12397_s1 + $0x290] sm:$0xff] }
  0x1b   :  { %v37_v52 = vld [vmem:[%s12397_s1 + $0x88] sm:$0xff]  ;;  %429 = vmatpush.msra.mxu3 %v173_v49  ;;  %v36_v54 = vld [vmem:[%s12397_s1 + $0x80] sm:$0xff]  ;;  %389 = vmatpush.msra.mxu1 %v172_v51  ;;  %v5327_v33 = vld [vmem:[%s12397_s1 + $0x690] sm:$0xff] }
  0x1c   :  { %v165_v53 = vld [vmem:[%s12397_s1 + $0x488] sm:$0xff]  ;;  %v164_v55 = vld [vmem:[%s12397_s1 + $0x480] sm:$0xff]  ;;  %410 = vmatpush.msra.mxu2 %v37_v52  ;;  %370 = vmatpush.msra.mxu0 %v36_v54  ;;  %v5336_v36 = vld [vmem:[%s12397_s1 + $0x218] sm:$0xff] }
  0x1d   :  { %v29_v56 = vld [vmem:[%s12397_s1 + $0x48] sm:$0xff]  ;;  %430 = vmatpush.msra.mxu3 %v165_v53  ;;  %v28_v58 = vld [vmem:[%s12397_s1 + $0x40] sm:$0xff]  ;;  %390 = vmatpush.msra.mxu1 %v164_v55  ;;  %v5341_v37 = vld [vmem:[%s12397_s1 + $0x618] sm:$0xff]  ;;  %v12403_v53 = vmov 0.0  }
  0x1e   :  { %v157_v57 = vld [vmem:[%s12397_s1 + $0x448] sm:$0xff]  ;;  %v156_v59 = vld [vmem:[%s12397_s1 + $0x440] sm:$0xff]  ;;  %411 = vmatpush.msra.mxu2 %v29_v56  ;;  %371 = vmatpush.msra.mxu0 %v28_v58  ;;  %v5349_v39 = vld [vmem:[%s12397_s1 + $0x250] sm:$0xff] }
  0x1f   :  { %v21_v60 = vld [vmem:[%s12397_s1 + $0x8] sm:$0xff]  ;;  %431 = vmatpush.msra.mxu3 %v157_v57  ;;  %391 = vmatpush.msra.mxu1 %v156_v59  ;;  %v20_v0 = vld [vmem:[%s12397_s1] sm:$0xff]  ;;  %v5354_v40 = vld [vmem:[%s12397_s1 + $0x650] sm:$0xff] }
  0x20   :  { %v149_v61 = vld [vmem:[%s12397_s1 + $0x408] sm:$0xff]  ;;  %v148_v1 = vld [vmem:[%s12397_s1 + $0x400] sm:$0xff]  ;;  %412 = vmatpush.msra.mxu2 %v21_v60  ;;  %372 = vmatpush.msra.mxu0 %v20_v0  ;;  %v5364_v42 = vld [vmem:[%s12397_s1 + $0x1d8] sm:$0xff] }
  0x21   :  { %432 = vmatpush.msra.mxu3 %v149_v61  ;;  %v286_v7 = vld [vmem:[%s12398_s0] sm:$0xff]  ;;  %392 = vmatpush.msra.mxu1 %v148_v1  ;;  %v287_v9 = vld [vmem:[%s12398_s0 + $0x8] sm:$0xff]  ;;  %v5369_v43 = vld [vmem:[%s12397_s1 + $0x5d8] sm:$0xff] }
  0x22   :  { %477 = vmatpush.msrb.mxu2 %v143_v62  ;;  %v3843_v11 = vmul.f32 -1.442695, %v286_v7  ;;  %v3844_v14 = vmul.f32 -1.442695, %v287_v9  ;;  %437 = vmatpush.msrb.mxu0 %v142_v4  ;;  %v5377_v44 = vld [vmem:[%s12397_s1 + $0x210] sm:$0xff]  ;;  %v5390_v46 = vld [vmem:[%s12397_s1 + $0x198] sm:$0xff] }
  0x23   :  { %497 = vmatpush.msrb.mxu3 %v271_v63  ;;  %457 = vmatpush.msrb.mxu1 %v270_v5  ;;  %v5382_v45 = vld [vmem:[%s12397_s1 + $0x610] sm:$0xff]  ;;  %v5400_v48 = vld [vmem:[%s12397_s1 + $0x598] sm:$0xff] }
  0x24   :  { %478 = vmatpush.msrb.mxu2 %v135_v2  ;;  %3921 = vpow2.f32 %v3843_v11  ;;  %438 = vmatpush.msrb.mxu0 %v134_v12  ;;  %v288_v47 = vld [vmem:[%s12398_s0 + $0x10] sm:$0xff]  ;;  %v5417_v51 = vld [vmem:[%s12397_s1 + $0x158] sm:$0xff] }
  0x25   :  { %498 = vmatpush.msrb.mxu3 %v263_v3  ;;  %3923 = vpow2.f32 %v3844_v14  ;;  %458 = vmatpush.msrb.mxu1 %v262_v13  ;;  %v5405_v49 = vld [vmem:[%s12397_s1 + $0x1d0] sm:$0xff]  ;;  %v5426_v54 = vld [vmem:[%s12397_s1 + $0x558] sm:$0xff] }
  0x26   :  { %479 = vmatpush.msrb.mxu2 %v127_v6  ;;  %3925 = vpow2.f32 %v3845_v15  ;;  %439 = vmatpush.msrb.mxu0 %v126_v18  ;;  %v5412_v50 = vld [vmem:[%s12397_s1 + $0x5d0] sm:$0xff]  ;;  %v5447_v59 = vld [vmem:[%s12397_s1 + $0x118] sm:$0xff] }
  0x27   :  { %499 = vmatpush.msrb.mxu3 %v255_v8  ;;  %459 = vmatpush.msrb.mxu1 %v254_v19  ;;  %v5431_v55 = vld [vmem:[%s12397_s1 + $0x190] sm:$0xff]  ;;  %v5461_v0 = vld [vmem:[%s12397_s1 + $0x518] sm:$0xff] }
  0x28   :  { %480 = vmatpush.msrb.mxu2 %v119_v16  ;;  %440 = vmatpush.msrb.mxu0 %v5289_v22  ;;  %v5442_v58 = vld [vmem:[%s12397_s1 + $0x590] sm:$0xff]  ;;  %v5482_v6 = vld [vmem:[%s12397_s1 + $0xd8] sm:$0xff] }
  0x29   :  { %500 = vmatpush.msrb.mxu3 %v247_v17  ;;  %460 = vmatpush.msrb.mxu1 %v246_v23  ;;  %v5466_v1 = vld [vmem:[%s12397_s1 + $0x150] sm:$0xff]  ;;  %v5492_v9 = vld [vmem:[%s12397_s1 + $0x4d8] sm:$0xff]  ;;  %v272_v23 = vld [vmem:[%s12397_s1 + $0x7e0] sm:$0xff] }
  0x2a   :  { %481 = vmatpush.msrb.mxu2 %v111_v20  ;;  %v3922_v28 = vpop.eup %3921  ;;  %441 = vmatpush.msrb.mxu0 %v5303_v26  ;;  %v5477_v5 = vld [vmem:[%s12397_s1 + $0x550] sm:$0xff]  ;;  %v5521_v17 = vld [vmem:[%s12397_s1 + $0x98] sm:$0xff] }
  0x2b   :  { %501 = vmatpush.msrb.mxu3 %v239_v21  ;;  %v3924_v31 = vpop.eup %3923  ;;  %v5329_v34 = vadd.f32 1.0, %v3922_v28  ;;  %461 = vmatpush.msrb.mxu1 %v5308_v27  ;;  %v5500_v12 = vld [vmem:[%s12397_s1 + $0x110] sm:$0xff]  ;;  %v5526_v18 = vld [vmem:[%s12397_s1 + $0x498] sm:$0xff] }
  0x2c   :  { %482 = vmatpush.msrb.mxu2 %v103_v24  ;;  %v3926_v35 = vpop.eup %3925  ;;  %v5343_v38 = vadd.f32 1.0, %v3924_v31  ;;  %442 = vmatpush.msrb.mxu0 %v5322_v32  ;;  %v5505_v13 = vld [vmem:[%s12397_s1 + $0x510] sm:$0xff]  ;;  %v257_v31 = vld [vmem:[%s12397_s1 + $0x768] sm:$0xff] }
  0x2d   :  { %502 = vmatpush.msrb.mxu3 %v231_v25  ;;  %v5356_v41 = vadd.f32 1.0, %v3926_v35  ;;  %3927 = vrcp.f32 %v5329_v34  ;;  %462 = vmatpush.msrb.mxu1 %v5327_v33  ;;  %vm311_vm0 = vweird.f32 %v5329_v34  ;;  %v315_v61 = vand.u32 2147483647, %v5329_v34  ;;  %v5546_v25 = vld [vmem:[%s12397_s1 + $0xd0] sm:$0xff]  ;;  %v5568_v35 = vld [vmem:[%s12397_s1 + $0x458] sm:$0xff] }
  0x2e   :  { %483 = vmatpush.msrb.mxu2 %v5314_v29  ;;  %3929 = vrcp.f32 %v5343_v38  ;;  %443 = vmatpush.msrb.mxu0 %v5349_v39  ;;  %v317_v62 = vand.u32 2147483648, %v5329_v34  ;;  %v332_v3 = vand.u32 2147483648, %v5343_v38  ;;  %vm326_vm2 = vweird.f32 %v5343_v38  ;;  %v5551_v28 = vld [vmem:[%s12397_s1 + $0x4d0] sm:$0xff] }
  0x2f   :  { %503 = vmatpush.msrb.mxu3 %v223_v30  ;;  %3931 = vrcp.f32 %v5356_v41  ;;  %463 = vmatpush.msrb.mxu1 %v5354_v40  ;;  %v330_v8 = vand.u32 2147483647, %v5343_v38  ;;  %vm5529_vm5 = vcmp.eq.f32.partialorder %v315_v61, 8.507059e+37  ;;  %v5584_v61 = vld [vmem:[%s12397_s1 + $0x490] sm:$0xff]  ;;  %vm341_vm8 = vweird.f32 %v5356_v41 }
  0x30   :  { %484 = vmatpush.msrb.mxu2 %v5336_v36  ;;  %444 = vmatpush.msrb.mxu0 %v5377_v44  ;;  %3933 = vtanh.f32 %v288_v47  ;;  %v318_v15 = vor.u32 1.1754944e-38, %v317_v62  ;;  %v333_v24 = vor.u32 1.1754944e-38, %v332_v3  ;;  %v345_v14 = vand.u32 2147483647, %v5356_v41  ;;  %v5649_v21 = vld [vmem:[%s12397_s1 + $0x410] sm:$0xff] }
  0x31   :  { %504 = vmatpush.msrb.mxu3 %v5341_v37  ;;  %464 = vmatpush.msrb.mxu1 %v5382_v45  ;;  %vm5554_vm7 = vcmp.eq.f32.partialorder %v330_v8, 8.507059e+37  ;;  %v347_v8 = vand.u32 2147483648, %v5356_v41 }
  0x32   :  { %485 = vmatpush.msrb.mxu2 %v5364_v42  ;;  %433 = vmatmul.f32.vlgmr.msra.gmra.mxu3 %v12403_v53  ;;  %vm346_vm11 = vcmp.eq.f32.partialorder %v345_v14, 8.507059e+37  ;;  %v233_v14 = vld [vmem:[%s12397_s1 + $0x6a8] sm:$0xff] }
  0x33   :  { %505 = vmatpush.msrb.mxu3 %v5369_v43  ;;  %v5419_v52 = vpop.eup %3927  ;;  %445 = vmatpush.msrb.mxu0 %v5405_v49 }
  0x34   :  { %486 = vmatpush.msrb.mxu2 %v5390_v46  ;;  %v5433_v56 = vpop.eup %3929  ;;  %v307_v57 = vmul.f32 %v5419_v52, %v5329_v34  ;;  %465 = vmatpush.msrb.mxu1 %v5412_v50  ;;  %vm312_vm1 = vweird.f32 %v5419_v52  ;;  %v5563_v34 = vld [vmem:[%s12397_s1 + $0x58] sm:$0xff] }
  0x35   :  { %506 = vmatpush.msrb.mxu3 %v5400_v48  ;;  %v5449_v60 = vpop.eup %3931  ;;  %v322_v63 = vmul.f32 %v5433_v56, %v5343_v38  ;;  %446 = vmatpush.msrb.mxu0 %v5431_v55  ;;  %vm327_vm3 = vweird.f32 %v5433_v56  ;;  %vm5511_vm4 = vmor %vm311_vm0, %vm312_vm1 }
  0x36   :  { %487 = vmatpush.msrb.mxu2 %v5417_v51  ;;  %v308_v2 = vsub.f32 1.0, %v307_v57  ;;  %v337_v4 = vmul.f32 %v5449_v60, %v5356_v41  ;;  %466 = vmatpush.msrb.mxu1 %v5442_v58  ;;  %v3934_v19 = vpop.eup %3933  ;;  %vm5537_vm6 = vmor %vm326_vm2, %vm327_vm3  ;;  %v5579_v57 = vld [vmem:[%s12397_s1 + $0x90] sm:$0xff]  ;;  %vm342_vm9 = vweird.f32 %v5449_v60  ;;  %v265_v41 = vld [vmem:[%s12397_s1 + $0x7a8] sm:$0xff] }
  0x37   :  { %507 = vmatpush.msrb.mxu3 %v5426_v54  ;;  %v323_v7 = vsub.f32 1.0, %v322_v63  ;;  %447 = vmatpush.msrb.mxu0 %v5466_v1  ;;  %v5596_v63 = vld [vmem:[%s12397_s1 + $0x18] sm:$0xff]  ;;  %vm5638_vm10 = vmor %vm341_vm8, %vm342_vm9 }
  0x38   :  { %488 = vmatpush.msrb.mxu2 %v5447_v59  ;;  %v309_v10 = vmul.f32 %v5419_v52, %v308_v2  ;;  %v338_v11 = vsub.f32 1.0, %v337_v4  ;;  %467 = vmatpush.msrb.mxu1 %v5477_v5  ;;  %v5601_v2 = vld [vmem:[%s12397_s1 + $0x418] sm:$0xff]  ;;  %v5612_v4 = vld [vmem:[%s12397_s1 + $0x50] sm:$0xff] }
  0x39   :  { %508 = vmatpush.msrb.mxu3 %v5461_v0  ;;  %v324_v16 = vmul.f32 %v5433_v56, %v323_v7  ;;  %393 = vmatmul.f32.vlgmr.msra.gmra.mxu1 %v12403_v53  ;;  %v5617_v7 = vld [vmem:[%s12397_s1 + $0x450] sm:$0xff] }
  0x3a   :  { %489 = vmatpush.msrb.mxu2 %v5482_v6  ;;  %v310_v20 = vadd.f32 %v5419_v52, %v309_v10  ;;  %448 = vmatpush.msrb.mxu0 %v5500_v12  ;;  %v339_v47 = vmul.f32 %v5449_v60, %v338_v11 }
  0x3b   :  { %509 = vmatpush.msrb.mxu3 %v5492_v9  ;;  %v325_v30 = vadd.f32 %v5433_v56, %v324_v16  ;;  %468 = vmatpush.msrb.mxu1 %v5505_v13  ;;  %v5632_v16 = vld [vmem:[%s12397_s1 + $0x10] sm:$0xff] }
  0x3c   :  { %v314_v38 = vsel %vm5511_vm4, %v5419_v52, %v310_v20  ;;  %490 = vmatpush.msrb.mxu2 %v5521_v17  ;;  %449 = vmatpush.msrb.mxu0 %v5546_v25  ;;  %v340_v11 = vadd.f32 %v5449_v60, %v339_v47  ;;  %v249_v47 = vld [vmem:[%s12397_s1 + $0x728] sm:$0xff] }
  0x3d   :  { %510 = vmatpush.msrb.mxu3 %v5526_v18  ;;  %v319_v62 = vsel %vm5529_vm5, %v318_v15, %v314_v38  ;;  %v329_v52 = vsel %vm5537_vm6, %v5433_v56, %v325_v30  ;;  %469 = vmatpush.msrb.mxu1 %v5551_v28  ;;  %v273_v15 = vld [vmem:[%s12397_s1 + $0x7e8] sm:$0xff]  ;;  %v264_v38 = vld [vmem:[%s12397_s1 + $0x7a0] sm:$0xff] }
  0x3e   :  { %v334_v3 = vsel %vm5554_vm7, %v333_v24, %v329_v52  ;;  %v353_v56 = vmul.f32 %v3934_v19, %v319_v62  ;;  %491 = vmatpush.msrb.mxu2 %v5563_v34  ;;  %450 = vmatpush.msrb.mxu0 %v5579_v57  ;;  %v348_v24 = vor.u32 1.1754944e-38, %v347_v8  ;;  %v344_v30 = vsel %vm5638_vm10, %v5449_v60, %v340_v11  ;;  %v256_v60 = vld [vmem:[%s12397_s1 + $0x760] sm:$0xff]  ;;  %v241_v52 = vld [vmem:[%s12397_s1 + $0x6e8] sm:$0xff] }
  0x3f   :  { %511 = vmatpush.msrb.mxu3 %v5568_v35  ;;  %v352_v10 = vmul.f32 0.0, %v334_v3  ;;  %470 = vmatpush.msrb.mxu1 %v5584_v61  ;;  %v248_v3 = vld [vmem:[%s12397_s1 + $0x720] sm:$0xff]  ;;  %v5706_v19 = vld [vmem:[%s12397_s1 + $0x3a8] sm:$0xff] }
  0x40   :  { %492 = vmatpush.msrb.mxu2 %v5596_v63  ;;  %451 = vmatpush.msrb.mxu0 %v5612_v4  ;;  %v349_v62 = vsel %vm346_vm11, %v348_v24, %v344_v30  ;;  %v5693_v11 = vld [vmem:[%s12397_s1 + $0x3e0] sm:$0xff]  ;;  %v5724_v30 = vld [vmem:[%s12397_s1 + $0x368] sm:$0xff] }
  0x41   :  { %512 = vmatpush.msrb.mxu3 %v5601_v2  ;;  %v5642_v20 = vadd.f32 %v353_v56, %v352_v10  ;;  %471 = vmatpush.msrb.mxu1 %v5617_v7  ;;  %v5688_v10 = vld [vmem:[%s12397_s1 + $0x3e8] sm:$0xff]  ;;  %v232_v24 = vld [vmem:[%s12397_s1 + $0x6a0] sm:$0xff] }
  0x42   :  { %513 = vmatmul.f32.vlgmr.msrb.gmra.mxu3 %v12403_v53  ;;  %452 = vmatpush.msrb.mxu0 %v5632_v16 }
  0x43   :  { %3935 = vtanh.f32 %v5642_v20  ;;  %577 = vmatpush.msra.mxu3 %v273_v15  ;;  %472 = vmatpush.msrb.mxu1 %v5649_v21  ;;  %v240_v15 = vld [vmem:[%s12397_s1 + $0x6e0] sm:$0xff] }
  0x44   :  { %473 = vmatmul.f32.vlgmr.msrb.gmra.mxu1 %v12403_v53  ;;  %v5797_v53 = vld [vmem:[%s12397_s1 + $0x260] sm:$0xff] }
  0x45   :  { %578 = vmatpush.msra.mxu3 %v265_v41  ;;  %537 = vmatpush.msra.mxu1 %v272_v23  ;;  %v5711_v41 = vld [vmem:[%s12397_s1 + $0x3a0] sm:$0xff]  ;;  %v225_v23 = vld [vmem:[%s12397_s1 + $0x668] sm:$0xff]  ;;  %12998 = vst [vmem:[#allocation8_spill] sm:$0xff] %v5797_v53 }
  0x47   :  { %579 = vmatpush.msra.mxu3 %v257_v31  ;;  %538 = vmatpush.msra.mxu1 %v264_v38  ;;  %v5729_v31 = vld [vmem:[%s12397_s1 + $0x360] sm:$0xff]  ;;  %v217_v38 = vld [vmem:[%s12397_s1 + $0x628] sm:$0xff] }
  0x49   :  { %v3936_v56 = vpop.eup %3935  ;;  %580 = vmatpush.msra.mxu3 %v249_v47  ;;  %539 = vmatpush.msra.mxu1 %v256_v60  ;;  %v224_v47 = vld [vmem:[%s12397_s1 + $0x660] sm:$0xff]  ;;  %v5742_v60 = vld [vmem:[%s12397_s1 + $0x328] sm:$0xff] }
  0x4a   :  { %v5683_v8 = vmul.f32 %v3936_v56, %v349_v62  ;;  %12992 = vst [vmem:[#allocation2_spill] sm:$0xff] %v5742_v60  ;;  %v5747_v62 = vld [vmem:[%s12397_s1 + $0x320] sm:$0xff]  ;;  %v209_v56 = vld [vmem:[%s12397_s1 + $0x5e8] sm:$0xff] }
  0x4b   :  { %581 = vmatpush.msra.mxu3 %v241_v52  ;;  %540 = vmatpush.msra.mxu1 %v248_v3  ;;  %v5754_v52 = vld [vmem:[%s12397_s1 + $0x2e8] sm:$0xff]  ;;  %v5759_v3 = vld [vmem:[%s12397_s1 + $0x2e0] sm:$0xff] }
  0x4c   :  { %413 = vmatmul.f32.vlgmr.msra.gmra.mxu2 %v5683_v8  ;;  %373 = vmatmul.f32.vlgmr.msra.gmra.mxu0 %v5683_v8  ;;  %12993 = vst [vmem:[#allocation3_spill] sm:$0xff] %v5754_v52 }
  0x4d   :  { %557 = vmatpush.msra.mxu2 %v5688_v10  ;;  %517 = vmatpush.msra.mxu0 %v5693_v11  ;;  %12994 = vst [vmem:[#allocation4_spill] sm:$0xff] %v5759_v3 }
  0x4e   :  { %582 = vmatpush.msra.mxu3 %v233_v14  ;;  %541 = vmatpush.msra.mxu1 %v240_v15  ;;  %v216_v14 = vld [vmem:[%s12397_s1 + $0x620] sm:$0xff]  ;;  %v5773_v15 = vld [vmem:[%s12397_s1 + $0x2a8] sm:$0xff] }
  0x4f   :  { %558 = vmatpush.msra.mxu2 %v5706_v19  ;;  %518 = vmatpush.msra.mxu0 %v5711_v41  ;;  %12995 = vst [vmem:[#allocation5_spill] sm:$0xff] %v5773_v15 }
  0x50   :  { %583 = vmatpush.msra.mxu3 %v225_v23  ;;  %542 = vmatpush.msra.mxu1 %v232_v24  ;;  %v5778_v23 = vld [vmem:[%s12397_s1 + $0x2a0] sm:$0xff]  ;;  %v201_v24 = vld [vmem:[%s12397_s1 + $0x5a8] sm:$0xff] }
  0x51   :  { %559 = vmatpush.msra.mxu2 %v5724_v30  ;;  %519 = vmatpush.msra.mxu0 %v5729_v31  ;;  %12996 = vst [vmem:[#allocation6_spill] sm:$0xff] %v5778_v23 }
  0x52   :  { %584 = vmatpush.msra.mxu3 %v217_v38  ;;  %543 = vmatpush.msra.mxu1 %v224_v47  ;;  %v208_v38 = vld [vmem:[%s12397_s1 + $0x5e0] sm:$0xff]  ;;  %v5792_v47 = vld [vmem:[%s12397_s1 + $0x268] sm:$0xff] }
  0x53   :  { %560 = vmatpush.msra.mxu2 %v5742_v60  ;;  %520 = vmatpush.msra.mxu0 %v5747_v62  ;;  %12997 = vst [vmem:[#allocation7_spill] sm:$0xff] %v5792_v47  ;;  %v5810_v60 = vld [vmem:[%s12397_s1 + $0x228] sm:$0xff] }
  0x54   :  { %493 = vmatmul.f32.vlgmr.msrb.gmra.mxu2 %v5683_v8  ;;  %453 = vmatmul.f32.vlgmr.msrb.gmra.mxu0 %v5683_v8  ;;  %12999 = vst [vmem:[#allocation9_spill] sm:$0xff] %v5810_v60 }
  0x55   :  { %561 = vmatpush.msra.mxu2 %v5754_v52  ;;  %521 = vmatpush.msra.mxu0 %v5759_v3  ;;  %v193_v52 = vld [vmem:[%s12397_s1 + $0x568] sm:$0xff]  ;;  %v200_v3 = vld [vmem:[%s12397_s1 + $0x5a0] sm:$0xff] }
  0x56   :  { %585 = vmatpush.msra.mxu3 %v209_v56  ;;  %544 = vmatpush.msra.mxu1 %v216_v14  ;;  %v5815_v56 = vld [vmem:[%s12397_s1 + $0x220] sm:$0xff]  ;;  %v185_v14 = vld [vmem:[%s12397_s1 + $0x528] sm:$0xff] }
  0x57   :  { %562 = vmatpush.msra.mxu2 %v5773_v15  ;;  %522 = vmatpush.msra.mxu0 %v5778_v23  ;;  %13000 = vst [vmem:[#allocation10_spill] sm:$0xff] %v5815_v56  ;;  %v192_v15 = vld [vmem:[%s12397_s1 + $0x560] sm:$0xff]  ;;  %v5828_v23 = vld [vmem:[%s12397_s1 + $0x1e8] sm:$0xff] }
  0x58   :  { %586 = vmatpush.msra.mxu3 %v201_v24  ;;  %545 = vmatpush.msra.mxu1 %v208_v38  ;;  %13001 = vst [vmem:[#allocation11_spill] sm:$0xff] %v5828_v23  ;;  %v5833_v24 = vld [vmem:[%s12397_s1 + $0x1e0] sm:$0xff]  ;;  %v177_v38 = vld [vmem:[%s12397_s1 + $0x4e8] sm:$0xff] }
  0x59   :  { %563 = vmatpush.msra.mxu2 %v5792_v47  ;;  %523 = vmatpush.msra.mxu0 %v5797_v53  ;;  %13002 = vst [vmem:[#allocation12_spill] sm:$0xff] %v5833_v24  ;;  %v184_v47 = vld [vmem:[%s12397_s1 + $0x520] sm:$0xff]  ;;  %v5846_v53 = vld [vmem:[%s12397_s1 + $0x1a8] sm:$0xff] }
  0x5a   :  { %587 = vmatpush.msra.mxu3 %v193_v52  ;;  %546 = vmatpush.msra.mxu1 %v200_v3  ;;  %13003 = vst [vmem:[#allocation13_spill] sm:$0xff] %v5846_v53  ;;  %v5851_v52 = vld [vmem:[%s12397_s1 + $0x1a0] sm:$0xff]  ;;  %v169_v3 = vld [vmem:[%s12397_s1 + $0x4a8] sm:$0xff] }
  0x5b   :  { %564 = vmatpush.msra.mxu2 %v5810_v60  ;;  %524 = vmatpush.msra.mxu0 %v5815_v56  ;;  %13004 = vst [vmem:[#allocation14_spill] sm:$0xff] %v5851_v52  ;;  %v176_v60 = vld [vmem:[%s12397_s1 + $0x4e0] sm:$0xff]  ;;  %v5864_v56 = vld [vmem:[%s12397_s1 + $0x168] sm:$0xff] }
  0x5c   :  { %588 = vmatpush.msra.mxu3 %v185_v14  ;;  %547 = vmatpush.msra.mxu1 %v192_v15  ;;  %13005 = vst [vmem:[#allocation15_spill] sm:$0xff] %v5864_v56  ;;  %v5869_v15 = vld [vmem:[%s12397_s1 + $0x160] sm:$0xff]  ;;  %v161_v14 = vld [vmem:[%s12397_s1 + $0x468] sm:$0xff] }
  0x5d   :  { %565 = vmatpush.msra.mxu2 %v5828_v23  ;;  %525 = vmatpush.msra.mxu0 %v5833_v24  ;;  %13006 = vst [vmem:[#allocation16_spill] sm:$0xff] %v5869_v15  ;;  %v168_v23 = vld [vmem:[%s12397_s1 + $0x4a0] sm:$0xff]  ;;  %v5882_v24 = vld [vmem:[%s12397_s1 + $0x128] sm:$0xff] }
  0x5e   :  { %589 = vmatpush.msra.mxu3 %v177_v38  ;;  %548 = vmatpush.msra.mxu1 %v184_v47  ;;  %13007 = vst [vmem:[#allocation17_spill] sm:$0xff] %v5882_v24  ;;  %v5887_v47 = vld [vmem:[%s12397_s1 + $0x120] sm:$0xff]  ;;  %v153_v38 = vld [vmem:[%s12397_s1 + $0x428] sm:$0xff] }
  0x5f   :  { %566 = vmatpush.msra.mxu2 %v5846_v53  ;;  %526 = vmatpush.msra.mxu0 %v5851_v52  ;;  %13008 = vst [vmem:[#allocation18_spill] sm:$0xff] %v5887_v47  ;;  %v160_v53 = vld [vmem:[%s12397_s1 + $0x460] sm:$0xff]  ;;  %v5900_v52 = vld [vmem:[%s12397_s1 + $0xe8] sm:$0xff] }
  0x60   :  { %590 = vmatpush.msra.mxu3 %v169_v3  ;;  %549 = vmatpush.msra.mxu1 %v176_v60  ;;  %13009 = vst [vmem:[#allocation19_spill] sm:$0xff] %v5900_v52  ;;  %v5905_v60 = vld [vmem:[%s12397_s1 + $0xe0] sm:$0xff]  ;;  %v275_v3 = vld [vmem:[%s12397_s1 + $0x7f8] sm:$0xff] }
  0x61   :  { %567 = vmatpush.msra.mxu2 %v5864_v56  ;;  %527 = vmatpush.msra.mxu0 %v5869_v15  ;;  %13010 = vst [vmem:[#allocation20_spill] sm:$0xff] %v5905_v60  ;;  %v152_v56 = vld [vmem:[%s12397_s1 + $0x420] sm:$0xff]  ;;  %v5918_v15 = vld [vmem:[%s12397_s1 + $0xa8] sm:$0xff] }
  0x62   :  { %591 = vmatpush.msra.mxu3 %v161_v14  ;;  %550 = vmatpush.msra.mxu1 %v168_v23  ;;  %13011 = vst [vmem:[#allocation21_spill] sm:$0xff] %v5918_v15  ;;  %v5923_v23 = vld [vmem:[%s12397_s1 + $0xa0] sm:$0xff]  ;;  %v267_v14 = vld [vmem:[%s12397_s1 + $0x7b8] sm:$0xff] }
  0x63   :  { %568 = vmatpush.msra.mxu2 %v5882_v24  ;;  %528 = vmatpush.msra.mxu0 %v5887_v47  ;;  %13012 = vst [vmem:[#allocation22_spill] sm:$0xff] %v5923_v23  ;;  %v274_v24 = vld [vmem:[%s12397_s1 + $0x7f0] sm:$0xff]  ;;  %v5936_v47 = vld [vmem:[%s12397_s1 + $0x68] sm:$0xff] }
  0x64   :  { %592 = vmatpush.msra.mxu3 %v153_v38  ;;  %551 = vmatpush.msra.mxu1 %v160_v53  ;;  %13013 = vst [vmem:[#allocation23_spill] sm:$0xff] %v5936_v47  ;;  %v5941_v53 = vld [vmem:[%s12397_s1 + $0x60] sm:$0xff]  ;;  %v259_v38 = vld [vmem:[%s12397_s1 + $0x778] sm:$0xff] }
  0x65   :  { %569 = vmatpush.msra.mxu2 %v5900_v52  ;;  %529 = vmatpush.msra.mxu0 %v5905_v60  ;;  %13014 = vst [vmem:[#allocation24_spill] sm:$0xff] %v5941_v53  ;;  %v266_v52 = vld [vmem:[%s12397_s1 + $0x7b0] sm:$0xff]  ;;  %v5954_v60 = vld [vmem:[%s12397_s1 + $0x28] sm:$0xff] }
  0x66   :  { %657 = vmatpush.msrb.mxu3 %v275_v3  ;;  %552 = vmatpush.msra.mxu1 %v152_v56  ;;  %13015 = vst [vmem:[#allocation25_spill] sm:$0xff] %v5954_v60  ;;  %v5959_v56 = vld [vmem:[%s12397_s1 + $0x20] sm:$0xff]  ;;  %v5966_v3 = vld [vmem:[%s12397_s1 + $0x3f8] sm:$0xff] }
  0x67   :  { %570 = vmatpush.msra.mxu2 %v5918_v15  ;;  %530 = vmatpush.msra.mxu0 %v5923_v23  ;;  %13016 = vst [vmem:[#allocation26_spill] sm:$0xff] %v5959_v56  ;;  %v5971_v15 = vld [vmem:[%s12397_s1 + $0x3f0] sm:$0xff]  ;;  %v6049_v23 = vld [vmem:[%s12397_s1 + $0x2b8] sm:$0xff] }
  0x68   :  { %658 = vmatpush.msrb.mxu3 %v267_v14  ;;  %617 = vmatpush.msrb.mxu1 %v274_v24  ;;  %13017 = vst [vmem:[#allocation27_spill] sm:$0xff] %v5966_v3  ;;  %v251_v24 = vld [vmem:[%s12397_s1 + $0x738] sm:$0xff] }
  0x69   :  { %571 = vmatpush.msra.mxu2 %v5936_v47  ;;  %531 = vmatpush.msra.mxu0 %v5941_v53  ;;  %13018 = vst [vmem:[#allocation28_spill] sm:$0xff] %v5971_v15  ;;  %v5981_v14 = vld [vmem:[%s12397_s1 + $0x3b8] sm:$0xff]  ;;  %v5986_v47 = vld [vmem:[%s12397_s1 + $0x3b0] sm:$0xff] }
  0x6a   :  { %659 = vmatpush.msrb.mxu3 %v259_v38  ;;  %618 = vmatpush.msrb.mxu1 %v266_v52  ;;  %13019 = vst [vmem:[#allocation29_spill] sm:$0xff] %v5981_v14  ;;  %v258_v52 = vld [vmem:[%s12397_s1 + $0x770] sm:$0xff]  ;;  %v5996_v38 = vld [vmem:[%s12397_s1 + $0x378] sm:$0xff] }
  0x6b   :  { %572 = vmatpush.msra.mxu2 %v5954_v60  ;;  %532 = vmatpush.msra.mxu0 %v5959_v56  ;;  %13020 = vst [vmem:[#allocation30_spill] sm:$0xff] %v5986_v47  ;;  %v6002_v60 = vld [vmem:[%s12397_s1 + $0x370] sm:$0xff]  ;;  %v13024_v56 = vmov 0.0  }
  0x6c   :  { %13021 = vst [vmem:[#allocation31_spill] sm:$0xff] %v5996_v38  ;;  %660 = vmatpush.msrb.mxu3 %v251_v24  ;;  %573 = vmatmul.f32.vlgmr.msra.gmra.mxu2 %v5683_v8  ;;  %v6015_v24 = vld [vmem:[%s12397_s1 + $0x338] sm:$0xff]  ;;  %v242_v53 = vld [vmem:[%s12397_s1 + $0x6f0] sm:$0xff] }
  0x6d   :  { %637 = vmatpush.msrb.mxu2 %v5966_v3  ;;  %597 = vmatpush.msrb.mxu0 %v5971_v15  ;;  %13022 = vst [vmem:[#allocation32_spill] sm:$0xff] %v6002_v60  ;;  %v243_v3 = vld [vmem:[%s12397_s1 + $0x6f8] sm:$0xff]  ;;  %v250_v15 = vld [vmem:[%s12397_s1 + $0x730] sm:$0xff] }
  0x6e   :  { %13023 = vst [vmem:[#allocation33_spill] sm:$0xff] %v6015_v24  ;;  %593 = vmatmul.f32.vlgmr.msra.gmra.mxu3 %v13024_v56  ;;  %619 = vmatpush.msrb.mxu1 %v258_v52  ;;  %v6034_v52 = vld [vmem:[%s12397_s1 + $0x2f8] sm:$0xff] }
  0x6f   :  { %638 = vmatpush.msrb.mxu2 %v5981_v14  ;;  %598 = vmatpush.msrb.mxu0 %v5986_v47  ;;  %v6021_v14 = vld [vmem:[%s12397_s1 + $0x330] sm:$0xff]  ;;  %v235_v47 = vld [vmem:[%s12397_s1 + $0x6b8] sm:$0xff]  ;;  %13025 = vst [vmem:[#allocation34_spill] sm:$0xff] %v6034_v52 }
  0x70   :  { %661 = vmatpush.msrb.mxu3 %v243_v3  ;;  %620 = vmatpush.msrb.mxu1 %v250_v15  ;;  %13027 = vst [vmem:[#allocation36_spill] sm:$0xff] %v6049_v23  ;;  %v6056_v15 = vld [vmem:[%s12397_s1 + $0x2b0] sm:$0xff] }
  0x71   :  { %639 = vmatpush.msrb.mxu2 %v5996_v38  ;;  %599 = vmatpush.msrb.mxu0 %v6002_v60  ;;  %v6039_v38 = vld [vmem:[%s12397_s1 + $0x2f0] sm:$0xff]  ;;  %v227_v60 = vld [vmem:[%s12397_s1 + $0x678] sm:$0xff]  ;;  %13028 = vst [vmem:[#allocation37_spill] sm:$0xff] %v6056_v15 }
  0x72   :  { %13026 = vst [vmem:[#allocation35_spill] sm:$0xff] %v6039_v38  ;;  %662 = vmatpush.msrb.mxu3 %v235_v47  ;;  %621 = vmatpush.msrb.mxu1 %v242_v53  ;;  %v234_v3 = vld [vmem:[%s12397_s1 + $0x6b0] sm:$0xff]  ;;  %v219_v47 = vld [vmem:[%s12397_s1 + $0x638] sm:$0xff] }
  0x73   :  { %640 = vmatpush.msrb.mxu2 %v6015_v24  ;;  %600 = vmatpush.msrb.mxu0 %v6021_v14  ;;  %v6064_v24 = vld [vmem:[%s12397_s1 + $0x278] sm:$0xff]  ;;  %v6075_v53 = vld [vmem:[%s12397_s1 + $0x270] sm:$0xff] }
  0x74   :  { %13029 = vst [vmem:[#allocation38_spill] sm:$0xff] %v6064_v24  ;;  %663 = vmatpush.msrb.mxu3 %v227_v60  ;;  %533 = vmatmul.f32.vlgmr.msra.gmra.mxu0 %v5683_v8  ;;  %v6084_v60 = vld [vmem:[%s12397_s1 + $0x238] sm:$0xff] }
  0x75   :  { %641 = vmatpush.msrb.mxu2 %v6034_v52  ;;  %601 = vmatpush.msrb.mxu0 %v6039_v38  ;;  %13030 = vst [vmem:[#allocation39_spill] sm:$0xff] %v6075_v53  ;;  %v226_v52 = vld [vmem:[%s12397_s1 + $0x670] sm:$0xff] }
  0x76   :  { %553 = vmatmul.f32.vlgmr.msra.gmra.mxu1 %v13024_v56  ;;  %13031 = vst [vmem:[#allocation40_spill] sm:$0xff] %v6084_v60  ;;  %664 = vmatpush.msrb.mxu3 %v219_v47  ;;  %v6093_v38 = vld [vmem:[%s12397_s1 + $0x230] sm:$0xff]  ;;  %v203_v47 = vld [vmem:[%s12397_s1 + $0x5b8] sm:$0xff] }
  0x77   :  { %642 = vmatpush.msrb.mxu2 %v6049_v23  ;;  %602 = vmatpush.msrb.mxu0 %v6056_v15  ;;  %v211_v23 = vld [vmem:[%s12397_s1 + $0x5f8] sm:$0xff]  ;;  %13032 = vst [vmem:[#allocation41_spill] sm:$0xff] %v6093_v38 }
  0x78   :  { %622 = vmatpush.msrb.mxu1 %v234_v3  ;;  %v218_v3 = vld [vmem:[%s12397_s1 + $0x630] sm:$0xff]  ;;  %v6102_v15 = vld [vmem:[%s12397_s1 + $0x1f8] sm:$0xff]  ;;  %665 = vmatpush.msrb.mxu3 %v211_v23 }
  0x79   :  { %643 = vmatpush.msrb.mxu2 %v6064_v24  ;;  %603 = vmatpush.msrb.mxu0 %v6075_v53  ;;  %13033 = vst [vmem:[#allocation42_spill] sm:$0xff] %v6102_v15  ;;  %v6111_v24 = vld [vmem:[%s12397_s1 + $0x1f0] sm:$0xff]  ;;  %v6120_v53 = vld [vmem:[%s12397_s1 + $0x1b8] sm:$0xff] }
  0x7a   :  { %623 = vmatpush.msrb.mxu1 %v226_v52  ;;  %13034 = vst [vmem:[#allocation43_spill] sm:$0xff] %v6111_v24  ;;  %v210_v52 = vld [vmem:[%s12397_s1 + $0x5f0] sm:$0xff]  ;;  %v195_v23 = vld [vmem:[%s12397_s1 + $0x578] sm:$0xff]  ;;  %666 = vmatpush.msrb.mxu3 %v203_v47 }
  0x7b   :  { %644 = vmatpush.msrb.mxu2 %v6084_v60  ;;  %604 = vmatpush.msrb.mxu0 %v6093_v38  ;;  %13035 = vst [vmem:[#allocation44_spill] sm:$0xff] %v6120_v53  ;;  %v6129_v60 = vld [vmem:[%s12397_s1 + $0x1b0] sm:$0xff]  ;;  %v6138_v38 = vld [vmem:[%s12397_s1 + $0x178] sm:$0xff] }
  0x7c   :  { %624 = vmatpush.msrb.mxu1 %v218_v3  ;;  %13036 = vst [vmem:[#allocation45_spill] sm:$0xff] %v6129_v60  ;;  %v202_v3 = vld [vmem:[%s12397_s1 + $0x5b0] sm:$0xff]  ;;  %v187_v47 = vld [vmem:[%s12397_s1 + $0x538] sm:$0xff]  ;;  %667 = vmatpush.msrb.mxu3 %v195_v23 }
  0x7d   :  { %645 = vmatpush.msrb.mxu2 %v6102_v15  ;;  %605 = vmatpush.msrb.mxu0 %v6111_v24  ;;  %13037 = vst [vmem:[#allocation46_spill] sm:$0xff] %v6138_v38  ;;  %v6147_v15 = vld [vmem:[%s12397_s1 + $0x170] sm:$0xff]  ;;  %v6156_v24 = vld [vmem:[%s12397_s1 + $0x138] sm:$0xff] }
  0x7e   :  { %625 = vmatpush.msrb.mxu1 %v210_v52  ;;  %13038 = vst [vmem:[#allocation47_spill] sm:$0xff] %v6147_v15  ;;  %v194_v52 = vld [vmem:[%s12397_s1 + $0x570] sm:$0xff]  ;;  %v179_v23 = vld [vmem:[%s12397_s1 + $0x4f8] sm:$0xff]  ;;  %668 = vmatpush.msrb.mxu3 %v187_v47 }
  0x7f   :  { %646 = vmatpush.msrb.mxu2 %v6120_v53  ;;  %606 = vmatpush.msrb.mxu0 %v6129_v60  ;;  %13039 = vst [vmem:[#allocation48_spill] sm:$0xff] %v6156_v24  ;;  %v6165_v53 = vld [vmem:[%s12397_s1 + $0x130] sm:$0xff]  ;;  %v6174_v60 = vld [vmem:[%s12397_s1 + $0xf8] sm:$0xff] }
  0x80   :  { %626 = vmatpush.msrb.mxu1 %v202_v3  ;;  %13040 = vst [vmem:[#allocation49_spill] sm:$0xff] %v6165_v53  ;;  %v186_v3 = vld [vmem:[%s12397_s1 + $0x530] sm:$0xff]  ;;  %v171_v47 = vld [vmem:[%s12397_s1 + $0x4b8] sm:$0xff]  ;;  %669 = vmatpush.msrb.mxu3 %v179_v23 }
  0x81   :  { %647 = vmatpush.msrb.mxu2 %v6138_v38  ;;  %607 = vmatpush.msrb.mxu0 %v6147_v15  ;;  %13041 = vst [vmem:[#allocation50_spill] sm:$0xff] %v6174_v60  ;;  %v6183_v38 = vld [vmem:[%s12397_s1 + $0xf0] sm:$0xff]  ;;  %v6192_v15 = vld [vmem:[%s12397_s1 + $0xb8] sm:$0xff] }
  0x82   :  { %627 = vmatpush.msrb.mxu1 %v194_v52  ;;  %13042 = vst [vmem:[#allocation51_spill] sm:$0xff] %v6183_v38  ;;  %v178_v52 = vld [vmem:[%s12397_s1 + $0x4f0] sm:$0xff]  ;;  %v163_v23 = vld [vmem:[%s12397_s1 + $0x478] sm:$0xff]  ;;  %670 = vmatpush.msrb.mxu3 %v171_v47 }
  0x83   :  { %648 = vmatpush.msrb.mxu2 %v6156_v24  ;;  %608 = vmatpush.msrb.mxu0 %v6165_v53  ;;  %v6201_v24 = vld [vmem:[%s12397_s1 + $0xb0] sm:$0xff]  ;;  %v6212_v53 = vld [vmem:[%s12397_s1 + $0x78] sm:$0xff] }
  0x84   :  { %628 = vmatpush.msrb.mxu1 %v186_v3  ;;  %v6206_v3 = vld [vmem:[%s12397_s1 + $0x4b0] sm:$0xff]  ;;  %v155_v47 = vld [vmem:[%s12397_s1 + $0x438] sm:$0xff]  ;;  %671 = vmatpush.msrb.mxu3 %v163_v23 }
  0x85   :  { %649 = vmatpush.msrb.mxu2 %v6174_v60  ;;  %13043 = vst [vmem:[#allocation52_spill] sm:$0xff] %v6206_v3  ;;  %609 = vmatpush.msrb.mxu0 %v6183_v38  ;;  %v6221_v60 = vld [vmem:[%s12397_s1 + $0x70] sm:$0xff]  ;;  %v6233_v38 = vld [vmem:[%s12397_s1 + $0x38] sm:$0xff] }
  0x86   :  { %629 = vmatpush.msrb.mxu1 %v178_v52  ;;  %v6226_v52 = vld [vmem:[%s12397_s1 + $0x470] sm:$0xff]  ;;  %672 = vmatpush.msrb.mxu3 %v155_v47  ;;  %v6258_v47 = vld [vmem:[%s12397_s1 + $0x3c0] sm:$0xff] }
  0x87   :  { %650 = vmatpush.msrb.mxu2 %v6192_v15  ;;  %13044 = vst [vmem:[#allocation53_spill] sm:$0xff] %v6226_v52  ;;  %610 = vmatpush.msrb.mxu0 %v6201_v24  ;;  %v6239_v23 = vld [vmem:[%s12397_s1 + $0x30] sm:$0xff] }
  0x88   :  { %630 = vmatpush.msrb.mxu1 %v6206_v3  ;;  %v6246_v3 = vld [vmem:[%s12397_s1 + $0x430] sm:$0xff]  ;;  %673 = vmatmul.f32.vlgmr.msrb.gmra.mxu3 %v13024_v56 }
  0x89   :  { %651 = vmatpush.msrb.mxu2 %v6212_v53  ;;  %611 = vmatpush.msrb.mxu0 %v6221_v60  ;;  %13045 = vst [vmem:[#allocation54_spill] sm:$0xff] %v6246_v3 }
  0x8a   :  { %631 = vmatpush.msrb.mxu1 %v6226_v52  ;;  %v6264_v52 = vld [vmem:[%s12397_s1 + $0x3c8] sm:$0xff] }
  0x8b   :  { %652 = vmatpush.msrb.mxu2 %v6233_v38  ;;  %612 = vmatpush.msrb.mxu0 %v6239_v23  ;;  %13046 = vst [vmem:[#allocation55_spill] sm:$0xff] %v6264_v52 }
  0x8c   :  { %653 = vmatmul.f32.vlgmr.msrb.gmra.mxu2 %v5683_v8  ;;  %632 = vmatpush.msrb.mxu1 %v6246_v3  ;;  %v6282_v3 = vld [vmem:[%s12397_s1 + $0x7c8] sm:$0xff] }
  0x8d   :  { %613 = vmatmul.f32.vlgmr.msrb.gmra.mxu0 %v5683_v8  ;;  %633 = vmatmul.f32.vlgmr.msrb.gmra.mxu1 %v13024_v56  ;;  %v6270_v8 = vld [vmem:[%s12397_s1 + $0x7c0] sm:$0xff]  ;;  %13049 = vst [vmem:[#allocation58_spill] sm:$0xff] %v6282_v3 }
  0x8e   :  { %816 = vmatpush.msra.mxu0 %v6258_v47  ;;  %856 = vmatpush.msra.mxu2 %v6264_v52  ;;  %13047 = vst [vmem:[#allocation56_spill] sm:$0xff] %v6270_v8  ;;  %v6276_v56 = vld [vmem:[%s12397_s1 + $0x380] sm:$0xff]  ;;  %v6288_v52 = vld [vmem:[%s12397_s1 + $0x388] sm:$0xff] }
  0x8f   :  { %836 = vmatpush.msra.mxu1 %v6270_v8  ;;  %13048 = vst [vmem:[#allocation57_spill] sm:$0xff] %v6276_v56  ;;  %876 = vmatpush.msra.mxu3 %v6282_v3  ;;  %v6294_v8 = vld [vmem:[%s12397_s1 + $0x780] sm:$0xff]  ;;  %v6306_v3 = vld [vmem:[%s12397_s1 + $0x788] sm:$0xff] }
  0x90   :  { %817 = vmatpush.msra.mxu0 %v6276_v56  ;;  %13050 = vst [vmem:[#allocation59_spill] sm:$0xff] %v6288_v52  ;;  %857 = vmatpush.msra.mxu2 %v6288_v52  ;;  %v6300_v56 = vld [vmem:[%s12397_s1 + $0x340] sm:$0xff]  ;;  %v6312_v52 = vld [vmem:[%s12397_s1 + $0x348] sm:$0xff] }
  0x91   :  { %13051 = vst [vmem:[#allocation60_spill] sm:$0xff] %v6294_v8  ;;  %837 = vmatpush.msra.mxu1 %v6294_v8  ;;  %877 = vmatpush.msra.mxu3 %v6306_v3  ;;  %v6318_v8 = vld [vmem:[%s12397_s1 + $0x740] sm:$0xff] }
  0x92   :  { %13052 = vst [vmem:[#allocation61_spill] sm:$0xff] %v6300_v56  ;;  %818 = vmatpush.msra.mxu0 %v6300_v56  ;;  %858 = vmatpush.msra.mxu2 %v6312_v52  ;;  %v6324_v56 = vld [vmem:[%s12397_s1 + $0x300] sm:$0xff] }
  0x93   :  { %13053 = vst [vmem:[#allocation62_spill] sm:$0xff] %v6306_v3  ;;  %838 = vmatpush.msra.mxu1 %v6318_v8  ;;  %v6330_v3 = vld [vmem:[%s12397_s1 + $0x748] sm:$0xff] }
  0x94   :  { %13054 = vst [vmem:[#allocation63_spill] sm:$0xff] %v6312_v52  ;;  %819 = vmatpush.msra.mxu0 %v6324_v56  ;;  %878 = vmatpush.msra.mxu3 %v6330_v3  ;;  %v6336_v52 = vld [vmem:[%s12397_s1 + $0x308] sm:$0xff] }
  0x95   :  { %13055 = vst [vmem:[#allocation64_spill] sm:$0xff] %v6318_v8  ;;  %859 = vmatpush.msra.mxu2 %v6336_v52  ;;  %v6342_v8 = vld [vmem:[%s12397_s1 + $0x700] sm:$0xff] }
  0x96   :  { %13056 = vst [vmem:[#allocation65_spill] sm:$0xff] %v6324_v56  ;;  %839 = vmatpush.msra.mxu1 %v6342_v8  ;;  %v6348_v56 = vld [vmem:[%s12397_s1 + $0x2c0] sm:$0xff] }
  0x97   :  { %13057 = vst [vmem:[#allocation66_spill] sm:$0xff] %v6330_v3  ;;  %820 = vmatpush.msra.mxu0 %v6348_v56  ;;  %v6354_v3 = vld [vmem:[%s12397_s1 + $0x708] sm:$0xff] }
  0x98   :  { %13058 = vst [vmem:[#allocation67_spill] sm:$0xff] %v6336_v52  ;;  %879 = vmatpush.msra.mxu3 %v6354_v3  ;;  %v6360_v52 = vld [vmem:[%s12397_s1 + $0x2c8] sm:$0xff] }
  0x99   :  { %13059 = vst [vmem:[#allocation68_spill] sm:$0xff] %v6342_v8  ;;  %860 = vmatpush.msra.mxu2 %v6360_v52  ;;  %v6366_v8 = vld [vmem:[%s12397_s1 + $0x6c0] sm:$0xff] }
  0x9a   :  { %13060 = vst [vmem:[#allocation69_spill] sm:$0xff] %v6348_v56  ;;  %840 = vmatpush.msra.mxu1 %v6366_v8  ;;  %v6372_v56 = vld [vmem:[%s12397_s1 + $0x280] sm:$0xff] }
  0x9b   :  { %13061 = vst [vmem:[#allocation70_spill] sm:$0xff] %v6354_v3  ;;  %821 = vmatpush.msra.mxu0 %v6372_v56  ;;  %v6378_v3 = vld [vmem:[%s12397_s1 + $0x6c8] sm:$0xff] }
  0x9c   :  { %13062 = vst [vmem:[#allocation71_spill] sm:$0xff] %v6360_v52  ;;  %880 = vmatpush.msra.mxu3 %v6378_v3  ;;  %v6384_v52 = vld [vmem:[%s12397_s1 + $0x288] sm:$0xff] }
  0x9d   :  { %13063 = vst [vmem:[#allocation72_spill] sm:$0xff] %v6366_v8  ;;  %861 = vmatpush.msra.mxu2 %v6384_v52  ;;  %v6390_v8 = vld [vmem:[%s12397_s1 + $0x680] sm:$0xff] }
  0x9e   :  { %13064 = vst [vmem:[#allocation73_spill] sm:$0xff] %v6372_v56  ;;  %841 = vmatpush.msra.mxu1 %v6390_v8  ;;  %v6396_v56 = vld [vmem:[%s12397_s1 + $0x240] sm:$0xff] }
  0x9f   :  { %13065 = vst [vmem:[#allocation74_spill] sm:$0xff] %v6378_v3  ;;  %822 = vmatpush.msra.mxu0 %v6396_v56  ;;  %v6402_v3 = vld [vmem:[%s12397_s1 + $0x688] sm:$0xff] }
  0xa0   :  { %13066 = vst [vmem:[#allocation75_spill] sm:$0xff] %v6384_v52  ;;  %881 = vmatpush.msra.mxu3 %v6402_v3  ;;  %v6408_v52 = vld [vmem:[%s12397_s1 + $0x248] sm:$0xff] }
  0xa1   :  { %13067 = vst [vmem:[#allocation76_spill] sm:$0xff] %v6390_v8  ;;  %862 = vmatpush.msra.mxu2 %v6408_v52  ;;  %v6414_v8 = vld [vmem:[%s12397_s1 + $0x640] sm:$0xff] }
  0xa2   :  { %13068 = vst [vmem:[#allocation77_spill] sm:$0xff] %v6396_v56  ;;  %842 = vmatpush.msra.mxu1 %v6414_v8  ;;  %v6420_v56 = vld [vmem:[%s12397_s1 + $0x200] sm:$0xff] }
  0xa3   :  { %13069 = vst [vmem:[#allocation78_spill] sm:$0xff] %v6402_v3  ;;  %823 = vmatpush.msra.mxu0 %v6420_v56  ;;  %v6426_v3 = vld [vmem:[%s12397_s1 + $0x648] sm:$0xff] }
  0xa4   :  { %13070 = vst [vmem:[#allocation79_spill] sm:$0xff] %v6408_v52  ;;  %882 = vmatpush.msra.mxu3 %v6426_v3  ;;  %v6432_v52 = vld [vmem:[%s12397_s1 + $0x208] sm:$0xff] }
  0xa5   :  { %13071 = vst [vmem:[#allocation80_spill] sm:$0xff] %v6414_v8  ;;  %863 = vmatpush.msra.mxu2 %v6432_v52  ;;  %v6438_v8 = vld [vmem:[%s12397_s1 + $0x600] sm:$0xff] }
  0xa6   :  { %13072 = vst [vmem:[#allocation81_spill] sm:$0xff] %v6420_v56  ;;  %843 = vmatpush.msra.mxu1 %v6438_v8  ;;  %v6444_v56 = vld [vmem:[%s12397_s1 + $0x1c0] sm:$0xff] }
  0xa7   :  { %13073 = vst [vmem:[#allocation82_spill] sm:$0xff] %v6426_v3  ;;  %824 = vmatpush.msra.mxu0 %v6444_v56  ;;  %v6450_v3 = vld [vmem:[%s12397_s1 + $0x608] sm:$0xff] }
  0xa8   :  { %13074 = vst [vmem:[#allocation83_spill] sm:$0xff] %v6432_v52  ;;  %883 = vmatpush.msra.mxu3 %v6450_v3  ;;  %v6456_v52 = vld [vmem:[%s12397_s1 + $0x1c8] sm:$0xff] }
  0xa9   :  { %13075 = vst [vmem:[#allocation84_spill] sm:$0xff] %v6438_v8  ;;  %864 = vmatpush.msra.mxu2 %v6456_v52  ;;  %v6462_v8 = vld [vmem:[%s12397_s1 + $0x5c0] sm:$0xff] }
  0xaa   :  { %13076 = vst [vmem:[#allocation85_spill] sm:$0xff] %v6444_v56  ;;  %844 = vmatpush.msra.mxu1 %v6462_v8  ;;  %v6468_v56 = vld [vmem:[%s12397_s1 + $0x180] sm:$0xff] }
  0xab   :  { %13077 = vst [vmem:[#allocation86_spill] sm:$0xff] %v6450_v3  ;;  %825 = vmatpush.msra.mxu0 %v6468_v56  ;;  %v6474_v3 = vld [vmem:[%s12397_s1 + $0x5c8] sm:$0xff] }
  0xac   :  { %13078 = vst [vmem:[#allocation87_spill] sm:$0xff] %v6456_v52  ;;  %884 = vmatpush.msra.mxu3 %v6474_v3  ;;  %v6480_v52 = vld [vmem:[%s12397_s1 + $0x188] sm:$0xff] }
  0xad   :  { %13079 = vst [vmem:[#allocation88_spill] sm:$0xff] %v6462_v8  ;;  %865 = vmatpush.msra.mxu2 %v6480_v52  ;;  %v6486_v8 = vld [vmem:[%s12397_s1 + $0x580] sm:$0xff] }
  0xae   :  { %13080 = vst [vmem:[#allocation89_spill] sm:$0xff] %v6468_v56  ;;  %845 = vmatpush.msra.mxu1 %v6486_v8  ;;  %v6492_v56 = vld [vmem:[%s12397_s1 + $0x140] sm:$0xff] }
  0xaf   :  { %13081 = vst [vmem:[#allocation90_spill] sm:$0xff] %v6474_v3  ;;  %826 = vmatpush.msra.mxu0 %v6492_v56  ;;  %v6498_v3 = vld [vmem:[%s12397_s1 + $0x588] sm:$0xff] }
  0xb0   :  { %13082 = vst [vmem:[#allocation91_spill] sm:$0xff] %v6480_v52  ;;  %885 = vmatpush.msra.mxu3 %v6498_v3  ;;  %v6504_v52 = vld [vmem:[%s12397_s1 + $0x148] sm:$0xff] }
  0xb1   :  { %13083 = vst [vmem:[#allocation92_spill] sm:$0xff] %v6486_v8  ;;  %866 = vmatpush.msra.mxu2 %v6504_v52  ;;  %v6510_v8 = vld [vmem:[%s12397_s1 + $0x540] sm:$0xff] }
  0xb2   :  { %13084 = vst [vmem:[#allocation93_spill] sm:$0xff] %v6492_v56  ;;  %846 = vmatpush.msra.mxu1 %v6510_v8  ;;  %v6516_v56 = vld [vmem:[%s12397_s1 + $0x100] sm:$0xff] }
  0xb3   :  { %13085 = vst [vmem:[#allocation94_spill] sm:$0xff] %v6498_v3  ;;  %827 = vmatpush.msra.mxu0 %v6516_v56  ;;  %v6522_v3 = vld [vmem:[%s12397_s1 + $0x548] sm:$0xff] }
  0xb4   :  { %13086 = vst [vmem:[#allocation95_spill] sm:$0xff] %v6504_v52  ;;  %886 = vmatpush.msra.mxu3 %v6522_v3  ;;  %v6528_v52 = vld [vmem:[%s12397_s1 + $0x108] sm:$0xff] }
  0xb5   :  { %13087 = vst [vmem:[#allocation96_spill] sm:$0xff] %v6510_v8  ;;  %867 = vmatpush.msra.mxu2 %v6528_v52  ;;  %v6534_v8 = vld [vmem:[%s12397_s1 + $0x500] sm:$0xff] }
  0xb6   :  { %13088 = vst [vmem:[#allocation97_spill] sm:$0xff] %v6516_v56  ;;  %847 = vmatpush.msra.mxu1 %v6534_v8  ;;  %v6540_v56 = vld [vmem:[%s12397_s1 + $0xc0] sm:$0xff] }
  0xb7   :  { %13089 = vst [vmem:[#allocation98_spill] sm:$0xff] %v6522_v3  ;;  %828 = vmatpush.msra.mxu0 %v6540_v56  ;;  %v6546_v3 = vld [vmem:[%s12397_s1 + $0x508] sm:$0xff] }
  0xb8   :  { %13090 = vst [vmem:[#allocation99_spill] sm:$0xff] %v6528_v52  ;;  %887 = vmatpush.msra.mxu3 %v6546_v3  ;;  %v6552_v52 = vld [vmem:[%s12397_s1 + $0xc8] sm:$0xff] }
  0xb9   :  { %13091 = vst [vmem:[#allocation100_spill] sm:$0xff] %v6534_v8  ;;  %868 = vmatpush.msra.mxu2 %v6552_v52  ;;  %v6558_v8 = vld [vmem:[%s12397_s1 + $0x4c0] sm:$0xff] }
  0xba   :  { %13092 = vst [vmem:[#allocation101_spill] sm:$0xff] %v6540_v56  ;;  %848 = vmatpush.msra.mxu1 %v6558_v8  ;;  %v6564_v56 = vld [vmem:[%s12397_s1 + $0x80] sm:$0xff] }
  0xbb   :  { %13093 = vst [vmem:[#allocation102_spill] sm:$0xff] %v6546_v3  ;;  %829 = vmatpush.msra.mxu0 %v6564_v56  ;;  %v6570_v3 = vld [vmem:[%s12397_s1 + $0x4c8] sm:$0xff] }
  0xbc   :  { %13094 = vst [vmem:[#allocation103_spill] sm:$0xff] %v6552_v52  ;;  %888 = vmatpush.msra.mxu3 %v6570_v3  ;;  %v6576_v52 = vld [vmem:[%s12397_s1 + $0x88] sm:$0xff] }
  0xbd   :  { %13095 = vst [vmem:[#allocation104_spill] sm:$0xff] %v6558_v8  ;;  %869 = vmatpush.msra.mxu2 %v6576_v52  ;;  %v6582_v8 = vld [vmem:[%s12397_s1 + $0x480] sm:$0xff] }
  0xbe   :  { %13096 = vst [vmem:[#allocation105_spill] sm:$0xff] %v6564_v56  ;;  %849 = vmatpush.msra.mxu1 %v6582_v8  ;;  %v6588_v56 = vld [vmem:[%s12397_s1 + $0x40] sm:$0xff] }
  0xbf   :  { %13097 = vst [vmem:[#allocation106_spill] sm:$0xff] %v6570_v3  ;;  %830 = vmatpush.msra.mxu0 %v6588_v56  ;;  %v6594_v3 = vld [vmem:[%s12397_s1 + $0x488] sm:$0xff] }
  0xc0   :  { %13098 = vst [vmem:[#allocation107_spill] sm:$0xff] %v6576_v52  ;;  %889 = vmatpush.msra.mxu3 %v6594_v3  ;;  %v6600_v52 = vld [vmem:[%s12397_s1 + $0x48] sm:$0xff] }
  0xc1   :  { %13099 = vst [vmem:[#allocation108_spill] sm:$0xff] %v6582_v8  ;;  %870 = vmatpush.msra.mxu2 %v6600_v52  ;;  %v6606_v8 = vld [vmem:[%s12397_s1 + $0x440] sm:$0xff] }
  0xc2   :  { %13100 = vst [vmem:[#allocation109_spill] sm:$0xff] %v6588_v56  ;;  %850 = vmatpush.msra.mxu1 %v6606_v8  ;;  %v6612_v56 = vld [vmem:[%s12397_s1] sm:$0xff] }
  0xc3   :  { %13101 = vst [vmem:[#allocation110_spill] sm:$0xff] %v6594_v3  ;;  %831 = vmatpush.msra.mxu0 %v6612_v56  ;;  %v6618_v3 = vld [vmem:[%s12397_s1 + $0x448] sm:$0xff] }
  0xc4   :  { %13102 = vst [vmem:[#allocation111_spill] sm:$0xff] %v6600_v52  ;;  %890 = vmatpush.msra.mxu3 %v6618_v3  ;;  %v6624_v52 = vld [vmem:[%s12397_s1 + $0x8] sm:$0xff] }
  0xc5   :  { %13103 = vst [vmem:[#allocation112_spill] sm:$0xff] %v6606_v8  ;;  %871 = vmatpush.msra.mxu2 %v6624_v52  ;;  %v6630_v8 = vld [vmem:[%s12397_s1 + $0x3d0] sm:$0xff] }
  0xc6   :  { %13104 = vst [vmem:[#allocation113_spill] sm:$0xff] %v6612_v56  ;;  %896 = vmatpush.msrb.mxu0 %v6630_v8  ;;  %v6636_v56 = vld [vmem:[%s12397_s1 + $0x3d8] sm:$0xff] }
  0xc7   :  { %13105 = vst [vmem:[#allocation114_spill] sm:$0xff] %v6618_v3  ;;  %936 = vmatpush.msrb.mxu2 %v6636_v56  ;;  %v6642_v3 = vld [vmem:[%s12397_s1 + $0x400] sm:$0xff] }
  0xc8   :  { %13106 = vst [vmem:[#allocation115_spill] sm:$0xff] %v6624_v52  ;;  %851 = vmatpush.msra.mxu1 %v6642_v3  ;;  %v6648_v52 = vld [vmem:[%s12397_s1 + $0x390] sm:$0xff] }
  0xc9   :  { %13107 = vst [vmem:[#allocation116_spill] sm:$0xff] %v6630_v8  ;;  %897 = vmatpush.msrb.mxu0 %v6648_v52  ;;  %v6654_v8 = vld [vmem:[%s12397_s1 + $0x408] sm:$0xff] }
  0xca   :  { %13108 = vst [vmem:[#allocation117_spill] sm:$0xff] %v6636_v56  ;;  %891 = vmatpush.msra.mxu3 %v6654_v8  ;;  %v6660_v56 = vld [vmem:[%s12397_s1 + $0x398] sm:$0xff] }
  0xcb   :  { %13109 = vst [vmem:[#allocation118_spill] sm:$0xff] %v6642_v3  ;;  %937 = vmatpush.msrb.mxu2 %v6660_v56  ;;  %v6666_v3 = vld [vmem:[%s12397_s1 + $0x7d0] sm:$0xff] }
  0xcc   :  { %13110 = vst [vmem:[#allocation119_spill] sm:$0xff] %v6648_v52  ;;  %916 = vmatpush.msrb.mxu1 %v6666_v3  ;;  %v6672_v52 = vld [vmem:[%s12397_s1 + $0x350] sm:$0xff] }
  0xcd   :  { %13111 = vst [vmem:[#allocation120_spill] sm:$0xff] %v6654_v8  ;;  %898 = vmatpush.msrb.mxu0 %v6672_v52  ;;  %v6678_v8 = vld [vmem:[%s12397_s1 + $0x7d8] sm:$0xff] }
  0xce   :  { %13112 = vst [vmem:[#allocation121_spill] sm:$0xff] %v6660_v56  ;;  %956 = vmatpush.msrb.mxu3 %v6678_v8  ;;  %v6684_v56 = vld [vmem:[%s12397_s1 + $0x358] sm:$0xff] }
  0xcf   :  { %13113 = vst [vmem:[#allocation122_spill] sm:$0xff] %v6666_v3  ;;  %938 = vmatpush.msrb.mxu2 %v6684_v56  ;;  %v6690_v3 = vld [vmem:[%s12397_s1 + $0x790] sm:$0xff]  ;;  %899 = vmatpush.msrb.mxu0 %v5289_v22  ;;  %v6716_v22 = vld [vmem:[%s12397_s1 + $0x758] sm:$0xff] }
  0xd0   :  { %13114 = vst [vmem:[#allocation123_spill] sm:$0xff] %v6678_v8  ;;  %917 = vmatpush.msrb.mxu1 %v6690_v3  ;;  %v6697_v8 = vld [vmem:[%s12397_s1 + $0x798] sm:$0xff] }
  0xd1   :  { %13115 = vst [vmem:[#allocation124_spill] sm:$0xff] %v6684_v56  ;;  %957 = vmatpush.msrb.mxu3 %v6697_v8  ;;  %v6703_v56 = vld [vmem:[%s12397_s1 + $0x318] sm:$0xff]  ;;  %900 = vmatpush.msrb.mxu0 %v5303_v26 }
  0xd2   :  { %13116 = vst [vmem:[#allocation125_spill] sm:$0xff] %v6690_v3  ;;  %939 = vmatpush.msrb.mxu2 %v6703_v56  ;;  %v6709_v3 = vld [vmem:[%s12397_s1 + $0x750] sm:$0xff]  ;;  %v6735_v26 = vld [vmem:[%s12397_s1 + $0x718] sm:$0xff] }
  0xd3   :  { %13117 = vst [vmem:[#allocation126_spill] sm:$0xff] %v6697_v8  ;;  %918 = vmatpush.msrb.mxu1 %v6709_v3  ;;  %958 = vmatpush.msrb.mxu3 %v6716_v22  ;;  %v6722_v8 = vld [vmem:[%s12397_s1 + $0x2d8] sm:$0xff] }
  0xd4   :  { %13118 = vst [vmem:[#allocation127_spill] sm:$0xff] %v6709_v3  ;;  %940 = vmatpush.msrb.mxu2 %v6722_v8  ;;  %v6728_v3 = vld [vmem:[%s12397_s1 + $0x710] sm:$0xff]  ;;  %901 = vmatpush.msrb.mxu0 %v5322_v32  ;;  %v6749_v32 = vld [vmem:[%s12397_s1 + $0x6d8] sm:$0xff] }
  0xd5   :  { %13119 = vst [vmem:[#allocation128_spill] sm:$0xff] %v6716_v22  ;;  %919 = vmatpush.msrb.mxu1 %v6728_v3  ;;  %959 = vmatpush.msrb.mxu3 %v6735_v26  ;;  %v6741_v22 = vld [vmem:[%s12397_s1 + $0x298] sm:$0xff] }
  0xd6   :  { %13120 = vst [vmem:[#allocation129_spill] sm:$0xff] %v6735_v26  ;;  %941 = vmatpush.msrb.mxu2 %v6741_v22  ;;  %902 = vmatpush.msrb.mxu0 %v5349_v39  ;;  %v6758_v26 = vld [vmem:[%s12397_s1 + $0x698] sm:$0xff] }
  0xd7   :  { %920 = vmatpush.msrb.mxu1 %v5308_v27  ;;  %960 = vmatpush.msrb.mxu3 %v6749_v32  ;;  %v6767_v27 = vld [vmem:[%s12397_s1 + $0x658] sm:$0xff] }
  0xd8   :  { %942 = vmatpush.msrb.mxu2 %v5314_v29  ;;  %903 = vmatpush.msrb.mxu0 %v5377_v44  ;;  %v394_v29 = vpop.f32.mrf.mxu1  ;;  %v3850_v44 = vld [vmem:[%s12398_s0 + $0x28] sm:$0xff] }
  0xd9   :  { %921 = vmatpush.msrb.mxu1 %v5327_v33  ;;  %961 = vmatpush.msrb.mxu3 %v6758_v26  ;;  %v374_v33 = vpop.f32.mrf.mxu0 }
  0xda   :  { %943 = vmatpush.msrb.mxu2 %v5336_v36  ;;  %904 = vmatpush.msrb.mxu0 %v5405_v49  ;;  %v3849_v36 = vld [vmem:[%s12398_s0 + $0x20] sm:$0xff] }
  0xdb   :  { %922 = vmatpush.msrb.mxu1 %v5354_v40  ;;  %962 = vmatpush.msrb.mxu3 %v6767_v27  ;;  %v434_v40 = vpop.f32.mrf.mxu3 }
  0xdc   :  { %944 = vmatpush.msrb.mxu2 %v5364_v42  ;;  %905 = vmatpush.msrb.mxu0 %v5431_v55  ;;  %v3852_v55 = vld [vmem:[%s12398_s0 + $0x38] sm:$0xff] }
  0xdd   :  { %923 = vmatpush.msrb.mxu1 %v5382_v45  ;;  %963 = vmatpush.msrb.mxu3 %v5341_v37  ;;  %v395_v37 = vadd.f32 %v394_v29, %v374_v33 }
  0xde   :  { %945 = vmatpush.msrb.mxu2 %v5390_v46  ;;  %906 = vmatpush.msrb.mxu0 %v5466_v1 }
  0xdf   :  { %924 = vmatpush.msrb.mxu1 %v5412_v50  ;;  %964 = vmatpush.msrb.mxu3 %v5369_v43  ;;  %v749_v39 = vadd.f32 %v3849_v36, %v395_v37  ;;  %v414_v43 = vpop.f32.mrf.mxu2 }
  0xe0   :  { %946 = vmatpush.msrb.mxu2 %v5417_v51  ;;  %907 = vmatpush.msrb.mxu0 %v5500_v12  ;;  %v435_v45 = vadd.f32 %v434_v40, %v414_v43  ;;  %v474_v1 = vpop.f32.mrf.mxu1 }
  0xe1   :  { %925 = vmatpush.msrb.mxu1 %v5442_v58  ;;  %965 = vmatpush.msrb.mxu3 %v5400_v48  ;;  %v3853_v42 = vmul.f32 -1.442695, %v749_v39 }
  0xe2   :  { %947 = vmatpush.msrb.mxu2 %v5447_v59  ;;  %908 = vmatpush.msrb.mxu0 %v5546_v25  ;;  %v750_v46 = vadd.f32 %v3850_v44, %v435_v45 }
  0xe3   :  { %926 = vmatpush.msrb.mxu1 %v5477_v5  ;;  %966 = vmatpush.msrb.mxu3 %v5426_v54  ;;  %3937 = vpow2.f32 %v3853_v42  ;;  %v514_v49 = vpop.f32.mrf.mxu3 }
  0xe4   :  { %948 = vmatpush.msrb.mxu2 %v5482_v6  ;;  %909 = vmatpush.msrb.mxu0 %v5579_v57  ;;  %v3854_v48 = vmul.f32 -1.442695, %v750_v46 }
  0xe5   :  { %927 = vmatpush.msrb.mxu1 %v5505_v13  ;;  %967 = vmatpush.msrb.mxu3 %v5461_v0  ;;  %v454_v0 = vpop.f32.mrf.mxu0  ;;  %v3851_v13 = vld [vmem:[%s12398_s0 + $0x30] sm:$0xff] }
  0xe6   :  { %949 = vmatpush.msrb.mxu2 %v5521_v17  ;;  %910 = vmatpush.msrb.mxu0 %v5612_v4  ;;  %3939 = vpow2.f32 %v3854_v48  ;;  %v475_v12 = vadd.f32 %v474_v1, %v454_v0 }
  0xe7   :  { %928 = vmatpush.msrb.mxu1 %v5551_v28  ;;  %968 = vmatpush.msrb.mxu3 %v5492_v9  ;;  %v494_v54 = vpop.f32.mrf.mxu2 }
  0xe8   :  { %950 = vmatpush.msrb.mxu2 %v5563_v34  ;;  %911 = vmatpush.msrb.mxu0 %v5632_v16  ;;  %v515_v58 = vadd.f32 %v514_v49, %v494_v54  ;;  %v751_v25 = vadd.f32 %v3851_v13, %v475_v12 }
  0xe9   :  { %929 = vmatpush.msrb.mxu1 %v5584_v61  ;;  %969 = vmatpush.msrb.mxu3 %v5526_v18  ;;  %v3938_v50 = vpop.eup %3937 }
  0xea   :  { %951 = vmatpush.msrb.mxu2 %v5596_v63  ;;  %v762_v51 = vadd.f32 1.0, %v3938_v50  ;;  %v752_v59 = vadd.f32 %v3852_v55, %v515_v58  ;;  %v6824_v50 = vld [vmem:[%s12399_s2] sm:$0xf] }
  0xeb   :  { %930 = vmatpush.msrb.mxu1 %v5617_v7  ;;  %970 = vmatpush.msrb.mxu3 %v5568_v35  ;;  %v6828_v1 = vperm.slane %v6824_v50, 1  ;;  %v6833_v12 = vperm.slane %v6824_v50, 0 }
  0xec   :  { %3941 = vrcp.f32 %v762_v51  ;;  %v3940_v5 = vpop.eup %3939  ;;  %v3855_v6 = vmul.f32 -1.442695, %v752_v59  ;;  %vm770_vm12 = vweird.f32 %v762_v51  ;;  %v774_v34 = vand.u32 2147483647, %v762_v51 }
  0xed   :  { %931 = vmatpush.msrb.mxu1 %v5649_v21  ;;  %971 = vmatpush.msrb.mxu3 %v5601_v2  ;;  %v763_v9 = vadd.f32 1.0, %v3940_v5  ;;  %v776_v35 = vand.u32 2147483648, %v762_v51  ;;  %13123 = vst [vmem:[#allocation130_spill] sm:$0xff] %v6828_v1 }
  0xee   :  { %3943 = vpow2.f32 %v3855_v6  ;;  %vm775_vm15 = vcmp.eq.f32.partialorder %v774_v34, 8.507059e+37  ;;  %13124 = vst [vmem:[#allocation131_spill] sm:$0xff] %v6833_v12 }
  0xef   :  { %3945 = vrcp.f32 %v763_v9  ;;  %vm785_vm0 = vweird.f32 %v763_v9  ;;  %v791_v21 = vand.u32 2147483648, %v763_v9  ;;  %v777_v29 = vor.u32 1.1754944e-38, %v776_v35  ;;  %v574_v59 = vpop.f32.mrf.mxu2 }
  0xf0   :  { %3947 = vtanh.f32 %v751_v25  ;;  %v789_v37 = vand.u32 2147483647, %v763_v9 }
  0xf1   :  { %v792_v42 = vor.u32 1.1754944e-38, %v791_v21  ;;  %v594_v13 = vpop.f32.mrf.mxu3 }
  0xf2   :  { %v3942_v17 = vpop.eup %3941  ;;  %vm790_vm3 = vcmp.eq.f32.partialorder %v789_v37, 8.507059e+37 }
  0xf3   :  { %v766_v18 = vmul.f32 %v3942_v17, %v762_v51  ;;  %vm771_vm13 = vweird.f32 %v3942_v17 }
  0xf4   :  { %v3944_v57 = vpop.eup %3943  ;;  %vm6815_vm14 = vmor %vm770_vm12, %vm771_vm13 }
  0xf5   :  { %v767_v28 = vsub.f32 1.0, %v766_v18  ;;  %v3946_v63 = vpop.eup %3945  ;;  %v764_v2 = vadd.f32 1.0, %v3944_v57  ;;  %v595_v18 = vadd.f32 %v594_v13, %v574_v59  ;;  %v6880_v59 = vperm.slane %v6824_v50, 2  ;;  %v13139_v13 = vld [vmem:[#allocation13_spill] sm:$0xff] }
  0xf6   :  { %v781_v7 = vmul.f32 %v3946_v63, %v763_v9  ;;  %vm786_vm1 = vweird.f32 %v3946_v63  ;;  %v3948_v40 = vpop.eup %3947  ;;  %v534_v9 = vpop.f32.mrf.mxu0 }
  0xf7   :  { %v768_v61 = vmul.f32 %v3942_v17, %v767_v28  ;;  %3949 = vrcp.f32 %v764_v2  ;;  %vm787_vm2 = vmor %vm785_vm0, %vm786_vm1  ;;  %vm800_vm4 = vweird.f32 %v764_v2  ;;  %v806_v55 = vand.u32 2147483648, %v764_v2 }
  0xf8   :  { %v782_v33 = vsub.f32 1.0, %v781_v7  ;;  %v804_v0 = vand.u32 2147483647, %v764_v2  ;;  %v678_v34 = vadd.f32 %v595_v18, %v6828_v1 }
  0xf9   :  { %v769_v16 = vadd.f32 %v3942_v17, %v768_v61  ;;  %v807_v28 = vor.u32 1.1754944e-38, %v806_v55  ;;  %v13136_v55 = vld [vmem:[#allocation11_spill] sm:$0xff] }
  0xfa   :  { %v783_v39 = vmul.f32 %v3946_v63, %v782_v33  ;;  %vm805_vm7 = vcmp.eq.f32.partialorder %v804_v0, 8.507059e+37  ;;  %v3847_v61 = vmul.f32 -1.442695, %v678_v34 }
  0xfb   :  { %v773_v36 = vsel %vm6815_vm14, %v3942_v17, %v769_v16  ;;  %v554_v17 = vpop.f32.mrf.mxu1 }
  0xfc   :  { %v778_v43 = vsel %vm775_vm15, %v777_v29, %v773_v36  ;;  %v784_v44 = vadd.f32 %v3946_v63, %v783_v39  ;;  %v13128_v36 = vld [vmem:[#allocation6_spill] sm:$0xff]  ;;  %v13130_v39 = vld [vmem:[#allocation8_spill] sm:$0xff] }
  0xfd   :  { %v3950_v45 = vpop.eup %3949  ;;  %v812_v49 = vmul.f32 %v3948_v40, %v778_v43  ;;  %v13131_v40 = vld [vmem:[#allocation7_spill] sm:$0xff]  ;;  %v13133_v43 = vld [vmem:[#allocation9_spill] sm:$0xff] }
  0xfe   :  { %v796_v46 = vmul.f32 %v3950_v45, %v764_v2  ;;  %v788_v48 = vsel %vm787_vm2, %v3946_v63, %v784_v44  ;;  %vm801_vm5 = vweird.f32 %v3950_v45 }
  0xff   :  { %v793_v51 = vsel %vm790_vm3, %v792_v42, %v788_v48  ;;  %vm802_vm6 = vmor %vm800_vm4, %vm801_vm5  ;;  %v13132_v42 = vld [vmem:[#allocation10_spill] sm:$0xff] }
 0x100   :  { %v797_v54 = vsub.f32 1.0, %v796_v46  ;;  %v811_v58 = vmul.f32 %v793_v51, %v5642_v20  ;;  %v555_v20 = vadd.f32 %v554_v17, %v534_v9  ;;  %v6875_v46 = vperm.slane %v6824_v50, 3  ;;  %v13138_v9 = vld [vmem:[#allocation14_spill] sm:$0xff] }
 0x102   :  { %v798_v5 = vmul.f32 %v3950_v45, %v797_v54  ;;  %v6830_v6 = vadd.f32 %v812_v49, %v811_v58  ;;  %v677_v57 = vadd.f32 %v555_v20, %v6833_v12  ;;  %v13135_v54 = vld [vmem:[#allocation12_spill] sm:$0xff] }
 0x104   :  { %v799_v25 = vadd.f32 %v3950_v45, %v798_v5  ;;  %3951 = vtanh.f32 %v6830_v6  ;;  %v3846_v2 = vmul.f32 -1.442695, %v677_v57  ;;  %v13143_v57 = vld [vmem:[#allocation17_spill] sm:$0xff] }
 0x105   :  { %3953 = vpow2.f32 %v3847_v61 }
 0x106   :  { %v803_v35 = vsel %vm802_vm6, %v3950_v45, %v799_v25  ;;  %3955 = vpow2.f32 %v3846_v2  ;;  %v13140_v25 = vld [vmem:[#allocation16_spill] sm:$0xff] }
 0x107   :  { %v808_v63 = vsel %vm805_vm7, %v807_v28, %v803_v35  ;;  %v13141_v28 = vld [vmem:[#allocation15_spill] sm:$0xff]  ;;  %v13142_v35 = vld [vmem:[#allocation18_spill] sm:$0xff] }
 0x10a   :  { %v3952_v4 = vpop.eup %3951  ;;  %v614_v44 = vpop.f32.mrf.mxu0 }
 0x10b   :  { %v6838_v7 = vmul.f32 %v3952_v4, %v808_v63  ;;  %v3954_v16 = vpop.eup %3953  ;;  %v634_v45 = vpop.f32.mrf.mxu1 }
 0x10c   :  { %v3956_v21 = vpop.eup %3955  ;;  %v6846_v29 = vadd.f32 1.0, %v3954_v16  ;;  %v674_v48 = vpop.f32.mrf.mxu3  ;;  %v635_v0 = vadd.f32 %v634_v45, %v614_v44  ;;  %v13154_v45 = vld [vmem:[#allocation26_spill] sm:$0xff] }
 0x10d   :  { %832 = vmatmul.f32.vlgmr.msra.gmra.mxu0 %v6838_v7  ;;  %872 = vmatmul.f32.vlgmr.msra.gmra.mxu2 %v6838_v7  ;;  %v6848_v33 = vadd.f32 1.0, %v3956_v21 }
 0x10e   :  { %976 = vmatpush.msra.mxu0 %v5693_v11  ;;  %1016 = vmatpush.msra.mxu2 %v5688_v10  ;;  %3957 = vrcp.f32 %v6846_v29  ;;  %v13125_v10 = vld [vmem:[#allocation2_spill] sm:$0xff]  ;;  %v13126_v11 = vld [vmem:[#allocation4_spill] sm:$0xff]  ;;  %vm713_vm8 = vweird.f32 %v6846_v29  ;;  %v679_v50 = vadd.f32 %v635_v0, %v6880_v59  ;;  %v719_v61 = vand.u32 2147483648, %v6846_v29 }
 0x10f   :  { %3959 = vrcp.f32 %v6848_v33  ;;  %13134 = vst [vmem:[#allocation2_spill] sm:$0xff] %v6875_v46  ;;  %v654_v58 = vpop.f32.mrf.mxu2  ;;  %vm698_vm10 = vweird.f32 %v6848_v33  ;;  %v704_v63 = vand.u32 2147483648, %v6848_v33  ;;  %v702_v4 = vand.u32 2147483647, %v6848_v33  ;;  %v13158_v0 = vld [vmem:[#allocation30_spill] sm:$0xff] }
 0x110   :  { %977 = vmatpush.msra.mxu0 %v5711_v41  ;;  %1017 = vmatpush.msra.mxu2 %v5706_v19  ;;  %v13127_v19 = vld [vmem:[#allocation3_spill] sm:$0xff]  ;;  %13137 = vst [vmem:[#allocation4_spill] sm:$0xff] %v6880_v59  ;;  %v675_v5 = vadd.f32 %v674_v48, %v654_v58  ;;  %v13155_v48 = vld [vmem:[#allocation25_spill] sm:$0xff] }
 0x111   :  { %vm703_vm14 = vcmp.eq.f32.partialorder %v702_v4, 8.507059e+37  ;;  %v13167_v4 = vld [vmem:[#allocation39_spill] sm:$0xff] }
 0x112   :  { %978 = vmatpush.msra.mxu0 %v5729_v31  ;;  %1018 = vmatpush.msra.mxu2 %v5724_v30  ;;  %v13129_v31 = vld [vmem:[#allocation5_spill] sm:$0xff]  ;;  %v680_v17 = vadd.f32 %v675_v5, %v6875_v46 }
 0x113   :  { %v13159_v5 = vld [vmem:[#allocation29_spill] sm:$0xff] }
 0x114   :  { %979 = vmatpush.msra.mxu0 %v5747_v62  ;;  %1019 = vmatpush.msra.mxu2 %v13125_v10  ;;  %v6860_v41 = vpop.eup %3957  ;;  %v3848_v34 = vmul.f32 -1.442695, %v680_v17  ;;  %v717_v10 = vand.u32 2147483647, %v6846_v29 }
 0x115   :  { %912 = vmatmul.f32.vlgmr.msrb.gmra.mxu0 %v6838_v7  ;;  %952 = vmatmul.f32.vlgmr.msrb.gmra.mxu2 %v6838_v7  ;;  %v6864_v30 = vpop.eup %3959  ;;  %v709_v37 = vmul.f32 %v6860_v41, %v6846_v29  ;;  %vm714_vm9 = vweird.f32 %v6860_v41 }
 0x116   :  { %980 = vmatpush.msra.mxu0 %v13126_v11  ;;  %1020 = vmatpush.msra.mxu2 %v13127_v19  ;;  %v694_v62 = vmul.f32 %v6864_v30, %v6848_v33  ;;  %vm699_vm11 = vweird.f32 %v6864_v30  ;;  %3961 = vpow2.f32 %v3848_v34  ;;  %vm6901_vm12 = vmor %vm713_vm8, %vm714_vm9  ;;  %v13146_v11 = vld [vmem:[#allocation20_spill] sm:$0xff]  ;;  %v13147_v19 = vld [vmem:[#allocation19_spill] sm:$0xff]  ;;  %vm718_vm15 = vcmp.eq.f32.partialorder %v717_v10, 8.507059e+37 }
 0x117   :  { %v710_v51 = vsub.f32 1.0, %v709_v37  ;;  %vm6908_vm13 = vmor %vm698_vm10, %vm699_vm11  ;;  %3963 = vtanh.f32 %v679_v50  ;;  %v13151_v33 = vld [vmem:[#allocation21_spill] sm:$0xff]  ;;  %v705_v37 = vor.u32 1.1754944e-38, %v704_v63  ;;  %v13164_v50 = vld [vmem:[#allocation34_spill] sm:$0xff] }
 0x118   :  { %981 = vmatpush.msra.mxu0 %v13128_v36  ;;  %1021 = vmatpush.msra.mxu2 %v13129_v31  ;;  %v695_v49 = vsub.f32 1.0, %v694_v62  ;;  %v13150_v31 = vld [vmem:[#allocation22_spill] sm:$0xff]  ;;  %v720_v62 = vor.u32 1.1754944e-38, %v719_v61  ;;  %v13166_v61 = vld [vmem:[#allocation36_spill] sm:$0xff]  ;;  %v13169_v10 = vld [vmem:[#allocation41_spill] sm:$0xff] }
 0x119   :  { %v711_v18 = vmul.f32 %v6860_v41, %v710_v51 }
 0x11a   :  { %982 = vmatpush.msra.mxu0 %v13130_v39  ;;  %1022 = vmatpush.msra.mxu2 %v13131_v40  ;;  %v696_v20 = vmul.f32 %v6864_v30, %v695_v49  ;;  %v13152_v40 = vld [vmem:[#allocation24_spill] sm:$0xff] }
 0x11b   :  { %v712_v16 = vadd.f32 %v6860_v41, %v711_v18 }
 0x11c   :  { %983 = vmatpush.msra.mxu0 %v13132_v42  ;;  %1023 = vmatpush.msra.mxu2 %v13133_v43  ;;  %v697_v2 = vadd.f32 %v6864_v30, %v696_v20  ;;  %v13153_v42 = vld [vmem:[#allocation23_spill] sm:$0xff]  ;;  %v3962_v43 = vpop.eup %3961 }
 0x11d   :  { %v716_v29 = vsel %vm6901_vm12, %v6860_v41, %v712_v16  ;;  %v692_v44 = vadd.f32 1.0, %v3962_v43  ;;  %v3964_v49 = vpop.eup %3963  ;;  %v13156_v41 = vld [vmem:[#allocation28_spill] sm:$0xff]  ;;  %v13163_v20 = vld [vmem:[#allocation35_spill] sm:$0xff]  ;;  %v6958_v43 = vld [vmem:[%s12397_s1 + $0x7e0] sm:$0xff] }
 0x11e   :  { %984 = vmatpush.msra.mxu0 %v13135_v54  ;;  %1024 = vmatpush.msra.mxu2 %v13136_v55  ;;  %v701_v39 = vsel %vm6908_vm13, %v6864_v30, %v697_v2  ;;  %v721_v54 = vsel %vm718_vm15, %v720_v62, %v716_v29  ;;  %v13157_v30 = vld [vmem:[#allocation27_spill] sm:$0xff]  ;;  %v13172_v62 = vld [vmem:[#allocation42_spill] sm:$0xff]  ;;  %v13174_v29 = vld [vmem:[#allocation44_spill] sm:$0xff] }
 0x11f   :  { %v706_v51 = vsel %vm703_vm14, %v705_v37, %v701_v39  ;;  %3965 = vrcp.f32 %v692_v44  ;;  %v739_v55 = vmul.f32 0.0, %v721_v54  ;;  %v732_v2 = vand.u32 2147483647, %v692_v44  ;;  %v13173_v39 = vld [vmem:[#allocation45_spill] sm:$0xff]  ;;  %v13179_v54 = vld [vmem:[#allocation51_spill] sm:$0xff] }
 0x120   :  { %985 = vmatpush.msra.mxu0 %v13138_v9  ;;  %1025 = vmatpush.msra.mxu2 %v13139_v13  ;;  %v740_v58 = vmul.f32 %v3964_v49, %v706_v51  ;;  %v13160_v9 = vld [vmem:[#allocation32_spill] sm:$0xff]  ;;  %v13161_v13 = vld [vmem:[#allocation31_spill] sm:$0xff]  ;;  %vm728_vm1 = vweird.f32 %v692_v44  ;;  %v6972_v49 = vld [vmem:[%s12397_s1 + $0x7a0] sm:$0xff] }
 0x121   :  { %vm733_vm3 = vcmp.eq.f32.partialorder %v732_v2, 8.507059e+37  ;;  %v6978_v51 = vld [vmem:[%s12397_s1 + $0x7a8] sm:$0xff]  ;;  %v13190_v2 = vld [vmem:[#allocation73_spill] sm:$0xff] }
 0x122   :  { %986 = vmatpush.msra.mxu0 %v13140_v25  ;;  %1026 = vmatpush.msra.mxu2 %v13141_v28  ;;  %v6932_v18 = vadd.f32 %v740_v58, %v739_v55  ;;  %v13162_v25 = vld [vmem:[#allocation33_spill] sm:$0xff]  ;;  %v6992_v55 = vld [vmem:[%s12397_s1 + $0x768] sm:$0xff]  ;;  %v7000_v58 = vld [vmem:[%s12397_s1 + $0x720] sm:$0xff] }
 0x124   :  { %987 = vmatpush.msra.mxu0 %v13142_v35  ;;  %1027 = vmatpush.msra.mxu2 %v13143_v57  ;;  %3967 = vtanh.f32 %v6932_v18  ;;  %v734_v35 = vand.u32 2147483648, %v692_v44  ;;  %v13165_v57 = vld [vmem:[#allocation37_spill] sm:$0xff] }
 0x125   :  { %v3966_v17 = vpop.eup %3965 }
 0x126   :  { %988 = vmatpush.msra.mxu0 %v13146_v11  ;;  %1028 = vmatpush.msra.mxu2 %v13147_v19  ;;  %v724_v28 = vmul.f32 %v3966_v17, %v692_v44  ;;  %vm729_vm0 = vweird.f32 %v3966_v17  ;;  %v735_v21 = vor.u32 1.1754944e-38, %v734_v35  ;;  %v13170_v11 = vld [vmem:[#allocation40_spill] sm:$0xff]  ;;  %v6964_v44 = vld [vmem:[%s12397_s1 + $0x7e8] sm:$0xff]  ;;  %v13188_v35 = vld [vmem:[#allocation69_spill] sm:$0xff] }
 0x127   :  { %vm730_vm2 = vmor %vm728_vm1, %vm729_vm0 }
 0x128   :  { %989 = vmatpush.msra.mxu0 %v13150_v31  ;;  %1029 = vmatpush.msra.mxu2 %v13151_v33  ;;  %v725_v34 = vsub.f32 1.0, %v724_v28  ;;  %v13171_v33 = vld [vmem:[#allocation43_spill] sm:$0xff]  ;;  %v13186_v28 = vld [vmem:[#allocation65_spill] sm:$0xff] }
 0x12a   :  { %990 = vmatpush.msra.mxu0 %v13152_v40  ;;  %1030 = vmatpush.msra.mxu2 %v13153_v42  ;;  %v726_v63 = vmul.f32 %v3966_v17, %v725_v34  ;;  %v3968_v36 = vpop.eup %3967  ;;  %v13175_v40 = vld [vmem:[#allocation47_spill] sm:$0xff]  ;;  %v13176_v42 = vld [vmem:[#allocation46_spill] sm:$0xff] }
 0x12b   :  { %v7082_v34 = vld [vmem:[%s12397_s1 + $0x5e8] sm:$0xff] }
 0x12c   :  { %991 = vmatpush.msra.mxu0 %v13154_v45  ;;  %1031 = vmatpush.msra.mxu2 %v13155_v48  ;;  %v727_v16 = vadd.f32 %v3966_v17, %v726_v63  ;;  %v13177_v45 = vld [vmem:[#allocation49_spill] sm:$0xff]  ;;  %v13178_v48 = vld [vmem:[#allocation48_spill] sm:$0xff]  ;;  %v7096_v63 = vld [vmem:[%s12397_s1 + $0x5a8] sm:$0xff] }
 0x12d   :  { %992 = vmatmul.f32.vlgmr.msra.gmra.mxu0 %v6838_v7  ;;  %1032 = vmatmul.f32.vlgmr.msra.gmra.mxu2 %v6838_v7 }
 0x12e   :  { %1056 = vmatpush.msrb.mxu0 %v13156_v41  ;;  %1096 = vmatpush.msrb.mxu2 %v13157_v30  ;;  %v731_v19 = vsel %vm730_vm2, %v3966_v17, %v727_v16  ;;  %v13180_v41 = vld [vmem:[#allocation50_spill] sm:$0xff]  ;;  %v7110_v16 = vld [vmem:[%s12397_s1 + $0x568] sm:$0xff] }
 0x12f   :  { %v736_v31 = vsel %vm733_vm3, %v735_v21, %v731_v19  ;;  %v6986_v30 = vld [vmem:[%s12397_s1 + $0x760] sm:$0xff]  ;;  %v13192_v21 = vld [vmem:[#allocation77_spill] sm:$0xff]  ;;  %v7124_v19 = vld [vmem:[%s12397_s1 + $0x528] sm:$0xff] }
 0x130   :  { %1057 = vmatpush.msrb.mxu0 %v13158_v0  ;;  %1097 = vmatpush.msrb.mxu2 %v13159_v5  ;;  %v6947_v37 = vmul.f32 %v3968_v36, %v736_v31  ;;  %v7006_v0 = vld [vmem:[%s12397_s1 + $0x728] sm:$0xff]  ;;  %v7062_v17 = vld [vmem:[%s12397_s1 + $0x620] sm:$0xff]  ;;  %v13194_v36 = vld [vmem:[#allocation81_spill] sm:$0xff] }
 0x131   :  { %v7054_v5 = vld [vmem:[%s12397_s1 + $0x668] sm:$0xff] }
 0x132   :  { %1058 = vmatpush.msrb.mxu0 %v13160_v9  ;;  %1098 = vmatpush.msrb.mxu2 %v13161_v13  ;;  %v13184_v9 = vld [vmem:[#allocation61_spill] sm:$0xff]  ;;  %v13185_v13 = vld [vmem:[#allocation63_spill] sm:$0xff] }
 0x133   :  { %852 = vmatmul.f32.vlgmr.msra.gmra.mxu1 %v6947_v37  ;;  %892 = vmatmul.f32.vlgmr.msra.gmra.mxu3 %v6947_v37  ;;  %v13195_v31 = vld [vmem:[#allocation83_spill] sm:$0xff] }
 0x134   :  { %1059 = vmatpush.msrb.mxu0 %v6021_v14  ;;  %1099 = vmatpush.msrb.mxu2 %v13162_v25  ;;  %v13168_v14 = vld [vmem:[#allocation38_spill] sm:$0xff]  ;;  %v7068_v25 = vld [vmem:[%s12397_s1 + $0x628] sm:$0xff] }
 0x135   :  { %996 = vmatpush.msra.mxu1 %v6958_v43  ;;  %1036 = vmatpush.msra.mxu3 %v6964_v44 }
 0x136   :  { %1060 = vmatpush.msrb.mxu0 %v13163_v20  ;;  %1100 = vmatpush.msrb.mxu2 %v13164_v50  ;;  %v13187_v20 = vld [vmem:[#allocation67_spill] sm:$0xff]  ;;  %v7076_v50 = vld [vmem:[%s12397_s1 + $0x5e0] sm:$0xff] }
 0x137   :  { %997 = vmatpush.msra.mxu1 %v6972_v49  ;;  %1037 = vmatpush.msra.mxu3 %v6978_v51 }
 0x138   :  { %1061 = vmatpush.msrb.mxu0 %v13165_v57  ;;  %1101 = vmatpush.msrb.mxu2 %v13166_v61  ;;  %v13189_v57 = vld [vmem:[#allocation71_spill] sm:$0xff]  ;;  %v7090_v61 = vld [vmem:[%s12397_s1 + $0x5a0] sm:$0xff] }
 0x139   :  { %998 = vmatpush.msra.mxu1 %v6986_v30  ;;  %1038 = vmatpush.msra.mxu3 %v6992_v55 }
 0x13a   :  { %1062 = vmatpush.msrb.mxu0 %v13167_v4  ;;  %1102 = vmatpush.msrb.mxu2 %v13168_v14  ;;  %v13191_v4 = vld [vmem:[#allocation75_spill] sm:$0xff]  ;;  %v7104_v14 = vld [vmem:[%s12397_s1 + $0x560] sm:$0xff] }
 0x13b   :  { %999 = vmatpush.msra.mxu1 %v7000_v58  ;;  %1039 = vmatpush.msra.mxu3 %v7006_v0 }
 0x13c   :  { %1063 = vmatpush.msrb.mxu0 %v13169_v10  ;;  %1103 = vmatpush.msrb.mxu2 %v13170_v11  ;;  %v13193_v10 = vld [vmem:[#allocation79_spill] sm:$0xff]  ;;  %v7118_v11 = vld [vmem:[%s12397_s1 + $0x520] sm:$0xff] }
 0x13d   :  { %932 = vmatmul.f32.vlgmr.msrb.gmra.mxu1 %v6947_v37  ;;  %972 = vmatmul.f32.vlgmr.msrb.gmra.mxu3 %v6947_v37 }
 0x13e   :  { %1064 = vmatpush.msrb.mxu0 %v13171_v33  ;;  %1104 = vmatpush.msrb.mxu2 %v13172_v62  ;;  %v7132_v33 = vld [vmem:[%s12397_s1 + $0x4e0] sm:$0xff]  ;;  %v7138_v62 = vld [vmem:[%s12397_s1 + $0x4e8] sm:$0xff] }
 0x140   :  { %1065 = vmatpush.msrb.mxu0 %v13173_v39  ;;  %1105 = vmatpush.msrb.mxu2 %v13174_v29  ;;  %v13196_v39 = vld [vmem:[#allocation85_spill] sm:$0xff]  ;;  %v13197_v29 = vld [vmem:[#allocation87_spill] sm:$0xff] }
 0x142   :  { %1066 = vmatpush.msrb.mxu0 %v13175_v40  ;;  %1106 = vmatpush.msrb.mxu2 %v13176_v42  ;;  %v7146_v40 = vld [vmem:[%s12397_s1 + $0x4a0] sm:$0xff]  ;;  %v7152_v42 = vld [vmem:[%s12397_s1 + $0x4a8] sm:$0xff] }
 0x144   :  { %1067 = vmatpush.msrb.mxu0 %v13177_v45  ;;  %1107 = vmatpush.msrb.mxu2 %v13178_v48  ;;  %v13198_v45 = vld [vmem:[#allocation89_spill] sm:$0xff]  ;;  %v13199_v48 = vld [vmem:[#allocation91_spill] sm:$0xff] }
 0x146   :  { %1068 = vmatpush.msrb.mxu0 %v13179_v54  ;;  %1108 = vmatpush.msrb.mxu2 %v13180_v41  ;;  %v7160_v54 = vld [vmem:[%s12397_s1 + $0x460] sm:$0xff]  ;;  %v7166_v41 = vld [vmem:[%s12397_s1 + $0x468] sm:$0xff] }
 0x148   :  { %1069 = vmatpush.msrb.mxu0 %v6201_v24  ;;  %1109 = vmatpush.msrb.mxu2 %v6192_v15  ;;  %v7020_v24 = vld [vmem:[%s12397_s1 + $0x6e0] sm:$0xff]  ;;  %v7026_v15 = vld [vmem:[%s12397_s1 + $0x6e8] sm:$0xff] }
 0x149   :  { %1000 = vmatpush.msra.mxu1 %v7020_v24  ;;  %1040 = vmatpush.msra.mxu3 %v7026_v15 }
 0x14a   :  { %1070 = vmatpush.msrb.mxu0 %v6221_v60  ;;  %1110 = vmatpush.msrb.mxu2 %v6212_v53  ;;  %v7034_v53 = vld [vmem:[%s12397_s1 + $0x6a0] sm:$0xff]  ;;  %v7040_v60 = vld [vmem:[%s12397_s1 + $0x6a8] sm:$0xff] }
 0x14b   :  { %1001 = vmatpush.msra.mxu1 %v7034_v53  ;;  %1041 = vmatpush.msra.mxu3 %v7040_v60 }
 0x14c   :  { %1071 = vmatpush.msrb.mxu0 %v6239_v23  ;;  %1111 = vmatpush.msrb.mxu2 %v6233_v38  ;;  %v13181_v38 = vld [vmem:[#allocation55_spill] sm:$0xff]  ;;  %v13182_v23 = vld [vmem:[#allocation57_spill] sm:$0xff] }
 0x14d   :  { %1072 = vmatmul.f32.vlgmr.msrb.gmra.mxu0 %v6838_v7  ;;  %1112 = vmatmul.f32.vlgmr.msrb.gmra.mxu2 %v6838_v7  ;;  %v13183_v7 = vld [vmem:[#allocation59_spill] sm:$0xff] }
 0x14e   :  { %1275 = vmatpush.msra.mxu0 %v6258_v47  ;;  %1315 = vmatpush.msra.mxu2 %v13181_v38  ;;  %v7048_v47 = vld [vmem:[%s12397_s1 + $0x660] sm:$0xff]  ;;  %v13200_v38 = vld [vmem:[#allocation93_spill] sm:$0xff] }
 0x14f   :  { %1002 = vmatpush.msra.mxu1 %v7048_v47  ;;  %1042 = vmatpush.msra.mxu3 %v7054_v5 }
 0x150   :  { %1276 = vmatpush.msra.mxu0 %v13182_v23  ;;  %1316 = vmatpush.msra.mxu2 %v13183_v7  ;;  %v13201_v23 = vld [vmem:[#allocation95_spill] sm:$0xff]  ;;  %v7174_v7 = vld [vmem:[%s12397_s1 + $0x420] sm:$0xff] }
 0x151   :  { %1003 = vmatpush.msra.mxu1 %v7062_v17  ;;  %1043 = vmatpush.msra.mxu3 %v7068_v25 }
 0x152   :  { %1277 = vmatpush.msra.mxu0 %v13184_v9  ;;  %1317 = vmatpush.msra.mxu2 %v13185_v13  ;;  %v7180_v9 = vld [vmem:[%s12397_s1 + $0x428] sm:$0xff]  ;;  %v7188_v13 = vld [vmem:[%s12397_s1 + $0x7f0] sm:$0xff] }
 0x153   :  { %1004 = vmatpush.msra.mxu1 %v7076_v50  ;;  %1044 = vmatpush.msra.mxu3 %v7082_v34 }
 0x154   :  { %1278 = vmatpush.msra.mxu0 %v13186_v28  ;;  %1318 = vmatpush.msra.mxu2 %v13187_v20  ;;  %v7194_v28 = vld [vmem:[%s12397_s1 + $0x7f8] sm:$0xff] }
 0x155   :  { %1005 = vmatpush.msra.mxu1 %v7090_v61  ;;  %1045 = vmatpush.msra.mxu3 %v7096_v63  ;;  %v13202_v20 = vld [vmem:[#allocation97_spill] sm:$0xff] }
 0x156   :  { %1279 = vmatpush.msra.mxu0 %v13188_v35  ;;  %1319 = vmatpush.msra.mxu2 %v13189_v57  ;;  %v13203_v35 = vld [vmem:[#allocation99_spill] sm:$0xff]  ;;  %v7202_v57 = vld [vmem:[%s12397_s1 + $0x7b0] sm:$0xff] }
 0x157   :  { %1006 = vmatpush.msra.mxu1 %v7104_v14  ;;  %1046 = vmatpush.msra.mxu3 %v7110_v16  ;;  %13204 = vst [vmem:[#allocation3_spill] sm:$0xff] %v7202_v57 }
 0x158   :  { %1280 = vmatpush.msra.mxu0 %v13190_v2  ;;  %1320 = vmatpush.msra.mxu2 %v13191_v4  ;;  %v7208_v2 = vld [vmem:[%s12397_s1 + $0x7b8] sm:$0xff] }
 0x159   :  { %1007 = vmatpush.msra.mxu1 %v7118_v11  ;;  %1047 = vmatpush.msra.mxu3 %v7124_v19  ;;  %13205 = vst [vmem:[#allocation6_spill] sm:$0xff] %v7208_v2  ;;  %v13206_v4 = vld [vmem:[#allocation101_spill] sm:$0xff] }
 0x15a   :  { %1281 = vmatpush.msra.mxu0 %v13192_v21  ;;  %1321 = vmatpush.msra.mxu2 %v13193_v10  ;;  %v13207_v21 = vld [vmem:[#allocation103_spill] sm:$0xff]  ;;  %v7216_v10 = vld [vmem:[%s12397_s1 + $0x770] sm:$0xff] }
 0x15b   :  { %1008 = vmatpush.msra.mxu1 %v7132_v33  ;;  %1048 = vmatpush.msra.mxu3 %v7138_v62  ;;  %13208 = vst [vmem:[#allocation5_spill] sm:$0xff] %v7216_v10 }
 0x15c   :  { %1282 = vmatpush.msra.mxu0 %v13194_v36  ;;  %1322 = vmatpush.msra.mxu2 %v13195_v31  ;;  %v7222_v36 = vld [vmem:[%s12397_s1 + $0x778] sm:$0xff] }
 0x15d   :  { %1009 = vmatpush.msra.mxu1 %v7146_v40  ;;  %1049 = vmatpush.msra.mxu3 %v7152_v42  ;;  %13209 = vst [vmem:[#allocation8_spill] sm:$0xff] %v7222_v36  ;;  %v13210_v31 = vld [vmem:[#allocation105_spill] sm:$0xff] }
 0x15e   :  { %1283 = vmatpush.msra.mxu0 %v13196_v39  ;;  %1323 = vmatpush.msra.mxu2 %v13197_v29  ;;  %v13211_v39 = vld [vmem:[#allocation107_spill] sm:$0xff]  ;;  %v7230_v29 = vld [vmem:[%s12397_s1 + $0x730] sm:$0xff] }
 0x15f   :  { %1010 = vmatpush.msra.mxu1 %v7160_v54  ;;  %1050 = vmatpush.msra.mxu3 %v7166_v41  ;;  %13212 = vst [vmem:[#allocation7_spill] sm:$0xff] %v7230_v29 }
 0x160   :  { %1284 = vmatpush.msra.mxu0 %v13198_v45  ;;  %1324 = vmatpush.msra.mxu2 %v13199_v48  ;;  %v7236_v45 = vld [vmem:[%s12397_s1 + $0x738] sm:$0xff] }
 0x161   :  { %1011 = vmatpush.msra.mxu1 %v7174_v7  ;;  %1051 = vmatpush.msra.mxu3 %v7180_v9  ;;  %13213 = vst [vmem:[#allocation10_spill] sm:$0xff] %v7236_v45  ;;  %v13214_v48 = vld [vmem:[#allocation109_spill] sm:$0xff] }
 0x162   :  { %1285 = vmatpush.msra.mxu0 %v13200_v38  ;;  %1325 = vmatpush.msra.mxu2 %v13201_v23  ;;  %v13215_v38 = vld [vmem:[#allocation111_spill] sm:$0xff]  ;;  %v7244_v23 = vld [vmem:[%s12397_s1 + $0x6f0] sm:$0xff] }
 0x163   :  { %1012 = vmatmul.f32.vlgmr.msra.gmra.mxu1 %v6947_v37  ;;  %1052 = vmatmul.f32.vlgmr.msra.gmra.mxu3 %v6947_v37  ;;  %13216 = vst [vmem:[#allocation9_spill] sm:$0xff] %v7244_v23 }
 0x164   :  { %1076 = vmatpush.msrb.mxu1 %v7188_v13  ;;  %1116 = vmatpush.msrb.mxu3 %v7194_v28 }
 0x165   :  { %1286 = vmatpush.msra.mxu0 %v13202_v20  ;;  %1326 = vmatpush.msra.mxu2 %v13203_v35  ;;  %v7250_v20 = vld [vmem:[%s12397_s1 + $0x6f8] sm:$0xff] }
 0x166   :  { %1077 = vmatpush.msrb.mxu1 %v7202_v57  ;;  %1117 = vmatpush.msrb.mxu3 %v7208_v2  ;;  %13217 = vst [vmem:[#allocation12_spill] sm:$0xff] %v7250_v20  ;;  %v13218_v35 = vld [vmem:[#allocation113_spill] sm:$0xff] }
 0x167   :  { %1287 = vmatpush.msra.mxu0 %v13206_v4  ;;  %1327 = vmatpush.msra.mxu2 %v13207_v21  ;;  %v13219_v4 = vld [vmem:[#allocation115_spill] sm:$0xff]  ;;  %v7258_v21 = vld [vmem:[%s12397_s1 + $0x6b0] sm:$0xff] }
 0x168   :  { %1078 = vmatpush.msrb.mxu1 %v7216_v10  ;;  %1118 = vmatpush.msrb.mxu3 %v7222_v36  ;;  %13220 = vst [vmem:[#allocation11_spill] sm:$0xff] %v7258_v21 }
 0x169   :  { %1288 = vmatpush.msra.mxu0 %v13210_v31  ;;  %1328 = vmatpush.msra.mxu2 %v13211_v39  ;;  %v7264_v31 = vld [vmem:[%s12397_s1 + $0x6b8] sm:$0xff]  ;;  %v13222_v39 = vld [vmem:[#allocation116_spill] sm:$0xff] }
 0x16a   :  { %1079 = vmatpush.msrb.mxu1 %v7230_v29  ;;  %1119 = vmatpush.msrb.mxu3 %v7236_v45  ;;  %13221 = vst [vmem:[#allocation14_spill] sm:$0xff] %v7264_v31 }
 0x16b   :  { %1289 = vmatpush.msra.mxu0 %v13214_v48  ;;  %1329 = vmatpush.msra.mxu2 %v13215_v38  ;;  %v13223_v48 = vld [vmem:[#allocation117_spill] sm:$0xff]  ;;  %v7272_v38 = vld [vmem:[%s12397_s1 + $0x670] sm:$0xff] }
 0x16c   :  { %1080 = vmatpush.msrb.mxu1 %v7244_v23  ;;  %1120 = vmatpush.msrb.mxu3 %v7250_v20  ;;  %13224 = vst [vmem:[#allocation13_spill] sm:$0xff] %v7272_v38 }
 0x16d   :  { %1290 = vmatpush.msra.mxu0 %v13218_v35  ;;  %1330 = vmatpush.msra.mxu2 %v13219_v4  ;;  %v7278_v35 = vld [vmem:[%s12397_s1 + $0x678] sm:$0xff]  ;;  %v13226_v4 = vld [vmem:[#allocation119_spill] sm:$0xff] }
 0x16e   :  { %1081 = vmatpush.msrb.mxu1 %v7258_v21  ;;  %1121 = vmatpush.msrb.mxu3 %v7264_v31  ;;  %13225 = vst [vmem:[#allocation16_spill] sm:$0xff] %v7278_v35  ;;  %v13227_v31 = vld [vmem:[#allocation121_spill] sm:$0xff] }
 0x16f   :  { %1355 = vmatpush.msrb.mxu0 %v13222_v39  ;;  %1395 = vmatpush.msrb.mxu2 %v13223_v48  ;;  %v7286_v39 = vld [vmem:[%s12397_s1 + $0x630] sm:$0xff]  ;;  %v7292_v48 = vld [vmem:[%s12397_s1 + $0x638] sm:$0xff] }
 0x170   :  { %1082 = vmatpush.msrb.mxu1 %v7272_v38  ;;  %1122 = vmatpush.msrb.mxu3 %v7278_v35  ;;  %13228 = vst [vmem:[#allocation15_spill] sm:$0xff] %v7286_v39  ;;  %v13230_v35 = vld [vmem:[#allocation124_spill] sm:$0xff]  ;;  %v13291_v38 = vld [vmem:[#allocation98_spill] sm:$0xff] }
 0x171   :  { %1356 = vmatpush.msrb.mxu0 %v13226_v4  ;;  %1396 = vmatpush.msrb.mxu2 %v13227_v31  ;;  %13229 = vst [vmem:[#allocation18_spill] sm:$0xff] %v7292_v48  ;;  %v7300_v31 = vld [vmem:[%s12397_s1 + $0x5f0] sm:$0xff]  ;;  %v7306_v4 = vld [vmem:[%s12397_s1 + $0x5f8] sm:$0xff] }
 0x172   :  { %1083 = vmatpush.msrb.mxu1 %v7286_v39  ;;  %1123 = vmatpush.msrb.mxu3 %v7292_v48  ;;  %13231 = vst [vmem:[#allocation17_spill] sm:$0xff] %v7300_v31  ;;  %v13289_v48 = vld [vmem:[#allocation94_spill] sm:$0xff]  ;;  %v13290_v39 = vld [vmem:[#allocation96_spill] sm:$0xff] }
 0x173   :  { %1357 = vmatpush.msrb.mxu0 %v6672_v52  ;;  %1397 = vmatpush.msrb.mxu2 %v13230_v35  ;;  %13232 = vst [vmem:[#allocation20_spill] sm:$0xff] %v7306_v4  ;;  %v7312_v52 = vld [vmem:[%s12397_s1 + $0x310] sm:$0xff] }
 0x174   :  { %1084 = vmatpush.msrb.mxu1 %v7300_v31  ;;  %1124 = vmatpush.msrb.mxu3 %v7306_v4  ;;  %13233 = vst [vmem:[#allocation19_spill] sm:$0xff] %v7312_v52  ;;  %v7319_v35 = vld [vmem:[%s12397_s1 + $0x5b0] sm:$0xff]  ;;  %v7325_v4 = vld [vmem:[%s12397_s1 + $0x5b8] sm:$0xff]  ;;  %v13287_v31 = vld [vmem:[#allocation90_spill] sm:$0xff] }
 0x175   :  { %1358 = vmatpush.msrb.mxu0 %v7312_v52  ;;  %1398 = vmatpush.msrb.mxu2 %v6703_v56  ;;  %13234 = vst [vmem:[#allocation22_spill] sm:$0xff] %v7319_v35  ;;  %v7331_v52 = vld [vmem:[%s12397_s1 + $0x2d0] sm:$0xff] }
 0x176   :  { %1085 = vmatpush.msrb.mxu1 %v7319_v35  ;;  %13235 = vst [vmem:[#allocation21_spill] sm:$0xff] %v7325_v4  ;;  %1125 = vmatpush.msrb.mxu3 %v7325_v4  ;;  %v7338_v56 = vld [vmem:[%s12397_s1 + $0x570] sm:$0xff]  ;;  %v7344_v4 = vld [vmem:[%s12397_s1 + $0x578] sm:$0xff] }
 0x177   :  { %13236 = vst [vmem:[#allocation24_spill] sm:$0xff] %v7331_v52  ;;  %1359 = vmatpush.msrb.mxu0 %v7331_v52  ;;  %1399 = vmatpush.msrb.mxu2 %v6722_v8  ;;  %v7350_v52 = vld [vmem:[%s12397_s1 + $0x290] sm:$0xff] }
 0x178   :  { %13237 = vst [vmem:[#allocation23_spill] sm:$0xff] %v7338_v56  ;;  %1086 = vmatpush.msrb.mxu1 %v7338_v56  ;;  %1126 = vmatpush.msrb.mxu3 %v7344_v4  ;;  %v7357_v8 = vld [vmem:[%s12397_s1 + $0x530] sm:$0xff]  ;;  %v13259_v56 = vld [vmem:[#allocation58_spill] sm:$0xff] }
 0x179   :  { %13238 = vst [vmem:[#allocation26_spill] sm:$0xff] %v7344_v4  ;;  %1360 = vmatpush.msrb.mxu0 %v7350_v52  ;;  %1400 = vmatpush.msrb.mxu2 %v6741_v22  ;;  %v7363_v4 = vld [vmem:[%s12397_s1 + $0x538] sm:$0xff]  ;;  %v13286_v35 = vld [vmem:[#allocation88_spill] sm:$0xff] }
 0x17a   :  { %13239 = vst [vmem:[#allocation25_spill] sm:$0xff] %v7350_v52  ;;  %1087 = vmatpush.msrb.mxu1 %v7357_v8  ;;  %1127 = vmatpush.msrb.mxu3 %v7363_v4  ;;  %v7369_v52 = vld [vmem:[%s12397_s1 + $0x250] sm:$0xff]  ;;  %v7375_v22 = vld [vmem:[%s12397_s1 + $0x258] sm:$0xff] }
 0x17b   :  { %13240 = vst [vmem:[#allocation28_spill] sm:$0xff] %v7357_v8  ;;  %1361 = vmatpush.msrb.mxu0 %v7369_v52  ;;  %1401 = vmatpush.msrb.mxu2 %v7375_v22  ;;  %v7381_v8 = vld [vmem:[%s12397_s1 + $0x4f0] sm:$0xff] }
 0x17c   :  { %13241 = vst [vmem:[#allocation27_spill] sm:$0xff] %v7363_v4  ;;  %1088 = vmatpush.msrb.mxu1 %v7381_v8  ;;  %v7387_v4 = vld [vmem:[%s12397_s1 + $0x4f8] sm:$0xff] }
 0x17d   :  { %13242 = vst [vmem:[#allocation30_spill] sm:$0xff] %v7369_v52  ;;  %1128 = vmatpush.msrb.mxu3 %v7387_v4  ;;  %v7393_v52 = vld [vmem:[%s12397_s1 + $0x210] sm:$0xff] }
 0x17e   :  { %13243 = vst [vmem:[#allocation29_spill] sm:$0xff] %v7375_v22  ;;  %1362 = vmatpush.msrb.mxu0 %v7393_v52  ;;  %v7399_v22 = vld [vmem:[%s12397_s1 + $0x218] sm:$0xff] }
 0x17f   :  { %13244 = vst [vmem:[#allocation32_spill] sm:$0xff] %v7381_v8  ;;  %1402 = vmatpush.msrb.mxu2 %v7399_v22  ;;  %v13248_v8 = vld [vmem:[#allocation52_spill] sm:$0xff] }
 0x180   :  { %13245 = vst [vmem:[#allocation31_spill] sm:$0xff] %v7387_v4  ;;  %1089 = vmatpush.msrb.mxu1 %v13248_v8  ;;  %v7406_v4 = vld [vmem:[%s12397_s1 + $0x4b8] sm:$0xff] }
 0x181   :  { %13246 = vst [vmem:[#allocation33_spill] sm:$0xff] %v7393_v52  ;;  %1129 = vmatpush.msrb.mxu3 %v7406_v4  ;;  %v7412_v52 = vld [vmem:[%s12397_s1 + $0x1d0] sm:$0xff]  ;;  %v13252_v8 = vld [vmem:[#allocation53_spill] sm:$0xff] }
 0x182   :  { %13247 = vst [vmem:[#allocation35_spill] sm:$0xff] %v7399_v22  ;;  %1363 = vmatpush.msrb.mxu0 %v7412_v52  ;;  %v7418_v22 = vld [vmem:[%s12397_s1 + $0x1d8] sm:$0xff]  ;;  %1090 = vmatpush.msrb.mxu1 %v13252_v8  ;;  %v13256_v8 = vld [vmem:[#allocation54_spill] sm:$0xff] }
 0x183   :  { %13249 = vst [vmem:[#allocation34_spill] sm:$0xff] %v7406_v4  ;;  %1403 = vmatpush.msrb.mxu2 %v7418_v22  ;;  %v7425_v4 = vld [vmem:[%s12397_s1 + $0x478] sm:$0xff] }
 0x184   :  { %13250 = vst [vmem:[#allocation37_spill] sm:$0xff] %v7412_v52  ;;  %1130 = vmatpush.msrb.mxu3 %v7425_v4  ;;  %v7431_v52 = vld [vmem:[%s12397_s1 + $0x190] sm:$0xff]  ;;  %1091 = vmatpush.msrb.mxu1 %v13256_v8  ;;  %v7460_v8 = vld [vmem:[%s12397_s1 + $0x158] sm:$0xff] }
 0x185   :  { %13251 = vst [vmem:[#allocation36_spill] sm:$0xff] %v7418_v22  ;;  %1364 = vmatpush.msrb.mxu0 %v7431_v52  ;;  %v7437_v22 = vld [vmem:[%s12397_s1 + $0x198] sm:$0xff]  ;;  %1092 = vmatmul.f32.vlgmr.msrb.gmra.mxu1 %v6947_v37 }
 0x186   :  { %13253 = vst [vmem:[#allocation39_spill] sm:$0xff] %v7425_v4  ;;  %1404 = vmatpush.msrb.mxu2 %v7437_v22  ;;  %v7444_v4 = vld [vmem:[%s12397_s1 + $0x438] sm:$0xff] }
 0x187   :  { %13254 = vst [vmem:[#allocation38_spill] sm:$0xff] %v7431_v52  ;;  %1131 = vmatpush.msrb.mxu3 %v7444_v4  ;;  %v13258_v52 = vld [vmem:[#allocation56_spill] sm:$0xff] }
 0x188   :  { %13255 = vst [vmem:[#allocation41_spill] sm:$0xff] %v7437_v22  ;;  %1132 = vmatmul.f32.vlgmr.msrb.gmra.mxu3 %v6947_v37  ;;  %1295 = vmatpush.msra.mxu1 %v13258_v52  ;;  %v7454_v22 = vld [vmem:[%s12397_s1 + $0x150] sm:$0xff]  ;;  %v13263_v37 = vld [vmem:[#allocation62_spill] sm:$0xff] }
 0x189   :  { %13257 = vst [vmem:[#allocation40_spill] sm:$0xff] %v7444_v4  ;;  %1335 = vmatpush.msra.mxu3 %v13259_v56  ;;  %1365 = vmatpush.msrb.mxu0 %v7454_v22  ;;  %v13262_v4 = vld [vmem:[#allocation60_spill] sm:$0xff]  ;;  %v7474_v56 = vld [vmem:[%s12397_s1 + $0x118] sm:$0xff] }
 0x18a   :  { %13260 = vst [vmem:[#allocation43_spill] sm:$0xff] %v7454_v22  ;;  %1405 = vmatpush.msrb.mxu2 %v7460_v8  ;;  %1296 = vmatpush.msra.mxu1 %v13262_v4  ;;  %v7468_v52 = vld [vmem:[%s12397_s1 + $0x110] sm:$0xff] }
 0x18b   :  { %13261 = vst [vmem:[#allocation42_spill] sm:$0xff] %v7460_v8  ;;  %1336 = vmatpush.msra.mxu3 %v13263_v37  ;;  %1366 = vmatpush.msrb.mxu0 %v7468_v52  ;;  %v13266_v22 = vld [vmem:[#allocation64_spill] sm:$0xff]  ;;  %v13267_v8 = vld [vmem:[#allocation66_spill] sm:$0xff]  ;;  %v7488_v37 = vld [vmem:[%s12397_s1 + $0xd8] sm:$0xff] }
 0x18c   :  { %13264 = vst [vmem:[#allocation45_spill] sm:$0xff] %v7468_v52  ;;  %1406 = vmatpush.msrb.mxu2 %v7474_v56  ;;  %1297 = vmatpush.msra.mxu1 %v13266_v22  ;;  %v7482_v4 = vld [vmem:[%s12397_s1 + $0xd0] sm:$0xff] }
 0x18d   :  { %13265 = vst [vmem:[#allocation44_spill] sm:$0xff] %v7474_v56  ;;  %1337 = vmatpush.msra.mxu3 %v13267_v8  ;;  %1367 = vmatpush.msrb.mxu0 %v7482_v4  ;;  %v13270_v52 = vld [vmem:[#allocation68_spill] sm:$0xff]  ;;  %v13271_v56 = vld [vmem:[#allocation70_spill] sm:$0xff]  ;;  %v7502_v8 = vld [vmem:[%s12397_s1 + $0x98] sm:$0xff] }
 0x18e   :  { %13268 = vst [vmem:[#allocation47_spill] sm:$0xff] %v7482_v4  ;;  %1407 = vmatpush.msrb.mxu2 %v7488_v37  ;;  %1298 = vmatpush.msra.mxu1 %v13270_v52  ;;  %v7496_v22 = vld [vmem:[%s12397_s1 + $0x90] sm:$0xff] }
 0x18f   :  { %13269 = vst [vmem:[#allocation46_spill] sm:$0xff] %v7488_v37  ;;  %1338 = vmatpush.msra.mxu3 %v13271_v56  ;;  %1368 = vmatpush.msrb.mxu0 %v7496_v22  ;;  %v13274_v4 = vld [vmem:[#allocation72_spill] sm:$0xff]  ;;  %v13275_v37 = vld [vmem:[#allocation74_spill] sm:$0xff]  ;;  %v7516_v56 = vld [vmem:[%s12397_s1 + $0x58] sm:$0xff] }
 0x190   :  { %13272 = vst [vmem:[#allocation49_spill] sm:$0xff] %v7496_v22  ;;  %1408 = vmatpush.msrb.mxu2 %v7502_v8  ;;  %1299 = vmatpush.msra.mxu1 %v13274_v4  ;;  %v7510_v52 = vld [vmem:[%s12397_s1 + $0x50] sm:$0xff] }
 0x191   :  { %13273 = vst [vmem:[#allocation48_spill] sm:$0xff] %v7502_v8  ;;  %1339 = vmatpush.msra.mxu3 %v13275_v37  ;;  %1369 = vmatpush.msrb.mxu0 %v7510_v52  ;;  %v13278_v22 = vld [vmem:[#allocation76_spill] sm:$0xff]  ;;  %v13279_v8 = vld [vmem:[#allocation78_spill] sm:$0xff]  ;;  %v7530_v37 = vld [vmem:[%s12397_s1 + $0x18] sm:$0xff] }
 0x192   :  { %13276 = vst [vmem:[#allocation51_spill] sm:$0xff] %v7510_v52  ;;  %1409 = vmatpush.msrb.mxu2 %v7516_v56  ;;  %1300 = vmatpush.msra.mxu1 %v13278_v22  ;;  %v7524_v4 = vld [vmem:[%s12397_s1 + $0x10] sm:$0xff] }
 0x193   :  { %13277 = vst [vmem:[#allocation50_spill] sm:$0xff] %v7516_v56  ;;  %1340 = vmatpush.msra.mxu3 %v13279_v8  ;;  %1370 = vmatpush.msrb.mxu0 %v7524_v4  ;;  %v13282_v52 = vld [vmem:[#allocation80_spill] sm:$0xff]  ;;  %v13283_v56 = vld [vmem:[#allocation82_spill] sm:$0xff] }
 0x194   :  { %13280 = vst [vmem:[#allocation55_spill] sm:$0xff] %v7524_v4  ;;  %1410 = vmatpush.msrb.mxu2 %v7530_v37  ;;  %1301 = vmatpush.msra.mxu1 %v13282_v52  ;;  %v13284_v22 = vld [vmem:[#allocation84_spill] sm:$0xff]  ;;  %v13285_v8 = vld [vmem:[#allocation86_spill] sm:$0xff] }
 0x195   :  { %13281 = vst [vmem:[#allocation57_spill] sm:$0xff] %v7530_v37  ;;  %1341 = vmatpush.msra.mxu3 %v13283_v56  ;;  %v13288_v4 = vld [vmem:[#allocation92_spill] sm:$0xff]  ;;  %v13293_v52 = vld [vmem:[#allocation102_spill] sm:$0xff] }
 0x196   :  { %1302 = vmatpush.msra.mxu1 %v13284_v22  ;;  %v13292_v37 = vld [vmem:[#allocation100_spill] sm:$0xff]  ;;  %v13295_v22 = vld [vmem:[#allocation106_spill] sm:$0xff] }
 0x197   :  { %1342 = vmatpush.msra.mxu3 %v13285_v8  ;;  %v13294_v56 = vld [vmem:[#allocation104_spill] sm:$0xff] }
 0x198   :  { %1303 = vmatpush.msra.mxu1 %v13286_v35  ;;  %v13296_v8 = vld [vmem:[#allocation108_spill] sm:$0xff]  ;;  %v13297_v35 = vld [vmem:[#allocation110_spill] sm:$0xff] }
 0x199   :  { %1343 = vmatpush.msra.mxu3 %v13287_v31  ;;  %v13298_v31 = vld [vmem:[#allocation112_spill] sm:$0xff] }
 0x19a   :  { %1304 = vmatpush.msra.mxu1 %v13288_v4  ;;  %v13299_v4 = vld [vmem:[#allocation114_spill] sm:$0xff] }
 0x19b   :  { %1344 = vmatpush.msra.mxu3 %v13289_v48  ;;  %v13300_v48 = vld [vmem:[#allocation118_spill] sm:$0xff] }
 0x19c   :  { %1305 = vmatpush.msra.mxu1 %v13290_v39  ;;  %v13301_v39 = vld [vmem:[#allocation120_spill] sm:$0xff] }
 0x19d   :  { %1345 = vmatpush.msra.mxu3 %v13291_v38  ;;  %v13302_v38 = vld [vmem:[#allocation122_spill] sm:$0xff] }
 0x19e   :  { %1306 = vmatpush.msra.mxu1 %v13292_v37  ;;  %v13303_v37 = vld [vmem:[#allocation123_spill] sm:$0xff] }
 0x19f   :  { %1346 = vmatpush.msra.mxu3 %v13293_v52  ;;  %v13304_v52 = vld [vmem:[#allocation125_spill] sm:$0xff] }
 0x1a0   :  { %1307 = vmatpush.msra.mxu1 %v13294_v56  ;;  %v13305_v56 = vld [vmem:[#allocation126_spill] sm:$0xff] }
 0x1a1   :  { %1347 = vmatpush.msra.mxu3 %v13295_v22  ;;  %v13306_v22 = vld [vmem:[#allocation127_spill] sm:$0xff] }
 0x1a2   :  { %1308 = vmatpush.msra.mxu1 %v13296_v8  ;;  %v13307_v8 = vld [vmem:[#allocation128_spill] sm:$0xff] }
 0x1a3   :  { %1348 = vmatpush.msra.mxu3 %v13297_v35  ;;  %v13308_v35 = vld [vmem:[#allocation129_spill] sm:$0xff] }
 0x1a4   :  { %1309 = vmatpush.msra.mxu1 %v13298_v31  ;;  %v7564_v31 = vld [vmem:[%s12397_s1 + $0x6d0] sm:$0xff] }
 0x1a5   :  { %1349 = vmatpush.msra.mxu3 %v13299_v4  ;;  %13309 = vst [vmem:[#allocation59_spill] sm:$0xff] %v7564_v31  ;;  %v7571_v4 = vld [vmem:[%s12397_s1 + $0x690] sm:$0xff] }
 0x1a6   :  { %1310 = vmatpush.msra.mxu1 %v13300_v48  ;;  %13310 = vst [vmem:[#allocation61_spill] sm:$0xff] %v7571_v4  ;;  %v7597_v48 = vld [vmem:[%s12397_s1 + $0x5d0] sm:$0xff] }
 0x1a7   :  { %1350 = vmatpush.msra.mxu3 %v13301_v39  ;;  %13314 = vst [vmem:[#allocation69_spill] sm:$0xff] %v7597_v48  ;;  %v7609_v39 = vld [vmem:[%s12397_s1 + $0x590] sm:$0xff] }
 0x1a8   :  { %1375 = vmatpush.msrb.mxu1 %v13302_v38  ;;  %13316 = vst [vmem:[#allocation73_spill] sm:$0xff] %v7609_v39  ;;  %v7615_v38 = vld [vmem:[%s12397_s1 + $0x598] sm:$0xff] }
 0x1a9   :  { %1415 = vmatpush.msrb.mxu3 %v13303_v37  ;;  %13317 = vst [vmem:[#allocation75_spill] sm:$0xff] %v7615_v38  ;;  %v7621_v37 = vld [vmem:[%s12397_s1 + $0x550] sm:$0xff] }
 0x1aa   :  { %1376 = vmatpush.msrb.mxu1 %v13304_v52  ;;  %13318 = vst [vmem:[#allocation77_spill] sm:$0xff] %v7621_v37  ;;  %v7627_v52 = vld [vmem:[%s12397_s1 + $0x558] sm:$0xff] }
 0x1ab   :  { %1416 = vmatpush.msrb.mxu3 %v13305_v56  ;;  %13319 = vst [vmem:[#allocation79_spill] sm:$0xff] %v7627_v52  ;;  %v7633_v56 = vld [vmem:[%s12397_s1 + $0x510] sm:$0xff] }
 0x1ac   :  { %1377 = vmatpush.msrb.mxu1 %v13306_v22  ;;  %13320 = vst [vmem:[#allocation81_spill] sm:$0xff] %v7633_v56  ;;  %v7639_v22 = vld [vmem:[%s12397_s1 + $0x518] sm:$0xff] }
 0x1ad   :  { %1417 = vmatpush.msrb.mxu3 %v13307_v8  ;;  %13321 = vst [vmem:[#allocation83_spill] sm:$0xff] %v7639_v22  ;;  %v7645_v8 = vld [vmem:[%s12397_s1 + $0x4d0] sm:$0xff] }
 0x1ae   :  { %1378 = vmatpush.msrb.mxu1 %v6728_v3  ;;  %v7578_v3 = vld [vmem:[%s12397_s1 + $0x650] sm:$0xff]  ;;  %13322 = vst [vmem:[#allocation85_spill] sm:$0xff] %v7645_v8 }
 0x1af   :  { %1418 = vmatpush.msrb.mxu3 %v13308_v35  ;;  %13311 = vst [vmem:[#allocation63_spill] sm:$0xff] %v7578_v3  ;;  %v7651_v35 = vld [vmem:[%s12397_s1 + $0x4d8] sm:$0xff] }
 0x1b0   :  { %1379 = vmatpush.msrb.mxu1 %v7564_v31  ;;  %13323 = vst [vmem:[#allocation87_spill] sm:$0xff] %v7651_v35 }
 0x1b1   :  { %1419 = vmatpush.msrb.mxu3 %v6749_v32  ;;  %v7585_v32 = vld [vmem:[%s12397_s1 + $0x610] sm:$0xff] }
 0x1b2   :  { %1380 = vmatpush.msrb.mxu1 %v7571_v4  ;;  %13312 = vst [vmem:[#allocation65_spill] sm:$0xff] %v7585_v32 }
 0x1b3   :  { %1420 = vmatpush.msrb.mxu3 %v6758_v26  ;;  %v7591_v26 = vld [vmem:[%s12397_s1 + $0x618] sm:$0xff] }
 0x1b4   :  { %1381 = vmatpush.msrb.mxu1 %v7578_v3  ;;  %13313 = vst [vmem:[#allocation67_spill] sm:$0xff] %v7591_v26 }
 0x1b5   :  { %1421 = vmatpush.msrb.mxu3 %v6767_v27  ;;  %v7603_v27 = vld [vmem:[%s12397_s1 + $0x5d8] sm:$0xff] }
 0x1b6   :  { %1382 = vmatpush.msrb.mxu1 %v7585_v32  ;;  %13315 = vst [vmem:[#allocation71_spill] sm:$0xff] %v7603_v27 }
 0x1b7   :  { %1422 = vmatpush.msrb.mxu3 %v7591_v26 }
 0x1b8   :  { %1383 = vmatpush.msrb.mxu1 %v7597_v48 }
 0x1b9   :  { %1423 = vmatpush.msrb.mxu3 %v7603_v27 }
 0x1ba   :  { %1384 = vmatpush.msrb.mxu1 %v7609_v39  ;;  %v7672_v39 = vld [vmem:[%s12397_s1 + $0x450] sm:$0xff] }
 0x1bb   :  { %1424 = vmatpush.msrb.mxu3 %v7615_v38  ;;  %v7660_v38 = vld [vmem:[%s12397_s1 + $0x490] sm:$0xff]  ;;  %13326 = vst [vmem:[#allocation93_spill] sm:$0xff] %v7672_v39 }
 0x1bc   :  { %1385 = vmatpush.msrb.mxu1 %v7621_v37  ;;  %13324 = vst [vmem:[#allocation89_spill] sm:$0xff] %v7660_v38 }
 0x1bd   :  { %1425 = vmatpush.msrb.mxu3 %v7627_v52  ;;  %v853_v52 = vpop.f32.mrf.mxu1 }
 0x1be   :  { %1386 = vmatpush.msrb.mxu1 %v7633_v56  ;;  %v833_v56 = vpop.f32.mrf.mxu0 }
 0x1bf   :  { %1426 = vmatpush.msrb.mxu3 %v7639_v22  ;;  %v3859_v22 = vld [vmem:[%s12398_s0 + $0x40] sm:$0xff]  ;;  %v854_v37 = vadd.f32 %v853_v52, %v833_v56  ;;  %v7678_v52 = vld [vmem:[%s12397_s1 + $0x458] sm:$0xff] }
 0x1c0   :  { %1387 = vmatpush.msrb.mxu1 %v7645_v8  ;;  %v7666_v8 = vld [vmem:[%s12397_s1 + $0x498] sm:$0xff]  ;;  %13327 = vst [vmem:[#allocation95_spill] sm:$0xff] %v7678_v52 }
 0x1c1   :  { %1427 = vmatpush.msrb.mxu3 %v7651_v35  ;;  %13325 = vst [vmem:[#allocation91_spill] sm:$0xff] %v7666_v8  ;;  %v1208_v35 = vadd.f32 %v3859_v22, %v854_v37  ;;  %v7690_v37 = vld [vmem:[%s12397_s1 + $0x418] sm:$0xff]  ;;  %v873_v22 = vpop.f32.mrf.mxu2 }
 0x1c2   :  { %1388 = vmatpush.msrb.mxu1 %v7660_v38  ;;  %13329 = vst [vmem:[#allocation99_spill] sm:$0xff] %v7690_v37 }
 0x1c3   :  { %1428 = vmatpush.msrb.mxu3 %v7666_v8  ;;  %v3863_v56 = vmul.f32 -1.442695, %v1208_v35  ;;  %v7684_v8 = vld [vmem:[%s12397_s1 + $0x410] sm:$0xff]  ;;  %v3860_v35 = vld [vmem:[%s12398_s0 + $0x48] sm:$0xff] }
 0x1c4   :  { %1389 = vmatpush.msrb.mxu1 %v7672_v39  ;;  %13328 = vst [vmem:[#allocation97_spill] sm:$0xff] %v7684_v8  ;;  %v893_v39 = vpop.f32.mrf.mxu3 }
 0x1c5   :  { %1429 = vmatpush.msrb.mxu3 %v7678_v52  ;;  %3969 = vpow2.f32 %v3863_v56  ;;  %v894_v52 = vadd.f32 %v893_v39, %v873_v22  ;;  %v933_v20 = vpop.f32.mrf.mxu1 }
 0x1c6   :  { %1390 = vmatpush.msrb.mxu1 %v7684_v8  ;;  %v913_v39 = vpop.f32.mrf.mxu0 }
 0x1c7   :  { %1430 = vmatpush.msrb.mxu3 %v7690_v37  ;;  %v1209_v38 = vadd.f32 %v3860_v35, %v894_v52  ;;  %v3862_v37 = vld [vmem:[%s12398_s0 + $0x58] sm:$0xff]  ;;  %v934_v52 = vadd.f32 %v933_v20, %v913_v39 }
 0x1c9   :  { %v3864_v27 = vmul.f32 -1.442695, %v1209_v38  ;;  %v953_v26 = vpop.f32.mrf.mxu2 }
 0x1cb   :  { %v3970_v48 = vpop.eup %3969  ;;  %3971 = vpow2.f32 %v3864_v27 }
 0x1cc   :  { %v1221_v8 = vadd.f32 1.0, %v3970_v48  ;;  %v973_v32 = vpop.f32.mrf.mxu3  ;;  %v3861_v48 = vld [vmem:[%s12398_s0 + $0x50] sm:$0xff] }
 0x1cd   :  { %v974_v3 = vadd.f32 %v973_v32, %v953_v26  ;;  %v1210_v22 = vadd.f32 %v3861_v48, %v934_v52 }
 0x1ce   :  { %3973 = vrcp.f32 %v1221_v8  ;;  %vm1229_vm5 = vweird.f32 %v1221_v8  ;;  %v1233_v29 = vand.u32 2147483647, %v1221_v8 }
 0x1cf   :  { %v1211_v31 = vadd.f32 %v3862_v37, %v974_v3 }
 0x1d0   :  { %vm1234_vm9 = vcmp.eq.f32.partialorder %v1233_v29, 8.507059e+37 }
 0x1d1   :  { %v3972_v4 = vpop.eup %3971  ;;  %v3865_v23 = vmul.f32 -1.442695, %v1211_v31 }
 0x1d2   :  { %v1222_v21 = vadd.f32 1.0, %v3972_v4  ;;  %v1235_v4 = vand.u32 2147483648, %v1221_v8 }
 0x1d4   :  { %v3974_v56 = vpop.eup %3973  ;;  %3975 = vrcp.f32 %v1222_v21  ;;  %v1250_v20 = vand.u32 2147483648, %v1222_v21  ;;  %v1236_v52 = vor.u32 1.1754944e-38, %v1235_v4  ;;  %vm1244_vm8 = vweird.f32 %v1222_v21  ;;  %v1033_v4 = vpop.f32.mrf.mxu2 }
 0x1d5   :  { %v1225_v38 = vmul.f32 %v3974_v56, %v1221_v8  ;;  %3977 = vpow2.f32 %v3865_v23  ;;  %vm1230_vm4 = vweird.f32 %v3974_v56 }
 0x1d6   :  { %3979 = vtanh.f32 %v1210_v22  ;;  %vm1231_vm6 = vmor %vm1229_vm5, %vm1230_vm4 }
 0x1d7   :  { %v1226_v27 = vsub.f32 1.0, %v1225_v38  ;;  %v1248_v38 = vand.u32 2147483647, %v1222_v21 }
 0x1d9   :  { %v1227_v35 = vmul.f32 %v3974_v56, %v1226_v27  ;;  %v993_v27 = vpop.f32.mrf.mxu0  ;;  %vm1249_vm11 = vcmp.eq.f32.partialorder %v1248_v38, 8.507059e+37 }
 0x1da   :  { %v3976_v45 = vpop.eup %3975 }
 0x1db   :  { %v3978_v32 = vpop.eup %3977  ;;  %v1240_v26 = vmul.f32 %v3976_v45, %v1222_v21  ;;  %v1228_v3 = vadd.f32 %v3974_v56, %v1227_v35  ;;  %vm1245_vm7 = vweird.f32 %v3976_v45  ;;  %v1251_v35 = vor.u32 1.1754944e-38, %v1250_v20 }
 0x1dc   :  { %v1223_v31 = vadd.f32 1.0, %v3978_v32  ;;  %vm1246_vm10 = vmor %vm1244_vm8, %vm1245_vm7 }
 0x1dd   :  { %v1241_v37 = vsub.f32 1.0, %v1240_v26  ;;  %v1232_v39 = vsel %vm1231_vm6, %v3974_v56, %v1228_v3  ;;  %v3980_v26 = vpop.eup %3979 }
 0x1de   :  { %3981 = vrcp.f32 %v1223_v31  ;;  %v1237_v36 = vsel %vm1234_vm9, %v1236_v52, %v1232_v39  ;;  %v1263_v38 = vand.u32 2147483647, %v1223_v31  ;;  %vm1259_vm13 = vweird.f32 %v1223_v31 }
 0x1df   :  { %v1242_v23 = vmul.f32 %v3976_v45, %v1241_v37  ;;  %v1271_v57 = vmul.f32 %v3980_v26, %v1237_v36 }
 0x1e0   :  { %v1013_v32 = vpop.f32.mrf.mxu1  ;;  %vm1264_vm15 = vcmp.eq.f32.partialorder %v1263_v38, 8.507059e+37  ;;  %v7783_v38 = vld [vmem:[%s12397_s1 + $0x2a0] sm:$0xff] }
 0x1e1   :  { %v1243_v48 = vadd.f32 %v3976_v45, %v1242_v23  ;;  %v1014_v8 = vadd.f32 %v1013_v32, %v993_v27  ;;  %v1265_v23 = vand.u32 2147483648, %v1223_v31  ;;  %v7721_v32 = vld [vmem:[%s12397_s1 + $0x3e8] sm:$0xff]  ;;  %13334 = vst [vmem:[#allocation109_spill] sm:$0xff] %v7783_v38 }
 0x1e3   :  { %v1247_v10 = vsel %vm1246_vm10, %v3976_v45, %v1243_v48  ;;  %v1136_v29 = vadd.f32 %v1014_v8, %v6833_v12  ;;  %v7727_v8 = vld [vmem:[%s12397_s1 + $0x3a0] sm:$0xff] }
 0x1e4   :  { %v3982_v22 = vpop.eup %3981  ;;  %v1252_v2 = vsel %vm1249_vm11, %v1251_v35, %v1247_v10 }
 0x1e5   :  { %v1270_v37 = vmul.f32 %v1252_v2, %v6830_v6  ;;  %v1255_v56 = vmul.f32 %v3982_v22, %v1223_v31  ;;  %vm1260_vm12 = vweird.f32 %v3982_v22  ;;  %v3856_v10 = vmul.f32 -1.442695, %v1136_v29  ;;  %v7715_v31 = vld [vmem:[%s12397_s1 + $0x3e0] sm:$0xff] }
 0x1e6   :  { %v1053_v20 = vpop.f32.mrf.mxu3  ;;  %vm1261_vm14 = vmor %vm1259_vm13, %vm1260_vm12  ;;  %v1266_v2 = vor.u32 1.1754944e-38, %v1265_v23  ;;  %v7755_v23 = vld [vmem:[%s12397_s1 + $0x320] sm:$0xff] }
 0x1e7   :  { %v7703_v3 = vadd.f32 %v1271_v57, %v1270_v37  ;;  %v1256_v21 = vsub.f32 1.0, %v1255_v56  ;;  %v1054_v45 = vadd.f32 %v1053_v20, %v1033_v4  ;;  %v7739_v56 = vld [vmem:[%s12397_s1 + $0x360] sm:$0xff]  ;;  %13330 = vst [vmem:[#allocation101_spill] sm:$0xff] %v7755_v23  ;;  %v7761_v20 = vld [vmem:[%s12397_s1 + $0x328] sm:$0xff] }
 0x1e8   :  { %13331 = vst [vmem:[#allocation103_spill] sm:$0xff] %v7761_v20 }
 0x1e9   :  { %3983 = vtanh.f32 %v7703_v3  ;;  %v1257_v39 = vmul.f32 %v3982_v22, %v1256_v21  ;;  %v1137_v6 = vadd.f32 %v1054_v45, %v6828_v1  ;;  %v7745_v21 = vld [vmem:[%s12397_s1 + $0x368] sm:$0xff] }
 0x1ea   :  { %3985 = vpow2.f32 %v3856_v10  ;;  %v7775_v45 = vld [vmem:[%s12397_s1 + $0x2e8] sm:$0xff]  ;;  %v7795_v10 = vld [vmem:[%s12397_s1 + $0x260] sm:$0xff] }
 0x1eb   :  { %v1258_v52 = vadd.f32 %v3982_v22, %v1257_v39  ;;  %v3857_v36 = vmul.f32 -1.442695, %v1137_v6  ;;  %v7769_v39 = vld [vmem:[%s12397_s1 + $0x2e0] sm:$0xff]  ;;  %13333 = vst [vmem:[#allocation107_spill] sm:$0xff] %v7775_v45  ;;  %v7801_v6 = vld [vmem:[%s12397_s1 + $0x268] sm:$0xff] }
 0x1ec   :  { %13332 = vst [vmem:[#allocation105_spill] sm:$0xff] %v7769_v39 }
 0x1ed   :  { %v1262_v57 = vsel %vm1261_vm14, %v3982_v22, %v1258_v52  ;;  %3987 = vpow2.f32 %v3857_v36  ;;  %v7733_v22 = vld [vmem:[%s12397_s1 + $0x3a8] sm:$0xff]  ;;  %13336 = vst [vmem:[#allocation113_spill] sm:$0xff] %v7795_v10 }
 0x1ee   :  { %v1267_v27 = vsel %vm1264_vm15, %v1266_v2, %v1262_v57  ;;  %v7789_v52 = vld [vmem:[%s12397_s1 + $0x2a8] sm:$0xff]  ;;  %13337 = vst [vmem:[#allocation115_spill] sm:$0xff] %v7801_v6  ;;  %v7807_v57 = vld [vmem:[%s12397_s1 + $0x220] sm:$0xff] }
 0x1ef   :  { %v3984_v48 = vpop.eup %3983  ;;  %13335 = vst [vmem:[#allocation111_spill] sm:$0xff] %v7789_v52  ;;  %v7813_v2 = vld [vmem:[%s12397_s1 + $0x228] sm:$0xff] }
 0x1f0   :  { %v7708_v35 = vmul.f32 %v3984_v48, %v1267_v27  ;;  %v3986_v26 = vpop.eup %3985  ;;  %13338 = vst [vmem:[#allocation116_spill] sm:$0xff] %v7807_v57  ;;  %v7823_v27 = vld [vmem:[%s12397_s1 + $0x1e0] sm:$0xff] }
 0x1f1   :  { %v7748_v29 = vadd.f32 1.0, %v3986_v26  ;;  %13339 = vst [vmem:[#allocation117_spill] sm:$0xff] %v7813_v2  ;;  %v7829_v26 = vld [vmem:[%s12397_s1 + $0x1e8] sm:$0xff] }
 0x1f2   :  { %1291 = vmatmul.f32.vlgmr.msra.gmra.mxu0 %v7708_v35  ;;  %1331 = vmatmul.f32.vlgmr.msra.gmra.mxu2 %v7708_v35  ;;  %13340 = vst [vmem:[#allocation119_spill] sm:$0xff] %v7823_v27 }
 0x1f3   :  { %1435 = vmatpush.msra.mxu0 %v7715_v31  ;;  %1475 = vmatpush.msra.mxu2 %v7721_v32  ;;  %v3988_v37 = vpop.eup %3987  ;;  %3989 = vrcp.f32 %v7748_v29  ;;  %13341 = vst [vmem:[#allocation121_spill] sm:$0xff] %v7829_v26  ;;  %vm1157_vm2 = vweird.f32 %v7748_v29 }
 0x1f4   :  { %v7750_v4 = vadd.f32 1.0, %v3988_v37  ;;  %v7835_v37 = vld [vmem:[%s12397_s1 + $0x1a0] sm:$0xff] }
 0x1f5   :  { %1436 = vmatpush.msra.mxu0 %v7727_v8  ;;  %1476 = vmatpush.msra.mxu2 %v7733_v22  ;;  %13342 = vst [vmem:[#allocation124_spill] sm:$0xff] %v7835_v37 }
 0x1f6   :  { %3991 = vrcp.f32 %v7750_v4  ;;  %vm1172_vm3 = vweird.f32 %v7750_v4 }
 0x1f7   :  { %1437 = vmatpush.msra.mxu0 %v7739_v56  ;;  %1477 = vmatpush.msra.mxu2 %v7745_v21 }
 0x1f9   :  { %1438 = vmatpush.msra.mxu0 %v7755_v23  ;;  %1478 = vmatpush.msra.mxu2 %v7761_v20  ;;  %v7816_v36 = vpop.eup %3989 }
 0x1fa   :  { %1371 = vmatmul.f32.vlgmr.msrb.gmra.mxu0 %v7708_v35  ;;  %1411 = vmatmul.f32.vlgmr.msrb.gmra.mxu2 %v7708_v35  ;;  %vm1158_vm0 = vweird.f32 %v7816_v36 }
 0x1fb   :  { %1439 = vmatpush.msra.mxu0 %v7769_v39  ;;  %1479 = vmatpush.msra.mxu2 %v7775_v45  ;;  %v7863_v39 = vld [vmem:[%s12397_s1 + $0x120] sm:$0xff]  ;;  %vm7948_vm4 = vmor %vm1157_vm2, %vm1158_vm0 }
 0x1fc   :  { %v7818_v48 = vpop.eup %3991  ;;  %13346 = vst [vmem:[#allocation56_spill] sm:$0xff] %v7863_v39 }
 0x1fd   :  { %1440 = vmatpush.msra.mxu0 %v7783_v38  ;;  %1480 = vmatpush.msra.mxu2 %v7789_v52  ;;  %vm1173_vm1 = vweird.f32 %v7818_v48 }
 0x1fe   :  { %vm7956_vm5 = vmor %vm1172_vm3, %vm1173_vm1 }
 0x1ff   :  { %1441 = vmatpush.msra.mxu0 %v7795_v10  ;;  %1481 = vmatpush.msra.mxu2 %v7801_v6  ;;  %v1073_v6 = vpop.f32.mrf.mxu0  ;;  %v7851_v10 = vld [vmem:[%s12397_s1 + $0x160] sm:$0xff] }
 0x200   :  { %13344 = vst [vmem:[#allocation53_spill] sm:$0xff] %v7851_v10 }
 0x201   :  { %1442 = vmatpush.msra.mxu0 %v7807_v57  ;;  %1482 = vmatpush.msra.mxu2 %v7813_v2  ;;  %v7841_v2 = vld [vmem:[%s12397_s1 + $0x1a8] sm:$0xff] }
 0x202   :  { %13343 = vst [vmem:[#allocation52_spill] sm:$0xff] %v7841_v2  ;;  %v1093_v57 = vpop.f32.mrf.mxu1 }
 0x203   :  { %1443 = vmatpush.msra.mxu0 %v7823_v27  ;;  %1483 = vmatpush.msra.mxu2 %v7829_v26  ;;  %v1153_v27 = vmul.f32 %v7816_v36, %v7748_v29  ;;  %v1168_v26 = vmul.f32 %v7818_v48, %v7750_v4  ;;  %v1094_v38 = vadd.f32 %v1093_v57, %v1073_v6  ;;  %v7882_v6 = vld [vmem:[%s12397_s1 + $0xe8] sm:$0xff] }
 0x204   :  { %13349 = vst [vmem:[#allocation62_spill] sm:$0xff] %v7882_v6 }
 0x205   :  { %1444 = vmatpush.msra.mxu0 %v7835_v37  ;;  %1484 = vmatpush.msra.mxu2 %v7841_v2  ;;  %v7857_v37 = vld [vmem:[%s12397_s1 + $0x168] sm:$0xff]  ;;  %v1113_v2 = vpop.f32.mrf.mxu2  ;;  %v1154_v20 = vsub.f32 1.0, %v1153_v27  ;;  %v1138_v57 = vadd.f32 %v1094_v38, %v6880_v59 }
 0x206   :  { %13345 = vst [vmem:[#allocation54_spill] sm:$0xff] %v7857_v37  ;;  %v7895_v27 = vld [vmem:[%s12397_s1 + $0xa8] sm:$0xff] }
 0x207   :  { %1445 = vmatpush.msra.mxu0 %v7851_v10  ;;  %1485 = vmatpush.msra.mxu2 %v7857_v37  ;;  %v7869_v10 = vld [vmem:[%s12397_s1 + $0x128] sm:$0xff]  ;;  %v1169_v37 = vsub.f32 1.0, %v1168_v26  ;;  %13351 = vst [vmem:[#allocation66_spill] sm:$0xff] %v7895_v27 }
 0x208   :  { %13347 = vst [vmem:[#allocation58_spill] sm:$0xff] %v7869_v10  ;;  %v7909_v38 = vld [vmem:[%s12397_s1 + $0x68] sm:$0xff] }
 0x209   :  { %1446 = vmatpush.msra.mxu0 %v7863_v39  ;;  %1486 = vmatpush.msra.mxu2 %v7869_v10  ;;  %v1170_v26 = vmul.f32 %v7818_v48, %v1169_v37  ;;  %13353 = vst [vmem:[#allocation70_spill] sm:$0xff] %v7909_v38  ;;  %v7922_v37 = vld [vmem:[%s12397_s1 + $0x28] sm:$0xff] }
 0x20a   :  { %13355 = vst [vmem:[#allocation74_spill] sm:$0xff] %v7922_v37 }
 0x20b   :  { %v1133_v52 = vpop.f32.mrf.mxu3  ;;  %1487 = vmatpush.msra.mxu2 %v7882_v6  ;;  %v1155_v6 = vmul.f32 %v7816_v36, %v1154_v20  ;;  %v7916_v20 = vld [vmem:[%s12397_s1 + $0x20] sm:$0xff] }
 0x20c   :  { %v1134_v45 = vadd.f32 %v1133_v52, %v1113_v2  ;;  %v7876_v52 = vld [vmem:[%s12397_s1 + $0xe0] sm:$0xff]  ;;  %13354 = vst [vmem:[#allocation72_spill] sm:$0xff] %v7916_v20 }
 0x20d   :  { %13348 = vst [vmem:[#allocation60_spill] sm:$0xff] %v7876_v52  ;;  %1447 = vmatpush.msra.mxu0 %v7876_v52  ;;  %1488 = vmatpush.msra.mxu2 %v7895_v27  ;;  %v1176_v27 = vand.u32 2147483647, %v7750_v4 }
 0x20e   :  { %v1139_v23 = vadd.f32 %v1134_v45, %v6875_v46  ;;  %v7889_v45 = vld [vmem:[%s12397_s1 + $0xa0] sm:$0xff] }
 0x20f   :  { %13350 = vst [vmem:[#allocation64_spill] sm:$0xff] %v7889_v45  ;;  %1448 = vmatpush.msra.mxu0 %v7889_v45  ;;  %1489 = vmatpush.msra.mxu2 %v7909_v38  ;;  %v1178_v38 = vand.u32 2147483648, %v7750_v4  ;;  %vm1177_vm7 = vcmp.eq.f32.partialorder %v1176_v27, 8.507059e+37  ;;  %v7993_v45 = vld [vmem:[%s12397_s1 + $0x330] sm:$0xff]  ;;  %v8024_v27 = vld [vmem:[%s12397_s1 + $0x2b8] sm:$0xff] }
 0x210   :  { %v3858_v2 = vmul.f32 -1.442695, %v1139_v23  ;;  %v7903_v23 = vld [vmem:[%s12397_s1 + $0x60] sm:$0xff]  ;;  %13363 = vst [vmem:[#allocation82_spill] sm:$0xff] %v8024_v27 }
 0x211   :  { %13352 = vst [vmem:[#allocation68_spill] sm:$0xff] %v7903_v23  ;;  %1449 = vmatpush.msra.mxu0 %v7903_v23  ;;  %1490 = vmatpush.msra.mxu2 %v7922_v37  ;;  %v7936_v37 = vld [vmem:[%s12397_s1 + $0x3f0] sm:$0xff]  ;;  %v1161_v23 = vand.u32 2147483647, %v7748_v29  ;;  %v1179_v59 = vor.u32 1.1754944e-38, %v1178_v38  ;;  %v7999_v38 = vld [vmem:[%s12397_s1 + $0x338] sm:$0xff] }
 0x212   :  { %3993 = vpow2.f32 %v3858_v2  ;;  %v1156_v2 = vadd.f32 %v7816_v36, %v1155_v6  ;;  %1491 = vmatmul.f32.vlgmr.msra.gmra.mxu2 %v7708_v35  ;;  %13356 = vst [vmem:[#allocation76_spill] sm:$0xff] %v7936_v37  ;;  %v7942_v6 = vld [vmem:[%s12397_s1 + $0x3f8] sm:$0xff] }
 0x213   :  { %3995 = vtanh.f32 %v1138_v57  ;;  %1450 = vmatpush.msra.mxu0 %v7916_v20  ;;  %v1171_v57 = vadd.f32 %v7818_v48, %v1170_v26  ;;  %v1163_v20 = vand.u32 2147483648, %v7748_v29  ;;  %13357 = vst [vmem:[#allocation78_spill] sm:$0xff] %v7942_v6  ;;  %1555 = vmatpush.msrb.mxu2 %v7942_v6  ;;  %v7963_v6 = vld [vmem:[%s12397_s1 + $0x3b0] sm:$0xff]  ;;  %v7969_v29 = vld [vmem:[%s12397_s1 + $0x3b8] sm:$0xff]  ;;  %vm1162_vm6 = vcmp.eq.f32.partialorder %v1161_v23, 8.507059e+37 }
 0x214   :  { %1451 = vmatmul.f32.vlgmr.msra.gmra.mxu0 %v7708_v35  ;;  %13362 = vst [vmem:[#allocation80_spill] sm:$0xff] %v7963_v6  ;;  %v1160_v4 = vsel %vm7948_vm4, %v7816_v36, %v1156_v2  ;;  %v7987_v26 = vld [vmem:[%s12397_s1 + $0x378] sm:$0xff] }
 0x215   :  { %1515 = vmatpush.msrb.mxu0 %v7936_v37  ;;  %1556 = vmatpush.msrb.mxu2 %v7969_v29  ;;  %v1175_v52 = vsel %vm7956_vm5, %v7818_v48, %v1171_v57  ;;  %v1164_v46 = vor.u32 1.1754944e-38, %v1163_v20  ;;  %v8038_v57 = vld [vmem:[%s12397_s1 + $0x278] sm:$0xff] }
 0x216   :  { %v1180_v48 = vsel %vm1177_vm7, %v1179_v59, %v1175_v52  ;;  %v8011_v59 = vld [vmem:[%s12397_s1 + $0x2f8] sm:$0xff]  ;;  %13365 = vst [vmem:[#allocation86_spill] sm:$0xff] %v8038_v57 }
 0x217   :  { %1516 = vmatpush.msrb.mxu0 %v7963_v6  ;;  %v7981_v6 = vld [vmem:[%s12397_s1 + $0x370] sm:$0xff]  ;;  %1557 = vmatpush.msrb.mxu2 %v7987_v26  ;;  %v1165_v36 = vsel %vm1162_vm6, %v1164_v46, %v1160_v4  ;;  %v1198_v52 = vmul.f32 %v1180_v48, %v6932_v18  ;;  %v8050_v48 = vld [vmem:[%s12397_s1 + $0x238] sm:$0xff] }
 0x218   :  { %v3994_v37 = vpop.eup %3993  ;;  %v8005_v46 = vld [vmem:[%s12397_s1 + $0x2f0] sm:$0xff]  ;;  %13367 = vst [vmem:[#allocation90_spill] sm:$0xff] %v8050_v48 }
 0x219   :  { %v1151_v10 = vadd.f32 1.0, %v3994_v37  ;;  %v3996_v39 = vpop.eup %3995  ;;  %1517 = vmatpush.msrb.mxu0 %v7981_v6  ;;  %1558 = vmatpush.msrb.mxu2 %v7999_v38  ;;  %v8032_v18 = vld [vmem:[%s12397_s1 + $0x270] sm:$0xff] }
 0x21a   :  { %v1199_v20 = vmul.f32 %v3996_v39, %v1165_v36  ;;  %v8018_v39 = vld [vmem:[%s12397_s1 + $0x2b0] sm:$0xff]  ;;  %13364 = vst [vmem:[#allocation84_spill] sm:$0xff] %v8032_v18 }
 0x21b   :  { %3997 = vrcp.f32 %v1151_v10  ;;  %1518 = vmatpush.msrb.mxu0 %v7993_v45  ;;  %1559 = vmatpush.msrb.mxu2 %v8011_v59  ;;  %v8044_v36 = vld [vmem:[%s12397_s1 + $0x230] sm:$0xff]  ;;  %vm1187_vm9 = vweird.f32 %v1151_v10 }
 0x21c   :  { %v8027_v37 = vadd.f32 %v1199_v20, %v1198_v52  ;;  %13366 = vst [vmem:[#allocation88_spill] sm:$0xff] %v8044_v36  ;;  %v1193_v20 = vand.u32 2147483648, %v1151_v10 }
 0x21d   :  { %1519 = vmatpush.msrb.mxu0 %v8005_v46  ;;  %1560 = vmatpush.msrb.mxu2 %v8024_v27 }
 0x21e   :  { %3999 = vtanh.f32 %v8027_v37 }
 0x21f   :  { %1520 = vmatpush.msrb.mxu0 %v8018_v39  ;;  %1561 = vmatpush.msrb.mxu2 %v8038_v57  ;;  %v8057_v57 = vld [vmem:[%s12397_s1 + $0x1f0] sm:$0xff] }
 0x220   :  { %13368 = vst [vmem:[#allocation92_spill] sm:$0xff] %v8057_v57 }
 0x221   :  { %v3998_v23 = vpop.eup %3997  ;;  %1521 = vmatpush.msrb.mxu0 %v8032_v18  ;;  %1562 = vmatpush.msrb.mxu2 %v8050_v48  ;;  %v1194_v18 = vor.u32 1.1754944e-38, %v1193_v20  ;;  %v8347_v20 = vld [vmem:[%s12397_s1 + $0xc0] sm:$0xff] }
 0x222   :  { %v1183_v2 = vmul.f32 %v3998_v23, %v1151_v10  ;;  %vm1188_vm8 = vweird.f32 %v3998_v23 }
 0x223   :  { %1522 = vmatpush.msrb.mxu0 %v8044_v36  ;;  %v8063_v36 = vld [vmem:[%s12397_s1 + $0x1f8] sm:$0xff]  ;;  %vm1189_vm10 = vmor %vm1187_vm9, %vm1188_vm8 }
 0x224   :  { %v1184_v4 = vsub.f32 1.0, %v1183_v2  ;;  %v1191_v2 = vand.u32 2147483647, %v1151_v10  ;;  %13369 = vst [vmem:[#allocation94_spill] sm:$0xff] %v8063_v36  ;;  %1563 = vmatpush.msrb.mxu2 %v8063_v36  ;;  %v8081_v10 = vld [vmem:[%s12397_s1 + $0x170] sm:$0xff] }
 0x225   :  { %1523 = vmatpush.msrb.mxu0 %v8057_v57  ;;  %v8075_v57 = vld [vmem:[%s12397_s1 + $0x1b8] sm:$0xff] }
 0x226   :  { %v1185_v52 = vmul.f32 %v3998_v23, %v1184_v4  ;;  %v8069_v4 = vld [vmem:[%s12397_s1 + $0x1b0] sm:$0xff]  ;;  %13371 = vst [vmem:[#allocation98_spill] sm:$0xff] %v8075_v57  ;;  %1564 = vmatpush.msrb.mxu2 %v8075_v57  ;;  %vm1192_vm11 = vcmp.eq.f32.partialorder %v1191_v2, 8.507059e+37  ;;  %v8353_v2 = vld [vmem:[%s12397_s1 + $0xc8] sm:$0xff] }
 0x227   :  { %13370 = vst [vmem:[#allocation96_spill] sm:$0xff] %v8069_v4  ;;  %1524 = vmatpush.msrb.mxu0 %v8069_v4  ;;  %v4000_v4 = vpop.eup %3999 }
 0x228   :  { %v1186_v48 = vadd.f32 %v3998_v23, %v1185_v52  ;;  %v8087_v52 = vld [vmem:[%s12397_s1 + $0x178] sm:$0xff] }
 0x229   :  { %1525 = vmatpush.msrb.mxu0 %v8081_v10  ;;  %1565 = vmatpush.msrb.mxu2 %v8087_v52 }
 0x22a   :  { %v1190_v27 = vsel %vm1189_vm10, %v3998_v23, %v1186_v48  ;;  %v8095_v23 = vld [vmem:[%s12397_s1 + $0x130] sm:$0xff]  ;;  %v8101_v48 = vld [vmem:[%s12397_s1 + $0x138] sm:$0xff] }
 0x22b   :  { %v1195_v57 = vsel %vm1192_vm11, %v1194_v18, %v1190_v27  ;;  %1526 = vmatpush.msrb.mxu0 %v8095_v23  ;;  %1566 = vmatpush.msrb.mxu2 %v8101_v48  ;;  %v8111_v27 = vld [vmem:[%s12397_s1 + $0xf0] sm:$0xff]  ;;  %v8117_v18 = vld [vmem:[%s12397_s1 + $0xf8] sm:$0xff] }
 0x22c   :  { %v8090_v36 = vmul.f32 %v4000_v4, %v1195_v57  ;;  %v13394_v57 = vld [vmem:[#allocation10_spill] sm:$0xff]  ;;  %v13397_v4 = vld [vmem:[#allocation9_spill] sm:$0xff] }
 0x22d   :  { %1527 = vmatpush.msrb.mxu0 %v8111_v27  ;;  %1567 = vmatpush.msrb.mxu2 %v8117_v18 }
 0x22e   :  { %1311 = vmatmul.f32.vlgmr.msra.gmra.mxu1 %v8090_v36  ;;  %1351 = vmatmul.f32.vlgmr.msra.gmra.mxu3 %v8090_v36 }
 0x22f   :  { %1455 = vmatpush.msra.mxu1 %v6958_v43  ;;  %1495 = vmatpush.msra.mxu3 %v6964_v44  ;;  %v8125_v43 = vld [vmem:[%s12397_s1 + $0xb0] sm:$0xff]  ;;  %v8131_v44 = vld [vmem:[%s12397_s1 + $0xb8] sm:$0xff] }
 0x230   :  { %1528 = vmatpush.msrb.mxu0 %v8125_v43  ;;  %1568 = vmatpush.msrb.mxu2 %v8131_v44 }
 0x231   :  { %1456 = vmatpush.msra.mxu1 %v6972_v49  ;;  %1496 = vmatpush.msra.mxu3 %v6978_v51  ;;  %v8139_v49 = vld [vmem:[%s12397_s1 + $0x70] sm:$0xff]  ;;  %v8145_v51 = vld [vmem:[%s12397_s1 + $0x78] sm:$0xff] }
 0x232   :  { %1529 = vmatpush.msrb.mxu0 %v8139_v49  ;;  %1569 = vmatpush.msrb.mxu2 %v8145_v51 }
 0x233   :  { %1457 = vmatpush.msra.mxu1 %v6986_v30  ;;  %1497 = vmatpush.msra.mxu3 %v6992_v55  ;;  %v8157_v30 = vld [vmem:[%s12397_s1 + $0x30] sm:$0xff]  ;;  %v8163_v55 = vld [vmem:[%s12397_s1 + $0x38] sm:$0xff] }
 0x234   :  { %1530 = vmatpush.msrb.mxu0 %v8157_v30  ;;  %1570 = vmatpush.msrb.mxu2 %v8163_v55 }
 0x235   :  { %1458 = vmatpush.msra.mxu1 %v7000_v58  ;;  %1498 = vmatpush.msra.mxu3 %v7006_v0  ;;  %v8175_v58 = vld [vmem:[%s12397_s1 + $0x3c0] sm:$0xff]  ;;  %v8181_v0 = vld [vmem:[%s12397_s1 + $0x3c8] sm:$0xff] }
 0x236   :  { %1391 = vmatmul.f32.vlgmr.msrb.gmra.mxu1 %v8090_v36  ;;  %1431 = vmatmul.f32.vlgmr.msrb.gmra.mxu3 %v8090_v36 }
 0x237   :  { %1459 = vmatpush.msra.mxu1 %v7020_v24  ;;  %1499 = vmatpush.msra.mxu3 %v7026_v15  ;;  %v8189_v24 = vld [vmem:[%s12397_s1 + $0x380] sm:$0xff]  ;;  %v8195_v15 = vld [vmem:[%s12397_s1 + $0x388] sm:$0xff] }
 0x238   :  { %1531 = vmatmul.f32.vlgmr.msrb.gmra.mxu0 %v7708_v35  ;;  %1571 = vmatmul.f32.vlgmr.msrb.gmra.mxu2 %v7708_v35  ;;  %v13393_v35 = vld [vmem:[#allocation7_spill] sm:$0xff] }
 0x239   :  { %1460 = vmatpush.msra.mxu1 %v7034_v53  ;;  %1500 = vmatpush.msra.mxu3 %v7040_v60  ;;  %v8203_v53 = vld [vmem:[%s12397_s1 + $0x340] sm:$0xff]  ;;  %v8209_v60 = vld [vmem:[%s12397_s1 + $0x348] sm:$0xff] }
 0x23a   :  { %1734 = vmatpush.msra.mxu0 %v8175_v58  ;;  %1774 = vmatpush.msra.mxu2 %v8181_v0 }
 0x23b   :  { %1461 = vmatpush.msra.mxu1 %v7048_v47  ;;  %1501 = vmatpush.msra.mxu3 %v7054_v5  ;;  %v8217_v47 = vld [vmem:[%s12397_s1 + $0x300] sm:$0xff]  ;;  %v8223_v5 = vld [vmem:[%s12397_s1 + $0x308] sm:$0xff] }
 0x23c   :  { %1735 = vmatpush.msra.mxu0 %v8189_v24  ;;  %1775 = vmatpush.msra.mxu2 %v8195_v15  ;;  %13372 = vst [vmem:[#allocation100_spill] sm:$0xff] %v8223_v5 }
 0x23d   :  { %1462 = vmatpush.msra.mxu1 %v7062_v17  ;;  %1502 = vmatpush.msra.mxu3 %v7068_v25  ;;  %v8231_v17 = vld [vmem:[%s12397_s1 + $0x2c0] sm:$0xff]  ;;  %v8237_v25 = vld [vmem:[%s12397_s1 + $0x2c8] sm:$0xff] }
 0x23e   :  { %1736 = vmatpush.msra.mxu0 %v8203_v53  ;;  %1776 = vmatpush.msra.mxu2 %v8209_v60  ;;  %13373 = vst [vmem:[#allocation102_spill] sm:$0xff] %v8231_v17 }
 0x23f   :  { %1463 = vmatpush.msra.mxu1 %v7076_v50  ;;  %1503 = vmatpush.msra.mxu3 %v7082_v34  ;;  %13374 = vst [vmem:[#allocation104_spill] sm:$0xff] %v8237_v25  ;;  %v8245_v50 = vld [vmem:[%s12397_s1 + $0x280] sm:$0xff]  ;;  %v8251_v34 = vld [vmem:[%s12397_s1 + $0x288] sm:$0xff] }
 0x240   :  { %1737 = vmatpush.msra.mxu0 %v8217_v47  ;;  %1777 = vmatpush.msra.mxu2 %v8223_v5  ;;  %13375 = vst [vmem:[#allocation106_spill] sm:$0xff] %v8245_v50 }
 0x241   :  { %1464 = vmatpush.msra.mxu1 %v7090_v61  ;;  %1504 = vmatpush.msra.mxu3 %v7096_v63  ;;  %13376 = vst [vmem:[#allocation108_spill] sm:$0xff] %v8251_v34  ;;  %v8259_v61 = vld [vmem:[%s12397_s1 + $0x240] sm:$0xff]  ;;  %v8265_v63 = vld [vmem:[%s12397_s1 + $0x248] sm:$0xff] }
 0x242   :  { %1738 = vmatpush.msra.mxu0 %v8231_v17  ;;  %1778 = vmatpush.msra.mxu2 %v8237_v25  ;;  %13377 = vst [vmem:[#allocation110_spill] sm:$0xff] %v8259_v61 }
 0x243   :  { %1465 = vmatpush.msra.mxu1 %v7104_v14  ;;  %1505 = vmatpush.msra.mxu3 %v7110_v16  ;;  %13378 = vst [vmem:[#allocation112_spill] sm:$0xff] %v8265_v63  ;;  %v8273_v14 = vld [vmem:[%s12397_s1 + $0x200] sm:$0xff]  ;;  %v8279_v16 = vld [vmem:[%s12397_s1 + $0x208] sm:$0xff] }
 0x244   :  { %1739 = vmatpush.msra.mxu0 %v8245_v50  ;;  %1779 = vmatpush.msra.mxu2 %v8251_v34  ;;  %13379 = vst [vmem:[#allocation114_spill] sm:$0xff] %v8273_v14 }
 0x245   :  { %1466 = vmatpush.msra.mxu1 %v7118_v11  ;;  %1506 = vmatpush.msra.mxu3 %v7124_v19  ;;  %13380 = vst [vmem:[#allocation118_spill] sm:$0xff] %v8279_v16  ;;  %v8287_v11 = vld [vmem:[%s12397_s1 + $0x1c0] sm:$0xff]  ;;  %v8293_v19 = vld [vmem:[%s12397_s1 + $0x1c8] sm:$0xff] }
 0x246   :  { %1740 = vmatpush.msra.mxu0 %v8259_v61  ;;  %1780 = vmatpush.msra.mxu2 %v8265_v63  ;;  %13381 = vst [vmem:[#allocation120_spill] sm:$0xff] %v8287_v11 }
 0x247   :  { %1467 = vmatpush.msra.mxu1 %v7132_v33  ;;  %1507 = vmatpush.msra.mxu3 %v7138_v62  ;;  %13382 = vst [vmem:[#allocation122_spill] sm:$0xff] %v8293_v19  ;;  %v8305_v33 = vld [vmem:[%s12397_s1 + $0x180] sm:$0xff]  ;;  %v8311_v62 = vld [vmem:[%s12397_s1 + $0x188] sm:$0xff] }
 0x248   :  { %1741 = vmatpush.msra.mxu0 %v8273_v14  ;;  %1781 = vmatpush.msra.mxu2 %v8279_v16  ;;  %13383 = vst [vmem:[#allocation123_spill] sm:$0xff] %v8305_v33 }
 0x249   :  { %1468 = vmatpush.msra.mxu1 %v7146_v40  ;;  %1508 = vmatpush.msra.mxu3 %v7152_v42  ;;  %13384 = vst [vmem:[#allocation125_spill] sm:$0xff] %v8311_v62  ;;  %v13385_v40 = vld [vmem:[#allocation3_spill] sm:$0xff]  ;;  %v13386_v42 = vld [vmem:[#allocation6_spill] sm:$0xff] }
 0x24a   :  { %1742 = vmatpush.msra.mxu0 %v8287_v11  ;;  %1782 = vmatpush.msra.mxu2 %v8293_v19  ;;  %13395 = vst [vmem:[#allocation3_spill] sm:$0xff] %v8347_v20 }
 0x24b   :  { %1469 = vmatpush.msra.mxu1 %v7160_v54  ;;  %1509 = vmatpush.msra.mxu3 %v7166_v41  ;;  %v8319_v54 = vld [vmem:[%s12397_s1 + $0x140] sm:$0xff]  ;;  %v8325_v41 = vld [vmem:[%s12397_s1 + $0x148] sm:$0xff]  ;;  %13396 = vst [vmem:[#allocation6_spill] sm:$0xff] %v8353_v2 }
 0x24c   :  { %1743 = vmatpush.msra.mxu0 %v8305_v33  ;;  %1783 = vmatpush.msra.mxu2 %v8311_v62  ;;  %13387 = vst [vmem:[#allocation126_spill] sm:$0xff] %v8319_v54 }
 0x24d   :  { %1470 = vmatpush.msra.mxu1 %v7174_v7  ;;  %1510 = vmatpush.msra.mxu3 %v7180_v9  ;;  %13388 = vst [vmem:[#allocation127_spill] sm:$0xff] %v8325_v41  ;;  %v13389_v7 = vld [vmem:[#allocation5_spill] sm:$0xff]  ;;  %v13390_v9 = vld [vmem:[#allocation8_spill] sm:$0xff] }
 0x24e   :  { %1471 = vmatmul.f32.vlgmr.msra.gmra.mxu1 %v8090_v36  ;;  %1511 = vmatmul.f32.vlgmr.msra.gmra.mxu3 %v8090_v36 }
 0x24f   :  { %1535 = vmatpush.msrb.mxu1 %v7188_v13  ;;  %1575 = vmatpush.msrb.mxu3 %v7194_v28  ;;  %v8333_v13 = vld [vmem:[%s12397_s1 + $0x100] sm:$0xff]  ;;  %v8339_v28 = vld [vmem:[%s12397_s1 + $0x108] sm:$0xff] }
 0x250   :  { %1744 = vmatpush.msra.mxu0 %v8319_v54  ;;  %1784 = vmatpush.msra.mxu2 %v8325_v41  ;;  %13391 = vst [vmem:[#allocation128_spill] sm:$0xff] %v8333_v13 }
 0x251   :  { %1536 = vmatpush.msrb.mxu1 %v13385_v40  ;;  %1576 = vmatpush.msrb.mxu3 %v13386_v42  ;;  %13392 = vst [vmem:[#allocation129_spill] sm:$0xff] %v8339_v28  ;;  %v13398_v40 = vld [vmem:[#allocation12_spill] sm:$0xff]  ;;  %v8361_v42 = vld [vmem:[%s12397_s1 + $0x80] sm:$0xff] }
 0x252   :  { %1745 = vmatpush.msra.mxu0 %v8333_v13  ;;  %1785 = vmatpush.msra.mxu2 %v8339_v28  ;;  %13399 = vst [vmem:[#allocation5_spill] sm:$0xff] %v8361_v42  ;;  %v13514_v28 = vld [vmem:[#allocation83_spill] sm:$0xff] }
 0x253   :  { %1537 = vmatpush.msrb.mxu1 %v13389_v7  ;;  %1577 = vmatpush.msrb.mxu3 %v13390_v9  ;;  %v8367_v7 = vld [vmem:[%s12397_s1 + $0x88] sm:$0xff] }
 0x254   :  { %1746 = vmatpush.msra.mxu0 %v8347_v20  ;;  %1786 = vmatpush.msra.mxu2 %v8353_v2  ;;  %13400 = vst [vmem:[#allocation8_spill] sm:$0xff] %v8367_v7  ;;  %v13401_v9 = vld [vmem:[#allocation11_spill] sm:$0xff]  ;;  %v13427_v2 = vld [vmem:[#allocation24_spill] sm:$0xff]  ;;  %v13513_v20 = vld [vmem:[#allocation81_spill] sm:$0xff] }
 0x255   :  { %1538 = vmatpush.msrb.mxu1 %v13393_v35  ;;  %1578 = vmatpush.msrb.mxu3 %v13394_v57  ;;  %v13402_v35 = vld [vmem:[#allocation14_spill] sm:$0xff] }
 0x256   :  { %1747 = vmatpush.msra.mxu0 %v8361_v42  ;;  %1787 = vmatpush.msra.mxu2 %v8367_v7  ;;  %v8375_v57 = vld [vmem:[%s12397_s1 + $0x40] sm:$0xff]  ;;  %v13406_v7 = vld [vmem:[#allocation16_spill] sm:$0xff]  ;;  %v13426_v42 = vld [vmem:[#allocation27_spill] sm:$0xff] }
 0x257   :  { %1539 = vmatpush.msrb.mxu1 %v13397_v4  ;;  %1579 = vmatpush.msrb.mxu3 %v13398_v40  ;;  %13403 = vst [vmem:[#allocation7_spill] sm:$0xff] %v8375_v57  ;;  %v8381_v4 = vld [vmem:[%s12397_s1 + $0x48] sm:$0xff]  ;;  %v13405_v40 = vld [vmem:[#allocation13_spill] sm:$0xff] }
 0x258   :  { %1748 = vmatpush.msra.mxu0 %v8375_v57  ;;  %13404 = vst [vmem:[#allocation10_spill] sm:$0xff] %v8381_v4  ;;  %1788 = vmatpush.msra.mxu2 %v8381_v4  ;;  %v13409_v57 = vld [vmem:[#allocation15_spill] sm:$0xff]  ;;  %v13410_v4 = vld [vmem:[#allocation18_spill] sm:$0xff] }
 0x259   :  { %1540 = vmatpush.msrb.mxu1 %v13401_v9  ;;  %1580 = vmatpush.msrb.mxu3 %v13402_v35  ;;  %v8389_v9 = vld [vmem:[%s12397_s1] sm:$0xff]  ;;  %v8395_v35 = vld [vmem:[%s12397_s1 + $0x8] sm:$0xff] }
 0x25a   :  { %13407 = vst [vmem:[#allocation9_spill] sm:$0xff] %v8389_v9  ;;  %1749 = vmatpush.msra.mxu0 %v8389_v9  ;;  %1789 = vmatpush.msra.mxu2 %v8395_v35  ;;  %v13413_v9 = vld [vmem:[#allocation17_spill] sm:$0xff] }
 0x25b   :  { %1541 = vmatpush.msrb.mxu1 %v13405_v40  ;;  %1581 = vmatpush.msrb.mxu3 %v13406_v7  ;;  %13408 = vst [vmem:[#allocation12_spill] sm:$0xff] %v8395_v35  ;;  %v8403_v7 = vld [vmem:[%s12397_s1 + $0x3d0] sm:$0xff]  ;;  %v8409_v40 = vld [vmem:[%s12397_s1 + $0x3d8] sm:$0xff] }
 0x25c   :  { %13411 = vst [vmem:[#allocation11_spill] sm:$0xff] %v8403_v7  ;;  %1814 = vmatpush.msrb.mxu0 %v8403_v7  ;;  %1854 = vmatpush.msrb.mxu2 %v8409_v40  ;;  %v13414_v35 = vld [vmem:[#allocation20_spill] sm:$0xff]  ;;  %v13417_v7 = vld [vmem:[#allocation22_spill] sm:$0xff] }
 0x25d   :  { %1542 = vmatpush.msrb.mxu1 %v13409_v57  ;;  %1582 = vmatpush.msrb.mxu3 %v13410_v4  ;;  %13412 = vst [vmem:[#allocation14_spill] sm:$0xff] %v8409_v40  ;;  %v8417_v57 = vld [vmem:[%s12397_s1 + $0x390] sm:$0xff]  ;;  %v8423_v4 = vld [vmem:[%s12397_s1 + $0x398] sm:$0xff] }
 0x25e   :  { %13415 = vst [vmem:[#allocation13_spill] sm:$0xff] %v8417_v57  ;;  %1815 = vmatpush.msrb.mxu0 %v8417_v57  ;;  %1855 = vmatpush.msrb.mxu2 %v8423_v4  ;;  %v13418_v40 = vld [vmem:[#allocation21_spill] sm:$0xff]  ;;  %v13421_v57 = vld [vmem:[#allocation23_spill] sm:$0xff] }
 0x25f   :  { %1543 = vmatpush.msrb.mxu1 %v13413_v9  ;;  %1583 = vmatpush.msrb.mxu3 %v13414_v35  ;;  %13416 = vst [vmem:[#allocation16_spill] sm:$0xff] %v8423_v4  ;;  %v8431_v9 = vld [vmem:[%s12397_s1 + $0x350] sm:$0xff]  ;;  %v8437_v35 = vld [vmem:[%s12397_s1 + $0x358] sm:$0xff]  ;;  %v13422_v4 = vld [vmem:[#allocation26_spill] sm:$0xff] }
 0x260   :  { %13419 = vst [vmem:[#allocation15_spill] sm:$0xff] %v8431_v9  ;;  %1816 = vmatpush.msrb.mxu0 %v8431_v9  ;;  %1856 = vmatpush.msrb.mxu2 %v8437_v35  ;;  %v13425_v9 = vld [vmem:[#allocation28_spill] sm:$0xff] }
 0x261   :  { %1544 = vmatpush.msrb.mxu1 %v13417_v7  ;;  %1584 = vmatpush.msrb.mxu3 %v13418_v40  ;;  %13420 = vst [vmem:[#allocation18_spill] sm:$0xff] %v8437_v35  ;;  %v13423_v7 = vld [vmem:[#allocation19_spill] sm:$0xff]  ;;  %v8446_v40 = vld [vmem:[%s12397_s1 + $0x318] sm:$0xff] }
 0x262   :  { %1817 = vmatpush.msrb.mxu0 %v13423_v7  ;;  %13424 = vst [vmem:[#allocation17_spill] sm:$0xff] %v8446_v40  ;;  %1857 = vmatpush.msrb.mxu2 %v8446_v40  ;;  %v13430_v7 = vld [vmem:[#allocation31_spill] sm:$0xff]  ;;  %v13431_v35 = vld [vmem:[#allocation25_spill] sm:$0xff] }
 0x263   :  { %1545 = vmatpush.msrb.mxu1 %v13421_v57  ;;  %1585 = vmatpush.msrb.mxu3 %v13422_v4  ;;  %v8455_v57 = vld [vmem:[%s12397_s1 + $0x2d8] sm:$0xff]  ;;  %v13429_v4 = vld [vmem:[#allocation32_spill] sm:$0xff]  ;;  %v13440_v40 = vld [vmem:[#allocation35_spill] sm:$0xff] }
 0x264   :  { %1818 = vmatpush.msrb.mxu0 %v13427_v2  ;;  %13428 = vst [vmem:[#allocation20_spill] sm:$0xff] %v8455_v57  ;;  %1858 = vmatpush.msrb.mxu2 %v8455_v57  ;;  %v8470_v2 = vld [vmem:[%s12397_s1 + $0x4b0] sm:$0xff]  ;;  %v13439_v57 = vld [vmem:[#allocation33_spill] sm:$0xff] }
 0x265   :  { %1546 = vmatpush.msrb.mxu1 %v13425_v9  ;;  %1586 = vmatpush.msrb.mxu3 %v13426_v42  ;;  %v8464_v9 = vld [vmem:[%s12397_s1 + $0x298] sm:$0xff]  ;;  %13433 = vst [vmem:[#allocation21_spill] sm:$0xff] %v8470_v2  ;;  %v13434_v42 = vld [vmem:[#allocation34_spill] sm:$0xff] }
 0x266   :  { %1819 = vmatpush.msrb.mxu0 %v13431_v35  ;;  %13432 = vst [vmem:[#allocation22_spill] sm:$0xff] %v8464_v9  ;;  %1859 = vmatpush.msrb.mxu2 %v8464_v9  ;;  %v8479_v35 = vld [vmem:[%s12397_s1 + $0x470] sm:$0xff]  ;;  %v13438_v9 = vld [vmem:[#allocation39_spill] sm:$0xff] }
 0x267   :  { %1547 = vmatpush.msrb.mxu1 %v13429_v4  ;;  %1587 = vmatpush.msrb.mxu3 %v13430_v7  ;;  %v13435_v4 = vld [vmem:[#allocation30_spill] sm:$0xff]  ;;  %v13436_v7 = vld [vmem:[#allocation29_spill] sm:$0xff]  ;;  %13437 = vst [vmem:[#allocation23_spill] sm:$0xff] %v8479_v35 }
 0x268   :  { %1820 = vmatpush.msrb.mxu0 %v13435_v4  ;;  %1860 = vmatpush.msrb.mxu2 %v13436_v7  ;;  %v13442_v4 = vld [vmem:[#allocation40_spill] sm:$0xff]  ;;  %v13443_v7 = vld [vmem:[#allocation37_spill] sm:$0xff] }
 0x269   :  { %1548 = vmatpush.msrb.mxu1 %v8470_v2  ;;  %1588 = vmatpush.msrb.mxu3 %v13434_v42  ;;  %v8488_v42 = vld [vmem:[%s12397_s1 + $0x430] sm:$0xff]  ;;  %v13512_v2 = vld [vmem:[#allocation79_spill] sm:$0xff] }
 0x26a   :  { %1821 = vmatpush.msrb.mxu0 %v13439_v57  ;;  %1861 = vmatpush.msrb.mxu2 %v13440_v40  ;;  %13441 = vst [vmem:[#allocation26_spill] sm:$0xff] %v8488_v42  ;;  %v8499_v40 = vld [vmem:[%s12397_s1 + $0x7c0] sm:$0xff]  ;;  %v8505_v57 = vld [vmem:[%s12397_s1 + $0x7c8] sm:$0xff] }
 0x26b   :  { %1549 = vmatpush.msrb.mxu1 %v8479_v35  ;;  %1589 = vmatpush.msrb.mxu3 %v13438_v9  ;;  %v13444_v9 = vld [vmem:[#allocation36_spill] sm:$0xff]  ;;  %13445 = vst [vmem:[#allocation19_spill] sm:$0xff] %v8499_v40  ;;  %v13509_v35 = vld [vmem:[#allocation73_spill] sm:$0xff] }
 0x26c   :  { %1822 = vmatpush.msrb.mxu0 %v13443_v7  ;;  %1862 = vmatpush.msrb.mxu2 %v13444_v9  ;;  %13446 = vst [vmem:[#allocation28_spill] sm:$0xff] %v8505_v57  ;;  %v8513_v7 = vld [vmem:[%s12397_s1 + $0x780] sm:$0xff]  ;;  %v8519_v9 = vld [vmem:[%s12397_s1 + $0x788] sm:$0xff] }
 0x26d   :  { %1550 = vmatpush.msrb.mxu1 %v8488_v42  ;;  %1590 = vmatpush.msrb.mxu3 %v13442_v4  ;;  %v13447_v4 = vld [vmem:[#allocation38_spill] sm:$0xff]  ;;  %13449 = vst [vmem:[#allocation27_spill] sm:$0xff] %v8513_v7  ;;  %v13508_v42 = vld [vmem:[#allocation71_spill] sm:$0xff] }
 0x26e   :  { %1551 = vmatmul.f32.vlgmr.msrb.gmra.mxu1 %v8090_v36  ;;  %1591 = vmatmul.f32.vlgmr.msrb.gmra.mxu3 %v8090_v36  ;;  %v13448_v36 = vld [vmem:[#allocation41_spill] sm:$0xff]  ;;  %13450 = vst [vmem:[#allocation24_spill] sm:$0xff] %v8519_v9 }
 0x26f   :  { %1754 = vmatpush.msra.mxu1 %v8499_v40  ;;  %1794 = vmatpush.msra.mxu3 %v8505_v57  ;;  %v13451_v40 = vld [vmem:[#allocation43_spill] sm:$0xff]  ;;  %v13452_v57 = vld [vmem:[#allocation42_spill] sm:$0xff] }
 0x270   :  { %1823 = vmatpush.msrb.mxu0 %v13447_v4  ;;  %1863 = vmatpush.msrb.mxu2 %v13448_v36  ;;  %v8527_v4 = vld [vmem:[%s12397_s1 + $0x740] sm:$0xff]  ;;  %v8533_v36 = vld [vmem:[%s12397_s1 + $0x748] sm:$0xff] }
 0x271   :  { %1755 = vmatpush.msra.mxu1 %v8513_v7  ;;  %1795 = vmatpush.msra.mxu3 %v8519_v9  ;;  %13453 = vst [vmem:[#allocation32_spill] sm:$0xff] %v8527_v4  ;;  %v13455_v7 = vld [vmem:[#allocation45_spill] sm:$0xff]  ;;  %v13456_v9 = vld [vmem:[#allocation44_spill] sm:$0xff] }
 0x272   :  { %1824 = vmatpush.msrb.mxu0 %v13451_v40  ;;  %1864 = vmatpush.msrb.mxu2 %v13452_v57  ;;  %13454 = vst [vmem:[#allocation31_spill] sm:$0xff] %v8533_v36  ;;  %v8541_v40 = vld [vmem:[%s12397_s1 + $0x700] sm:$0xff]  ;;  %v8547_v57 = vld [vmem:[%s12397_s1 + $0x708] sm:$0xff] }
 0x273   :  { %1756 = vmatpush.msra.mxu1 %v8527_v4  ;;  %1796 = vmatpush.msra.mxu3 %v8533_v36  ;;  %13457 = vst [vmem:[#allocation25_spill] sm:$0xff] %v8541_v40  ;;  %v13459_v4 = vld [vmem:[#allocation47_spill] sm:$0xff]  ;;  %v13460_v36 = vld [vmem:[#allocation46_spill] sm:$0xff] }
 0x274   :  { %1825 = vmatpush.msrb.mxu0 %v13455_v7  ;;  %1865 = vmatpush.msrb.mxu2 %v13456_v9  ;;  %13458 = vst [vmem:[#allocation34_spill] sm:$0xff] %v8547_v57  ;;  %v8555_v7 = vld [vmem:[%s12397_s1 + $0x6c0] sm:$0xff]  ;;  %v8561_v9 = vld [vmem:[%s12397_s1 + $0x6c8] sm:$0xff] }
 0x275   :  { %1757 = vmatpush.msra.mxu1 %v8541_v40  ;;  %1797 = vmatpush.msra.mxu3 %v8547_v57  ;;  %13461 = vst [vmem:[#allocation30_spill] sm:$0xff] %v8555_v7  ;;  %v13463_v40 = vld [vmem:[#allocation49_spill] sm:$0xff]  ;;  %v13464_v57 = vld [vmem:[#allocation48_spill] sm:$0xff]  ;;  %v1332_v13 = vpop.f32.mrf.mxu2 }
 0x276   :  { %1826 = vmatpush.msrb.mxu0 %v13459_v4  ;;  %1866 = vmatpush.msrb.mxu2 %v13460_v36  ;;  %13462 = vst [vmem:[#allocation29_spill] sm:$0xff] %v8561_v9  ;;  %v8569_v4 = vld [vmem:[%s12397_s1 + $0x680] sm:$0xff]  ;;  %v8575_v36 = vld [vmem:[%s12397_s1 + $0x688] sm:$0xff] }
 0x277   :  { %1758 = vmatpush.msra.mxu1 %v8555_v7  ;;  %1798 = vmatpush.msra.mxu3 %v8561_v9  ;;  %13465 = vst [vmem:[#allocation39_spill] sm:$0xff] %v8569_v4  ;;  %v13467_v7 = vld [vmem:[#allocation51_spill] sm:$0xff]  ;;  %v13468_v9 = vld [vmem:[#allocation50_spill] sm:$0xff] }
 0x278   :  { %1827 = vmatpush.msrb.mxu0 %v13463_v40  ;;  %1867 = vmatpush.msrb.mxu2 %v13464_v57  ;;  %13466 = vst [vmem:[#allocation33_spill] sm:$0xff] %v8575_v36  ;;  %v8583_v40 = vld [vmem:[%s12397_s1 + $0x640] sm:$0xff]  ;;  %v8589_v57 = vld [vmem:[%s12397_s1 + $0x648] sm:$0xff] }
 0x279   :  { %1759 = vmatpush.msra.mxu1 %v8569_v4  ;;  %1799 = vmatpush.msra.mxu3 %v8575_v36  ;;  %13469 = vst [vmem:[#allocation35_spill] sm:$0xff] %v8583_v40  ;;  %v13471_v4 = vld [vmem:[#allocation55_spill] sm:$0xff]  ;;  %v13472_v36 = vld [vmem:[#allocation57_spill] sm:$0xff] }
 0x27a   :  { %1828 = vmatpush.msrb.mxu0 %v13467_v7  ;;  %1868 = vmatpush.msrb.mxu2 %v13468_v9  ;;  %13470 = vst [vmem:[#allocation40_spill] sm:$0xff] %v8589_v57  ;;  %v8597_v7 = vld [vmem:[%s12397_s1 + $0x600] sm:$0xff]  ;;  %v8603_v9 = vld [vmem:[%s12397_s1 + $0x608] sm:$0xff] }
 0x27b   :  { %1760 = vmatpush.msra.mxu1 %v8583_v40  ;;  %1800 = vmatpush.msra.mxu3 %v8589_v57  ;;  %13473 = vst [vmem:[#allocation37_spill] sm:$0xff] %v8597_v7  ;;  %v13501_v57 = vld [vmem:[#allocation61_spill] sm:$0xff]  ;;  %v13503_v40 = vld [vmem:[#allocation63_spill] sm:$0xff] }
 0x27c   :  { %1829 = vmatpush.msrb.mxu0 %v13471_v4  ;;  %1869 = vmatpush.msrb.mxu2 %v13472_v36  ;;  %13474 = vst [vmem:[#allocation36_spill] sm:$0xff] %v8603_v9  ;;  %v8609_v4 = vld [vmem:[%s12397_s1 + $0x5c0] sm:$0xff]  ;;  %v8615_v36 = vld [vmem:[%s12397_s1 + $0x5c8] sm:$0xff] }
 0x27d   :  { %1761 = vmatpush.msra.mxu1 %v8597_v7  ;;  %1801 = vmatpush.msra.mxu3 %v8603_v9  ;;  %13475 = vst [vmem:[#allocation38_spill] sm:$0xff] %v8609_v4  ;;  %v8621_v7 = vld [vmem:[%s12397_s1 + $0x580] sm:$0xff]  ;;  %v8627_v9 = vld [vmem:[%s12397_s1 + $0x588] sm:$0xff] }
 0x27e   :  { %13476 = vst [vmem:[#allocation41_spill] sm:$0xff] %v8615_v36 }
 0x27f   :  { %1762 = vmatpush.msra.mxu1 %v8609_v4  ;;  %1802 = vmatpush.msra.mxu3 %v8615_v36  ;;  %13477 = vst [vmem:[#allocation43_spill] sm:$0xff] %v8621_v7  ;;  %v8633_v4 = vld [vmem:[%s12397_s1 + $0x540] sm:$0xff]  ;;  %v8639_v36 = vld [vmem:[%s12397_s1 + $0x548] sm:$0xff] }
 0x280   :  { %13478 = vst [vmem:[#allocation42_spill] sm:$0xff] %v8627_v9 }
 0x281   :  { %1763 = vmatpush.msra.mxu1 %v8621_v7  ;;  %1803 = vmatpush.msra.mxu3 %v8627_v9  ;;  %13479 = vst [vmem:[#allocation45_spill] sm:$0xff] %v8633_v4  ;;  %v8645_v7 = vld [vmem:[%s12397_s1 + $0x500] sm:$0xff]  ;;  %v8651_v9 = vld [vmem:[%s12397_s1 + $0x508] sm:$0xff] }
 0x282   :  { %13480 = vst [vmem:[#allocation44_spill] sm:$0xff] %v8639_v36 }
 0x283   :  { %1764 = vmatpush.msra.mxu1 %v8633_v4  ;;  %1804 = vmatpush.msra.mxu3 %v8639_v36  ;;  %13481 = vst [vmem:[#allocation47_spill] sm:$0xff] %v8645_v7  ;;  %v8657_v4 = vld [vmem:[%s12397_s1 + $0x4c0] sm:$0xff]  ;;  %v8663_v36 = vld [vmem:[%s12397_s1 + $0x4c8] sm:$0xff] }
 0x284   :  { %13482 = vst [vmem:[#allocation46_spill] sm:$0xff] %v8651_v9 }
 0x285   :  { %1765 = vmatpush.msra.mxu1 %v8645_v7  ;;  %1805 = vmatpush.msra.mxu3 %v8651_v9  ;;  %13483 = vst [vmem:[#allocation49_spill] sm:$0xff] %v8657_v4  ;;  %v8669_v7 = vld [vmem:[%s12397_s1 + $0x480] sm:$0xff]  ;;  %v8675_v9 = vld [vmem:[%s12397_s1 + $0x488] sm:$0xff] }
 0x286   :  { %13484 = vst [vmem:[#allocation48_spill] sm:$0xff] %v8663_v36 }
 0x287   :  { %1766 = vmatpush.msra.mxu1 %v8657_v4  ;;  %1806 = vmatpush.msra.mxu3 %v8663_v36  ;;  %13485 = vst [vmem:[#allocation51_spill] sm:$0xff] %v8669_v7  ;;  %v8681_v4 = vld [vmem:[%s12397_s1 + $0x440] sm:$0xff]  ;;  %v8687_v36 = vld [vmem:[%s12397_s1 + $0x448] sm:$0xff] }
 0x288   :  { %13486 = vst [vmem:[#allocation50_spill] sm:$0xff] %v8675_v9 }
 0x289   :  { %1767 = vmatpush.msra.mxu1 %v8669_v7  ;;  %1807 = vmatpush.msra.mxu3 %v8675_v9  ;;  %13487 = vst [vmem:[#allocation55_spill] sm:$0xff] %v8681_v4  ;;  %v8693_v7 = vld [vmem:[%s12397_s1 + $0x400] sm:$0xff]  ;;  %v8699_v9 = vld [vmem:[%s12397_s1 + $0x408] sm:$0xff] }
 0x28a   :  { %13488 = vst [vmem:[#allocation57_spill] sm:$0xff] %v8687_v36 }
 0x28b   :  { %1768 = vmatpush.msra.mxu1 %v8681_v4  ;;  %1808 = vmatpush.msra.mxu3 %v8687_v36  ;;  %13489 = vst [vmem:[#allocation132_spill] sm:$0xff] %v8693_v7  ;;  %v8705_v4 = vld [vmem:[%s12397_s1 + $0x7d0] sm:$0xff]  ;;  %v8711_v36 = vld [vmem:[%s12397_s1 + $0x7d8] sm:$0xff] }
 0x28c   :  { %13490 = vst [vmem:[#allocation133_spill] sm:$0xff] %v8699_v9 }
 0x28d   :  { %1769 = vmatpush.msra.mxu1 %v8693_v7  ;;  %1809 = vmatpush.msra.mxu3 %v8699_v9  ;;  %13491 = vst [vmem:[#allocation134_spill] sm:$0xff] %v8705_v4  ;;  %v8717_v7 = vld [vmem:[%s12397_s1 + $0x790] sm:$0xff]  ;;  %v8723_v9 = vld [vmem:[%s12397_s1 + $0x798] sm:$0xff] }
 0x28e   :  { %13492 = vst [vmem:[#allocation135_spill] sm:$0xff] %v8711_v36 }
 0x28f   :  { %1834 = vmatpush.msrb.mxu1 %v8705_v4  ;;  %1874 = vmatpush.msrb.mxu3 %v8711_v36  ;;  %13493 = vst [vmem:[#allocation136_spill] sm:$0xff] %v8717_v7  ;;  %v8729_v4 = vld [vmem:[%s12397_s1 + $0x750] sm:$0xff]  ;;  %v8735_v36 = vld [vmem:[%s12397_s1 + $0x758] sm:$0xff] }
 0x290   :  { %13494 = vst [vmem:[#allocation137_spill] sm:$0xff] %v8723_v9 }
 0x291   :  { %1835 = vmatpush.msrb.mxu1 %v8717_v7  ;;  %1875 = vmatpush.msrb.mxu3 %v8723_v9  ;;  %13495 = vst [vmem:[#allocation138_spill] sm:$0xff] %v8729_v4  ;;  %v8741_v7 = vld [vmem:[%s12397_s1 + $0x710] sm:$0xff]  ;;  %v8747_v9 = vld [vmem:[%s12397_s1 + $0x718] sm:$0xff] }
 0x292   :  { %13496 = vst [vmem:[#allocation139_spill] sm:$0xff] %v8735_v36 }
 0x293   :  { %1836 = vmatpush.msrb.mxu1 %v8729_v4  ;;  %1876 = vmatpush.msrb.mxu3 %v8735_v36  ;;  %13497 = vst [vmem:[#allocation140_spill] sm:$0xff] %v8741_v7  ;;  %v13499_v4 = vld [vmem:[#allocation59_spill] sm:$0xff]  ;;  %v8754_v36 = vld [vmem:[%s12397_s1 + $0x6d8] sm:$0xff] }
 0x294   :  { %13498 = vst [vmem:[#allocation141_spill] sm:$0xff] %v8747_v9 }
 0x295   :  { %1837 = vmatpush.msrb.mxu1 %v8741_v7  ;;  %1877 = vmatpush.msrb.mxu3 %v8747_v9  ;;  %13500 = vst [vmem:[#allocation59_spill] sm:$0xff] %v8754_v36  ;;  %v8761_v7 = vld [vmem:[%s12397_s1 + $0x698] sm:$0xff] }
 0x296   :  { %13502 = vst [vmem:[#allocation61_spill] sm:$0xff] %v8761_v7  ;;  %v13505_v9 = vld [vmem:[#allocation65_spill] sm:$0xff] }
 0x297   :  { %1838 = vmatpush.msrb.mxu1 %v13499_v4  ;;  %1878 = vmatpush.msrb.mxu3 %v8754_v36  ;;  %v8768_v4 = vld [vmem:[%s12397_s1 + $0x658] sm:$0xff]  ;;  %v13506_v36 = vld [vmem:[#allocation67_spill] sm:$0xff] }
 0x298   :  { %13504 = vst [vmem:[#allocation63_spill] sm:$0xff] %v8768_v4 }
 0x299   :  { %1839 = vmatpush.msrb.mxu1 %v13501_v57  ;;  %1879 = vmatpush.msrb.mxu3 %v8761_v7  ;;  %v13507_v57 = vld [vmem:[#allocation69_spill] sm:$0xff]  ;;  %v13510_v7 = vld [vmem:[#allocation75_spill] sm:$0xff] }
 0x29b   :  { %1840 = vmatpush.msrb.mxu1 %v13503_v40  ;;  %1880 = vmatpush.msrb.mxu3 %v8768_v4  ;;  %v13511_v40 = vld [vmem:[#allocation77_spill] sm:$0xff] }
 0x29c   :  { %v13515_v4 = vld [vmem:[#allocation85_spill] sm:$0xff] }
 0x29d   :  { %1841 = vmatpush.msrb.mxu1 %v13505_v9  ;;  %1881 = vmatpush.msrb.mxu3 %v13506_v36  ;;  %v13516_v9 = vld [vmem:[#allocation87_spill] sm:$0xff]  ;;  %v13517_v36 = vld [vmem:[#allocation89_spill] sm:$0xff] }
 0x29f   :  { %1842 = vmatpush.msrb.mxu1 %v13507_v57  ;;  %1882 = vmatpush.msrb.mxu3 %v13508_v42  ;;  %v13518_v57 = vld [vmem:[#allocation91_spill] sm:$0xff]  ;;  %v1292_v42 = vpop.f32.mrf.mxu0 }
 0x2a1   :  { %1843 = vmatpush.msrb.mxu1 %v13509_v35  ;;  %1883 = vmatpush.msrb.mxu3 %v13510_v7  ;;  %v3869_v7 = vld [vmem:[%s12398_s0 + $0x60] sm:$0xff] }
 0x2a3   :  { %1844 = vmatpush.msrb.mxu1 %v13511_v40  ;;  %1884 = vmatpush.msrb.mxu3 %v13512_v2  ;;  %v13519_v40 = vld [vmem:[#allocation93_spill] sm:$0xff]  ;;  %v13520_v2 = vld [vmem:[#allocation95_spill] sm:$0xff] }
 0x2a5   :  { %1845 = vmatpush.msrb.mxu1 %v13513_v20  ;;  %1885 = vmatpush.msrb.mxu3 %v13514_v28  ;;  %v13521_v28 = vld [vmem:[#allocation97_spill] sm:$0xff] }
 0x2a7   :  { %1846 = vmatpush.msrb.mxu1 %v13515_v4  ;;  %1886 = vmatpush.msrb.mxu3 %v13516_v9  ;;  %v13522_v4 = vld [vmem:[#allocation99_spill] sm:$0xff] }
 0x2a9   :  { %1847 = vmatpush.msrb.mxu1 %v13517_v36  ;;  %1887 = vmatpush.msrb.mxu3 %v13518_v57  ;;  %v3870_v57 = vld [vmem:[%s12398_s0 + $0x68] sm:$0xff] }
 0x2ab   :  { %v1312_v35 = vpop.f32.mrf.mxu1  ;;  %1848 = vmatpush.msrb.mxu1 %v13519_v40  ;;  %1888 = vmatpush.msrb.mxu3 %v13520_v2  ;;  %v1412_v2 = vpop.f32.mrf.mxu2 }
 0x2ac   :  { %v1313_v20 = vadd.f32 %v1312_v35, %v1292_v42 }
 0x2ad   :  { %1849 = vmatpush.msrb.mxu1 %v13521_v28  ;;  %1889 = vmatpush.msrb.mxu3 %v13522_v4 }
 0x2ae   :  { %v1667_v9 = vadd.f32 %v3869_v7, %v1313_v20  ;;  %v3872_v7 = vld [vmem:[%s12398_s0 + $0x78] sm:$0xff] }
 0x2b0   :  { %v3873_v36 = vmul.f32 -1.442695, %v1667_v9 }
 0x2b1   :  { %v1352_v41 = vpop.f32.mrf.mxu3 }
 0x2b2   :  { %4001 = vpow2.f32 %v3873_v36  ;;  %v1353_v54 = vadd.f32 %v1352_v41, %v1332_v13  ;;  %v3871_v36 = vld [vmem:[%s12398_s0 + $0x70] sm:$0xff] }
 0x2b3   :  { %v1392_v11 = vpop.f32.mrf.mxu1 }
 0x2b4   :  { %v1668_v62 = vadd.f32 %v3870_v57, %v1353_v54 }
 0x2b6   :  { %v3874_v33 = vmul.f32 -1.442695, %v1668_v62  ;;  %v1372_v62 = vpop.f32.mrf.mxu0 }
 0x2b8   :  { %v4002_v40 = vpop.eup %4001  ;;  %4003 = vpow2.f32 %v3874_v33  ;;  %v1393_v33 = vadd.f32 %v1392_v11, %v1372_v62 }
 0x2b9   :  { %v1680_v42 = vadd.f32 1.0, %v4002_v40  ;;  %v1432_v35 = vpop.f32.mrf.mxu3 }
 0x2ba   :  { %v1433_v20 = vadd.f32 %v1432_v35, %v1412_v2  ;;  %v1669_v35 = vadd.f32 %v3871_v36, %v1393_v33 }
 0x2bb   :  { %4005 = vrcp.f32 %v1680_v42  ;;  %vm1688_vm13 = vweird.f32 %v1680_v42  ;;  %v1692_v16 = vand.u32 2147483647, %v1680_v42 }
 0x2bc   :  { %v1670_v28 = vadd.f32 %v3872_v7, %v1433_v20 }
 0x2bd   :  { %vm1693_vm1 = vcmp.eq.f32.partialorder %v1692_v16, 8.507059e+37 }
 0x2be   :  { %v4004_v4 = vpop.eup %4003  ;;  %v3875_v9 = vmul.f32 -1.442695, %v1670_v28  ;;  %v1452_v14 = vpop.f32.mrf.mxu0 }
 0x2bf   :  { %v1681_v19 = vadd.f32 1.0, %v4004_v4  ;;  %v1694_v4 = vand.u32 2147483648, %v1680_v42 }
 0x2c0   :  { %4007 = vpow2.f32 %v3875_v9 }
 0x2c1   :  { %v4006_v41 = vpop.eup %4005  ;;  %4009 = vrcp.f32 %v1681_v19  ;;  %v1709_v11 = vand.u32 2147483648, %v1681_v19  ;;  %vm1703_vm0 = vweird.f32 %v1681_v19 }
 0x2c2   :  { %v1684_v54 = vmul.f32 %v4006_v41, %v1680_v42  ;;  %vm1689_vm12 = vweird.f32 %v4006_v41 }
 0x2c3   :  { %vm8801_vm14 = vmor %vm1688_vm13, %vm1689_vm12 }
 0x2c4   :  { %v1685_v13 = vsub.f32 1.0, %v1684_v54  ;;  %v1707_v54 = vand.u32 2147483647, %v1681_v19 }
 0x2c6   :  { %v4008_v57 = vpop.eup %4007  ;;  %v1686_v40 = vmul.f32 %v4006_v41, %v1685_v13  ;;  %vm1708_vm3 = vcmp.eq.f32.partialorder %v1707_v54, 8.507059e+37 }
 0x2c7   :  { %v4010_v2 = vpop.eup %4009  ;;  %v1682_v7 = vadd.f32 1.0, %v4008_v57  ;;  %v1695_v57 = vor.u32 1.1754944e-38, %v1694_v4 }
 0x2c8   :  { %v1699_v20 = vmul.f32 %v4010_v2, %v1681_v19  ;;  %v1687_v28 = vadd.f32 %v4006_v41, %v1686_v40  ;;  %vm1704_vm15 = vweird.f32 %v4010_v2 }
 0x2c9   :  { %4011 = vrcp.f32 %v1682_v7  ;;  %vm1705_vm2 = vmor %vm1703_vm0, %vm1704_vm15  ;;  %v1724_v62 = vand.u32 2147483648, %v1682_v7  ;;  %vm1718_vm5 = vweird.f32 %v1682_v7 }
 0x2ca   :  { %v1700_v9 = vsub.f32 1.0, %v1699_v20  ;;  %4013 = vtanh.f32 %v1669_v35  ;;  %v1691_v33 = vsel %vm8801_vm14, %v4006_v41, %v1687_v28  ;;  %v1710_v20 = vor.u32 1.1754944e-38, %v1709_v11 }
 0x2cb   :  { %v1472_v13 = vpop.f32.mrf.mxu1  ;;  %v1696_v61 = vsel %vm1693_vm1, %v1695_v57, %v1691_v33 }
 0x2cc   :  { %v1701_v63 = vmul.f32 %v4010_v2, %v1700_v9  ;;  %v1473_v36 = vadd.f32 %v1472_v13, %v1452_v14  ;;  %v1492_v9 = vpop.f32.mrf.mxu2 }
 0x2ce   :  { %v1702_v40 = vadd.f32 %v4010_v2, %v1701_v63  ;;  %v1595_v35 = vadd.f32 %v1473_v36, %v6833_v12  ;;  %v13525_v36 = vld [vmem:[#allocation101_spill] sm:$0xff] }
 0x2cf   :  { %v4012_v42 = vpop.eup %4011 }
 0x2d0   :  { %v1706_v34 = vsel %vm1705_vm2, %v4010_v2, %v1702_v40  ;;  %v1714_v50 = vmul.f32 %v4012_v42, %v1682_v7  ;;  %v4014_v25 = vpop.eup %4013  ;;  %v3866_v4 = vmul.f32 -1.442695, %v1595_v35  ;;  %vm1719_vm4 = vweird.f32 %v4012_v42  ;;  %v13531_v40 = vld [vmem:[#allocation113_spill] sm:$0xff] }
 0x2d1   :  { %v1711_v17 = vsel %vm1708_vm3, %v1710_v20, %v1706_v34  ;;  %v1512_v5 = vpop.f32.mrf.mxu3  ;;  %v1730_v14 = vmul.f32 %v4014_v25, %v1696_v61  ;;  %v1722_v34 = vand.u32 2147483647, %v1682_v7  ;;  %vm1720_vm6 = vmor %vm1718_vm5, %vm1719_vm4  ;;  %v13533_v20 = vld [vmem:[#allocation116_spill] sm:$0xff]  ;;  %v13534_v35 = vld [vmem:[#allocation117_spill] sm:$0xff] }
 0x2d2   :  { %v1729_v41 = vmul.f32 %v1711_v17, %v7703_v3  ;;  %v1715_v28 = vsub.f32 1.0, %v1714_v50  ;;  %v1513_v19 = vadd.f32 %v1512_v5, %v1492_v9  ;;  %v1725_v17 = vor.u32 1.1754944e-38, %v1724_v62 }
 0x2d3   :  { %vm1723_vm7 = vcmp.eq.f32.partialorder %v1722_v34, 8.507059e+37  ;;  %v13538_v34 = vld [vmem:[#allocation52_spill] sm:$0xff] }
 0x2d4   :  { %v8809_v16 = vadd.f32 %v1730_v14, %v1729_v41  ;;  %v1716_v63 = vmul.f32 %v4012_v42, %v1715_v28  ;;  %v1596_v11 = vadd.f32 %v1513_v19, %v6828_v1  ;;  %v1532_v28 = vpop.f32.mrf.mxu0  ;;  %v13535_v19 = vld [vmem:[#allocation119_spill] sm:$0xff] }
 0x2d6   :  { %4015 = vtanh.f32 %v8809_v16  ;;  %v1717_v2 = vadd.f32 %v4012_v42, %v1716_v63  ;;  %v3867_v54 = vmul.f32 -1.442695, %v1596_v11  ;;  %v13536_v63 = vld [vmem:[#allocation121_spill] sm:$0xff] }
 0x2d7   :  { %4017 = vpow2.f32 %v3866_v4  ;;  %v1572_v4 = vpop.f32.mrf.mxu2 }
 0x2d8   :  { %v1721_v3 = vsel %vm1720_vm6, %v4012_v42, %v1717_v2  ;;  %4019 = vpow2.f32 %v3867_v54  ;;  %v13532_v42 = vld [vmem:[#allocation115_spill] sm:$0xff]  ;;  %v13537_v54 = vld [vmem:[#allocation124_spill] sm:$0xff] }
 0x2d9   :  { %v1726_v25 = vsel %vm1723_vm7, %v1725_v17, %v1721_v3 }
 0x2dc   :  { %v4016_v5 = vpop.eup %4015 }
 0x2dd   :  { %v8813_v50 = vmul.f32 %v4016_v5, %v1726_v25  ;;  %v4018_v61 = vpop.eup %4017  ;;  %v13539_v5 = vld [vmem:[#allocation2_spill] sm:$0xff] }
 0x2de   :  { %v4020_v13 = vpop.eup %4019  ;;  %v8819_v7 = vadd.f32 1.0, %v4018_v61  ;;  %v13540_v61 = vld [vmem:[#allocation53_spill] sm:$0xff] }
 0x2df   :  { %1750 = vmatmul.f32.vlgmr.msra.gmra.mxu0 %v8813_v50  ;;  %1790 = vmatmul.f32.vlgmr.msra.gmra.mxu2 %v8813_v50  ;;  %v8821_v33 = vadd.f32 1.0, %v4020_v13  ;;  %v13541_v13 = vld [vmem:[#allocation54_spill] sm:$0xff] }
 0x2e0   :  { %1894 = vmatpush.msra.mxu0 %v7715_v31  ;;  %1934 = vmatpush.msra.mxu2 %v7721_v32  ;;  %4021 = vrcp.f32 %v8819_v7  ;;  %v13526_v31 = vld [vmem:[#allocation103_spill] sm:$0xff]  ;;  %v13527_v32 = vld [vmem:[#allocation105_spill] sm:$0xff]  ;;  %vm1616_vm10 = vweird.f32 %v8819_v7 }
 0x2e1   :  { %4023 = vrcp.f32 %v8821_v33  ;;  %vm1631_vm11 = vweird.f32 %v8821_v33 }
 0x2e2   :  { %1895 = vmatpush.msra.mxu0 %v7727_v8  ;;  %1935 = vmatpush.msra.mxu2 %v7733_v22  ;;  %v13528_v8 = vld [vmem:[#allocation107_spill] sm:$0xff]  ;;  %v13529_v22 = vld [vmem:[#allocation109_spill] sm:$0xff] }
 0x2e4   :  { %1896 = vmatpush.msra.mxu0 %v7739_v56  ;;  %1936 = vmatpush.msra.mxu2 %v7745_v21  ;;  %v13530_v56 = vld [vmem:[#allocation111_spill] sm:$0xff] }
 0x2e6   :  { %1897 = vmatpush.msra.mxu0 %v13525_v36  ;;  %1937 = vmatpush.msra.mxu2 %v13526_v31  ;;  %v8837_v21 = vpop.eup %4021  ;;  %v13542_v36 = vld [vmem:[#allocation4_spill] sm:$0xff] }
 0x2e7   :  { %1830 = vmatmul.f32.vlgmr.msrb.gmra.mxu0 %v8813_v50  ;;  %1870 = vmatmul.f32.vlgmr.msrb.gmra.mxu2 %v8813_v50  ;;  %v8839_v57 = vpop.eup %4023  ;;  %v1612_v9 = vmul.f32 %v8837_v21, %v8819_v7  ;;  %vm1617_vm8 = vweird.f32 %v8837_v21 }
 0x2e8   :  { %1898 = vmatpush.msra.mxu0 %v13527_v32  ;;  %1938 = vmatpush.msra.mxu2 %v13528_v8  ;;  %v1627_v41 = vmul.f32 %v8839_v57, %v8821_v33  ;;  %v13543_v8 = vld [vmem:[#allocation56_spill] sm:$0xff]  ;;  %vm1632_vm9 = vweird.f32 %v8839_v57  ;;  %vm8875_vm12 = vmor %vm1616_vm10, %vm1617_vm8 }
 0x2e9   :  { %v1613_v3 = vsub.f32 1.0, %v1612_v9  ;;  %v13548_v9 = vld [vmem:[#allocation66_spill] sm:$0xff]  ;;  %vm8881_vm13 = vmor %vm1631_vm11, %vm1632_vm9 }
 0x2ea   :  { %1899 = vmatpush.msra.mxu0 %v13529_v22  ;;  %1939 = vmatpush.msra.mxu2 %v13530_v56  ;;  %v1628_v17 = vsub.f32 1.0, %v1627_v41  ;;  %v13544_v22 = vld [vmem:[#allocation58_spill] sm:$0xff] }
 0x2eb   :  { %v1552_v14 = vpop.f32.mrf.mxu1 }
 0x2ec   :  { %1900 = vmatpush.msra.mxu0 %v13531_v40  ;;  %1940 = vmatpush.msra.mxu2 %v13532_v42  ;;  %v1553_v2 = vadd.f32 %v1552_v14, %v1532_v28  ;;  %v1629_v56 = vmul.f32 %v8839_v57, %v1628_v17  ;;  %v1614_v40 = vmul.f32 %v8837_v21, %v1613_v3  ;;  %v13545_v42 = vld [vmem:[#allocation60_spill] sm:$0xff]  ;;  %v1637_v28 = vand.u32 2147483648, %v8821_v33  ;;  %v13556_v17 = vld [vmem:[#allocation74_spill] sm:$0xff] }
 0x2ed   :  { %v13555_v3 = vld [vmem:[#allocation72_spill] sm:$0xff] }
 0x2ee   :  { %1901 = vmatpush.msra.mxu0 %v13533_v20  ;;  %1941 = vmatpush.msra.mxu2 %v13534_v35  ;;  %v1597_v31 = vadd.f32 %v1553_v2, %v13542_v36  ;;  %v13546_v20 = vld [vmem:[#allocation62_spill] sm:$0xff]  ;;  %v13547_v35 = vld [vmem:[#allocation64_spill] sm:$0xff]  ;;  %v1615_v41 = vadd.f32 %v8837_v21, %v1614_v40  ;;  %v1630_v14 = vadd.f32 %v8839_v57, %v1629_v56  ;;  %v1620_v2 = vand.u32 2147483647, %v8819_v7 }
 0x2ef   :  { %v13559_v56 = vld [vmem:[#allocation80_spill] sm:$0xff] }
 0x2f0   :  { %1902 = vmatpush.msra.mxu0 %v13535_v19  ;;  %1942 = vmatpush.msra.mxu2 %v13536_v63  ;;  %v1622_v19 = vand.u32 2147483648, %v8819_v7  ;;  %v13549_v63 = vld [vmem:[#allocation68_spill] sm:$0xff]  ;;  %vm1621_vm14 = vcmp.eq.f32.partialorder %v1620_v2, 8.507059e+37 }
 0x2f1   :  { %v1592_v11 = vpop.f32.mrf.mxu3  ;;  %v13567_v2 = vld [vmem:[#allocation96_spill] sm:$0xff] }
 0x2f2   :  { %v1593_v62 = vadd.f32 %v1592_v11, %v1572_v4  ;;  %1903 = vmatpush.msra.mxu0 %v13537_v54  ;;  %1943 = vmatpush.msra.mxu2 %v13538_v34  ;;  %v13550_v4 = vld [vmem:[#allocation70_spill] sm:$0xff]  ;;  %v8932_v34 = vld [vmem:[%s12397_s1 + $0x7e8] sm:$0xff] }
 0x2f4   :  { %v1598_v25 = vadd.f32 %v1593_v62, %v13539_v5  ;;  %1904 = vmatpush.msra.mxu0 %v13540_v61  ;;  %1944 = vmatpush.msra.mxu2 %v13541_v13  ;;  %v1635_v62 = vand.u32 2147483647, %v8821_v33  ;;  %v1634_v61 = vsel %vm8881_vm13, %v8839_v57, %v1630_v14  ;;  %v1638_v13 = vor.u32 1.1754944e-38, %v1637_v28  ;;  %v13565_v28 = vld [vmem:[#allocation92_spill] sm:$0xff] }
 0x2f6   :  { %v3868_v32 = vmul.f32 -1.442695, %v1598_v25  ;;  %1905 = vmatpush.msra.mxu0 %v13543_v8  ;;  %1945 = vmatpush.msra.mxu2 %v13544_v22  ;;  %v1619_v25 = vsel %vm8875_vm12, %v8837_v21, %v1615_v41  ;;  %v13558_v8 = vld [vmem:[#allocation78_spill] sm:$0xff]  ;;  %vm1636_vm15 = vcmp.eq.f32.partialorder %v1635_v62, 8.507059e+37 }
 0x2f7   :  { %v1639_v22 = vsel %vm1636_vm15, %v1638_v13, %v1634_v61  ;;  %v13568_v62 = vld [vmem:[#allocation98_spill] sm:$0xff]  ;;  %v13571_v61 = vld [vmem:[#allocation104_spill] sm:$0xff] }
 0x2f8   :  { %4025 = vpow2.f32 %v3868_v32  ;;  %1906 = vmatpush.msra.mxu0 %v13545_v42  ;;  %1946 = vmatpush.msra.mxu2 %v13546_v20  ;;  %v13557_v32 = vld [vmem:[#allocation76_spill] sm:$0xff]  ;;  %v1657_v40 = vmul.f32 %v1639_v22, %v8027_v37  ;;  %v9112_v22 = vld [vmem:[%s12397_s1 + $0x4a0] sm:$0xff] }
 0x2f9   :  { %4027 = vtanh.f32 %v1597_v31  ;;  %v1623_v31 = vor.u32 1.1754944e-38, %v1622_v19  ;;  %v13566_v19 = vld [vmem:[#allocation94_spill] sm:$0xff]  ;;  %v13573_v13 = vld [vmem:[#allocation108_spill] sm:$0xff] }
 0x2fa   :  { %1907 = vmatpush.msra.mxu0 %v13547_v35  ;;  %1947 = vmatpush.msra.mxu2 %v13548_v9  ;;  %v13562_v9 = vld [vmem:[#allocation86_spill] sm:$0xff] }
 0x2fb   :  { %v1624_v21 = vsel %vm1621_vm14, %v1623_v31, %v1619_v25  ;;  %v13570_v25 = vld [vmem:[#allocation102_spill] sm:$0xff] }
 0x2fc   :  { %1908 = vmatpush.msra.mxu0 %v13549_v63  ;;  %1948 = vmatpush.msra.mxu2 %v13550_v4  ;;  %v9098_v31 = vld [vmem:[%s12397_s1 + $0x4e0] sm:$0xff] }
 0x2fe   :  { %v4026_v54 = vpop.eup %4025  ;;  %1909 = vmatpush.msra.mxu0 %v13555_v3  ;;  %1949 = vmatpush.msra.mxu2 %v13556_v17  ;;  %v8940_v3 = vld [vmem:[%s12397_s1 + $0x7a0] sm:$0xff]  ;;  %v8946_v17 = vld [vmem:[%s12397_s1 + $0x7a8] sm:$0xff] }
 0x2ff   :  { %v1610_v7 = vadd.f32 1.0, %v4026_v54  ;;  %1910 = vmatmul.f32.vlgmr.msra.gmra.mxu0 %v8813_v50  ;;  %1950 = vmatmul.f32.vlgmr.msra.gmra.mxu2 %v8813_v50  ;;  %v4028_v33 = vpop.eup %4027  ;;  %v8926_v54 = vld [vmem:[%s12397_s1 + $0x7e0] sm:$0xff] }
 0x300   :  { %1974 = vmatpush.msrb.mxu0 %v13557_v32  ;;  %2014 = vmatpush.msrb.mxu2 %v13558_v8  ;;  %v1658_v57 = vmul.f32 %v4028_v33, %v1624_v21  ;;  %v13572_v33 = vld [vmem:[#allocation106_spill] sm:$0xff]  ;;  %v9104_v32 = vld [vmem:[%s12397_s1 + $0x4e8] sm:$0xff]  ;;  %v13575_v21 = vld [vmem:[#allocation112_spill] sm:$0xff] }
 0x301   :  { %4029 = vrcp.f32 %v1610_v7  ;;  %vm1646_vm1 = vweird.f32 %v1610_v7  ;;  %v13574_v8 = vld [vmem:[#allocation110_spill] sm:$0xff] }
 0x302   :  { %1975 = vmatpush.msrb.mxu0 %v13559_v56  ;;  %2015 = vmatpush.msrb.mxu2 %v7969_v29  ;;  %v8904_v20 = vadd.f32 %v1658_v57, %v1657_v40  ;;  %v9118_v56 = vld [vmem:[%s12397_s1 + $0x4a8] sm:$0xff]  ;;  %v13576_v57 = vld [vmem:[#allocation114_spill] sm:$0xff] }
 0x303   :  { %v13577_v40 = vld [vmem:[#allocation118_spill] sm:$0xff] }
 0x304   :  { %1976 = vmatpush.msrb.mxu0 %v7981_v6  ;;  %2016 = vmatpush.msrb.mxu2 %v7987_v26  ;;  %v13560_v6 = vld [vmem:[#allocation82_spill] sm:$0xff]  ;;  %4031 = vtanh.f32 %v8904_v20  ;;  %v1652_v26 = vand.u32 2147483648, %v1610_v7 }
 0x306   :  { %1977 = vmatpush.msrb.mxu0 %v7993_v45  ;;  %2017 = vmatpush.msrb.mxu2 %v7999_v38  ;;  %v1650_v45 = vand.u32 2147483647, %v1610_v7  ;;  %v13561_v38 = vld [vmem:[#allocation84_spill] sm:$0xff] }
 0x307   :  { %v4030_v42 = vpop.eup %4029 }
 0x308   :  { %v1642_v35 = vmul.f32 %v4030_v42, %v1610_v7  ;;  %1978 = vmatpush.msrb.mxu0 %v8005_v46  ;;  %2018 = vmatpush.msrb.mxu2 %v8011_v59  ;;  %vm1647_vm0 = vweird.f32 %v4030_v42  ;;  %v13563_v46 = vld [vmem:[#allocation88_spill] sm:$0xff]  ;;  %v13564_v59 = vld [vmem:[#allocation90_spill] sm:$0xff]  ;;  %vm1651_vm3 = vcmp.eq.f32.partialorder %v1650_v45, 8.507059e+37  ;;  %v9090_v7 = vld [vmem:[%s12397_s1 + $0x528] sm:$0xff] }
 0x309   :  { %vm1648_vm2 = vmor %vm1646_vm1, %vm1647_vm0  ;;  %v9154_v45 = vld [vmem:[%s12397_s1 + $0x7f0] sm:$0xff] }
 0x30a   :  { %v1643_v29 = vsub.f32 1.0, %v1642_v35  ;;  %1979 = vmatpush.msrb.mxu0 %v8018_v39  ;;  %2019 = vmatpush.msrb.mxu2 %v13560_v6  ;;  %v1653_v39 = vor.u32 1.1754944e-38, %v1652_v26  ;;  %v4032_v63 = vpop.eup %4031  ;;  %v9132_v35 = vld [vmem:[%s12397_s1 + $0x468] sm:$0xff]  ;;  %v13579_v6 = vld [vmem:[#allocation122_spill] sm:$0xff] }
 0x30b   :  { %v9140_v26 = vld [vmem:[%s12397_s1 + $0x420] sm:$0xff] }
 0x30c   :  { %v1644_v37 = vmul.f32 %v4030_v42, %v1643_v29  ;;  %1980 = vmatpush.msrb.mxu0 %v13561_v38  ;;  %2020 = vmatpush.msrb.mxu2 %v13562_v9  ;;  %v13578_v29 = vld [vmem:[#allocation120_spill] sm:$0xff]  ;;  %v9160_v38 = vld [vmem:[%s12397_s1 + $0x7f8] sm:$0xff]  ;;  %v13581_v9 = vld [vmem:[#allocation123_spill] sm:$0xff] }
 0x30d   :  { %13580 = vst [vmem:[#allocation65_spill] sm:$0xff] %v9160_v38 }
 0x30e   :  { %v1645_v41 = vadd.f32 %v4030_v42, %v1644_v37  ;;  %1981 = vmatpush.msrb.mxu0 %v13563_v46  ;;  %2021 = vmatpush.msrb.mxu2 %v13564_v59  ;;  %v9146_v37 = vld [vmem:[%s12397_s1 + $0x428] sm:$0xff]  ;;  %v9168_v46 = vld [vmem:[%s12397_s1 + $0x7b0] sm:$0xff]  ;;  %v9174_v59 = vld [vmem:[%s12397_s1 + $0x7b8] sm:$0xff] }
 0x30f   :  { %13583 = vst [vmem:[#allocation67_spill] sm:$0xff] %v9168_v46 }
 0x310   :  { %v1649_v14 = vsel %vm1648_vm2, %v4030_v42, %v1645_v41  ;;  %1982 = vmatpush.msrb.mxu0 %v13565_v28  ;;  %2022 = vmatpush.msrb.mxu2 %v13566_v19  ;;  %v9126_v42 = vld [vmem:[%s12397_s1 + $0x460] sm:$0xff]  ;;  %v13582_v41 = vld [vmem:[#allocation125_spill] sm:$0xff]  ;;  %13584 = vst [vmem:[#allocation69_spill] sm:$0xff] %v9174_v59  ;;  %v9182_v28 = vld [vmem:[%s12397_s1 + $0x770] sm:$0xff] }
 0x311   :  { %v1654_v4 = vsel %vm1651_vm3, %v1653_v39, %v1649_v14  ;;  %v13585_v39 = vld [vmem:[#allocation126_spill] sm:$0xff]  ;;  %v13586_v14 = vld [vmem:[#allocation127_spill] sm:$0xff]  ;;  %13587 = vst [vmem:[#allocation71_spill] sm:$0xff] %v9182_v28  ;;  %v9188_v19 = vld [vmem:[%s12397_s1 + $0x778] sm:$0xff] }
 0x312   :  { %v8917_v11 = vmul.f32 %v4032_v63, %v1654_v4  ;;  %1983 = vmatpush.msrb.mxu0 %v13567_v2  ;;  %2023 = vmatpush.msrb.mxu2 %v13568_v62  ;;  %13588 = vst [vmem:[#allocation73_spill] sm:$0xff] %v9188_v19  ;;  %v13589_v63 = vld [vmem:[#allocation128_spill] sm:$0xff]  ;;  %v13590_v4 = vld [vmem:[#allocation129_spill] sm:$0xff] }
 0x313   :  { %v9196_v2 = vld [vmem:[%s12397_s1 + $0x730] sm:$0xff]  ;;  %v9202_v62 = vld [vmem:[%s12397_s1 + $0x738] sm:$0xff] }
 0x314   :  { %1770 = vmatmul.f32.vlgmr.msra.gmra.mxu1 %v8917_v11  ;;  %1810 = vmatmul.f32.vlgmr.msra.gmra.mxu3 %v8917_v11  ;;  %13591 = vst [vmem:[#allocation75_spill] sm:$0xff] %v9196_v2 }
 0x315   :  { %1914 = vmatpush.msra.mxu1 %v8926_v54  ;;  %1954 = vmatpush.msra.mxu3 %v8932_v34  ;;  %13592 = vst [vmem:[#allocation77_spill] sm:$0xff] %v9202_v62 }
 0x316   :  { %1984 = vmatpush.msrb.mxu0 %v8081_v10  ;;  %2024 = vmatpush.msrb.mxu2 %v8087_v52  ;;  %v8954_v10 = vld [vmem:[%s12397_s1 + $0x760] sm:$0xff]  ;;  %v8960_v52 = vld [vmem:[%s12397_s1 + $0x768] sm:$0xff] }
 0x317   :  { %1915 = vmatpush.msra.mxu1 %v8940_v3  ;;  %1955 = vmatpush.msra.mxu3 %v8946_v17 }
 0x318   :  { %1985 = vmatpush.msrb.mxu0 %v8095_v23  ;;  %2025 = vmatpush.msrb.mxu2 %v8101_v48  ;;  %v8968_v23 = vld [vmem:[%s12397_s1 + $0x720] sm:$0xff]  ;;  %v8974_v48 = vld [vmem:[%s12397_s1 + $0x728] sm:$0xff] }
 0x319   :  { %1916 = vmatpush.msra.mxu1 %v8954_v10  ;;  %1956 = vmatpush.msra.mxu3 %v8960_v52 }
 0x31a   :  { %1986 = vmatpush.msrb.mxu0 %v8111_v27  ;;  %2026 = vmatpush.msrb.mxu2 %v8117_v18  ;;  %v8984_v27 = vld [vmem:[%s12397_s1 + $0x6e0] sm:$0xff]  ;;  %v8990_v18 = vld [vmem:[%s12397_s1 + $0x6e8] sm:$0xff] }
 0x31b   :  { %1917 = vmatpush.msra.mxu1 %v8968_v23  ;;  %1957 = vmatpush.msra.mxu3 %v8974_v48 }
 0x31c   :  { %1987 = vmatpush.msrb.mxu0 %v8125_v43  ;;  %2027 = vmatpush.msrb.mxu2 %v8131_v44  ;;  %v8998_v43 = vld [vmem:[%s12397_s1 + $0x6a0] sm:$0xff]  ;;  %v9004_v44 = vld [vmem:[%s12397_s1 + $0x6a8] sm:$0xff] }
 0x31d   :  { %1850 = vmatmul.f32.vlgmr.msrb.gmra.mxu1 %v8917_v11  ;;  %1890 = vmatmul.f32.vlgmr.msrb.gmra.mxu3 %v8917_v11 }
 0x31e   :  { %1918 = vmatpush.msra.mxu1 %v8984_v27  ;;  %1958 = vmatpush.msra.mxu3 %v8990_v18 }
 0x31f   :  { %1988 = vmatpush.msrb.mxu0 %v8139_v49  ;;  %2028 = vmatpush.msrb.mxu2 %v8145_v51  ;;  %v9014_v49 = vld [vmem:[%s12397_s1 + $0x660] sm:$0xff]  ;;  %v9020_v51 = vld [vmem:[%s12397_s1 + $0x668] sm:$0xff] }
 0x320   :  { %1919 = vmatpush.msra.mxu1 %v8998_v43  ;;  %1959 = vmatpush.msra.mxu3 %v9004_v44 }
 0x321   :  { %1989 = vmatpush.msrb.mxu0 %v8157_v30  ;;  %2029 = vmatpush.msrb.mxu2 %v8163_v55  ;;  %v9028_v30 = vld [vmem:[%s12397_s1 + $0x620] sm:$0xff]  ;;  %v9034_v55 = vld [vmem:[%s12397_s1 + $0x628] sm:$0xff] }
 0x322   :  { %1990 = vmatmul.f32.vlgmr.msrb.gmra.mxu0 %v8813_v50  ;;  %2030 = vmatmul.f32.vlgmr.msrb.gmra.mxu2 %v8813_v50  ;;  %v13569_v50 = vld [vmem:[#allocation100_spill] sm:$0xff] }
 0x323   :  { %1920 = vmatpush.msra.mxu1 %v9014_v49  ;;  %1960 = vmatpush.msra.mxu3 %v9020_v51 }
 0x324   :  { %2193 = vmatpush.msra.mxu0 %v8175_v58  ;;  %2233 = vmatpush.msra.mxu2 %v8181_v0  ;;  %v9042_v58 = vld [vmem:[%s12397_s1 + $0x5e0] sm:$0xff]  ;;  %v9048_v0 = vld [vmem:[%s12397_s1 + $0x5e8] sm:$0xff] }
 0x325   :  { %1921 = vmatpush.msra.mxu1 %v9028_v30  ;;  %1961 = vmatpush.msra.mxu3 %v9034_v55 }
 0x326   :  { %2194 = vmatpush.msra.mxu0 %v8189_v24  ;;  %2234 = vmatpush.msra.mxu2 %v8195_v15  ;;  %v9056_v24 = vld [vmem:[%s12397_s1 + $0x5a0] sm:$0xff]  ;;  %v9062_v15 = vld [vmem:[%s12397_s1 + $0x5a8] sm:$0xff] }
 0x327   :  { %1922 = vmatpush.msra.mxu1 %v9042_v58  ;;  %1962 = vmatpush.msra.mxu3 %v9048_v0 }
 0x328   :  { %2195 = vmatpush.msra.mxu0 %v8203_v53  ;;  %2235 = vmatpush.msra.mxu2 %v8209_v60  ;;  %v9070_v53 = vld [vmem:[%s12397_s1 + $0x560] sm:$0xff]  ;;  %v9076_v60 = vld [vmem:[%s12397_s1 + $0x568] sm:$0xff] }
 0x329   :  { %1923 = vmatpush.msra.mxu1 %v9056_v24  ;;  %1963 = vmatpush.msra.mxu3 %v9062_v15 }
 0x32a   :  { %2196 = vmatpush.msra.mxu0 %v8217_v47  ;;  %2236 = vmatpush.msra.mxu2 %v13569_v50  ;;  %v9084_v47 = vld [vmem:[%s12397_s1 + $0x520] sm:$0xff]  ;;  %v13593_v50 = vld [vmem:[#allocation3_spill] sm:$0xff] }
 0x32b   :  { %1924 = vmatpush.msra.mxu1 %v9070_v53  ;;  %1964 = vmatpush.msra.mxu3 %v9076_v60 }
 0x32c   :  { %2197 = vmatpush.msra.mxu0 %v13570_v25  ;;  %2237 = vmatpush.msra.mxu2 %v13571_v61  ;;  %v13594_v25 = vld [vmem:[#allocation6_spill] sm:$0xff]  ;;  %v9210_v61 = vld [vmem:[%s12397_s1 + $0x6f0] sm:$0xff] }
 0x32d   :  { %1925 = vmatpush.msra.mxu1 %v9084_v47  ;;  %1965 = vmatpush.msra.mxu3 %v9090_v7  ;;  %13595 = vst [vmem:[#allocation79_spill] sm:$0xff] %v9210_v61 }
 0x32e   :  { %2198 = vmatpush.msra.mxu0 %v13572_v33  ;;  %2238 = vmatpush.msra.mxu2 %v13573_v13  ;;  %v9216_v33 = vld [vmem:[%s12397_s1 + $0x6f8] sm:$0xff] }
 0x32f   :  { %1926 = vmatpush.msra.mxu1 %v9098_v31  ;;  %1966 = vmatpush.msra.mxu3 %v9104_v32  ;;  %13596 = vst [vmem:[#allocation81_spill] sm:$0xff] %v9216_v33  ;;  %v13597_v13 = vld [vmem:[#allocation5_spill] sm:$0xff] }
 0x330   :  { %2199 = vmatpush.msra.mxu0 %v13574_v8  ;;  %2239 = vmatpush.msra.mxu2 %v13575_v21  ;;  %v13598_v8 = vld [vmem:[#allocation8_spill] sm:$0xff] }
 0x331   :  { %1927 = vmatpush.msra.mxu1 %v9112_v22  ;;  %1967 = vmatpush.msra.mxu3 %v9118_v56  ;;  %v9224_v21 = vld [vmem:[%s12397_s1 + $0x6b0] sm:$0xff] }
 0x332   :  { %2200 = vmatpush.msra.mxu0 %v13576_v57  ;;  %2240 = vmatpush.msra.mxu2 %v13577_v40  ;;  %13599 = vst [vmem:[#allocation83_spill] sm:$0xff] %v9224_v21  ;;  %v9230_v57 = vld [vmem:[%s12397_s1 + $0x6b8] sm:$0xff]  ;;  %v13601_v40 = vld [vmem:[#allocation7_spill] sm:$0xff] }
 0x333   :  { %1928 = vmatpush.msra.mxu1 %v9126_v42  ;;  %1968 = vmatpush.msra.mxu3 %v9132_v35  ;;  %13600 = vst [vmem:[#allocation85_spill] sm:$0xff] %v9230_v57 }
 0x334   :  { %2201 = vmatpush.msra.mxu0 %v13578_v29  ;;  %2241 = vmatpush.msra.mxu2 %v13579_v6  ;;  %v13602_v29 = vld [vmem:[#allocation10_spill] sm:$0xff]  ;;  %v9238_v6 = vld [vmem:[%s12397_s1 + $0x670] sm:$0xff] }
 0x335   :  { %1929 = vmatpush.msra.mxu1 %v9140_v26  ;;  %1969 = vmatpush.msra.mxu3 %v9146_v37  ;;  %13603 = vst [vmem:[#allocation87_spill] sm:$0xff] %v9238_v6 }
 0x336   :  { %1930 = vmatmul.f32.vlgmr.msra.gmra.mxu1 %v8917_v11  ;;  %1970 = vmatmul.f32.vlgmr.msra.gmra.mxu3 %v8917_v11 }
 0x337   :  { %1994 = vmatpush.msrb.mxu1 %v9154_v45  ;;  %2034 = vmatpush.msrb.mxu3 %v9160_v38 }
 0x338   :  { %2202 = vmatpush.msra.mxu0 %v13581_v9  ;;  %2242 = vmatpush.msra.mxu2 %v13582_v41  ;;  %v9244_v9 = vld [vmem:[%s12397_s1 + $0x678] sm:$0xff] }
 0x339   :  { %1995 = vmatpush.msrb.mxu1 %v9168_v46  ;;  %2035 = vmatpush.msrb.mxu3 %v9174_v59  ;;  %13604 = vst [vmem:[#allocation89_spill] sm:$0xff] %v9244_v9  ;;  %v13605_v41 = vld [vmem:[#allocation9_spill] sm:$0xff] }
 0x33a   :  { %2203 = vmatpush.msra.mxu0 %v13585_v39  ;;  %2243 = vmatpush.msra.mxu2 %v13586_v14  ;;  %v13606_v39 = vld [vmem:[#allocation12_spill] sm:$0xff] }
 0x33b   :  { %1996 = vmatpush.msrb.mxu1 %v9182_v28  ;;  %2036 = vmatpush.msrb.mxu3 %v9188_v19  ;;  %v9252_v14 = vld [vmem:[%s12397_s1 + $0x630] sm:$0xff] }
 0x33c   :  { %2204 = vmatpush.msra.mxu0 %v13589_v63  ;;  %2244 = vmatpush.msra.mxu2 %v13590_v4  ;;  %13607 = vst [vmem:[#allocation91_spill] sm:$0xff] %v9252_v14  ;;  %v9258_v63 = vld [vmem:[%s12397_s1 + $0x638] sm:$0xff]  ;;  %v13609_v4 = vld [vmem:[#allocation11_spill] sm:$0xff] }
 0x33d   :  { %1997 = vmatpush.msrb.mxu1 %v9196_v2  ;;  %2037 = vmatpush.msrb.mxu3 %v9202_v62  ;;  %13608 = vst [vmem:[#allocation93_spill] sm:$0xff] %v9258_v63 }
 0x33e   :  { %2205 = vmatpush.msra.mxu0 %v13593_v50  ;;  %2245 = vmatpush.msra.mxu2 %v13594_v25  ;;  %v13610_v50 = vld [vmem:[#allocation14_spill] sm:$0xff]  ;;  %v9266_v25 = vld [vmem:[%s12397_s1 + $0x5f0] sm:$0xff] }
 0x33f   :  { %1998 = vmatpush.msrb.mxu1 %v9210_v61  ;;  %2038 = vmatpush.msrb.mxu3 %v9216_v33  ;;  %13611 = vst [vmem:[#allocation95_spill] sm:$0xff] %v9266_v25 }
 0x340   :  { %2206 = vmatpush.msra.mxu0 %v13597_v13  ;;  %2246 = vmatpush.msra.mxu2 %v13598_v8  ;;  %v9272_v13 = vld [vmem:[%s12397_s1 + $0x5f8] sm:$0xff] }
 0x341   :  { %1999 = vmatpush.msrb.mxu1 %v9224_v21  ;;  %2039 = vmatpush.msrb.mxu3 %v9230_v57  ;;  %13612 = vst [vmem:[#allocation97_spill] sm:$0xff] %v9272_v13  ;;  %v13613_v8 = vld [vmem:[#allocation13_spill] sm:$0xff] }
 0x342   :  { %2207 = vmatpush.msra.mxu0 %v13601_v40  ;;  %2247 = vmatpush.msra.mxu2 %v13602_v29  ;;  %v13614_v40 = vld [vmem:[#allocation16_spill] sm:$0xff] }
 0x343   :  { %2000 = vmatpush.msrb.mxu1 %v9238_v6  ;;  %2040 = vmatpush.msrb.mxu3 %v9244_v9  ;;  %v9280_v29 = vld [vmem:[%s12397_s1 + $0x5b0] sm:$0xff] }
 0x344   :  { %2208 = vmatpush.msra.mxu0 %v13605_v41  ;;  %2248 = vmatpush.msra.mxu2 %v13606_v39  ;;  %13615 = vst [vmem:[#allocation99_spill] sm:$0xff] %v9280_v29  ;;  %v9286_v41 = vld [vmem:[%s12397_s1 + $0x5b8] sm:$0xff]  ;;  %v13617_v39 = vld [vmem:[#allocation15_spill] sm:$0xff] }
 0x345   :  { %2001 = vmatpush.msrb.mxu1 %v9252_v14  ;;  %2041 = vmatpush.msrb.mxu3 %v9258_v63  ;;  %13616 = vst [vmem:[#allocation101_spill] sm:$0xff] %v9286_v41  ;;  %v13680_v63 = vld [vmem:[#allocation46_spill] sm:$0xff] }
 0x346   :  { %2273 = vmatpush.msrb.mxu0 %v13609_v4  ;;  %2313 = vmatpush.msrb.mxu2 %v13610_v50  ;;  %v13618_v4 = vld [vmem:[#allocation18_spill] sm:$0xff]  ;;  %v9294_v50 = vld [vmem:[%s12397_s1 + $0x570] sm:$0xff] }
 0x347   :  { %2002 = vmatpush.msrb.mxu1 %v9266_v25  ;;  %2042 = vmatpush.msrb.mxu3 %v9272_v13  ;;  %13619 = vst [vmem:[#allocation103_spill] sm:$0xff] %v9294_v50  ;;  %v13678_v13 = vld [vmem:[#allocation44_spill] sm:$0xff]  ;;  %v13679_v25 = vld [vmem:[#allocation47_spill] sm:$0xff] }
 0x348   :  { %2274 = vmatpush.msrb.mxu0 %v13613_v8  ;;  %2314 = vmatpush.msrb.mxu2 %v13614_v40  ;;  %v9300_v8 = vld [vmem:[%s12397_s1 + $0x578] sm:$0xff]  ;;  %v9306_v40 = vld [vmem:[%s12397_s1 + $0x310] sm:$0xff] }
 0x349   :  { %2003 = vmatpush.msrb.mxu1 %v9280_v29  ;;  %2043 = vmatpush.msrb.mxu3 %v9286_v41  ;;  %13620 = vst [vmem:[#allocation105_spill] sm:$0xff] %v9300_v8  ;;  %v13675_v41 = vld [vmem:[#allocation43_spill] sm:$0xff]  ;;  %v13676_v29 = vld [vmem:[#allocation42_spill] sm:$0xff] }
 0x34a   :  { %2275 = vmatpush.msrb.mxu0 %v13617_v39  ;;  %2315 = vmatpush.msrb.mxu2 %v13618_v4  ;;  %13621 = vst [vmem:[#allocation107_spill] sm:$0xff] %v9306_v40  ;;  %v13622_v39 = vld [vmem:[#allocation17_spill] sm:$0xff]  ;;  %v9313_v4 = vld [vmem:[%s12397_s1 + $0x530] sm:$0xff] }
 0x34b   :  { %2004 = vmatpush.msrb.mxu1 %v9294_v50  ;;  %2044 = vmatpush.msrb.mxu3 %v9300_v8  ;;  %13623 = vst [vmem:[#allocation109_spill] sm:$0xff] %v9313_v4  ;;  %v9319_v8 = vld [vmem:[%s12397_s1 + $0x538] sm:$0xff] }
 0x34c   :  { %2276 = vmatpush.msrb.mxu0 %v9306_v40  ;;  %2316 = vmatpush.msrb.mxu2 %v13622_v39  ;;  %13624 = vst [vmem:[#allocation111_spill] sm:$0xff] %v9319_v8  ;;  %v9325_v40 = vld [vmem:[%s12397_s1 + $0x2d0] sm:$0xff]  ;;  %v13631_v50 = vld [vmem:[#allocation21_spill] sm:$0xff] }
 0x34d   :  { %2005 = vmatpush.msrb.mxu1 %v9313_v4  ;;  %2045 = vmatpush.msrb.mxu3 %v9319_v8  ;;  %13625 = vst [vmem:[#allocation113_spill] sm:$0xff] %v9325_v40  ;;  %v13626_v39 = vld [vmem:[#allocation20_spill] sm:$0xff]  ;;  %v9338_v8 = vld [vmem:[%s12397_s1 + $0x4f8] sm:$0xff] }
 0x34e   :  { %2277 = vmatpush.msrb.mxu0 %v9325_v40  ;;  %2317 = vmatpush.msrb.mxu2 %v13626_v39  ;;  %v9332_v4 = vld [vmem:[%s12397_s1 + $0x4f0] sm:$0xff]  ;;  %13628 = vst [vmem:[#allocation116_spill] sm:$0xff] %v9338_v8  ;;  %v13630_v39 = vld [vmem:[#allocation22_spill] sm:$0xff] }
 0x34f   :  { %13627 = vst [vmem:[#allocation115_spill] sm:$0xff] %v9332_v4  ;;  %2006 = vmatpush.msrb.mxu1 %v9332_v4  ;;  %2046 = vmatpush.msrb.mxu3 %v9338_v8  ;;  %v9344_v40 = vld [vmem:[%s12397_s1 + $0x290] sm:$0xff]  ;;  %v9352_v4 = vld [vmem:[%s12397_s1 + $0x4b8] sm:$0xff] }
 0x350   :  { %13629 = vst [vmem:[#allocation117_spill] sm:$0xff] %v9344_v40  ;;  %2278 = vmatpush.msrb.mxu0 %v9344_v40  ;;  %2318 = vmatpush.msrb.mxu2 %v13630_v39  ;;  %v9358_v8 = vld [vmem:[%s12397_s1 + $0x250] sm:$0xff]  ;;  %v9364_v39 = vld [vmem:[%s12397_s1 + $0x258] sm:$0xff]  ;;  %v13647_v40 = vld [vmem:[#allocation27_spill] sm:$0xff] }
 0x351   :  { %2007 = vmatpush.msrb.mxu1 %v13631_v50  ;;  %13632 = vst [vmem:[#allocation119_spill] sm:$0xff] %v9352_v4  ;;  %2047 = vmatpush.msrb.mxu3 %v9352_v4  ;;  %v13635_v50 = vld [vmem:[#allocation23_spill] sm:$0xff]  ;;  %v9371_v4 = vld [vmem:[%s12397_s1 + $0x478] sm:$0xff] }
 0x352   :  { %13633 = vst [vmem:[#allocation121_spill] sm:$0xff] %v9358_v8  ;;  %2279 = vmatpush.msrb.mxu0 %v9358_v8  ;;  %2319 = vmatpush.msrb.mxu2 %v9364_v39  ;;  %v9377_v8 = vld [vmem:[%s12397_s1 + $0x210] sm:$0xff] }
 0x353   :  { %13634 = vst [vmem:[#allocation124_spill] sm:$0xff] %v9364_v39  ;;  %2008 = vmatpush.msrb.mxu1 %v13635_v50  ;;  %2048 = vmatpush.msrb.mxu3 %v9371_v4  ;;  %v9383_v39 = vld [vmem:[%s12397_s1 + $0x218] sm:$0xff]  ;;  %v13639_v50 = vld [vmem:[#allocation26_spill] sm:$0xff] }
 0x354   :  { %13636 = vst [vmem:[#allocation52_spill] sm:$0xff] %v9371_v4  ;;  %2280 = vmatpush.msrb.mxu0 %v9377_v8  ;;  %2320 = vmatpush.msrb.mxu2 %v9383_v39  ;;  %v9390_v4 = vld [vmem:[%s12397_s1 + $0x438] sm:$0xff] }
 0x355   :  { %13637 = vst [vmem:[#allocation53_spill] sm:$0xff] %v9377_v8  ;;  %2009 = vmatpush.msrb.mxu1 %v13639_v50  ;;  %2049 = vmatpush.msrb.mxu3 %v9390_v4  ;;  %v9398_v8 = vld [vmem:[%s12397_s1 + $0x1d0] sm:$0xff]  ;;  %v9404_v50 = vld [vmem:[%s12397_s1 + $0x1d8] sm:$0xff] }
 0x356   :  { %13638 = vst [vmem:[#allocation54_spill] sm:$0xff] %v9383_v39  ;;  %2010 = vmatmul.f32.vlgmr.msrb.gmra.mxu1 %v8917_v11  ;;  %2050 = vmatmul.f32.vlgmr.msrb.gmra.mxu3 %v8917_v11  ;;  %v13643_v39 = vld [vmem:[#allocation19_spill] sm:$0xff]  ;;  %v9412_v11 = vld [vmem:[%s12397_s1 + $0x190] sm:$0xff] }
 0x357   :  { %13640 = vst [vmem:[#allocation56_spill] sm:$0xff] %v9390_v4  ;;  %2281 = vmatpush.msrb.mxu0 %v9398_v8  ;;  %2321 = vmatpush.msrb.mxu2 %v9404_v50  ;;  %v13644_v4 = vld [vmem:[#allocation28_spill] sm:$0xff] }
 0x358   :  { %13641 = vst [vmem:[#allocation58_spill] sm:$0xff] %v9398_v8  ;;  %2213 = vmatpush.msra.mxu1 %v13643_v39  ;;  %2253 = vmatpush.msra.mxu3 %v13644_v4  ;;  %v9418_v8 = vld [vmem:[%s12397_s1 + $0x198] sm:$0xff]  ;;  %v9426_v4 = vld [vmem:[%s12397_s1 + $0x150] sm:$0xff] }
 0x359   :  { %13642 = vst [vmem:[#allocation60_spill] sm:$0xff] %v9404_v50  ;;  %2282 = vmatpush.msrb.mxu0 %v9412_v11  ;;  %2322 = vmatpush.msrb.mxu2 %v9418_v8  ;;  %v13648_v50 = vld [vmem:[#allocation24_spill] sm:$0xff]  ;;  %v9432_v39 = vld [vmem:[%s12397_s1 + $0x158] sm:$0xff] }
 0x35a   :  { %13645 = vst [vmem:[#allocation62_spill] sm:$0xff] %v9412_v11  ;;  %2214 = vmatpush.msra.mxu1 %v13647_v40  ;;  %2254 = vmatpush.msra.mxu3 %v13648_v50  ;;  %v13651_v11 = vld [vmem:[#allocation32_spill] sm:$0xff]  ;;  %v9446_v50 = vld [vmem:[%s12397_s1 + $0x118] sm:$0xff] }
 0x35b   :  { %13646 = vst [vmem:[#allocation64_spill] sm:$0xff] %v9418_v8  ;;  %2283 = vmatpush.msrb.mxu0 %v9426_v4  ;;  %2323 = vmatpush.msrb.mxu2 %v9432_v39  ;;  %v13652_v8 = vld [vmem:[#allocation31_spill] sm:$0xff]  ;;  %v9440_v40 = vld [vmem:[%s12397_s1 + $0x110] sm:$0xff] }
 0x35c   :  { %13649 = vst [vmem:[#allocation66_spill] sm:$0xff] %v9426_v4  ;;  %2215 = vmatpush.msra.mxu1 %v13651_v11  ;;  %2255 = vmatpush.msra.mxu3 %v13652_v8  ;;  %v13655_v4 = vld [vmem:[#allocation25_spill] sm:$0xff]  ;;  %v9454_v8 = vld [vmem:[%s12397_s1 + $0xd0] sm:$0xff] }
 0x35d   :  { %13650 = vst [vmem:[#allocation68_spill] sm:$0xff] %v9432_v39  ;;  %2284 = vmatpush.msrb.mxu0 %v9440_v40  ;;  %2324 = vmatpush.msrb.mxu2 %v9446_v50  ;;  %v13656_v39 = vld [vmem:[#allocation34_spill] sm:$0xff]  ;;  %v9460_v11 = vld [vmem:[%s12397_s1 + $0xd8] sm:$0xff] }
 0x35e   :  { %13653 = vst [vmem:[#allocation70_spill] sm:$0xff] %v9440_v40  ;;  %2216 = vmatpush.msra.mxu1 %v13655_v4  ;;  %2256 = vmatpush.msra.mxu3 %v13656_v39  ;;  %v13659_v40 = vld [vmem:[#allocation30_spill] sm:$0xff]  ;;  %v9468_v4 = vld [vmem:[%s12397_s1 + $0x90] sm:$0xff]  ;;  %v9474_v39 = vld [vmem:[%s12397_s1 + $0x98] sm:$0xff] }
 0x35f   :  { %13654 = vst [vmem:[#allocation72_spill] sm:$0xff] %v9446_v50  ;;  %2285 = vmatpush.msrb.mxu0 %v9454_v8  ;;  %2325 = vmatpush.msrb.mxu2 %v9460_v11  ;;  %v13660_v50 = vld [vmem:[#allocation29_spill] sm:$0xff] }
 0x360   :  { %13657 = vst [vmem:[#allocation74_spill] sm:$0xff] %v9454_v8  ;;  %2217 = vmatpush.msra.mxu1 %v13659_v40  ;;  %2257 = vmatpush.msra.mxu3 %v13660_v50  ;;  %v13663_v8 = vld [vmem:[#allocation39_spill] sm:$0xff]  ;;  %v9482_v40 = vld [vmem:[%s12397_s1 + $0x50] sm:$0xff]  ;;  %v9488_v50 = vld [vmem:[%s12397_s1 + $0x58] sm:$0xff] }
 0x361   :  { %13658 = vst [vmem:[#allocation76_spill] sm:$0xff] %v9460_v11  ;;  %2286 = vmatpush.msrb.mxu0 %v9468_v4  ;;  %2326 = vmatpush.msrb.mxu2 %v9474_v39  ;;  %v13664_v11 = vld [vmem:[#allocation33_spill] sm:$0xff] }
 0x362   :  { %13661 = vst [vmem:[#allocation78_spill] sm:$0xff] %v9468_v4  ;;  %2218 = vmatpush.msra.mxu1 %v13663_v8  ;;  %2258 = vmatpush.msra.mxu3 %v13664_v11  ;;  %v13667_v4 = vld [vmem:[#allocation35_spill] sm:$0xff]  ;;  %v9496_v8 = vld [vmem:[%s12397_s1 + $0x10] sm:$0xff]  ;;  %v9502_v11 = vld [vmem:[%s12397_s1 + $0x18] sm:$0xff] }
 0x363   :  { %13662 = vst [vmem:[#allocation80_spill] sm:$0xff] %v9474_v39  ;;  %2287 = vmatpush.msrb.mxu0 %v9482_v40  ;;  %2327 = vmatpush.msrb.mxu2 %v9488_v50  ;;  %v13668_v39 = vld [vmem:[#allocation40_spill] sm:$0xff] }
 0x364   :  { %13665 = vst [vmem:[#allocation82_spill] sm:$0xff] %v9482_v40  ;;  %2219 = vmatpush.msra.mxu1 %v13667_v4  ;;  %2259 = vmatpush.msra.mxu3 %v13668_v39  ;;  %v13671_v40 = vld [vmem:[#allocation37_spill] sm:$0xff]  ;;  %v13673_v4 = vld [vmem:[#allocation38_spill] sm:$0xff] }
 0x365   :  { %13666 = vst [vmem:[#allocation84_spill] sm:$0xff] %v9488_v50  ;;  %2288 = vmatpush.msrb.mxu0 %v9496_v8  ;;  %2328 = vmatpush.msrb.mxu2 %v9502_v11  ;;  %v13672_v50 = vld [vmem:[#allocation36_spill] sm:$0xff]  ;;  %v13674_v39 = vld [vmem:[#allocation41_spill] sm:$0xff] }
 0x366   :  { %13669 = vst [vmem:[#allocation86_spill] sm:$0xff] %v9496_v8  ;;  %2220 = vmatpush.msra.mxu1 %v13671_v40  ;;  %2260 = vmatpush.msra.mxu3 %v13672_v50  ;;  %v13677_v8 = vld [vmem:[#allocation45_spill] sm:$0xff]  ;;  %v13682_v40 = vld [vmem:[#allocation48_spill] sm:$0xff]  ;;  %v13683_v50 = vld [vmem:[#allocation51_spill] sm:$0xff] }
 0x367   :  { %13670 = vst [vmem:[#allocation88_spill] sm:$0xff] %v9502_v11  ;;  %v13681_v11 = vld [vmem:[#allocation49_spill] sm:$0xff] }
 0x368   :  { %2221 = vmatpush.msra.mxu1 %v13673_v4  ;;  %2261 = vmatpush.msra.mxu3 %v13674_v39  ;;  %v13684_v4 = vld [vmem:[#allocation50_spill] sm:$0xff]  ;;  %v13685_v39 = vld [vmem:[#allocation55_spill] sm:$0xff] }
 0x36a   :  { %2222 = vmatpush.msra.mxu1 %v13675_v41  ;;  %2262 = vmatpush.msra.mxu3 %v13676_v29  ;;  %v13686_v41 = vld [vmem:[#allocation57_spill] sm:$0xff]  ;;  %v13687_v29 = vld [vmem:[#allocation132_spill] sm:$0xff] }
 0x36c   :  { %2223 = vmatpush.msra.mxu1 %v13677_v8  ;;  %2263 = vmatpush.msra.mxu3 %v13678_v13  ;;  %v13688_v8 = vld [vmem:[#allocation133_spill] sm:$0xff]  ;;  %v13689_v13 = vld [vmem:[#allocation134_spill] sm:$0xff] }
 0x36e   :  { %2224 = vmatpush.msra.mxu1 %v13679_v25  ;;  %2264 = vmatpush.msra.mxu3 %v13680_v63  ;;  %v13690_v25 = vld [vmem:[#allocation135_spill] sm:$0xff]  ;;  %v13691_v63 = vld [vmem:[#allocation136_spill] sm:$0xff] }
 0x370   :  { %2225 = vmatpush.msra.mxu1 %v13681_v11  ;;  %2265 = vmatpush.msra.mxu3 %v13682_v40  ;;  %v13692_v11 = vld [vmem:[#allocation137_spill] sm:$0xff]  ;;  %v13693_v40 = vld [vmem:[#allocation138_spill] sm:$0xff] }
 0x372   :  { %2226 = vmatpush.msra.mxu1 %v13683_v50  ;;  %2266 = vmatpush.msra.mxu3 %v13684_v4  ;;  %v13694_v50 = vld [vmem:[#allocation139_spill] sm:$0xff]  ;;  %v13695_v4 = vld [vmem:[#allocation140_spill] sm:$0xff] }
 0x374   :  { %2227 = vmatpush.msra.mxu1 %v13685_v39  ;;  %2267 = vmatpush.msra.mxu3 %v13686_v41  ;;  %v13696_v39 = vld [vmem:[#allocation141_spill] sm:$0xff]  ;;  %v9534_v41 = vld [vmem:[%s12397_s1 + $0x6d0] sm:$0xff] }
 0x375   :  { %13697 = vst [vmem:[#allocation90_spill] sm:$0xff] %v9534_v41 }
 0x376   :  { %2228 = vmatpush.msra.mxu1 %v13687_v29  ;;  %2268 = vmatpush.msra.mxu3 %v13688_v8  ;;  %v13698_v29 = vld [vmem:[#allocation59_spill] sm:$0xff]  ;;  %v9541_v8 = vld [vmem:[%s12397_s1 + $0x690] sm:$0xff] }
 0x377   :  { %13699 = vst [vmem:[#allocation92_spill] sm:$0xff] %v9541_v8 }
 0x378   :  { %2293 = vmatpush.msrb.mxu1 %v13689_v13  ;;  %2333 = vmatpush.msrb.mxu3 %v13690_v25  ;;  %v13700_v13 = vld [vmem:[#allocation61_spill] sm:$0xff]  ;;  %v9548_v25 = vld [vmem:[%s12397_s1 + $0x650] sm:$0xff] }
 0x379   :  { %13701 = vst [vmem:[#allocation94_spill] sm:$0xff] %v9548_v25 }
 0x37a   :  { %2294 = vmatpush.msrb.mxu1 %v13691_v63  ;;  %2334 = vmatpush.msrb.mxu3 %v13692_v11  ;;  %v13702_v63 = vld [vmem:[#allocation63_spill] sm:$0xff]  ;;  %v9555_v11 = vld [vmem:[%s12397_s1 + $0x610] sm:$0xff] }
 0x37b   :  { %13703 = vst [vmem:[#allocation96_spill] sm:$0xff] %v9555_v11 }
 0x37c   :  { %2295 = vmatpush.msrb.mxu1 %v13693_v40  ;;  %2335 = vmatpush.msrb.mxu3 %v13694_v50  ;;  %v9561_v40 = vld [vmem:[%s12397_s1 + $0x618] sm:$0xff]  ;;  %v9567_v50 = vld [vmem:[%s12397_s1 + $0x5d0] sm:$0xff] }
 0x37d   :  { %13704 = vst [vmem:[#allocation98_spill] sm:$0xff] %v9561_v40 }
 0x37e   :  { %2296 = vmatpush.msrb.mxu1 %v13695_v4  ;;  %2336 = vmatpush.msrb.mxu3 %v13696_v39  ;;  %13705 = vst [vmem:[#allocation100_spill] sm:$0xff] %v9567_v50  ;;  %v9573_v4 = vld [vmem:[%s12397_s1 + $0x5d8] sm:$0xff]  ;;  %v9579_v39 = vld [vmem:[%s12397_s1 + $0x590] sm:$0xff] }
 0x37f   :  { %13706 = vst [vmem:[#allocation102_spill] sm:$0xff] %v9573_v4 }
 0x380   :  { %2297 = vmatpush.msrb.mxu1 %v9534_v41  ;;  %2337 = vmatpush.msrb.mxu3 %v13698_v29  ;;  %13707 = vst [vmem:[#allocation104_spill] sm:$0xff] %v9579_v39  ;;  %v9585_v29 = vld [vmem:[%s12397_s1 + $0x598] sm:$0xff] }
 0x381   :  { %13708 = vst [vmem:[#allocation106_spill] sm:$0xff] %v9585_v29 }
 0x382   :  { %2298 = vmatpush.msrb.mxu1 %v9541_v8  ;;  %2338 = vmatpush.msrb.mxu3 %v13700_v13  ;;  %v9591_v13 = vld [vmem:[%s12397_s1 + $0x550] sm:$0xff] }
 0x383   :  { %13709 = vst [vmem:[#allocation108_spill] sm:$0xff] %v9591_v13 }
 0x384   :  { %2299 = vmatpush.msrb.mxu1 %v9548_v25  ;;  %2339 = vmatpush.msrb.mxu3 %v13702_v63  ;;  %v9597_v63 = vld [vmem:[%s12397_s1 + $0x558] sm:$0xff] }
 0x385   :  { %13710 = vst [vmem:[#allocation110_spill] sm:$0xff] %v9597_v63 }
 0x386   :  { %2300 = vmatpush.msrb.mxu1 %v9555_v11  ;;  %2340 = vmatpush.msrb.mxu3 %v9561_v40  ;;  %v9642_v40 = vld [vmem:[%s12397_s1 + $0x450] sm:$0xff]  ;;  %v9648_v11 = vld [vmem:[%s12397_s1 + $0x458] sm:$0xff] }
 0x387   :  { %13717 = vst [vmem:[#allocation125_spill] sm:$0xff] %v9642_v40 }
 0x388   :  { %2301 = vmatpush.msrb.mxu1 %v9567_v50  ;;  %2341 = vmatpush.msrb.mxu3 %v9573_v4  ;;  %v9630_v50 = vld [vmem:[%s12397_s1 + $0x490] sm:$0xff]  ;;  %13718 = vst [vmem:[#allocation126_spill] sm:$0xff] %v9648_v11 }
 0x389   :  { %13715 = vst [vmem:[#allocation122_spill] sm:$0xff] %v9630_v50 }
 0x38a   :  { %2302 = vmatpush.msrb.mxu1 %v9579_v39  ;;  %2342 = vmatpush.msrb.mxu3 %v9585_v29  ;;  %v9603_v39 = vld [vmem:[%s12397_s1 + $0x510] sm:$0xff]  ;;  %v9609_v29 = vld [vmem:[%s12397_s1 + $0x518] sm:$0xff] }
 0x38b   :  { %13711 = vst [vmem:[#allocation112_spill] sm:$0xff] %v9603_v39 }
 0x38c   :  { %2303 = vmatpush.msrb.mxu1 %v9591_v13  ;;  %2343 = vmatpush.msrb.mxu3 %v9597_v63  ;;  %13712 = vst [vmem:[#allocation114_spill] sm:$0xff] %v9609_v29  ;;  %v9615_v13 = vld [vmem:[%s12397_s1 + $0x4d0] sm:$0xff]  ;;  %v9621_v63 = vld [vmem:[%s12397_s1 + $0x4d8] sm:$0xff] }
 0x38d   :  { %13713 = vst [vmem:[#allocation118_spill] sm:$0xff] %v9615_v13 }
 0x38e   :  { %2304 = vmatpush.msrb.mxu1 %v9603_v39  ;;  %2344 = vmatpush.msrb.mxu3 %v9609_v29  ;;  %13714 = vst [vmem:[#allocation120_spill] sm:$0xff] %v9621_v63  ;;  %v1751_v39 = vpop.f32.mrf.mxu0  ;;  %v3879_v29 = vld [vmem:[%s12398_s0 + $0x80] sm:$0xff] }
 0x390   :  { %2305 = vmatpush.msrb.mxu1 %v9615_v13  ;;  %2345 = vmatpush.msrb.mxu3 %v9621_v63  ;;  %v9636_v13 = vld [vmem:[%s12397_s1 + $0x498] sm:$0xff] }
 0x391   :  { %v1771_v4 = vpop.f32.mrf.mxu1  ;;  %13716 = vst [vmem:[#allocation123_spill] sm:$0xff] %v9636_v13 }
 0x392   :  { %2306 = vmatpush.msrb.mxu1 %v9630_v50  ;;  %2346 = vmatpush.msrb.mxu3 %v9636_v13  ;;  %v1772_v63 = vadd.f32 %v1771_v4, %v1751_v39  ;;  %v9654_v13 = vld [vmem:[%s12397_s1 + $0x410] sm:$0xff]  ;;  %v9660_v4 = vld [vmem:[%s12397_s1 + $0x418] sm:$0xff] }
 0x393   :  { %13719 = vst [vmem:[#allocation127_spill] sm:$0xff] %v9654_v13 }
 0x394   :  { %2307 = vmatpush.msrb.mxu1 %v9642_v40  ;;  %2347 = vmatpush.msrb.mxu3 %v9648_v11  ;;  %v2126_v50 = vadd.f32 %v3879_v29, %v1772_v63  ;;  %13720 = vst [vmem:[#allocation128_spill] sm:$0xff] %v9660_v4  ;;  %v1791_v40 = vpop.f32.mrf.mxu2  ;;  %v3880_v29 = vld [vmem:[%s12398_s0 + $0x88] sm:$0xff] }
 0x396   :  { %2308 = vmatpush.msrb.mxu1 %v9654_v13  ;;  %2348 = vmatpush.msrb.mxu3 %v9660_v4  ;;  %v3883_v39 = vmul.f32 -1.442695, %v2126_v50  ;;  %v3882_v50 = vld [vmem:[%s12398_s0 + $0x98] sm:$0xff] }
 0x397   :  { %v1811_v25 = vpop.f32.mrf.mxu3 }
 0x398   :  { %4033 = vpow2.f32 %v3883_v39  ;;  %v1812_v63 = vadd.f32 %v1811_v25, %v1791_v40  ;;  %v1831_v25 = vpop.f32.mrf.mxu0 }
 0x39a   :  { %v2127_v11 = vadd.f32 %v3880_v29, %v1812_v63  ;;  %v1851_v33 = vpop.f32.mrf.mxu1 }
 0x39b   :  { %v1852_v40 = vadd.f32 %v1851_v33, %v1831_v25 }
 0x39c   :  { %v3884_v8 = vmul.f32 -1.442695, %v2127_v11  ;;  %v1871_v9 = vpop.f32.mrf.mxu2 }
 0x39e   :  { %v4034_v41 = vpop.eup %4033  ;;  %4035 = vpow2.f32 %v3884_v8 }
 0x39f   :  { %v2139_v13 = vadd.f32 1.0, %v4034_v41  ;;  %v3881_v41 = vld [vmem:[%s12398_s0 + $0x90] sm:$0xff] }
 0x3a0   :  { %v1891_v14 = vpop.f32.mrf.mxu3  ;;  %v2128_v29 = vadd.f32 %v3881_v41, %v1852_v40  ;;  %v1911_v41 = vpop.f32.mrf.mxu0 }
 0x3a1   :  { %4037 = vrcp.f32 %v2139_v13  ;;  %v1892_v4 = vadd.f32 %v1891_v14, %v1871_v9  ;;  %vm2147_vm5 = vweird.f32 %v2139_v13  ;;  %v2151_v2 = vand.u32 2147483647, %v2139_v13 }
 0x3a3   :  { %v2129_v57 = vadd.f32 %v3882_v50, %v1892_v4  ;;  %vm2152_vm9 = vcmp.eq.f32.partialorder %v2151_v2, 8.507059e+37 }
 0x3a4   :  { %v4036_v6 = vpop.eup %4035 }
 0x3a5   :  { %v2140_v21 = vadd.f32 1.0, %v4036_v6  ;;  %v3885_v61 = vmul.f32 -1.442695, %v2129_v57  ;;  %v2153_v6 = vand.u32 2147483648, %v2139_v13 }
 0x3a7   :  { %v4038_v39 = vpop.eup %4037  ;;  %4039 = vrcp.f32 %v2140_v21  ;;  %v2168_v33 = vand.u32 2147483648, %v2140_v21  ;;  %v2166_v40 = vand.u32 2147483647, %v2140_v21  ;;  %vm2162_vm8 = vweird.f32 %v2140_v21 }
 0x3a8   :  { %v2143_v11 = vmul.f32 %v4038_v39, %v2139_v13  ;;  %4041 = vpow2.f32 %v3885_v61  ;;  %vm2148_vm4 = vweird.f32 %v4038_v39 }
 0x3a9   :  { %4043 = vtanh.f32 %v2128_v29  ;;  %vm9672_vm6 = vmor %vm2147_vm5, %vm2148_vm4  ;;  %v2169_v29 = vor.u32 1.1754944e-38, %v2168_v33  ;;  %vm2167_vm11 = vcmp.eq.f32.partialorder %v2166_v40, 8.507059e+37 }
 0x3aa   :  { %v2144_v8 = vsub.f32 1.0, %v2143_v11 }
 0x3ac   :  { %v2145_v63 = vmul.f32 %v4038_v39, %v2144_v8  ;;  %v2154_v8 = vor.u32 1.1754944e-38, %v2153_v6  ;;  %v1951_v6 = vpop.f32.mrf.mxu2 }
 0x3ad   :  { %v4040_v62 = vpop.eup %4039 }
 0x3ae   :  { %v4042_v9 = vpop.eup %4041  ;;  %v2158_v14 = vmul.f32 %v4040_v62, %v2140_v21  ;;  %v2146_v4 = vadd.f32 %v4038_v39, %v2145_v63  ;;  %vm2163_vm7 = vweird.f32 %v4040_v62 }
 0x3af   :  { %v2141_v57 = vadd.f32 1.0, %v4042_v9  ;;  %vm2164_vm10 = vmor %vm2162_vm8, %vm2163_vm7  ;;  %v4044_v19 = vpop.eup %4043 }
 0x3b0   :  { %v2159_v50 = vsub.f32 1.0, %v2158_v14  ;;  %v2150_v11 = vsel %vm9672_vm6, %v4038_v39, %v2146_v4 }
 0x3b1   :  { %4045 = vrcp.f32 %v2141_v57  ;;  %v2155_v14 = vsel %vm2152_vm9, %v2154_v8, %v2150_v11  ;;  %v2183_v33 = vand.u32 2147483648, %v2141_v57  ;;  %v2181_v40 = vand.u32 2147483647, %v2141_v57 }
 0x3b2   :  { %v2160_v25 = vmul.f32 %v4040_v62, %v2159_v50  ;;  %v2189_v61 = vmul.f32 %v4044_v19, %v2155_v14  ;;  %vm2177_vm13 = vweird.f32 %v2141_v57  ;;  %v9709_v14 = vld [vmem:[%s12397_s1 + $0x3a8] sm:$0xff] }
 0x3b3   :  { %v1931_v63 = vpop.f32.mrf.mxu1  ;;  %v2184_v8 = vor.u32 1.1754944e-38, %v2183_v33  ;;  %vm2182_vm15 = vcmp.eq.f32.partialorder %v2181_v40, 8.507059e+37  ;;  %v9753_v33 = vld [vmem:[%s12397_s1 + $0x2e8] sm:$0xff] }
 0x3b4   :  { %v2161_v9 = vadd.f32 %v4040_v62, %v2160_v25  ;;  %v1932_v13 = vadd.f32 %v1931_v63, %v1911_v41  ;;  %13725 = vst [vmem:[#allocation6_spill] sm:$0xff] %v9753_v33  ;;  %v9777_v40 = vld [vmem:[%s12397_s1 + $0x268] sm:$0xff] }
 0x3b5   :  { %13729 = vst [vmem:[#allocation10_spill] sm:$0xff] %v9777_v40 }
 0x3b6   :  { %v2165_v28 = vsel %vm2164_vm10, %v4040_v62, %v2161_v9  ;;  %v2054_v4 = vadd.f32 %v1932_v13, %v6833_v12 }
 0x3b7   :  { %v4046_v59 = vpop.eup %4045  ;;  %v2170_v50 = vsel %vm2167_vm11, %v2169_v29, %v2165_v28  ;;  %v9703_v29 = vld [vmem:[%s12397_s1 + $0x3a0] sm:$0xff] }
 0x3b8   :  { %v2188_v46 = vmul.f32 %v2170_v50, %v8809_v16  ;;  %v2173_v39 = vmul.f32 %v4046_v59, %v2141_v57  ;;  %vm2178_vm12 = vweird.f32 %v4046_v59  ;;  %v3876_v11 = vmul.f32 -1.442695, %v2054_v4  ;;  %v9691_v57 = vld [vmem:[%s12397_s1 + $0x3e0] sm:$0xff]  ;;  %v9725_v4 = vld [vmem:[%s12397_s1 + $0x368] sm:$0xff] }
 0x3b9   :  { %v1971_v38 = vpop.f32.mrf.mxu3  ;;  %vm2179_vm14 = vmor %vm2177_vm13, %vm2178_vm12 }
 0x3ba   :  { %v9680_v21 = vadd.f32 %v2189_v61, %v2188_v46  ;;  %v2174_v2 = vsub.f32 1.0, %v2173_v39  ;;  %v1972_v25 = vadd.f32 %v1971_v38, %v1951_v6  ;;  %v9719_v39 = vld [vmem:[%s12397_s1 + $0x360] sm:$0xff] }
 0x3bb   :  { %v9731_v6 = vld [vmem:[%s12397_s1 + $0x320] sm:$0xff] }
 0x3bc   :  { %4047 = vtanh.f32 %v9680_v21  ;;  %v2175_v62 = vmul.f32 %v4046_v59, %v2174_v2  ;;  %v2055_v28 = vadd.f32 %v1972_v25, %v6828_v1  ;;  %v9737_v2 = vld [vmem:[%s12397_s1 + $0x328] sm:$0xff]  ;;  %v9747_v25 = vld [vmem:[%s12397_s1 + $0x2e0] sm:$0xff] }
 0x3bd   :  { %4049 = vpow2.f32 %v3876_v11  ;;  %13723 = vst [vmem:[#allocation129_spill] sm:$0xff] %v9737_v2  ;;  %v9765_v11 = vld [vmem:[%s12397_s1 + $0x2a8] sm:$0xff] }
 0x3be   :  { %v2176_v16 = vadd.f32 %v4046_v59, %v2175_v62  ;;  %v3877_v19 = vmul.f32 -1.442695, %v2055_v28  ;;  %13724 = vst [vmem:[#allocation3_spill] sm:$0xff] %v9747_v25  ;;  %v9759_v62 = vld [vmem:[%s12397_s1 + $0x2a0] sm:$0xff] }
 0x3bf   :  { %13726 = vst [vmem:[#allocation5_spill] sm:$0xff] %v9759_v62  ;;  %v9771_v28 = vld [vmem:[%s12397_s1 + $0x260] sm:$0xff] }
 0x3c0   :  { %v2180_v41 = vsel %vm2179_vm14, %v4046_v59, %v2176_v16  ;;  %4051 = vpow2.f32 %v3877_v19  ;;  %v9697_v59 = vld [vmem:[%s12397_s1 + $0x3e8] sm:$0xff]  ;;  %13727 = vst [vmem:[#allocation8_spill] sm:$0xff] %v9765_v11 }
 0x3c1   :  { %v2185_v38 = vsel %vm2182_vm15, %v2184_v8, %v2180_v41  ;;  %13728 = vst [vmem:[#allocation7_spill] sm:$0xff] %v9771_v28  ;;  %v9787_v41 = vld [vmem:[%s12397_s1 + $0x220] sm:$0xff]  ;;  %v9793_v8 = vld [vmem:[%s12397_s1 + $0x228] sm:$0xff] }
 0x3c2   :  { %v4048_v46 = vpop.eup %4047  ;;  %13730 = vst [vmem:[#allocation9_spill] sm:$0xff] %v9787_v41 }
 0x3c3   :  { %v9684_v63 = vmul.f32 %v4048_v46, %v2185_v38  ;;  %v4050_v9 = vpop.eup %4049  ;;  %13731 = vst [vmem:[#allocation12_spill] sm:$0xff] %v9793_v8  ;;  %v9799_v46 = vld [vmem:[%s12397_s1 + $0x1e0] sm:$0xff]  ;;  %v9805_v38 = vld [vmem:[%s12397_s1 + $0x1e8] sm:$0xff] }
 0x3c4   :  { %v9712_v50 = vadd.f32 1.0, %v4050_v9  ;;  %13732 = vst [vmem:[#allocation11_spill] sm:$0xff] %v9799_v46 }
 0x3c5   :  { %2209 = vmatmul.f32.vlgmr.msra.gmra.mxu0 %v9684_v63  ;;  %2249 = vmatmul.f32.vlgmr.msra.gmra.mxu2 %v9684_v63  ;;  %13733 = vst [vmem:[#allocation14_spill] sm:$0xff] %v9805_v38 }
 0x3c6   :  { %2353 = vmatpush.msra.mxu0 %v9691_v57  ;;  %2393 = vmatpush.msra.mxu2 %v9697_v59  ;;  %v4052_v13 = vpop.eup %4051  ;;  %4053 = vrcp.f32 %v9712_v50  ;;  %vm2075_vm2 = vweird.f32 %v9712_v50 }
 0x3c7   :  { %v9714_v61 = vadd.f32 1.0, %v4052_v13 }
 0x3c8   :  { %2354 = vmatpush.msra.mxu0 %v9703_v29  ;;  %2394 = vmatpush.msra.mxu2 %v9709_v14 }
 0x3c9   :  { %4055 = vrcp.f32 %v9714_v61  ;;  %vm2090_vm3 = vweird.f32 %v9714_v61 }
 0x3ca   :  { %2355 = vmatpush.msra.mxu0 %v9719_v39  ;;  %2395 = vmatpush.msra.mxu2 %v9725_v4 }
 0x3cc   :  { %2356 = vmatpush.msra.mxu0 %v9731_v6  ;;  %2396 = vmatpush.msra.mxu2 %v9737_v2  ;;  %v9780_v16 = vpop.eup %4053 }
 0x3cd   :  { %2289 = vmatmul.f32.vlgmr.msrb.gmra.mxu0 %v9684_v63  ;;  %2329 = vmatmul.f32.vlgmr.msrb.gmra.mxu2 %v9684_v63  ;;  %v2071_v9 = vmul.f32 %v9780_v16, %v9712_v50  ;;  %vm2076_vm0 = vweird.f32 %v9780_v16 }
 0x3ce   :  { %2357 = vmatpush.msra.mxu0 %v9747_v25  ;;  %2397 = vmatpush.msra.mxu2 %v9753_v33  ;;  %v9827_v33 = vld [vmem:[%s12397_s1 + $0x160] sm:$0xff]  ;;  %vm9910_vm4 = vmor %vm2075_vm2, %vm2076_vm0 }
 0x3cf   :  { %v9782_v19 = vpop.eup %4055  ;;  %13736 = vst [vmem:[#allocation15_spill] sm:$0xff] %v9827_v33  ;;  %v2072_v25 = vsub.f32 1.0, %v2071_v9  ;;  %v9859_v9 = vld [vmem:[%s12397_s1 + $0xe8] sm:$0xff] }
 0x3d0   :  { %2358 = vmatpush.msra.mxu0 %v9759_v62  ;;  %2398 = vmatpush.msra.mxu2 %v9765_v11  ;;  %v2086_v13 = vmul.f32 %v9782_v19, %v9714_v61  ;;  %13741 = vst [vmem:[#allocation21_spill] sm:$0xff] %v9859_v9  ;;  %vm2091_vm1 = vweird.f32 %v9782_v19 }
 0x3d1   :  { %vm9920_vm5 = vmor %vm2090_vm3, %vm2091_vm1 }
 0x3d2   :  { %2359 = vmatpush.msra.mxu0 %v9771_v28  ;;  %2399 = vmatpush.msra.mxu2 %v9777_v40  ;;  %v9815_v40 = vld [vmem:[%s12397_s1 + $0x1a0] sm:$0xff] }
 0x3d3   :  { %13734 = vst [vmem:[#allocation13_spill] sm:$0xff] %v9815_v40 }
 0x3d4   :  { %2360 = vmatpush.msra.mxu0 %v9787_v41  ;;  %2400 = vmatpush.msra.mxu2 %v9793_v8  ;;  %v2011_v8 = vpop.f32.mrf.mxu1  ;;  %v1991_v41 = vpop.f32.mrf.mxu0 }
 0x3d5   :  { %v2012_v11 = vadd.f32 %v2011_v8, %v1991_v41  ;;  %v9846_v41 = vld [vmem:[%s12397_s1 + $0x128] sm:$0xff] }
 0x3d6   :  { %2361 = vmatpush.msra.mxu0 %v9799_v46  ;;  %2401 = vmatpush.msra.mxu2 %v9805_v38  ;;  %v9821_v46 = vld [vmem:[%s12397_s1 + $0x1a8] sm:$0xff]  ;;  %v2031_v38 = vpop.f32.mrf.mxu2  ;;  %13739 = vst [vmem:[#allocation20_spill] sm:$0xff] %v9846_v41 }
 0x3d7   :  { %13735 = vst [vmem:[#allocation16_spill] sm:$0xff] %v9821_v46  ;;  %v2056_v8 = vadd.f32 %v2012_v11, %v13542_v36  ;;  %v9873_v11 = vld [vmem:[%s12397_s1 + $0xa8] sm:$0xff] }
 0x3d8   :  { %2362 = vmatpush.msra.mxu0 %v9815_v40  ;;  %2402 = vmatpush.msra.mxu2 %v9821_v46  ;;  %v9833_v40 = vld [vmem:[%s12397_s1 + $0x168] sm:$0xff]  ;;  %v2087_v46 = vsub.f32 1.0, %v2086_v13  ;;  %13743 = vst [vmem:[#allocation26_spill] sm:$0xff] %v9873_v11 }
 0x3d9   :  { %v2051_v28 = vpop.f32.mrf.mxu3  ;;  %13737 = vst [vmem:[#allocation18_spill] sm:$0xff] %v9833_v40 }
 0x3da   :  { %v2052_v62 = vadd.f32 %v2051_v28, %v2031_v38  ;;  %2363 = vmatpush.msra.mxu0 %v9827_v33  ;;  %2403 = vmatpush.msra.mxu2 %v9833_v40  ;;  %v9840_v28 = vld [vmem:[%s12397_s1 + $0x120] sm:$0xff]  ;;  %v2088_v13 = vmul.f32 %v9782_v19, %v2087_v46  ;;  %v9886_v46 = vld [vmem:[%s12397_s1 + $0x68] sm:$0xff] }
 0x3db   :  { %13738 = vst [vmem:[#allocation17_spill] sm:$0xff] %v9840_v28 }
 0x3dc   :  { %v2057_v2 = vadd.f32 %v2052_v62, %v13539_v5  ;;  %2364 = vmatpush.msra.mxu0 %v9840_v28  ;;  %2404 = vmatpush.msra.mxu2 %v9846_v41  ;;  %v9853_v62 = vld [vmem:[%s12397_s1 + $0xe0] sm:$0xff]  ;;  %v2073_v41 = vmul.f32 %v9780_v16, %v2072_v25  ;;  %13745 = vst [vmem:[#allocation28_spill] sm:$0xff] %v9886_v46 }
 0x3dd   :  { %13740 = vst [vmem:[#allocation22_spill] sm:$0xff] %v9853_v62  ;;  %v9880_v25 = vld [vmem:[%s12397_s1 + $0x60] sm:$0xff] }
 0x3de   :  { %v3878_v38 = vmul.f32 -1.442695, %v2057_v2  ;;  %2365 = vmatpush.msra.mxu0 %v9853_v62  ;;  %2405 = vmatpush.msra.mxu2 %v9859_v9  ;;  %v9867_v2 = vld [vmem:[%s12397_s1 + $0xa0] sm:$0xff]  ;;  %13744 = vst [vmem:[#allocation19_spill] sm:$0xff] %v9880_v25  ;;  %v2094_v9 = vand.u32 2147483647, %v9714_v61 }
 0x3df   :  { %13742 = vst [vmem:[#allocation23_spill] sm:$0xff] %v9867_v2  ;;  %v9927_v62 = vld [vmem:[%s12397_s1 + $0x3f0] sm:$0xff] }
 0x3e0   :  { %4057 = vpow2.f32 %v3878_v38  ;;  %2366 = vmatpush.msra.mxu0 %v9867_v2  ;;  %2406 = vmatpush.msra.mxu2 %v9873_v11  ;;  %v2074_v38 = vadd.f32 %v9780_v16, %v2073_v41  ;;  %v2096_v11 = vand.u32 2147483648, %v9714_v61  ;;  %v2081_v2 = vand.u32 2147483648, %v9712_v50  ;;  %13752 = vst [vmem:[#allocation32_spill] sm:$0xff] %v9927_v62  ;;  %v9951_v41 = vld [vmem:[%s12397_s1 + $0x3b8] sm:$0xff] }
 0x3e1   :  { %4059 = vtanh.f32 %v2056_v8  ;;  %v2089_v8 = vadd.f32 %v9782_v19, %v2088_v13  ;;  %v2079_v13 = vand.u32 2147483647, %v9712_v50  ;;  %v9933_v50 = vld [vmem:[%s12397_s1 + $0x3f8] sm:$0xff]  ;;  %vm2095_vm7 = vcmp.eq.f32.partialorder %v2094_v9, 8.507059e+37 }
 0x3e2   :  { %2367 = vmatpush.msra.mxu0 %v9880_v25  ;;  %2407 = vmatpush.msra.mxu2 %v9886_v46  ;;  %v9898_v25 = vld [vmem:[%s12397_s1 + $0x20] sm:$0xff]  ;;  %v9904_v46 = vld [vmem:[%s12397_s1 + $0x28] sm:$0xff]  ;;  %v2078_v61 = vsel %vm9910_vm4, %v9780_v16, %v2074_v38  ;;  %v2097_v40 = vor.u32 1.1754944e-38, %v2096_v11  ;;  %v2082_v33 = vor.u32 1.1754944e-38, %v2081_v2  ;;  %v9957_v2 = vld [vmem:[%s12397_s1 + $0x370] sm:$0xff] }
 0x3e3   :  { %13746 = vst [vmem:[#allocation27_spill] sm:$0xff] %v9898_v25  ;;  %v2093_v36 = vsel %vm9920_vm5, %v9782_v19, %v2089_v8  ;;  %vm2080_vm6 = vcmp.eq.f32.partialorder %v2079_v13, 8.507059e+37  ;;  %v9963_v11 = vld [vmem:[%s12397_s1 + $0x378] sm:$0xff] }
 0x3e4   :  { %2368 = vmatpush.msra.mxu0 %v9898_v25  ;;  %13747 = vst [vmem:[#allocation24_spill] sm:$0xff] %v9904_v46  ;;  %2408 = vmatpush.msra.mxu2 %v9904_v46  ;;  %v2083_v16 = vsel %vm2080_vm6, %v2082_v33, %v2078_v61  ;;  %v2098_v19 = vsel %vm2095_vm7, %v2097_v40, %v2093_v36  ;;  %v9969_v33 = vld [vmem:[%s12397_s1 + $0x330] sm:$0xff]  ;;  %v9975_v36 = vld [vmem:[%s12397_s1 + $0x338] sm:$0xff] }
 0x3e5   :  { %2369 = vmatmul.f32.vlgmr.msra.gmra.mxu0 %v9684_v63  ;;  %2409 = vmatmul.f32.vlgmr.msra.gmra.mxu2 %v9684_v63  ;;  %v2116_v40 = vmul.f32 %v2098_v19, %v8904_v20  ;;  %v9988_v9 = vld [vmem:[%s12397_s1 + $0x2f8] sm:$0xff]  ;;  %v9996_v20 = vld [vmem:[%s12397_s1 + $0x2b0] sm:$0xff] }
 0x3e6   :  { %v4058_v25 = vpop.eup %4057  ;;  %2433 = vmatpush.msrb.mxu0 %v9927_v62  ;;  %2473 = vmatpush.msrb.mxu2 %v9933_v50  ;;  %v9945_v62 = vld [vmem:[%s12397_s1 + $0x3b0] sm:$0xff]  ;;  %13753 = vst [vmem:[#allocation31_spill] sm:$0xff] %v9988_v9  ;;  %v10002_v13 = vld [vmem:[%s12397_s1 + $0x2b8] sm:$0xff] }
 0x3e7   :  { %v2069_v28 = vadd.f32 1.0, %v4058_v25  ;;  %v4060_v5 = vpop.eup %4059  ;;  %13754 = vst [vmem:[#allocation25_spill] sm:$0xff] %v9996_v20  ;;  %v10014_v19 = vld [vmem:[%s12397_s1 + $0x278] sm:$0xff] }
 0x3e8   :  { %2434 = vmatpush.msrb.mxu0 %v9945_v62  ;;  %2474 = vmatpush.msrb.mxu2 %v9951_v41  ;;  %v2117_v25 = vmul.f32 %v4060_v5, %v2083_v16  ;;  %v9982_v5 = vld [vmem:[%s12397_s1 + $0x2f0] sm:$0xff]  ;;  %13755 = vst [vmem:[#allocation34_spill] sm:$0xff] %v10002_v13 }
 0x3e9   :  { %4061 = vrcp.f32 %v2069_v28  ;;  %v10008_v16 = vld [vmem:[%s12397_s1 + $0x270] sm:$0xff]  ;;  %13757 = vst [vmem:[#allocation29_spill] sm:$0xff] %v10014_v19  ;;  %vm2105_vm9 = vweird.f32 %v2069_v28 }
 0x3ea   :  { %2435 = vmatpush.msrb.mxu0 %v9957_v2  ;;  %2475 = vmatpush.msrb.mxu2 %v9963_v11  ;;  %v9991_v38 = vadd.f32 %v2117_v25, %v2116_v40  ;;  %13756 = vst [vmem:[#allocation30_spill] sm:$0xff] %v10008_v16  ;;  %v2111_v25 = vand.u32 2147483648, %v2069_v28 }
 0x3ec   :  { %2436 = vmatpush.msrb.mxu0 %v9969_v33  ;;  %2476 = vmatpush.msrb.mxu2 %v9975_v36  ;;  %4063 = vtanh.f32 %v9991_v38 }
 0x3ee   :  { %2437 = vmatpush.msrb.mxu0 %v9982_v5  ;;  %2477 = vmatpush.msrb.mxu2 %v9988_v9 }
 0x3ef   :  { %v4062_v46 = vpop.eup %4061 }
 0x3f0   :  { %v2101_v8 = vmul.f32 %v4062_v46, %v2069_v28  ;;  %2438 = vmatpush.msrb.mxu0 %v9996_v20  ;;  %2478 = vmatpush.msrb.mxu2 %v10002_v13  ;;  %vm2106_vm8 = vweird.f32 %v4062_v46  ;;  %v10021_v13 = vld [vmem:[%s12397_s1 + $0x230] sm:$0xff]  ;;  %v2112_v20 = vor.u32 1.1754944e-38, %v2111_v25  ;;  %v10309_v25 = vld [vmem:[%s12397_s1 + $0x100] sm:$0xff] }
 0x3f1   :  { %13758 = vst [vmem:[#allocation39_spill] sm:$0xff] %v10021_v13  ;;  %vm2107_vm10 = vmor %vm2105_vm9, %vm2106_vm8 }
 0x3f2   :  { %v2102_v61 = vsub.f32 1.0, %v2101_v8  ;;  %2439 = vmatpush.msrb.mxu0 %v10008_v16  ;;  %2479 = vmatpush.msrb.mxu2 %v10014_v19  ;;  %v2109_v8 = vand.u32 2147483647, %v2069_v28  ;;  %v10027_v16 = vld [vmem:[%s12397_s1 + $0x238] sm:$0xff]  ;;  %v10045_v28 = vld [vmem:[%s12397_s1 + $0x1b0] sm:$0xff]  ;;  %13783 = vst [vmem:[#allocation132_spill] sm:$0xff] %v10309_v25 }
 0x3f3   :  { %13759 = vst [vmem:[#allocation33_spill] sm:$0xff] %v10027_v16 }
 0x3f4   :  { %v2103_v40 = vmul.f32 %v4062_v46, %v2102_v61  ;;  %2440 = vmatpush.msrb.mxu0 %v10021_v13  ;;  %2480 = vmatpush.msrb.mxu2 %v10027_v16  ;;  %v10033_v61 = vld [vmem:[%s12397_s1 + $0x1f0] sm:$0xff]  ;;  %v10039_v13 = vld [vmem:[%s12397_s1 + $0x1f8] sm:$0xff]  ;;  %vm2110_vm11 = vcmp.eq.f32.partialorder %v2109_v8, 8.507059e+37  ;;  %v10315_v8 = vld [vmem:[%s12397_s1 + $0x108] sm:$0xff] }
 0x3f5   :  { %13760 = vst [vmem:[#allocation35_spill] sm:$0xff] %v10033_v61 }
 0x3f6   :  { %v2104_v19 = vadd.f32 %v4062_v46, %v2103_v40  ;;  %2441 = vmatpush.msrb.mxu0 %v10033_v61  ;;  %13761 = vst [vmem:[#allocation40_spill] sm:$0xff] %v10039_v13  ;;  %2481 = vmatpush.msrb.mxu2 %v10039_v13  ;;  %v10051_v40 = vld [vmem:[%s12397_s1 + $0x1b8] sm:$0xff]  ;;  %v4064_v61 = vpop.eup %4063 }
 0x3f7   :  { %13784 = vst [vmem:[#allocation133_spill] sm:$0xff] %v10315_v8 }
 0x3f8   :  { %v2108_v9 = vsel %vm2107_vm10, %v4062_v46, %v2104_v19  ;;  %2442 = vmatpush.msrb.mxu0 %v10045_v28  ;;  %2482 = vmatpush.msrb.mxu2 %v10051_v40  ;;  %v10059_v46 = vld [vmem:[%s12397_s1 + $0x170] sm:$0xff]  ;;  %v10065_v19 = vld [vmem:[%s12397_s1 + $0x178] sm:$0xff] }
 0x3f9   :  { %v2113_v13 = vsel %vm2110_vm11, %v2112_v20, %v2108_v9  ;;  %v10075_v9 = vld [vmem:[%s12397_s1 + $0x130] sm:$0xff]  ;;  %v10081_v20 = vld [vmem:[%s12397_s1 + $0x138] sm:$0xff] }
 0x3fa   :  { %v10054_v16 = vmul.f32 %v4064_v61, %v2113_v13  ;;  %2443 = vmatpush.msrb.mxu0 %v10059_v46  ;;  %2483 = vmatpush.msrb.mxu2 %v10065_v19  ;;  %v13782_v13 = vld [vmem:[#allocation73_spill] sm:$0xff]  ;;  %v13785_v61 = vld [vmem:[#allocation75_spill] sm:$0xff] }
 0x3fc   :  { %2229 = vmatmul.f32.vlgmr.msra.gmra.mxu1 %v10054_v16  ;;  %2269 = vmatmul.f32.vlgmr.msra.gmra.mxu3 %v10054_v16 }
 0x3fd   :  { %2373 = vmatpush.msra.mxu1 %v8926_v54  ;;  %2413 = vmatpush.msra.mxu3 %v8932_v34  ;;  %v10089_v54 = vld [vmem:[%s12397_s1 + $0xf0] sm:$0xff]  ;;  %v10095_v34 = vld [vmem:[%s12397_s1 + $0xf8] sm:$0xff] }
 0x3fe   :  { %2444 = vmatpush.msrb.mxu0 %v10075_v9  ;;  %2484 = vmatpush.msrb.mxu2 %v10081_v20 }
 0x3ff   :  { %2374 = vmatpush.msra.mxu1 %v8940_v3  ;;  %2414 = vmatpush.msra.mxu3 %v8946_v17  ;;  %v10103_v3 = vld [vmem:[%s12397_s1 + $0xb0] sm:$0xff]  ;;  %v10109_v17 = vld [vmem:[%s12397_s1 + $0xb8] sm:$0xff] }
 0x400   :  { %2445 = vmatpush.msrb.mxu0 %v10089_v54  ;;  %2485 = vmatpush.msrb.mxu2 %v10095_v34 }
 0x401   :  { %2375 = vmatpush.msra.mxu1 %v8954_v10  ;;  %2415 = vmatpush.msra.mxu3 %v8960_v52  ;;  %v10121_v10 = vld [vmem:[%s12397_s1 + $0x70] sm:$0xff]  ;;  %v10127_v52 = vld [vmem:[%s12397_s1 + $0x78] sm:$0xff] }
 0x402   :  { %2446 = vmatpush.msrb.mxu0 %v10103_v3  ;;  %2486 = vmatpush.msrb.mxu2 %v10109_v17 }
 0x403   :  { %2376 = vmatpush.msra.mxu1 %v8968_v23  ;;  %2416 = vmatpush.msra.mxu3 %v8974_v48  ;;  %v10135_v23 = vld [vmem:[%s12397_s1 + $0x30] sm:$0xff]  ;;  %v10141_v48 = vld [vmem:[%s12397_s1 + $0x38] sm:$0xff] }
 0x404   :  { %2309 = vmatmul.f32.vlgmr.msrb.gmra.mxu1 %v10054_v16  ;;  %2349 = vmatmul.f32.vlgmr.msrb.gmra.mxu3 %v10054_v16 }
 0x405   :  { %2377 = vmatpush.msra.mxu1 %v8984_v27  ;;  %2417 = vmatpush.msra.mxu3 %v8990_v18  ;;  %v10151_v27 = vld [vmem:[%s12397_s1 + $0x3c0] sm:$0xff]  ;;  %v10157_v18 = vld [vmem:[%s12397_s1 + $0x3c8] sm:$0xff] }
 0x406   :  { %2447 = vmatpush.msrb.mxu0 %v10121_v10  ;;  %2487 = vmatpush.msrb.mxu2 %v10127_v52 }
 0x407   :  { %2378 = vmatpush.msra.mxu1 %v8998_v43  ;;  %2418 = vmatpush.msra.mxu3 %v9004_v44  ;;  %v10165_v43 = vld [vmem:[%s12397_s1 + $0x380] sm:$0xff]  ;;  %v10171_v44 = vld [vmem:[%s12397_s1 + $0x388] sm:$0xff] }
 0x408   :  { %2448 = vmatpush.msrb.mxu0 %v10135_v23  ;;  %2488 = vmatpush.msrb.mxu2 %v10141_v48 }
 0x409   :  { %2449 = vmatmul.f32.vlgmr.msrb.gmra.mxu0 %v9684_v63  ;;  %2489 = vmatmul.f32.vlgmr.msrb.gmra.mxu2 %v9684_v63  ;;  %v13781_v63 = vld [vmem:[#allocation71_spill] sm:$0xff] }
 0x40a   :  { %2379 = vmatpush.msra.mxu1 %v9014_v49  ;;  %2419 = vmatpush.msra.mxu3 %v9020_v51  ;;  %v10179_v49 = vld [vmem:[%s12397_s1 + $0x340] sm:$0xff]  ;;  %v10185_v51 = vld [vmem:[%s12397_s1 + $0x348] sm:$0xff] }
 0x40b   :  { %2652 = vmatpush.msra.mxu0 %v10151_v27  ;;  %2692 = vmatpush.msra.mxu2 %v10157_v18 }
 0x40c   :  { %2380 = vmatpush.msra.mxu1 %v9028_v30  ;;  %2420 = vmatpush.msra.mxu3 %v9034_v55  ;;  %v10193_v30 = vld [vmem:[%s12397_s1 + $0x300] sm:$0xff]  ;;  %v10199_v55 = vld [vmem:[%s12397_s1 + $0x308] sm:$0xff] }
 0x40d   :  { %2653 = vmatpush.msra.mxu0 %v10165_v43  ;;  %2693 = vmatpush.msra.mxu2 %v10171_v44  ;;  %13762 = vst [vmem:[#allocation37_spill] sm:$0xff] %v10193_v30 }
 0x40e   :  { %2381 = vmatpush.msra.mxu1 %v9042_v58  ;;  %2421 = vmatpush.msra.mxu3 %v9048_v0  ;;  %13763 = vst [vmem:[#allocation36_spill] sm:$0xff] %v10199_v55  ;;  %v10207_v58 = vld [vmem:[%s12397_s1 + $0x2c0] sm:$0xff]  ;;  %v10213_v0 = vld [vmem:[%s12397_s1 + $0x2c8] sm:$0xff] }
 0x40f   :  { %2654 = vmatpush.msra.mxu0 %v10179_v49  ;;  %2694 = vmatpush.msra.mxu2 %v10185_v51  ;;  %13764 = vst [vmem:[#allocation38_spill] sm:$0xff] %v10207_v58 }
 0x410   :  { %2382 = vmatpush.msra.mxu1 %v9056_v24  ;;  %2422 = vmatpush.msra.mxu3 %v9062_v15  ;;  %13765 = vst [vmem:[#allocation41_spill] sm:$0xff] %v10213_v0  ;;  %v10221_v24 = vld [vmem:[%s12397_s1 + $0x280] sm:$0xff]  ;;  %v10227_v15 = vld [vmem:[%s12397_s1 + $0x288] sm:$0xff] }
 0x411   :  { %2655 = vmatpush.msra.mxu0 %v10193_v30  ;;  %2695 = vmatpush.msra.mxu2 %v10199_v55  ;;  %13766 = vst [vmem:[#allocation43_spill] sm:$0xff] %v10221_v24 }
 0x412   :  { %2383 = vmatpush.msra.mxu1 %v9070_v53  ;;  %2423 = vmatpush.msra.mxu3 %v9076_v60  ;;  %13767 = vst [vmem:[#allocation42_spill] sm:$0xff] %v10227_v15  ;;  %v10235_v53 = vld [vmem:[%s12397_s1 + $0x240] sm:$0xff]  ;;  %v10241_v60 = vld [vmem:[%s12397_s1 + $0x248] sm:$0xff] }
 0x413   :  { %2656 = vmatpush.msra.mxu0 %v10207_v58  ;;  %2696 = vmatpush.msra.mxu2 %v10213_v0  ;;  %13768 = vst [vmem:[#allocation45_spill] sm:$0xff] %v10235_v53 }
 0x414   :  { %2384 = vmatpush.msra.mxu1 %v9084_v47  ;;  %2424 = vmatpush.msra.mxu3 %v9090_v7  ;;  %13769 = vst [vmem:[#allocation44_spill] sm:$0xff] %v10241_v60  ;;  %v10249_v47 = vld [vmem:[%s12397_s1 + $0x200] sm:$0xff]  ;;  %v10255_v7 = vld [vmem:[%s12397_s1 + $0x208] sm:$0xff] }
 0x415   :  { %2657 = vmatpush.msra.mxu0 %v10221_v24  ;;  %2697 = vmatpush.msra.mxu2 %v10227_v15  ;;  %13770 = vst [vmem:[#allocation47_spill] sm:$0xff] %v10249_v47 }
 0x416   :  { %2385 = vmatpush.msra.mxu1 %v9098_v31  ;;  %2425 = vmatpush.msra.mxu3 %v9104_v32  ;;  %13771 = vst [vmem:[#allocation46_spill] sm:$0xff] %v10255_v7  ;;  %v10263_v31 = vld [vmem:[%s12397_s1 + $0x1c0] sm:$0xff]  ;;  %v10269_v32 = vld [vmem:[%s12397_s1 + $0x1c8] sm:$0xff] }
 0x417   :  { %2658 = vmatpush.msra.mxu0 %v10235_v53  ;;  %2698 = vmatpush.msra.mxu2 %v10241_v60  ;;  %13772 = vst [vmem:[#allocation49_spill] sm:$0xff] %v10263_v31 }
 0x418   :  { %2386 = vmatpush.msra.mxu1 %v9112_v22  ;;  %2426 = vmatpush.msra.mxu3 %v9118_v56  ;;  %13773 = vst [vmem:[#allocation48_spill] sm:$0xff] %v10269_v32  ;;  %v13774_v22 = vld [vmem:[#allocation65_spill] sm:$0xff]  ;;  %v10281_v56 = vld [vmem:[%s12397_s1 + $0x180] sm:$0xff] }
 0x419   :  { %2659 = vmatpush.msra.mxu0 %v10249_v47  ;;  %2699 = vmatpush.msra.mxu2 %v10255_v7  ;;  %13775 = vst [vmem:[#allocation51_spill] sm:$0xff] %v10281_v56 }
 0x41a   :  { %2387 = vmatpush.msra.mxu1 %v9126_v42  ;;  %2427 = vmatpush.msra.mxu3 %v9132_v35  ;;  %v10287_v42 = vld [vmem:[%s12397_s1 + $0x188] sm:$0xff] }
 0x41b   :  { %2660 = vmatpush.msra.mxu0 %v10263_v31  ;;  %2700 = vmatpush.msra.mxu2 %v10269_v32  ;;  %13776 = vst [vmem:[#allocation50_spill] sm:$0xff] %v10287_v42  ;;  %v13777_v35 = vld [vmem:[#allocation67_spill] sm:$0xff] }
 0x41c   :  { %2388 = vmatpush.msra.mxu1 %v9140_v26  ;;  %2428 = vmatpush.msra.mxu3 %v9146_v37  ;;  %v13778_v26 = vld [vmem:[#allocation69_spill] sm:$0xff]  ;;  %v10295_v37 = vld [vmem:[%s12397_s1 + $0x140] sm:$0xff] }
 0x41d   :  { %2389 = vmatmul.f32.vlgmr.msra.gmra.mxu1 %v10054_v16  ;;  %2429 = vmatmul.f32.vlgmr.msra.gmra.mxu3 %v10054_v16  ;;  %13779 = vst [vmem:[#allocation55_spill] sm:$0xff] %v10295_v37 }
 0x41e   :  { %2453 = vmatpush.msrb.mxu1 %v9154_v45  ;;  %2493 = vmatpush.msrb.mxu3 %v13774_v22  ;;  %v10301_v45 = vld [vmem:[%s12397_s1 + $0x148] sm:$0xff]  ;;  %v13786_v22 = vld [vmem:[#allocation77_spill] sm:$0xff] }
 0x41f   :  { %2661 = vmatpush.msra.mxu0 %v10281_v56  ;;  %2701 = vmatpush.msra.mxu2 %v10287_v42  ;;  %13780 = vst [vmem:[#allocation57_spill] sm:$0xff] %v10301_v45  ;;  %v13913_v42 = vld [vmem:[#allocation127_spill] sm:$0xff] }
 0x420   :  { %2454 = vmatpush.msrb.mxu1 %v13777_v35  ;;  %2494 = vmatpush.msrb.mxu3 %v13778_v26  ;;  %v10323_v35 = vld [vmem:[%s12397_s1 + $0xc0] sm:$0xff]  ;;  %v10329_v26 = vld [vmem:[%s12397_s1 + $0xc8] sm:$0xff] }
 0x421   :  { %2662 = vmatpush.msra.mxu0 %v10295_v37  ;;  %2702 = vmatpush.msra.mxu2 %v10301_v45  ;;  %13787 = vst [vmem:[#allocation134_spill] sm:$0xff] %v10323_v35  ;;  %v13905_v45 = vld [vmem:[#allocation112_spill] sm:$0xff]  ;;  %v13906_v37 = vld [vmem:[#allocation114_spill] sm:$0xff] }
 0x422   :  { %2455 = vmatpush.msrb.mxu1 %v13781_v63  ;;  %2495 = vmatpush.msrb.mxu3 %v13782_v13  ;;  %13788 = vst [vmem:[#allocation135_spill] sm:$0xff] %v10329_v26  ;;  %v13789_v63 = vld [vmem:[#allocation79_spill] sm:$0xff]  ;;  %v13790_v13 = vld [vmem:[#allocation81_spill] sm:$0xff] }
 0x423   :  { %2663 = vmatpush.msra.mxu0 %v10309_v25  ;;  %2703 = vmatpush.msra.mxu2 %v10315_v8  ;;  %v13818_v8 = vld [vmem:[#allocation111_spill] sm:$0xff]  ;;  %v13819_v25 = vld [vmem:[#allocation113_spill] sm:$0xff] }
 0x424   :  { %2456 = vmatpush.msrb.mxu1 %v13785_v61  ;;  %2496 = vmatpush.msrb.mxu3 %v13786_v22  ;;  %v10337_v61 = vld [vmem:[%s12397_s1 + $0x80] sm:$0xff]  ;;  %v10343_v22 = vld [vmem:[%s12397_s1 + $0x88] sm:$0xff] }
 0x425   :  { %2664 = vmatpush.msra.mxu0 %v10323_v35  ;;  %2704 = vmatpush.msra.mxu2 %v10329_v26  ;;  %13791 = vst [vmem:[#allocation136_spill] sm:$0xff] %v10337_v61  ;;  %v13793_v35 = vld [vmem:[#allocation83_spill] sm:$0xff]  ;;  %v13794_v26 = vld [vmem:[#allocation85_spill] sm:$0xff] }
 0x426   :  { %2457 = vmatpush.msrb.mxu1 %v13789_v63  ;;  %2497 = vmatpush.msrb.mxu3 %v13790_v13  ;;  %13792 = vst [vmem:[#allocation137_spill] sm:$0xff] %v10343_v22  ;;  %v10351_v63 = vld [vmem:[%s12397_s1 + $0x40] sm:$0xff]  ;;  %v10357_v13 = vld [vmem:[%s12397_s1 + $0x48] sm:$0xff] }
 0x427   :  { %2665 = vmatpush.msra.mxu0 %v10337_v61  ;;  %2705 = vmatpush.msra.mxu2 %v10343_v22  ;;  %13795 = vst [vmem:[#allocation138_spill] sm:$0xff] %v10351_v63  ;;  %v13797_v61 = vld [vmem:[#allocation87_spill] sm:$0xff]  ;;  %v13798_v22 = vld [vmem:[#allocation89_spill] sm:$0xff] }
 0x428   :  { %2458 = vmatpush.msrb.mxu1 %v13793_v35  ;;  %2498 = vmatpush.msrb.mxu3 %v13794_v26  ;;  %13796 = vst [vmem:[#allocation139_spill] sm:$0xff] %v10357_v13  ;;  %v10365_v35 = vld [vmem:[%s12397_s1] sm:$0xff]  ;;  %v10371_v26 = vld [vmem:[%s12397_s1 + $0x8] sm:$0xff] }
 0x429   :  { %2666 = vmatpush.msra.mxu0 %v10351_v63  ;;  %2706 = vmatpush.msra.mxu2 %v10357_v13  ;;  %13799 = vst [vmem:[#allocation140_spill] sm:$0xff] %v10365_v35  ;;  %v13801_v63 = vld [vmem:[#allocation91_spill] sm:$0xff]  ;;  %v13802_v13 = vld [vmem:[#allocation93_spill] sm:$0xff] }
 0x42a   :  { %2459 = vmatpush.msrb.mxu1 %v13797_v61  ;;  %2499 = vmatpush.msrb.mxu3 %v13798_v22  ;;  %13800 = vst [vmem:[#allocation141_spill] sm:$0xff] %v10371_v26  ;;  %v10379_v61 = vld [vmem:[%s12397_s1 + $0x3d0] sm:$0xff]  ;;  %v10385_v22 = vld [vmem:[%s12397_s1 + $0x3d8] sm:$0xff] }
 0x42b   :  { %2667 = vmatpush.msra.mxu0 %v10365_v35  ;;  %2707 = vmatpush.msra.mxu2 %v10371_v26  ;;  %13803 = vst [vmem:[#allocation59_spill] sm:$0xff] %v10379_v61  ;;  %v13805_v35 = vld [vmem:[#allocation95_spill] sm:$0xff]  ;;  %v13806_v26 = vld [vmem:[#allocation97_spill] sm:$0xff] }
 0x42c   :  { %2460 = vmatpush.msrb.mxu1 %v13801_v63  ;;  %2500 = vmatpush.msrb.mxu3 %v13802_v13  ;;  %13804 = vst [vmem:[#allocation61_spill] sm:$0xff] %v10385_v22  ;;  %v10393_v63 = vld [vmem:[%s12397_s1 + $0x390] sm:$0xff]  ;;  %v10399_v13 = vld [vmem:[%s12397_s1 + $0x398] sm:$0xff] }
 0x42d   :  { %2732 = vmatpush.msrb.mxu0 %v10379_v61  ;;  %2772 = vmatpush.msrb.mxu2 %v10385_v22  ;;  %13807 = vst [vmem:[#allocation63_spill] sm:$0xff] %v10393_v63  ;;  %v13809_v61 = vld [vmem:[#allocation99_spill] sm:$0xff]  ;;  %v13810_v22 = vld [vmem:[#allocation101_spill] sm:$0xff] }
 0x42e   :  { %2461 = vmatpush.msrb.mxu1 %v13805_v35  ;;  %2501 = vmatpush.msrb.mxu3 %v13806_v26  ;;  %13808 = vst [vmem:[#allocation65_spill] sm:$0xff] %v10399_v13  ;;  %v10407_v35 = vld [vmem:[%s12397_s1 + $0x350] sm:$0xff]  ;;  %v10413_v26 = vld [vmem:[%s12397_s1 + $0x358] sm:$0xff] }
 0x42f   :  { %2733 = vmatpush.msrb.mxu0 %v10393_v63  ;;  %2773 = vmatpush.msrb.mxu2 %v10399_v13  ;;  %13811 = vst [vmem:[#allocation67_spill] sm:$0xff] %v10407_v35  ;;  %v13813_v63 = vld [vmem:[#allocation103_spill] sm:$0xff]  ;;  %v13814_v13 = vld [vmem:[#allocation105_spill] sm:$0xff] }
 0x430   :  { %2462 = vmatpush.msrb.mxu1 %v13809_v61  ;;  %2502 = vmatpush.msrb.mxu3 %v13810_v22  ;;  %13812 = vst [vmem:[#allocation69_spill] sm:$0xff] %v10413_v26  ;;  %v13815_v61 = vld [vmem:[#allocation107_spill] sm:$0xff]  ;;  %v10422_v22 = vld [vmem:[%s12397_s1 + $0x318] sm:$0xff] }
 0x431   :  { %2734 = vmatpush.msrb.mxu0 %v10407_v35  ;;  %2774 = vmatpush.msrb.mxu2 %v10413_v26  ;;  %13816 = vst [vmem:[#allocation71_spill] sm:$0xff] %v10422_v22  ;;  %v13817_v35 = vld [vmem:[#allocation109_spill] sm:$0xff] }
 0x432   :  { %2463 = vmatpush.msrb.mxu1 %v13813_v63  ;;  %2503 = vmatpush.msrb.mxu3 %v13814_v13  ;;  %v10431_v63 = vld [vmem:[%s12397_s1 + $0x2d8] sm:$0xff]  ;;  %v13821_v13 = vld [vmem:[#allocation115_spill] sm:$0xff] }
 0x433   :  { %2735 = vmatpush.msrb.mxu0 %v13815_v61  ;;  %2775 = vmatpush.msrb.mxu2 %v10422_v22  ;;  %13820 = vst [vmem:[#allocation73_spill] sm:$0xff] %v10431_v63  ;;  %v13822_v61 = vld [vmem:[#allocation116_spill] sm:$0xff]  ;;  %v13823_v26 = vld [vmem:[#allocation117_spill] sm:$0xff]  ;;  %v13832_v22 = vld [vmem:[#allocation54_spill] sm:$0xff] }
 0x434   :  { %2464 = vmatpush.msrb.mxu1 %v13817_v35  ;;  %2504 = vmatpush.msrb.mxu3 %v13818_v8  ;;  %v10440_v35 = vld [vmem:[%s12397_s1 + $0x298] sm:$0xff]  ;;  %v13826_v8 = vld [vmem:[#allocation119_spill] sm:$0xff] }
 0x435   :  { %2736 = vmatpush.msrb.mxu0 %v13819_v25  ;;  %2776 = vmatpush.msrb.mxu2 %v10431_v63  ;;  %13824 = vst [vmem:[#allocation75_spill] sm:$0xff] %v10440_v35  ;;  %v10446_v25 = vld [vmem:[%s12397_s1 + $0x4b0] sm:$0xff]  ;;  %v13831_v63 = vld [vmem:[#allocation53_spill] sm:$0xff] }
 0x436   :  { %2465 = vmatpush.msrb.mxu1 %v13821_v13  ;;  %2505 = vmatpush.msrb.mxu3 %v13822_v61  ;;  %13825 = vst [vmem:[#allocation77_spill] sm:$0xff] %v10446_v25  ;;  %v13827_v13 = vld [vmem:[#allocation121_spill] sm:$0xff]  ;;  %v13828_v61 = vld [vmem:[#allocation124_spill] sm:$0xff] }
 0x437   :  { %2737 = vmatpush.msrb.mxu0 %v13823_v26  ;;  %2777 = vmatpush.msrb.mxu2 %v10440_v35  ;;  %v10455_v26 = vld [vmem:[%s12397_s1 + $0x470] sm:$0xff] }
 0x438   :  { %2466 = vmatpush.msrb.mxu1 %v10446_v25  ;;  %2506 = vmatpush.msrb.mxu3 %v13826_v8  ;;  %13829 = vst [vmem:[#allocation79_spill] sm:$0xff] %v10455_v26  ;;  %v13830_v35 = vld [vmem:[#allocation52_spill] sm:$0xff]  ;;  %v13904_v25 = vld [vmem:[#allocation110_spill] sm:$0xff] }
 0x439   :  { %2738 = vmatpush.msrb.mxu0 %v13827_v13  ;;  %2778 = vmatpush.msrb.mxu2 %v13828_v61  ;;  %v10464_v8 = vld [vmem:[%s12397_s1 + $0x430] sm:$0xff]  ;;  %v13835_v61 = vld [vmem:[#allocation58_spill] sm:$0xff] }
 0x43a   :  { %2467 = vmatpush.msrb.mxu1 %v10455_v26  ;;  %2507 = vmatpush.msrb.mxu3 %v13830_v35  ;;  %13833 = vst [vmem:[#allocation81_spill] sm:$0xff] %v10464_v8  ;;  %v13834_v13 = vld [vmem:[#allocation56_spill] sm:$0xff] }
 0x43b   :  { %2739 = vmatpush.msrb.mxu0 %v13831_v63  ;;  %2779 = vmatpush.msrb.mxu2 %v13832_v22  ;;  %v13836_v35 = vld [vmem:[#allocation60_spill] sm:$0xff]  ;;  %v10475_v22 = vld [vmem:[%s12397_s1 + $0x7c0] sm:$0xff]  ;;  %v10481_v63 = vld [vmem:[%s12397_s1 + $0x7c8] sm:$0xff] }
 0x43c   :  { %2468 = vmatpush.msrb.mxu1 %v10464_v8  ;;  %2508 = vmatpush.msrb.mxu3 %v13834_v13  ;;  %13837 = vst [vmem:[#allocation83_spill] sm:$0xff] %v10475_v22  ;;  %v13839_v13 = vld [vmem:[#allocation62_spill] sm:$0xff]  ;;  %v13901_v26 = vld [vmem:[#allocation104_spill] sm:$0xff] }
 0x43d   :  { %2469 = vmatmul.f32.vlgmr.msrb.gmra.mxu1 %v10054_v16  ;;  %2509 = vmatmul.f32.vlgmr.msrb.gmra.mxu3 %v10054_v16  ;;  %13838 = vst [vmem:[#allocation85_spill] sm:$0xff] %v10481_v63  ;;  %v13840_v16 = vld [vmem:[#allocation64_spill] sm:$0xff]  ;;  %v13900_v8 = vld [vmem:[#allocation102_spill] sm:$0xff] }
 0x43e   :  { %2740 = vmatpush.msrb.mxu0 %v13835_v61  ;;  %2780 = vmatpush.msrb.mxu2 %v13836_v35  ;;  %v10489_v61 = vld [vmem:[%s12397_s1 + $0x780] sm:$0xff]  ;;  %v10495_v35 = vld [vmem:[%s12397_s1 + $0x788] sm:$0xff] }
 0x43f   :  { %2672 = vmatpush.msra.mxu1 %v10475_v22  ;;  %2712 = vmatpush.msra.mxu3 %v10481_v63  ;;  %13841 = vst [vmem:[#allocation87_spill] sm:$0xff] %v10489_v61  ;;  %v13843_v22 = vld [vmem:[#allocation66_spill] sm:$0xff]  ;;  %v13844_v63 = vld [vmem:[#allocation68_spill] sm:$0xff] }
 0x440   :  { %2741 = vmatpush.msrb.mxu0 %v13839_v13  ;;  %2781 = vmatpush.msrb.mxu2 %v13840_v16  ;;  %13842 = vst [vmem:[#allocation89_spill] sm:$0xff] %v10495_v35  ;;  %v10503_v13 = vld [vmem:[%s12397_s1 + $0x740] sm:$0xff]  ;;  %v10509_v16 = vld [vmem:[%s12397_s1 + $0x748] sm:$0xff] }
 0x441   :  { %2673 = vmatpush.msra.mxu1 %v10489_v61  ;;  %2713 = vmatpush.msra.mxu3 %v10495_v35  ;;  %13845 = vst [vmem:[#allocation91_spill] sm:$0xff] %v10503_v13  ;;  %v13847_v61 = vld [vmem:[#allocation70_spill] sm:$0xff]  ;;  %v13848_v35 = vld [vmem:[#allocation72_spill] sm:$0xff] }
 0x442   :  { %2742 = vmatpush.msrb.mxu0 %v13843_v22  ;;  %2782 = vmatpush.msrb.mxu2 %v13844_v63  ;;  %13846 = vst [vmem:[#allocation93_spill] sm:$0xff] %v10509_v16  ;;  %v10517_v22 = vld [vmem:[%s12397_s1 + $0x700] sm:$0xff]  ;;  %v10523_v63 = vld [vmem:[%s12397_s1 + $0x708] sm:$0xff] }
 0x443   :  { %2674 = vmatpush.msra.mxu1 %v10503_v13  ;;  %2714 = vmatpush.msra.mxu3 %v10509_v16  ;;  %13849 = vst [vmem:[#allocation95_spill] sm:$0xff] %v10517_v22  ;;  %v13851_v13 = vld [vmem:[#allocation74_spill] sm:$0xff]  ;;  %v13852_v16 = vld [vmem:[#allocation76_spill] sm:$0xff] }
 0x444   :  { %2743 = vmatpush.msrb.mxu0 %v13847_v61  ;;  %2783 = vmatpush.msrb.mxu2 %v13848_v35  ;;  %13850 = vst [vmem:[#allocation97_spill] sm:$0xff] %v10523_v63  ;;  %v10531_v61 = vld [vmem:[%s12397_s1 + $0x6c0] sm:$0xff]  ;;  %v10537_v35 = vld [vmem:[%s12397_s1 + $0x6c8] sm:$0xff] }
 0x445   :  { %2675 = vmatpush.msra.mxu1 %v10517_v22  ;;  %2715 = vmatpush.msra.mxu3 %v10523_v63  ;;  %13853 = vst [vmem:[#allocation99_spill] sm:$0xff] %v10531_v61  ;;  %v13855_v22 = vld [vmem:[#allocation78_spill] sm:$0xff]  ;;  %v13856_v63 = vld [vmem:[#allocation80_spill] sm:$0xff] }
 0x446   :  { %2744 = vmatpush.msrb.mxu0 %v13851_v13  ;;  %2784 = vmatpush.msrb.mxu2 %v13852_v16  ;;  %13854 = vst [vmem:[#allocation101_spill] sm:$0xff] %v10537_v35  ;;  %v10545_v13 = vld [vmem:[%s12397_s1 + $0x680] sm:$0xff]  ;;  %v10551_v16 = vld [vmem:[%s12397_s1 + $0x688] sm:$0xff] }
 0x447   :  { %2676 = vmatpush.msra.mxu1 %v10531_v61  ;;  %2716 = vmatpush.msra.mxu3 %v10537_v35  ;;  %13857 = vst [vmem:[#allocation103_spill] sm:$0xff] %v10545_v13  ;;  %v13859_v61 = vld [vmem:[#allocation82_spill] sm:$0xff]  ;;  %v13860_v35 = vld [vmem:[#allocation84_spill] sm:$0xff] }
 0x448   :  { %2745 = vmatpush.msrb.mxu0 %v13855_v22  ;;  %2785 = vmatpush.msrb.mxu2 %v13856_v63  ;;  %13858 = vst [vmem:[#allocation105_spill] sm:$0xff] %v10551_v16  ;;  %v10559_v22 = vld [vmem:[%s12397_s1 + $0x640] sm:$0xff]  ;;  %v10565_v63 = vld [vmem:[%s12397_s1 + $0x648] sm:$0xff] }
 0x449   :  { %2677 = vmatpush.msra.mxu1 %v10545_v13  ;;  %2717 = vmatpush.msra.mxu3 %v10551_v16  ;;  %13861 = vst [vmem:[#allocation107_spill] sm:$0xff] %v10559_v22  ;;  %v13863_v13 = vld [vmem:[#allocation86_spill] sm:$0xff]  ;;  %v13864_v16 = vld [vmem:[#allocation88_spill] sm:$0xff] }
 0x44a   :  { %2746 = vmatpush.msrb.mxu0 %v13859_v61  ;;  %2786 = vmatpush.msrb.mxu2 %v13860_v35  ;;  %13862 = vst [vmem:[#allocation109_spill] sm:$0xff] %v10565_v63  ;;  %v10573_v61 = vld [vmem:[%s12397_s1 + $0x600] sm:$0xff]  ;;  %v10579_v35 = vld [vmem:[%s12397_s1 + $0x608] sm:$0xff] }
 0x44b   :  { %2678 = vmatpush.msra.mxu1 %v10559_v22  ;;  %2718 = vmatpush.msra.mxu3 %v10565_v63  ;;  %13865 = vst [vmem:[#allocation111_spill] sm:$0xff] %v10573_v61  ;;  %v13893_v63 = vld [vmem:[#allocation92_spill] sm:$0xff]  ;;  %v13895_v22 = vld [vmem:[#allocation94_spill] sm:$0xff] }
 0x44c   :  { %2747 = vmatpush.msrb.mxu0 %v13863_v13  ;;  %2787 = vmatpush.msrb.mxu2 %v13864_v16  ;;  %13866 = vst [vmem:[#allocation113_spill] sm:$0xff] %v10579_v35  ;;  %v10585_v13 = vld [vmem:[%s12397_s1 + $0x5c0] sm:$0xff]  ;;  %v10591_v16 = vld [vmem:[%s12397_s1 + $0x5c8] sm:$0xff] }
 0x44d   :  { %2679 = vmatpush.msra.mxu1 %v10573_v61  ;;  %2719 = vmatpush.msra.mxu3 %v10579_v35  ;;  %13867 = vst [vmem:[#allocation115_spill] sm:$0xff] %v10585_v13  ;;  %v10597_v61 = vld [vmem:[%s12397_s1 + $0x580] sm:$0xff]  ;;  %v10603_v35 = vld [vmem:[%s12397_s1 + $0x588] sm:$0xff] }
 0x44e   :  { %13868 = vst [vmem:[#allocation116_spill] sm:$0xff] %v10591_v16 }
 0x44f   :  { %2680 = vmatpush.msra.mxu1 %v10585_v13  ;;  %2720 = vmatpush.msra.mxu3 %v10591_v16  ;;  %13869 = vst [vmem:[#allocation117_spill] sm:$0xff] %v10597_v61  ;;  %v10609_v13 = vld [vmem:[%s12397_s1 + $0x540] sm:$0xff]  ;;  %v10615_v16 = vld [vmem:[%s12397_s1 + $0x548] sm:$0xff] }
 0x450   :  { %13870 = vst [vmem:[#allocation119_spill] sm:$0xff] %v10603_v35 }
 0x451   :  { %2681 = vmatpush.msra.mxu1 %v10597_v61  ;;  %2721 = vmatpush.msra.mxu3 %v10603_v35  ;;  %13871 = vst [vmem:[#allocation121_spill] sm:$0xff] %v10609_v13  ;;  %v10621_v61 = vld [vmem:[%s12397_s1 + $0x500] sm:$0xff]  ;;  %v10627_v35 = vld [vmem:[%s12397_s1 + $0x508] sm:$0xff] }
 0x452   :  { %13872 = vst [vmem:[#allocation124_spill] sm:$0xff] %v10615_v16 }
 0x453   :  { %2682 = vmatpush.msra.mxu1 %v10609_v13  ;;  %2722 = vmatpush.msra.mxu3 %v10615_v16  ;;  %13873 = vst [vmem:[#allocation52_spill] sm:$0xff] %v10621_v61  ;;  %v10633_v13 = vld [vmem:[%s12397_s1 + $0x4c0] sm:$0xff]  ;;  %v10639_v16 = vld [vmem:[%s12397_s1 + $0x4c8] sm:$0xff] }
 0x454   :  { %13874 = vst [vmem:[#allocation53_spill] sm:$0xff] %v10627_v35 }
 0x455   :  { %2683 = vmatpush.msra.mxu1 %v10621_v61  ;;  %2723 = vmatpush.msra.mxu3 %v10627_v35  ;;  %13875 = vst [vmem:[#allocation54_spill] sm:$0xff] %v10633_v13  ;;  %v10645_v61 = vld [vmem:[%s12397_s1 + $0x480] sm:$0xff]  ;;  %v10651_v35 = vld [vmem:[%s12397_s1 + $0x488] sm:$0xff] }
 0x456   :  { %13876 = vst [vmem:[#allocation56_spill] sm:$0xff] %v10639_v16 }
 0x457   :  { %2684 = vmatpush.msra.mxu1 %v10633_v13  ;;  %2724 = vmatpush.msra.mxu3 %v10639_v16  ;;  %13877 = vst [vmem:[#allocation58_spill] sm:$0xff] %v10645_v61  ;;  %v10657_v13 = vld [vmem:[%s12397_s1 + $0x440] sm:$0xff]  ;;  %v10663_v16 = vld [vmem:[%s12397_s1 + $0x448] sm:$0xff] }
 0x458   :  { %13878 = vst [vmem:[#allocation60_spill] sm:$0xff] %v10651_v35 }
 0x459   :  { %2685 = vmatpush.msra.mxu1 %v10645_v61  ;;  %2725 = vmatpush.msra.mxu3 %v10651_v35  ;;  %13879 = vst [vmem:[#allocation62_spill] sm:$0xff] %v10657_v13  ;;  %v10669_v61 = vld [vmem:[%s12397_s1 + $0x400] sm:$0xff]  ;;  %v10675_v35 = vld [vmem:[%s12397_s1 + $0x408] sm:$0xff] }
 0x45a   :  { %13880 = vst [vmem:[#allocation64_spill] sm:$0xff] %v10663_v16 }
 0x45b   :  { %2686 = vmatpush.msra.mxu1 %v10657_v13  ;;  %2726 = vmatpush.msra.mxu3 %v10663_v16  ;;  %13881 = vst [vmem:[#allocation66_spill] sm:$0xff] %v10669_v61  ;;  %v10681_v13 = vld [vmem:[%s12397_s1 + $0x7d0] sm:$0xff]  ;;  %v10687_v16 = vld [vmem:[%s12397_s1 + $0x7d8] sm:$0xff] }
 0x45c   :  { %13882 = vst [vmem:[#allocation68_spill] sm:$0xff] %v10675_v35 }
 0x45d   :  { %2687 = vmatpush.msra.mxu1 %v10669_v61  ;;  %2727 = vmatpush.msra.mxu3 %v10675_v35  ;;  %13883 = vst [vmem:[#allocation70_spill] sm:$0xff] %v10681_v13  ;;  %v10693_v61 = vld [vmem:[%s12397_s1 + $0x790] sm:$0xff]  ;;  %v10699_v35 = vld [vmem:[%s12397_s1 + $0x798] sm:$0xff] }
 0x45e   :  { %13884 = vst [vmem:[#allocation72_spill] sm:$0xff] %v10687_v16 }
 0x45f   :  { %2752 = vmatpush.msrb.mxu1 %v10681_v13  ;;  %2792 = vmatpush.msrb.mxu3 %v10687_v16  ;;  %13885 = vst [vmem:[#allocation74_spill] sm:$0xff] %v10693_v61  ;;  %v10705_v13 = vld [vmem:[%s12397_s1 + $0x750] sm:$0xff]  ;;  %v10711_v16 = vld [vmem:[%s12397_s1 + $0x758] sm:$0xff] }
 0x460   :  { %13886 = vst [vmem:[#allocation76_spill] sm:$0xff] %v10699_v35 }
 0x461   :  { %2753 = vmatpush.msrb.mxu1 %v10693_v61  ;;  %2793 = vmatpush.msrb.mxu3 %v10699_v35  ;;  %13887 = vst [vmem:[#allocation78_spill] sm:$0xff] %v10705_v13  ;;  %v10717_v61 = vld [vmem:[%s12397_s1 + $0x710] sm:$0xff]  ;;  %v10723_v35 = vld [vmem:[%s12397_s1 + $0x718] sm:$0xff] }
 0x462   :  { %13888 = vst [vmem:[#allocation80_spill] sm:$0xff] %v10711_v16 }
 0x463   :  { %2754 = vmatpush.msrb.mxu1 %v10705_v13  ;;  %2794 = vmatpush.msrb.mxu3 %v10711_v16  ;;  %13889 = vst [vmem:[#allocation82_spill] sm:$0xff] %v10717_v61  ;;  %v13891_v13 = vld [vmem:[#allocation90_spill] sm:$0xff]  ;;  %v10730_v16 = vld [vmem:[%s12397_s1 + $0x6d8] sm:$0xff] }
 0x464   :  { %13890 = vst [vmem:[#allocation84_spill] sm:$0xff] %v10723_v35 }
 0x465   :  { %2755 = vmatpush.msrb.mxu1 %v10717_v61  ;;  %2795 = vmatpush.msrb.mxu3 %v10723_v35  ;;  %13892 = vst [vmem:[#allocation86_spill] sm:$0xff] %v10730_v16  ;;  %v10737_v61 = vld [vmem:[%s12397_s1 + $0x698] sm:$0xff]  ;;  %v13897_v35 = vld [vmem:[#allocation96_spill] sm:$0xff] }
 0x466   :  { %13894 = vst [vmem:[#allocation88_spill] sm:$0xff] %v10737_v61 }
 0x467   :  { %2756 = vmatpush.msrb.mxu1 %v13891_v13  ;;  %2796 = vmatpush.msrb.mxu3 %v10730_v16  ;;  %v10744_v13 = vld [vmem:[%s12397_s1 + $0x658] sm:$0xff]  ;;  %v13898_v16 = vld [vmem:[#allocation98_spill] sm:$0xff] }
 0x468   :  { %13896 = vst [vmem:[#allocation90_spill] sm:$0xff] %v10744_v13 }
 0x469   :  { %2757 = vmatpush.msrb.mxu1 %v13893_v63  ;;  %2797 = vmatpush.msrb.mxu3 %v10737_v61  ;;  %v13899_v63 = vld [vmem:[#allocation100_spill] sm:$0xff]  ;;  %v13902_v61 = vld [vmem:[#allocation106_spill] sm:$0xff] }
 0x46b   :  { %2758 = vmatpush.msrb.mxu1 %v13895_v22  ;;  %2798 = vmatpush.msrb.mxu3 %v10744_v13  ;;  %v13903_v22 = vld [vmem:[#allocation108_spill] sm:$0xff]  ;;  %v13907_v13 = vld [vmem:[#allocation118_spill] sm:$0xff] }
 0x46d   :  { %2759 = vmatpush.msrb.mxu1 %v13897_v35  ;;  %2799 = vmatpush.msrb.mxu3 %v13898_v16  ;;  %v13908_v35 = vld [vmem:[#allocation120_spill] sm:$0xff]  ;;  %v13909_v16 = vld [vmem:[#allocation122_spill] sm:$0xff] }
 0x46f   :  { %2760 = vmatpush.msrb.mxu1 %v13899_v63  ;;  %2800 = vmatpush.msrb.mxu3 %v13900_v8  ;;  %v13910_v63 = vld [vmem:[#allocation123_spill] sm:$0xff]  ;;  %v2210_v8 = vpop.f32.mrf.mxu0 }
 0x471   :  { %2761 = vmatpush.msrb.mxu1 %v13901_v26  ;;  %2801 = vmatpush.msrb.mxu3 %v13902_v61  ;;  %v3889_v61 = vld [vmem:[%s12398_s0 + $0xa0] sm:$0xff] }
 0x473   :  { %2762 = vmatpush.msrb.mxu1 %v13903_v22  ;;  %2802 = vmatpush.msrb.mxu3 %v13904_v25  ;;  %v13911_v25 = vld [vmem:[#allocation125_spill] sm:$0xff] }
 0x475   :  { %2763 = vmatpush.msrb.mxu1 %v13905_v45  ;;  %2803 = vmatpush.msrb.mxu3 %v13906_v37  ;;  %v13912_v45 = vld [vmem:[#allocation126_spill] sm:$0xff] }
 0x477   :  { %2764 = vmatpush.msrb.mxu1 %v13907_v13  ;;  %2804 = vmatpush.msrb.mxu3 %v13908_v35  ;;  %v13914_v13 = vld [vmem:[#allocation128_spill] sm:$0xff]  ;;  %v2250_v35 = vpop.f32.mrf.mxu2 }
 0x479   :  { %2765 = vmatpush.msrb.mxu1 %v13909_v16  ;;  %2805 = vmatpush.msrb.mxu3 %v13910_v63  ;;  %v2230_v26 = vpop.f32.mrf.mxu1  ;;  %v3890_v63 = vld [vmem:[%s12398_s0 + $0xa8] sm:$0xff] }
 0x47a   :  { %v2231_v22 = vadd.f32 %v2230_v26, %v2210_v8 }
 0x47b   :  { %2766 = vmatpush.msrb.mxu1 %v13911_v25  ;;  %2806 = vmatpush.msrb.mxu3 %v13912_v45 }
 0x47c   :  { %v2585_v37 = vadd.f32 %v3889_v61, %v2231_v22 }
 0x47d   :  { %2767 = vmatpush.msrb.mxu1 %v13913_v42  ;;  %2807 = vmatpush.msrb.mxu3 %v13914_v13  ;;  %v3892_v42 = vld [vmem:[%s12398_s0 + $0xb8] sm:$0xff] }
 0x47e   :  { %v3893_v16 = vmul.f32 -1.442695, %v2585_v37 }
 0x47f   :  { %v2270_v56 = vpop.f32.mrf.mxu3  ;;  %v2330_v25 = vpop.f32.mrf.mxu2 }
 0x480   :  { %4065 = vpow2.f32 %v3893_v16  ;;  %v2271_v32 = vadd.f32 %v2270_v56, %v2250_v35 }
 0x481   :  { %v2310_v60 = vpop.f32.mrf.mxu1 }
 0x482   :  { %v2586_v31 = vadd.f32 %v3890_v63, %v2271_v32  ;;  %v3891_v63 = vld [vmem:[%s12398_s0 + $0xb0] sm:$0xff] }
 0x484   :  { %v3894_v8 = vmul.f32 -1.442695, %v2586_v31  ;;  %v2290_v31 = vpop.f32.mrf.mxu0 }
 0x485   :  { %v2311_v35 = vadd.f32 %v2310_v60, %v2290_v31 }
 0x486   :  { %v4066_v26 = vpop.eup %4065  ;;  %4067 = vpow2.f32 %v3894_v8 }
 0x487   :  { %v2598_v45 = vadd.f32 1.0, %v4066_v26  ;;  %v2350_v61 = vpop.f32.mrf.mxu3  ;;  %v2410_v60 = vpop.f32.mrf.mxu2 }
 0x488   :  { %v2351_v22 = vadd.f32 %v2350_v61, %v2330_v25  ;;  %v2587_v61 = vadd.f32 %v3891_v63, %v2311_v35 }
 0x489   :  { %4069 = vrcp.f32 %v2598_v45  ;;  %vm2606_vm13 = vweird.f32 %v2598_v45  ;;  %v2610_v53 = vand.u32 2147483647, %v2598_v45 }
 0x48a   :  { %v2588_v37 = vadd.f32 %v3892_v42, %v2351_v22 }
 0x48b   :  { %vm2611_vm1 = vcmp.eq.f32.partialorder %v2610_v53, 8.507059e+37 }
 0x48c   :  { %v4068_v13 = vpop.eup %4067  ;;  %v3895_v7 = vmul.f32 -1.442695, %v2588_v37  ;;  %v2370_v31 = vpop.f32.mrf.mxu0 }
 0x48d   :  { %v2599_v47 = vadd.f32 1.0, %v4068_v13  ;;  %v2612_v13 = vand.u32 2147483648, %v2598_v45 }
 0x48e   :  { %4071 = vpow2.f32 %v3895_v7 }
 0x48f   :  { %v4070_v56 = vpop.eup %4069  ;;  %4073 = vrcp.f32 %v2599_v47  ;;  %v2627_v15 = vand.u32 2147483648, %v2599_v47  ;;  %vm2621_vm0 = vweird.f32 %v2599_v47 }
 0x490   :  { %v2602_v32 = vmul.f32 %v4070_v56, %v2598_v45  ;;  %vm2607_vm12 = vweird.f32 %v4070_v56 }
 0x491   :  { %vm10777_vm14 = vmor %vm2606_vm13, %vm2607_vm12  ;;  %v2628_v24 = vor.u32 1.1754944e-38, %v2627_v15 }
 0x492   :  { %v2603_v16 = vsub.f32 1.0, %v2602_v32 }
 0x494   :  { %v4072_v8 = vpop.eup %4071  ;;  %v2604_v26 = vmul.f32 %v4070_v56, %v2603_v16  ;;  %v2625_v16 = vand.u32 2147483647, %v2599_v47 }
 0x495   :  { %v4074_v25 = vpop.eup %4073  ;;  %v2600_v42 = vadd.f32 1.0, %v4072_v8  ;;  %v2613_v8 = vor.u32 1.1754944e-38, %v2612_v13 }
 0x496   :  { %v2617_v22 = vmul.f32 %v4074_v25, %v2599_v47  ;;  %v2605_v37 = vadd.f32 %v4070_v56, %v2604_v26  ;;  %vm2622_vm15 = vweird.f32 %v4074_v25  ;;  %vm2626_vm3 = vcmp.eq.f32.partialorder %v2625_v16, 8.507059e+37 }
 0x497   :  { %4075 = vrcp.f32 %v2600_v42  ;;  %vm2623_vm2 = vmor %vm2621_vm0, %vm2622_vm15  ;;  %vm2636_vm5 = vweird.f32 %v2600_v42 }
 0x498   :  { %v2618_v7 = vsub.f32 1.0, %v2617_v22  ;;  %4077 = vtanh.f32 %v2587_v61  ;;  %v2609_v35 = vsel %vm10777_vm14, %v4070_v56, %v2605_v37 }
 0x499   :  { %v2614_v0 = vsel %vm2611_vm1, %v2613_v8, %v2609_v35 }
 0x49a   :  { %v2619_v32 = vmul.f32 %v4074_v25, %v2618_v7  ;;  %v2390_v63 = vpop.f32.mrf.mxu1 }
 0x49b   :  { %v2391_v26 = vadd.f32 %v2390_v63, %v2370_v31 }
 0x49c   :  { %v2620_v22 = vadd.f32 %v4074_v25, %v2619_v32 }
 0x49d   :  { %v4076_v45 = vpop.eup %4075  ;;  %v2513_v30 = vadd.f32 %v2391_v26, %v6833_v12 }
 0x49e   :  { %v2624_v58 = vsel %vm2623_vm2, %v4074_v25, %v2620_v22  ;;  %v2632_v61 = vmul.f32 %v4076_v45, %v2600_v42  ;;  %v4078_v55 = vpop.eup %4077  ;;  %vm2637_vm4 = vweird.f32 %v4076_v45 }
 0x49f   :  { %v2629_v7 = vsel %vm2626_vm3, %v2628_v24, %v2624_v58  ;;  %v2648_v37 = vmul.f32 %v4078_v55, %v2614_v0  ;;  %v3886_v15 = vmul.f32 -1.442695, %v2513_v30  ;;  %v2642_v58 = vand.u32 2147483648, %v2600_v42  ;;  %vm2638_vm6 = vmor %vm2636_vm5, %vm2637_vm4 }
 0x4a0   :  { %v2647_v56 = vmul.f32 %v2629_v7, %v9680_v21  ;;  %v2633_v13 = vsub.f32 1.0, %v2632_v61  ;;  %v2430_v31 = vpop.f32.mrf.mxu3  ;;  %v2640_v24 = vand.u32 2147483647, %v2600_v42  ;;  %v13924_v7 = vld [vmem:[#allocation9_spill] sm:$0xff] }
 0x4a1   :  { %v2431_v47 = vadd.f32 %v2430_v31, %v2410_v60  ;;  %v2643_v55 = vor.u32 1.1754944e-38, %v2642_v58  ;;  %v13925_v60 = vld [vmem:[#allocation12_spill] sm:$0xff]  ;;  %v13926_v31 = vld [vmem:[#allocation11_spill] sm:$0xff] }
 0x4a2   :  { %v10785_v53 = vadd.f32 %v2648_v37, %v2647_v56  ;;  %v2634_v32 = vmul.f32 %v4076_v45, %v2633_v13  ;;  %vm2641_vm7 = vcmp.eq.f32.partialorder %v2640_v24, 8.507059e+37  ;;  %v13929_v58 = vld [vmem:[#allocation16_spill] sm:$0xff] }
 0x4a3   :  { %v2514_v25 = vadd.f32 %v2431_v47, %v6828_v1  ;;  %v13927_v47 = vld [vmem:[#allocation14_spill] sm:$0xff] }
 0x4a4   :  { %4079 = vtanh.f32 %v10785_v53  ;;  %v2635_v35 = vadd.f32 %v4076_v45, %v2634_v32  ;;  %v2450_v32 = vpop.f32.mrf.mxu0 }
 0x4a5   :  { %v3887_v16 = vmul.f32 -1.442695, %v2514_v25  ;;  %4081 = vpow2.f32 %v3886_v15  ;;  %v2490_v15 = vpop.f32.mrf.mxu2 }
 0x4a6   :  { %v2639_v21 = vsel %vm2638_vm6, %v4076_v45, %v2635_v35  ;;  %v13917_v45 = vld [vmem:[#allocation129_spill] sm:$0xff] }
 0x4a7   :  { %4083 = vpow2.f32 %v3887_v16  ;;  %v2644_v63 = vsel %vm2641_vm7, %v2643_v55, %v2639_v21  ;;  %v13928_v35 = vld [vmem:[#allocation13_spill] sm:$0xff] }
 0x4aa   :  { %v4080_v0 = vpop.eup %4079 }
 0x4ab   :  { %v10789_v8 = vmul.f32 %v4080_v0, %v2644_v63  ;;  %v4082_v30 = vpop.eup %4081  ;;  %v13930_v0 = vld [vmem:[#allocation15_spill] sm:$0xff]  ;;  %v13931_v63 = vld [vmem:[#allocation18_spill] sm:$0xff] }
 0x4ac   :  { %v10795_v42 = vadd.f32 1.0, %v4082_v30  ;;  %v13932_v30 = vld [vmem:[#allocation2_spill] sm:$0xff] }
 0x4ad   :  { %2668 = vmatmul.f32.vlgmr.msra.gmra.mxu0 %v10789_v8  ;;  %2708 = vmatmul.f32.vlgmr.msra.gmra.mxu2 %v10789_v8  ;;  %v4084_v26 = vpop.eup %4083 }
 0x4ae   :  { %2812 = vmatpush.msra.mxu0 %v9691_v57  ;;  %2852 = vmatpush.msra.mxu2 %v9697_v59  ;;  %v10799_v22 = vadd.f32 1.0, %v4084_v26  ;;  %4085 = vrcp.f32 %v10795_v42  ;;  %v13918_v57 = vld [vmem:[#allocation3_spill] sm:$0xff]  ;;  %v13919_v59 = vld [vmem:[#allocation6_spill] sm:$0xff]  ;;  %vm2534_vm10 = vweird.f32 %v10795_v42 }
 0x4b0   :  { %2813 = vmatpush.msra.mxu0 %v9703_v29  ;;  %2853 = vmatpush.msra.mxu2 %v9709_v14  ;;  %4087 = vrcp.f32 %v10799_v22  ;;  %v13920_v29 = vld [vmem:[#allocation5_spill] sm:$0xff]  ;;  %v13921_v14 = vld [vmem:[#allocation8_spill] sm:$0xff]  ;;  %vm2549_vm11 = vweird.f32 %v10799_v22 }
 0x4b2   :  { %2814 = vmatpush.msra.mxu0 %v9719_v39  ;;  %2854 = vmatpush.msra.mxu2 %v9725_v4  ;;  %v13922_v4 = vld [vmem:[#allocation7_spill] sm:$0xff] }
 0x4b4   :  { %2815 = vmatpush.msra.mxu0 %v9731_v6  ;;  %2855 = vmatpush.msra.mxu2 %v13917_v45  ;;  %v10813_v39 = vpop.eup %4085  ;;  %v13923_v6 = vld [vmem:[#allocation10_spill] sm:$0xff]  ;;  %v13933_v45 = vld [vmem:[#allocation17_spill] sm:$0xff] }
 0x4b5   :  { %2748 = vmatmul.f32.vlgmr.msrb.gmra.mxu0 %v10789_v8  ;;  %2788 = vmatmul.f32.vlgmr.msrb.gmra.mxu2 %v10789_v8  ;;  %v2530_v56 = vmul.f32 %v10813_v39, %v10795_v42  ;;  %vm2535_vm8 = vweird.f32 %v10813_v39 }
 0x4b6   :  { %2816 = vmatpush.msra.mxu0 %v13918_v57  ;;  %2856 = vmatpush.msra.mxu2 %v13919_v59  ;;  %v10817_v61 = vpop.eup %4087  ;;  %v13934_v57 = vld [vmem:[#allocation20_spill] sm:$0xff]  ;;  %vm10851_vm12 = vmor %vm2534_vm10, %vm2535_vm8 }
 0x4b7   :  { %v2545_v37 = vmul.f32 %v10817_v61, %v10799_v22  ;;  %v2531_v21 = vsub.f32 1.0, %v2530_v56  ;;  %v13935_v59 = vld [vmem:[#allocation4_spill] sm:$0xff]  ;;  %v13938_v56 = vld [vmem:[#allocation23_spill] sm:$0xff]  ;;  %vm2550_vm9 = vweird.f32 %v10817_v61 }
 0x4b8   :  { %2817 = vmatpush.msra.mxu0 %v13920_v29  ;;  %2857 = vmatpush.msra.mxu2 %v13921_v14  ;;  %vm10861_vm13 = vmor %vm2549_vm11, %vm2550_vm9 }
 0x4b9   :  { %v2546_v55 = vsub.f32 1.0, %v2545_v37  ;;  %v13939_v37 = vld [vmem:[#allocation26_spill] sm:$0xff] }
 0x4ba   :  { %2818 = vmatpush.msra.mxu0 %v13922_v4  ;;  %2858 = vmatpush.msra.mxu2 %v13923_v6  ;;  %v2470_v13 = vpop.f32.mrf.mxu1  ;;  %v2532_v6 = vmul.f32 %v10813_v39, %v2531_v21  ;;  %v13945_v21 = vld [vmem:[#allocation24_spill] sm:$0xff] }
 0x4bb   :  { %v2471_v24 = vadd.f32 %v2470_v13, %v2450_v32  ;;  %v2547_v4 = vmul.f32 %v10817_v61, %v2546_v55  ;;  %v13941_v32 = vld [vmem:[#allocation28_spill] sm:$0xff] }
 0x4bc   :  { %2819 = vmatpush.msra.mxu0 %v13924_v7  ;;  %2859 = vmatpush.msra.mxu2 %v13925_v60  ;;  %v13936_v7 = vld [vmem:[#allocation22_spill] sm:$0xff]  ;;  %v13937_v60 = vld [vmem:[#allocation21_spill] sm:$0xff]  ;;  %v2533_v13 = vadd.f32 %v10813_v39, %v2532_v6 }
 0x4bd   :  { %v2515_v29 = vadd.f32 %v2471_v24, %v13935_v59  ;;  %v2553_v24 = vand.u32 2147483647, %v10799_v22 }
 0x4be   :  { %2820 = vmatpush.msra.mxu0 %v13926_v31  ;;  %2860 = vmatpush.msra.mxu2 %v13927_v47  ;;  %v2548_v31 = vadd.f32 %v10817_v61, %v2547_v4  ;;  %v13940_v47 = vld [vmem:[#allocation19_spill] sm:$0xff] }
 0x4bf   :  { %vm2554_vm15 = vcmp.eq.f32.partialorder %v2553_v24, 8.507059e+37  ;;  %v10906_v24 = vld [vmem:[%s12397_s1 + $0x7e0] sm:$0xff] }
 0x4c0   :  { %v2510_v25 = vpop.f32.mrf.mxu3  ;;  %2821 = vmatpush.msra.mxu0 %v13928_v35  ;;  %2861 = vmatpush.msra.mxu2 %v13929_v58  ;;  %v2538_v58 = vand.u32 2147483647, %v10795_v42 }
 0x4c1   :  { %v2511_v16 = vadd.f32 %v2510_v25, %v2490_v15  ;;  %v2555_v15 = vand.u32 2147483648, %v10799_v22  ;;  %v2540_v25 = vand.u32 2147483648, %v10795_v42  ;;  %v2537_v42 = vsel %vm10851_vm12, %v10813_v39, %v2533_v13 }
 0x4c2   :  { %2822 = vmatpush.msra.mxu0 %v13930_v0  ;;  %2862 = vmatpush.msra.mxu2 %v13931_v63  ;;  %v2552_v22 = vsel %vm10861_vm13, %v10817_v61, %v2548_v31  ;;  %vm2539_vm14 = vcmp.eq.f32.partialorder %v2538_v58, 8.507059e+37  ;;  %v13961_v0 = vld [vmem:[#allocation41_spill] sm:$0xff] }
 0x4c3   :  { %v2516_v26 = vadd.f32 %v2511_v16, %v13932_v30  ;;  %v13944_v16 = vld [vmem:[#allocation27_spill] sm:$0xff] }
 0x4c4   :  { %2823 = vmatpush.msra.mxu0 %v13933_v45  ;;  %2863 = vmatpush.msra.mxu2 %v13934_v57  ;;  %v2556_v57 = vor.u32 1.1754944e-38, %v2555_v15 }
 0x4c5   :  { %v3888_v14 = vmul.f32 -1.442695, %v2516_v26  ;;  %v13948_v26 = vld [vmem:[#allocation32_spill] sm:$0xff] }
 0x4c6   :  { %2824 = vmatpush.msra.mxu0 %v13936_v7  ;;  %2864 = vmatpush.msra.mxu2 %v13937_v60  ;;  %v13950_v7 = vld [vmem:[#allocation25_spill] sm:$0xff]  ;;  %v13951_v60 = vld [vmem:[#allocation34_spill] sm:$0xff] }
 0x4c7   :  { %4089 = vpow2.f32 %v3888_v14  ;;  %v2557_v14 = vsel %vm2554_vm15, %v2556_v57, %v2552_v22  ;;  %v11068_v22 = vld [vmem:[%s12397_s1 + $0x528] sm:$0xff] }
 0x4c8   :  { %2825 = vmatpush.msra.mxu0 %v13938_v56  ;;  %2865 = vmatpush.msra.mxu2 %v13939_v37  ;;  %4091 = vtanh.f32 %v2515_v29  ;;  %v2541_v29 = vor.u32 1.1754944e-38, %v2540_v25  ;;  %v2575_v61 = vmul.f32 %v2557_v14, %v9991_v38  ;;  %v13952_v38 = vld [vmem:[#allocation30_spill] sm:$0xff]  ;;  %v13954_v37 = vld [vmem:[#allocation39_spill] sm:$0xff] }
 0x4c9   :  { %v11082_v57 = vld [vmem:[%s12397_s1 + $0x4e8] sm:$0xff]  ;;  %v11090_v14 = vld [vmem:[%s12397_s1 + $0x4a0] sm:$0xff] }
 0x4ca   :  { %2826 = vmatpush.msra.mxu0 %v13940_v47  ;;  %2866 = vmatpush.msra.mxu2 %v13941_v32  ;;  %v2542_v39 = vsel %vm2539_vm14, %v2541_v29, %v2537_v42  ;;  %v13956_v47 = vld [vmem:[#allocation35_spill] sm:$0xff]  ;;  %v13957_v32 = vld [vmem:[#allocation40_spill] sm:$0xff]  ;;  %v11062_v42 = vld [vmem:[%s12397_s1 + $0x520] sm:$0xff] }
 0x4cb   :  { %v13964_v29 = vld [vmem:[#allocation45_spill] sm:$0xff] }
 0x4cc   :  { %2827 = vmatpush.msra.mxu0 %v13944_v16  ;;  %2867 = vmatpush.msra.mxu2 %v13945_v21  ;;  %v10982_v16 = vld [vmem:[%s12397_s1 + $0x6a8] sm:$0xff]  ;;  %v13959_v21 = vld [vmem:[#allocation36_spill] sm:$0xff] }
 0x4cd   :  { %v4090_v55 = vpop.eup %4089  ;;  %2828 = vmatmul.f32.vlgmr.msra.gmra.mxu0 %v10789_v8  ;;  %2868 = vmatmul.f32.vlgmr.msra.gmra.mxu2 %v10789_v8 }
 0x4ce   :  { %v2528_v63 = vadd.f32 1.0, %v4090_v55  ;;  %2892 = vmatpush.msrb.mxu0 %v13948_v26  ;;  %2932 = vmatpush.msrb.mxu2 %v9933_v50  ;;  %v4092_v45 = vpop.eup %4091  ;;  %v13960_v55 = vld [vmem:[#allocation38_spill] sm:$0xff] }
 0x4cf   :  { %v2576_v4 = vmul.f32 %v4092_v45, %v2542_v39  ;;  %v13963_v26 = vld [vmem:[#allocation42_spill] sm:$0xff]  ;;  %v13965_v39 = vld [vmem:[#allocation44_spill] sm:$0xff] }
 0x4d0   :  { %4093 = vrcp.f32 %v2528_v63  ;;  %2893 = vmatpush.msrb.mxu0 %v9945_v62  ;;  %2933 = vmatpush.msrb.mxu2 %v9951_v41  ;;  %v13949_v62 = vld [vmem:[#allocation31_spill] sm:$0xff]  ;;  %v2568_v56 = vand.u32 2147483647, %v2528_v63  ;;  %vm2564_vm1 = vweird.f32 %v2528_v63  ;;  %v11076_v45 = vld [vmem:[%s12397_s1 + $0x4e0] sm:$0xff] }
 0x4d1   :  { %v10882_v6 = vadd.f32 %v2576_v4, %v2575_v61  ;;  %v11096_v4 = vld [vmem:[%s12397_s1 + $0x4a8] sm:$0xff] }
 0x4d2   :  { %2894 = vmatpush.msrb.mxu0 %v9957_v2  ;;  %2934 = vmatpush.msrb.mxu2 %v9963_v11  ;;  %v2570_v11 = vand.u32 2147483648, %v2528_v63  ;;  %vm2569_vm3 = vcmp.eq.f32.partialorder %v2568_v56, 8.507059e+37  ;;  %v13966_v61 = vld [vmem:[#allocation47_spill] sm:$0xff]  ;;  %v13977_v56 = vld [vmem:[#allocation50_spill] sm:$0xff] }
 0x4d3   :  { %4095 = vtanh.f32 %v10882_v6 }
 0x4d4   :  { %2895 = vmatpush.msrb.mxu0 %v9969_v33  ;;  %2935 = vmatpush.msrb.mxu2 %v9975_v36  ;;  %v13953_v33 = vld [vmem:[#allocation29_spill] sm:$0xff]  ;;  %v2571_v31 = vor.u32 1.1754944e-38, %v2570_v11  ;;  %v11124_v11 = vld [vmem:[%s12397_s1 + $0x428] sm:$0xff] }
 0x4d5   :  { %13973 = vst [vmem:[#allocation98_spill] sm:$0xff] %v11124_v11 }
 0x4d6   :  { %v4094_v50 = vpop.eup %4093  ;;  %2896 = vmatpush.msrb.mxu0 %v9982_v5  ;;  %2936 = vmatpush.msrb.mxu2 %v13949_v62  ;;  %v13955_v5 = vld [vmem:[#allocation33_spill] sm:$0xff]  ;;  %v11104_v62 = vld [vmem:[%s12397_s1 + $0x460] sm:$0xff] }
 0x4d7   :  { %v2560_v41 = vmul.f32 %v4094_v50, %v2528_v63  ;;  %vm2565_vm0 = vweird.f32 %v4094_v50  ;;  %v13962_v63 = vld [vmem:[#allocation43_spill] sm:$0xff]  ;;  %13968 = vst [vmem:[#allocation92_spill] sm:$0xff] %v11104_v62 }
 0x4d8   :  { %2897 = vmatpush.msrb.mxu0 %v13950_v7  ;;  %2937 = vmatpush.msrb.mxu2 %v13951_v60  ;;  %vm2566_vm2 = vmor %vm2564_vm1, %vm2565_vm0  ;;  %v13970_v7 = vld [vmem:[#allocation49_spill] sm:$0xff]  ;;  %v13971_v60 = vld [vmem:[#allocation48_spill] sm:$0xff] }
 0x4d9   :  { %v2561_v2 = vsub.f32 1.0, %v2560_v41  ;;  %v4096_v25 = vpop.eup %4095  ;;  %v11110_v41 = vld [vmem:[%s12397_s1 + $0x468] sm:$0xff] }
 0x4da   :  { %2898 = vmatpush.msrb.mxu0 %v13952_v38  ;;  %2938 = vmatpush.msrb.mxu2 %v13953_v33  ;;  %13969 = vst [vmem:[#allocation94_spill] sm:$0xff] %v11110_v41  ;;  %v11132_v38 = vld [vmem:[%s12397_s1 + $0x7f0] sm:$0xff]  ;;  %v11138_v33 = vld [vmem:[%s12397_s1 + $0x7f8] sm:$0xff] }
 0x4db   :  { %v2562_v36 = vmul.f32 %v4094_v50, %v2561_v2  ;;  %v11118_v2 = vld [vmem:[%s12397_s1 + $0x420] sm:$0xff]  ;;  %13974 = vst [vmem:[#allocation100_spill] sm:$0xff] %v11132_v38 }
 0x4dc   :  { %2899 = vmatpush.msrb.mxu0 %v13954_v37  ;;  %2939 = vmatpush.msrb.mxu2 %v13955_v5  ;;  %13972 = vst [vmem:[#allocation96_spill] sm:$0xff] %v11118_v2  ;;  %v11146_v37 = vld [vmem:[%s12397_s1 + $0x7b0] sm:$0xff]  ;;  %v11152_v5 = vld [vmem:[%s12397_s1 + $0x7b8] sm:$0xff] }
 0x4dd   :  { %v2563_v13 = vadd.f32 %v4094_v50, %v2562_v36  ;;  %13975 = vst [vmem:[#allocation102_spill] sm:$0xff] %v11138_v33  ;;  %v13976_v36 = vld [vmem:[#allocation51_spill] sm:$0xff] }
 0x4de   :  { %2900 = vmatpush.msrb.mxu0 %v13956_v47  ;;  %2940 = vmatpush.msrb.mxu2 %v13957_v32  ;;  %13978 = vst [vmem:[#allocation104_spill] sm:$0xff] %v11146_v37  ;;  %v11160_v47 = vld [vmem:[%s12397_s1 + $0x770] sm:$0xff]  ;;  %v11166_v32 = vld [vmem:[%s12397_s1 + $0x778] sm:$0xff] }
 0x4df   :  { %v2567_v15 = vsel %vm2566_vm2, %v4094_v50, %v2563_v13  ;;  %v13967_v50 = vld [vmem:[#allocation46_spill] sm:$0xff]  ;;  %13979 = vst [vmem:[#allocation106_spill] sm:$0xff] %v11152_v5  ;;  %v13980_v13 = vld [vmem:[#allocation55_spill] sm:$0xff] }
 0x4e0   :  { %v2572_v35 = vsel %vm2569_vm3, %v2571_v31, %v2567_v15  ;;  %2901 = vmatpush.msrb.mxu0 %v10045_v28  ;;  %2941 = vmatpush.msrb.mxu2 %v10051_v40  ;;  %v10912_v28 = vld [vmem:[%s12397_s1 + $0x7e8] sm:$0xff]  ;;  %v10920_v40 = vld [vmem:[%s12397_s1 + $0x7a0] sm:$0xff]  ;;  %v13981_v31 = vld [vmem:[#allocation57_spill] sm:$0xff]  ;;  %13982 = vst [vmem:[#allocation108_spill] sm:$0xff] %v11160_v47 }
 0x4e1   :  { %v10897_v58 = vmul.f32 %v4096_v25, %v2572_v35  ;;  %13983 = vst [vmem:[#allocation110_spill] sm:$0xff] %v11166_v32  ;;  %v13984_v15 = vld [vmem:[#allocation132_spill] sm:$0xff]  ;;  %v13985_v25 = vld [vmem:[#allocation133_spill] sm:$0xff] }
 0x4e2   :  { %2902 = vmatpush.msrb.mxu0 %v10059_v46  ;;  %2942 = vmatpush.msrb.mxu2 %v10065_v19  ;;  %v10926_v46 = vld [vmem:[%s12397_s1 + $0x7a8] sm:$0xff]  ;;  %v10934_v19 = vld [vmem:[%s12397_s1 + $0x760] sm:$0xff]  ;;  %v11174_v35 = vld [vmem:[%s12397_s1 + $0x730] sm:$0xff] }
 0x4e3   :  { %2688 = vmatmul.f32.vlgmr.msra.gmra.mxu1 %v10897_v58  ;;  %2728 = vmatmul.f32.vlgmr.msra.gmra.mxu3 %v10897_v58  ;;  %13986 = vst [vmem:[#allocation112_spill] sm:$0xff] %v11174_v35 }
 0x4e4   :  { %2832 = vmatpush.msra.mxu1 %v10906_v24  ;;  %2872 = vmatpush.msra.mxu3 %v10912_v28 }
 0x4e5   :  { %2903 = vmatpush.msrb.mxu0 %v10075_v9  ;;  %2943 = vmatpush.msrb.mxu2 %v10081_v20  ;;  %v10940_v9 = vld [vmem:[%s12397_s1 + $0x768] sm:$0xff]  ;;  %v10948_v20 = vld [vmem:[%s12397_s1 + $0x720] sm:$0xff] }
 0x4e6   :  { %2833 = vmatpush.msra.mxu1 %v10920_v40  ;;  %2873 = vmatpush.msra.mxu3 %v10926_v46 }
 0x4e7   :  { %2904 = vmatpush.msrb.mxu0 %v10089_v54  ;;  %2944 = vmatpush.msrb.mxu2 %v10095_v34  ;;  %v10954_v54 = vld [vmem:[%s12397_s1 + $0x728] sm:$0xff]  ;;  %v10962_v34 = vld [vmem:[%s12397_s1 + $0x6e0] sm:$0xff] }
 0x4e8   :  { %2834 = vmatpush.msra.mxu1 %v10934_v19  ;;  %2874 = vmatpush.msra.mxu3 %v10940_v9 }
 0x4e9   :  { %2905 = vmatpush.msrb.mxu0 %v10103_v3  ;;  %2945 = vmatpush.msrb.mxu2 %v10109_v17  ;;  %v10968_v3 = vld [vmem:[%s12397_s1 + $0x6e8] sm:$0xff]  ;;  %v10976_v17 = vld [vmem:[%s12397_s1 + $0x6a0] sm:$0xff] }
 0x4ea   :  { %2835 = vmatpush.msra.mxu1 %v10948_v20  ;;  %2875 = vmatpush.msra.mxu3 %v10954_v54 }
 0x4eb   :  { %2768 = vmatmul.f32.vlgmr.msrb.gmra.mxu1 %v10897_v58  ;;  %2808 = vmatmul.f32.vlgmr.msrb.gmra.mxu3 %v10897_v58 }
 0x4ec   :  { %2836 = vmatpush.msra.mxu1 %v10962_v34  ;;  %2876 = vmatpush.msra.mxu3 %v10968_v3 }
 0x4ed   :  { %2906 = vmatpush.msrb.mxu0 %v10121_v10  ;;  %2946 = vmatpush.msrb.mxu2 %v10127_v52  ;;  %v10992_v10 = vld [vmem:[%s12397_s1 + $0x660] sm:$0xff]  ;;  %v10998_v52 = vld [vmem:[%s12397_s1 + $0x668] sm:$0xff] }
 0x4ee   :  { %2837 = vmatpush.msra.mxu1 %v10976_v17  ;;  %2877 = vmatpush.msra.mxu3 %v10982_v16 }
 0x4ef   :  { %2907 = vmatpush.msrb.mxu0 %v10135_v23  ;;  %2947 = vmatpush.msrb.mxu2 %v10141_v48  ;;  %v11006_v23 = vld [vmem:[%s12397_s1 + $0x620] sm:$0xff]  ;;  %v11012_v48 = vld [vmem:[%s12397_s1 + $0x628] sm:$0xff] }
 0x4f0   :  { %2908 = vmatmul.f32.vlgmr.msrb.gmra.mxu0 %v10789_v8  ;;  %2948 = vmatmul.f32.vlgmr.msrb.gmra.mxu2 %v10789_v8  ;;  %v13958_v8 = vld [vmem:[#allocation37_spill] sm:$0xff] }
 0x4f1   :  { %2838 = vmatpush.msra.mxu1 %v10992_v10  ;;  %2878 = vmatpush.msra.mxu3 %v10998_v52 }
 0x4f2   :  { %3111 = vmatpush.msra.mxu0 %v10151_v27  ;;  %3151 = vmatpush.msra.mxu2 %v10157_v18  ;;  %v11020_v27 = vld [vmem:[%s12397_s1 + $0x5e0] sm:$0xff]  ;;  %v11026_v18 = vld [vmem:[%s12397_s1 + $0x5e8] sm:$0xff] }
 0x4f3   :  { %2839 = vmatpush.msra.mxu1 %v11006_v23  ;;  %2879 = vmatpush.msra.mxu3 %v11012_v48 }
 0x4f4   :  { %3112 = vmatpush.msra.mxu0 %v10165_v43  ;;  %3152 = vmatpush.msra.mxu2 %v10171_v44  ;;  %v11034_v43 = vld [vmem:[%s12397_s1 + $0x5a0] sm:$0xff]  ;;  %v11040_v44 = vld [vmem:[%s12397_s1 + $0x5a8] sm:$0xff] }
 0x4f5   :  { %2840 = vmatpush.msra.mxu1 %v11020_v27  ;;  %2880 = vmatpush.msra.mxu3 %v11026_v18 }
 0x4f6   :  { %3113 = vmatpush.msra.mxu0 %v10179_v49  ;;  %3153 = vmatpush.msra.mxu2 %v10185_v51  ;;  %v11048_v49 = vld [vmem:[%s12397_s1 + $0x560] sm:$0xff]  ;;  %v11054_v51 = vld [vmem:[%s12397_s1 + $0x568] sm:$0xff] }
 0x4f7   :  { %2841 = vmatpush.msra.mxu1 %v11034_v43  ;;  %2881 = vmatpush.msra.mxu3 %v11040_v44 }
 0x4f8   :  { %3114 = vmatpush.msra.mxu0 %v13958_v8  ;;  %3154 = vmatpush.msra.mxu2 %v13959_v21  ;;  %v11180_v8 = vld [vmem:[%s12397_s1 + $0x738] sm:$0xff]  ;;  %v13988_v21 = vld [vmem:[#allocation134_spill] sm:$0xff] }
 0x4f9   :  { %2842 = vmatpush.msra.mxu1 %v11048_v49  ;;  %2882 = vmatpush.msra.mxu3 %v11054_v51  ;;  %13987 = vst [vmem:[#allocation114_spill] sm:$0xff] %v11180_v8 }
 0x4fa   :  { %3115 = vmatpush.msra.mxu0 %v13960_v55  ;;  %3155 = vmatpush.msra.mxu2 %v13961_v0  ;;  %v13989_v55 = vld [vmem:[#allocation135_spill] sm:$0xff]  ;;  %v11188_v0 = vld [vmem:[%s12397_s1 + $0x6f0] sm:$0xff] }
 0x4fb   :  { %2843 = vmatpush.msra.mxu1 %v11062_v42  ;;  %2883 = vmatpush.msra.mxu3 %v11068_v22  ;;  %13990 = vst [vmem:[#allocation118_spill] sm:$0xff] %v11188_v0 }
 0x4fc   :  { %3116 = vmatpush.msra.mxu0 %v13962_v63  ;;  %3156 = vmatpush.msra.mxu2 %v13963_v26  ;;  %v11194_v63 = vld [vmem:[%s12397_s1 + $0x6f8] sm:$0xff]  ;;  %v13992_v26 = vld [vmem:[#allocation136_spill] sm:$0xff] }
 0x4fd   :  { %2844 = vmatpush.msra.mxu1 %v11076_v45  ;;  %2884 = vmatpush.msra.mxu3 %v11082_v57  ;;  %13991 = vst [vmem:[#allocation120_spill] sm:$0xff] %v11194_v63 }
 0x4fe   :  { %3117 = vmatpush.msra.mxu0 %v13964_v29  ;;  %3157 = vmatpush.msra.mxu2 %v13965_v39  ;;  %v13993_v29 = vld [vmem:[#allocation137_spill] sm:$0xff]  ;;  %v11202_v39 = vld [vmem:[%s12397_s1 + $0x6b0] sm:$0xff] }
 0x4ff   :  { %2845 = vmatpush.msra.mxu1 %v11090_v14  ;;  %2885 = vmatpush.msra.mxu3 %v11096_v4  ;;  %13994 = vst [vmem:[#allocation122_spill] sm:$0xff] %v11202_v39 }
 0x500   :  { %3118 = vmatpush.msra.mxu0 %v13966_v61  ;;  %3158 = vmatpush.msra.mxu2 %v13967_v50  ;;  %v11208_v61 = vld [vmem:[%s12397_s1 + $0x6b8] sm:$0xff]  ;;  %v13996_v50 = vld [vmem:[#allocation138_spill] sm:$0xff] }
 0x501   :  { %2846 = vmatpush.msra.mxu1 %v11104_v62  ;;  %2886 = vmatpush.msra.mxu3 %v11110_v41  ;;  %13995 = vst [vmem:[#allocation123_spill] sm:$0xff] %v11208_v61 }
 0x502   :  { %3119 = vmatpush.msra.mxu0 %v13970_v7  ;;  %3159 = vmatpush.msra.mxu2 %v13971_v60  ;;  %v13997_v7 = vld [vmem:[#allocation139_spill] sm:$0xff]  ;;  %v11216_v60 = vld [vmem:[%s12397_s1 + $0x670] sm:$0xff] }
 0x503   :  { %2847 = vmatpush.msra.mxu1 %v11118_v2  ;;  %2887 = vmatpush.msra.mxu3 %v11124_v11  ;;  %13998 = vst [vmem:[#allocation125_spill] sm:$0xff] %v11216_v60  ;;  %v11661_v11 = vld [vmem:[%s12397_s1 + $0x1a0] sm:$0xff]  ;;  %v11667_v2 = vld [vmem:[%s12397_s1 + $0x1a8] sm:$0xff] }
 0x504   :  { %2848 = vmatmul.f32.vlgmr.msra.gmra.mxu1 %v10897_v58  ;;  %2888 = vmatmul.f32.vlgmr.msra.gmra.mxu3 %v10897_v58  ;;  %14078 = vst [vmem:[#allocation22_spill] sm:$0xff] %v11661_v11 }
 0x505   :  { %2912 = vmatpush.msrb.mxu1 %v11132_v38  ;;  %2952 = vmatpush.msrb.mxu3 %v11138_v33  ;;  %14079 = vst [vmem:[#allocation21_spill] sm:$0xff] %v11667_v2 }
 0x506   :  { %3120 = vmatpush.msra.mxu0 %v13976_v36  ;;  %3160 = vmatpush.msra.mxu2 %v13977_v56  ;;  %v11222_v36 = vld [vmem:[%s12397_s1 + $0x678] sm:$0xff]  ;;  %v14000_v56 = vld [vmem:[#allocation140_spill] sm:$0xff] }
 0x507   :  { %2913 = vmatpush.msrb.mxu1 %v11146_v37  ;;  %2953 = vmatpush.msrb.mxu3 %v11152_v5  ;;  %13999 = vst [vmem:[#allocation126_spill] sm:$0xff] %v11222_v36 }
 0x508   :  { %3121 = vmatpush.msra.mxu0 %v13980_v13  ;;  %3161 = vmatpush.msra.mxu2 %v13981_v31  ;;  %v14001_v13 = vld [vmem:[#allocation141_spill] sm:$0xff]  ;;  %v11230_v31 = vld [vmem:[%s12397_s1 + $0x630] sm:$0xff] }
 0x509   :  { %2914 = vmatpush.msrb.mxu1 %v11160_v47  ;;  %2954 = vmatpush.msrb.mxu3 %v11166_v32  ;;  %14002 = vst [vmem:[#allocation127_spill] sm:$0xff] %v11230_v31 }
 0x50a   :  { %3122 = vmatpush.msra.mxu0 %v13984_v15  ;;  %3162 = vmatpush.msra.mxu2 %v13985_v25  ;;  %v11236_v15 = vld [vmem:[%s12397_s1 + $0x638] sm:$0xff]  ;;  %v14004_v25 = vld [vmem:[#allocation59_spill] sm:$0xff] }
 0x50b   :  { %2915 = vmatpush.msrb.mxu1 %v11174_v35  ;;  %2955 = vmatpush.msrb.mxu3 %v11180_v8  ;;  %14003 = vst [vmem:[#allocation128_spill] sm:$0xff] %v11236_v15 }
 0x50c   :  { %3123 = vmatpush.msra.mxu0 %v13988_v21  ;;  %3163 = vmatpush.msra.mxu2 %v13989_v55  ;;  %v14005_v21 = vld [vmem:[#allocation61_spill] sm:$0xff]  ;;  %v11244_v55 = vld [vmem:[%s12397_s1 + $0x5f0] sm:$0xff] }
 0x50d   :  { %2916 = vmatpush.msrb.mxu1 %v11188_v0  ;;  %2956 = vmatpush.msrb.mxu3 %v11194_v63  ;;  %14006 = vst [vmem:[#allocation129_spill] sm:$0xff] %v11244_v55 }
 0x50e   :  { %3124 = vmatpush.msra.mxu0 %v13992_v26  ;;  %3164 = vmatpush.msra.mxu2 %v13993_v29  ;;  %v11250_v26 = vld [vmem:[%s12397_s1 + $0x5f8] sm:$0xff]  ;;  %v14008_v29 = vld [vmem:[#allocation63_spill] sm:$0xff] }
 0x50f   :  { %2917 = vmatpush.msrb.mxu1 %v11202_v39  ;;  %2957 = vmatpush.msrb.mxu3 %v11208_v61  ;;  %14007 = vst [vmem:[#allocation3_spill] sm:$0xff] %v11250_v26 }
 0x510   :  { %3125 = vmatpush.msra.mxu0 %v13996_v50  ;;  %3165 = vmatpush.msra.mxu2 %v13997_v7  ;;  %v14009_v50 = vld [vmem:[#allocation65_spill] sm:$0xff]  ;;  %v11258_v7 = vld [vmem:[%s12397_s1 + $0x5b0] sm:$0xff] }
 0x511   :  { %2918 = vmatpush.msrb.mxu1 %v11216_v60  ;;  %2958 = vmatpush.msrb.mxu3 %v11222_v36  ;;  %14010 = vst [vmem:[#allocation6_spill] sm:$0xff] %v11258_v7 }
 0x512   :  { %3126 = vmatpush.msra.mxu0 %v14000_v56  ;;  %3166 = vmatpush.msra.mxu2 %v14001_v13  ;;  %v11264_v56 = vld [vmem:[%s12397_s1 + $0x5b8] sm:$0xff]  ;;  %v14012_v13 = vld [vmem:[#allocation67_spill] sm:$0xff] }
 0x513   :  { %2919 = vmatpush.msrb.mxu1 %v11230_v31  ;;  %2959 = vmatpush.msrb.mxu3 %v11236_v15  ;;  %14011 = vst [vmem:[#allocation5_spill] sm:$0xff] %v11264_v56  ;;  %v14052_v15 = vld [vmem:[#allocation53_spill] sm:$0xff] }
 0x514   :  { %3191 = vmatpush.msrb.mxu0 %v14004_v25  ;;  %3231 = vmatpush.msrb.mxu2 %v14005_v21  ;;  %v14013_v25 = vld [vmem:[#allocation69_spill] sm:$0xff]  ;;  %v11272_v21 = vld [vmem:[%s12397_s1 + $0x570] sm:$0xff] }
 0x515   :  { %2920 = vmatpush.msrb.mxu1 %v11244_v55  ;;  %2960 = vmatpush.msrb.mxu3 %v11250_v26  ;;  %14014 = vst [vmem:[#allocation8_spill] sm:$0xff] %v11272_v21  ;;  %v14049_v26 = vld [vmem:[#allocation121_spill] sm:$0xff]  ;;  %v14051_v55 = vld [vmem:[#allocation52_spill] sm:$0xff] }
 0x516   :  { %3192 = vmatpush.msrb.mxu0 %v14008_v29  ;;  %3232 = vmatpush.msrb.mxu2 %v14009_v50  ;;  %v11278_v29 = vld [vmem:[%s12397_s1 + $0x578] sm:$0xff]  ;;  %v4827_v50 = vld [vmem:[%s12397_s1 + $0x310] sm:$0xff] }
 0x517   :  { %2921 = vmatpush.msrb.mxu1 %v11258_v7  ;;  %2961 = vmatpush.msrb.mxu3 %v11264_v56  ;;  %14015 = vst [vmem:[#allocation7_spill] sm:$0xff] %v11278_v29  ;;  %v14032_v56 = vld [vmem:[#allocation89_spill] sm:$0xff]  ;;  %v14045_v7 = vld [vmem:[#allocation115_spill] sm:$0xff] }
 0x518   :  { %3193 = vmatpush.msrb.mxu0 %v14012_v13  ;;  %3233 = vmatpush.msrb.mxu2 %v14013_v25  ;;  %v14016_v13 = vld [vmem:[#allocation71_spill] sm:$0xff]  ;;  %v11288_v25 = vld [vmem:[%s12397_s1 + $0x530] sm:$0xff] }
 0x519   :  { %2922 = vmatpush.msrb.mxu1 %v11272_v21  ;;  %2962 = vmatpush.msrb.mxu3 %v11278_v29  ;;  %14017 = vst [vmem:[#allocation10_spill] sm:$0xff] %v11288_v25  ;;  %v11294_v21 = vld [vmem:[%s12397_s1 + $0x538] sm:$0xff]  ;;  %v11304_v29 = vld [vmem:[%s12397_s1 + $0x4f0] sm:$0xff] }
 0x51a   :  { %3194 = vmatpush.msrb.mxu0 %v4827_v50  ;;  %3234 = vmatpush.msrb.mxu2 %v14016_v13  ;;  %14018 = vst [vmem:[#allocation9_spill] sm:$0xff] %v11294_v21  ;;  %v4830_v50 = vld [vmem:[%s12397_s1 + $0x2d0] sm:$0xff]  ;;  %v14019_v13 = vld [vmem:[#allocation73_spill] sm:$0xff] }
 0x51b   :  { %2923 = vmatpush.msrb.mxu1 %v11288_v25  ;;  %2963 = vmatpush.msrb.mxu3 %v11294_v21  ;;  %14020 = vst [vmem:[#allocation12_spill] sm:$0xff] %v11304_v29  ;;  %v11310_v25 = vld [vmem:[%s12397_s1 + $0x4f8] sm:$0xff] }
 0x51c   :  { %3195 = vmatpush.msrb.mxu0 %v4830_v50  ;;  %3235 = vmatpush.msrb.mxu2 %v14019_v13  ;;  %14021 = vst [vmem:[#allocation11_spill] sm:$0xff] %v11310_v25  ;;  %v4833_v50 = vld [vmem:[%s12397_s1 + $0x290] sm:$0xff]  ;;  %v14022_v13 = vld [vmem:[#allocation75_spill] sm:$0xff]  ;;  %v14023_v21 = vld [vmem:[#allocation77_spill] sm:$0xff] }
 0x51d   :  { %2924 = vmatpush.msrb.mxu1 %v11304_v29  ;;  %2964 = vmatpush.msrb.mxu3 %v11310_v25  ;;  %v11321_v29 = vld [vmem:[%s12397_s1 + $0x4b8] sm:$0xff]  ;;  %v4835_v25 = vld [vmem:[%s12397_s1 + $0x250] sm:$0xff] }
 0x51e   :  { %3196 = vmatpush.msrb.mxu0 %v4833_v50  ;;  %3236 = vmatpush.msrb.mxu2 %v14022_v13  ;;  %14024 = vst [vmem:[#allocation14_spill] sm:$0xff] %v11321_v29  ;;  %v4836_v50 = vld [vmem:[%s12397_s1 + $0x258] sm:$0xff]  ;;  %v14025_v13 = vld [vmem:[#allocation79_spill] sm:$0xff] }
 0x51f   :  { %2925 = vmatpush.msrb.mxu1 %v14023_v21  ;;  %2965 = vmatpush.msrb.mxu3 %v11321_v29  ;;  %v11334_v21 = vld [vmem:[%s12397_s1 + $0x478] sm:$0xff]  ;;  %v4838_v29 = vld [vmem:[%s12397_s1 + $0x210] sm:$0xff] }
 0x520   :  { %3197 = vmatpush.msrb.mxu0 %v4835_v25  ;;  %3237 = vmatpush.msrb.mxu2 %v4836_v50  ;;  %14026 = vst [vmem:[#allocation13_spill] sm:$0xff] %v11334_v21  ;;  %v4839_v25 = vld [vmem:[%s12397_s1 + $0x218] sm:$0xff] }
 0x521   :  { %2926 = vmatpush.msrb.mxu1 %v14025_v13  ;;  %2966 = vmatpush.msrb.mxu3 %v11334_v21  ;;  %v14027_v50 = vld [vmem:[#allocation81_spill] sm:$0xff] }
 0x522   :  { %3198 = vmatpush.msrb.mxu0 %v4838_v29  ;;  %3238 = vmatpush.msrb.mxu2 %v4839_v25  ;;  %v11347_v13 = vld [vmem:[%s12397_s1 + $0x438] sm:$0xff]  ;;  %v4841_v29 = vld [vmem:[%s12397_s1 + $0x1d0] sm:$0xff] }
 0x523   :  { %2927 = vmatpush.msrb.mxu1 %v14027_v50  ;;  %14028 = vst [vmem:[#allocation16_spill] sm:$0xff] %v11347_v13  ;;  %2967 = vmatpush.msrb.mxu3 %v11347_v13  ;;  %v4842_v25 = vld [vmem:[%s12397_s1 + $0x1d8] sm:$0xff]  ;;  %v14029_v50 = vld [vmem:[#allocation83_spill] sm:$0xff]  ;;  %v4843_v13 = vld [vmem:[%s12397_s1 + $0x190] sm:$0xff] }
 0x524   :  { %2928 = vmatmul.f32.vlgmr.msrb.gmra.mxu1 %v10897_v58  ;;  %2968 = vmatmul.f32.vlgmr.msrb.gmra.mxu3 %v10897_v58  ;;  %v14030_v21 = vld [vmem:[#allocation85_spill] sm:$0xff] }
 0x525   :  { %3199 = vmatpush.msrb.mxu0 %v4841_v29  ;;  %3239 = vmatpush.msrb.mxu2 %v4842_v25  ;;  %v4844_v58 = vld [vmem:[%s12397_s1 + $0x198] sm:$0xff]  ;;  %v14031_v29 = vld [vmem:[#allocation87_spill] sm:$0xff]  ;;  %v4845_v25 = vld [vmem:[%s12397_s1 + $0x150] sm:$0xff] }
 0x526   :  { %3131 = vmatpush.msra.mxu1 %v14029_v50  ;;  %3171 = vmatpush.msra.mxu3 %v14030_v21  ;;  %v4846_v21 = vld [vmem:[%s12397_s1 + $0x158] sm:$0xff] }
 0x527   :  { %3200 = vmatpush.msrb.mxu0 %v4843_v13  ;;  %3240 = vmatpush.msrb.mxu2 %v4844_v58  ;;  %v14033_v13 = vld [vmem:[#allocation91_spill] sm:$0xff]  ;;  %v14034_v50 = vld [vmem:[#allocation93_spill] sm:$0xff]  ;;  %v4847_v58 = vld [vmem:[%s12397_s1 + $0x110] sm:$0xff] }
 0x528   :  { %3132 = vmatpush.msra.mxu1 %v14031_v29  ;;  %3172 = vmatpush.msra.mxu3 %v14032_v56  ;;  %v4848_v56 = vld [vmem:[%s12397_s1 + $0x118] sm:$0xff]  ;;  %v14035_v29 = vld [vmem:[#allocation95_spill] sm:$0xff] }
 0x529   :  { %3201 = vmatpush.msrb.mxu0 %v4845_v25  ;;  %3241 = vmatpush.msrb.mxu2 %v4846_v21  ;;  %v14036_v25 = vld [vmem:[#allocation97_spill] sm:$0xff]  ;;  %v4849_v21 = vld [vmem:[%s12397_s1 + $0xd0] sm:$0xff] }
 0x52a   :  { %3133 = vmatpush.msra.mxu1 %v14033_v13  ;;  %3173 = vmatpush.msra.mxu3 %v14034_v50  ;;  %v4850_v13 = vld [vmem:[%s12397_s1 + $0xd8] sm:$0xff]  ;;  %v14037_v50 = vld [vmem:[#allocation99_spill] sm:$0xff] }
 0x52b   :  { %3202 = vmatpush.msrb.mxu0 %v4847_v58  ;;  %3242 = vmatpush.msrb.mxu2 %v4848_v56  ;;  %v14038_v58 = vld [vmem:[#allocation101_spill] sm:$0xff]  ;;  %v4851_v56 = vld [vmem:[%s12397_s1 + $0x90] sm:$0xff] }
 0x52c   :  { %3134 = vmatpush.msra.mxu1 %v14035_v29  ;;  %3174 = vmatpush.msra.mxu3 %v14036_v25  ;;  %v4852_v29 = vld [vmem:[%s12397_s1 + $0x98] sm:$0xff]  ;;  %v14039_v25 = vld [vmem:[#allocation103_spill] sm:$0xff] }
 0x52d   :  { %3203 = vmatpush.msrb.mxu0 %v4849_v21  ;;  %3243 = vmatpush.msrb.mxu2 %v4850_v13  ;;  %v14040_v21 = vld [vmem:[#allocation105_spill] sm:$0xff]  ;;  %v4853_v13 = vld [vmem:[%s12397_s1 + $0x50] sm:$0xff] }
 0x52e   :  { %3135 = vmatpush.msra.mxu1 %v14037_v50  ;;  %3175 = vmatpush.msra.mxu3 %v14038_v58  ;;  %v4854_v50 = vld [vmem:[%s12397_s1 + $0x58] sm:$0xff]  ;;  %v14041_v58 = vld [vmem:[#allocation107_spill] sm:$0xff] }
 0x52f   :  { %3204 = vmatpush.msrb.mxu0 %v4851_v56  ;;  %3244 = vmatpush.msrb.mxu2 %v4852_v29  ;;  %v14042_v56 = vld [vmem:[#allocation109_spill] sm:$0xff]  ;;  %v4855_v29 = vld [vmem:[%s12397_s1 + $0x10] sm:$0xff] }
 0x530   :  { %3136 = vmatpush.msra.mxu1 %v14039_v25  ;;  %3176 = vmatpush.msra.mxu3 %v14040_v21  ;;  %v4856_v25 = vld [vmem:[%s12397_s1 + $0x18] sm:$0xff]  ;;  %v14043_v21 = vld [vmem:[#allocation111_spill] sm:$0xff] }
 0x531   :  { %3205 = vmatpush.msrb.mxu0 %v4853_v13  ;;  %3245 = vmatpush.msrb.mxu2 %v4854_v50  ;;  %v14044_v13 = vld [vmem:[#allocation113_spill] sm:$0xff]  ;;  %v14046_v50 = vld [vmem:[#allocation116_spill] sm:$0xff] }
 0x532   :  { %3137 = vmatpush.msra.mxu1 %v14041_v58  ;;  %3177 = vmatpush.msra.mxu3 %v14042_v56  ;;  %v14047_v58 = vld [vmem:[#allocation117_spill] sm:$0xff]  ;;  %v14048_v56 = vld [vmem:[#allocation119_spill] sm:$0xff] }
 0x533   :  { %3206 = vmatpush.msrb.mxu0 %v4855_v29  ;;  %3246 = vmatpush.msrb.mxu2 %v4856_v25  ;;  %v14050_v29 = vld [vmem:[#allocation124_spill] sm:$0xff]  ;;  %v14053_v25 = vld [vmem:[#allocation54_spill] sm:$0xff] }
 0x534   :  { %3138 = vmatpush.msra.mxu1 %v14043_v21  ;;  %3178 = vmatpush.msra.mxu3 %v14044_v13  ;;  %v14054_v21 = vld [vmem:[#allocation56_spill] sm:$0xff]  ;;  %v14055_v13 = vld [vmem:[#allocation58_spill] sm:$0xff] }
 0x536   :  { %3139 = vmatpush.msra.mxu1 %v14045_v7  ;;  %3179 = vmatpush.msra.mxu3 %v14046_v50  ;;  %v14056_v7 = vld [vmem:[#allocation60_spill] sm:$0xff]  ;;  %v14057_v50 = vld [vmem:[#allocation62_spill] sm:$0xff] }
 0x538   :  { %3140 = vmatpush.msra.mxu1 %v14047_v58  ;;  %3180 = vmatpush.msra.mxu3 %v14048_v56  ;;  %v14058_v58 = vld [vmem:[#allocation64_spill] sm:$0xff]  ;;  %v14059_v56 = vld [vmem:[#allocation66_spill] sm:$0xff] }
 0x53a   :  { %3141 = vmatpush.msra.mxu1 %v14049_v26  ;;  %3181 = vmatpush.msra.mxu3 %v14050_v29  ;;  %v14060_v26 = vld [vmem:[#allocation68_spill] sm:$0xff]  ;;  %v14061_v29 = vld [vmem:[#allocation70_spill] sm:$0xff] }
 0x53c   :  { %3142 = vmatpush.msra.mxu1 %v14051_v55  ;;  %3182 = vmatpush.msra.mxu3 %v14052_v15  ;;  %v14062_v55 = vld [vmem:[#allocation72_spill] sm:$0xff]  ;;  %v14063_v15 = vld [vmem:[#allocation74_spill] sm:$0xff] }
 0x53e   :  { %3143 = vmatpush.msra.mxu1 %v14053_v25  ;;  %3183 = vmatpush.msra.mxu3 %v14054_v21  ;;  %v14064_v25 = vld [vmem:[#allocation76_spill] sm:$0xff]  ;;  %v14065_v21 = vld [vmem:[#allocation78_spill] sm:$0xff] }
 0x540   :  { %3144 = vmatpush.msra.mxu1 %v14055_v13  ;;  %3184 = vmatpush.msra.mxu3 %v14056_v7  ;;  %v14066_v13 = vld [vmem:[#allocation80_spill] sm:$0xff]  ;;  %v14067_v7 = vld [vmem:[#allocation82_spill] sm:$0xff] }
 0x542   :  { %3145 = vmatpush.msra.mxu1 %v14057_v50  ;;  %3185 = vmatpush.msra.mxu3 %v14058_v58  ;;  %v14068_v50 = vld [vmem:[#allocation84_spill] sm:$0xff] }
 0x543   :  { %v4857_v58 = vld [vmem:[%s12397_s1 + $0x6d0] sm:$0xff] }
 0x544   :  { %3146 = vmatpush.msra.mxu1 %v14059_v56  ;;  %3186 = vmatpush.msra.mxu3 %v14060_v26  ;;  %v14069_v56 = vld [vmem:[#allocation86_spill] sm:$0xff]  ;;  %v4858_v26 = vld [vmem:[%s12397_s1 + $0x690] sm:$0xff] }
 0x546   :  { %3211 = vmatpush.msrb.mxu1 %v14061_v29  ;;  %3251 = vmatpush.msrb.mxu3 %v14062_v55  ;;  %v14070_v29 = vld [vmem:[#allocation88_spill] sm:$0xff] }
 0x547   :  { %v4859_v55 = vld [vmem:[%s12397_s1 + $0x650] sm:$0xff] }
 0x548   :  { %3212 = vmatpush.msrb.mxu1 %v14063_v15  ;;  %3252 = vmatpush.msrb.mxu3 %v14064_v25  ;;  %v14071_v15 = vld [vmem:[#allocation90_spill] sm:$0xff]  ;;  %v4860_v25 = vld [vmem:[%s12397_s1 + $0x610] sm:$0xff] }
 0x54a   :  { %3213 = vmatpush.msrb.mxu1 %v14065_v21  ;;  %3253 = vmatpush.msrb.mxu3 %v14066_v13  ;;  %v4861_v21 = vld [vmem:[%s12397_s1 + $0x618] sm:$0xff]  ;;  %v4862_v13 = vld [vmem:[%s12397_s1 + $0x5d0] sm:$0xff] }
 0x54c   :  { %3214 = vmatpush.msrb.mxu1 %v14067_v7  ;;  %3254 = vmatpush.msrb.mxu3 %v14068_v50  ;;  %v4863_v7 = vld [vmem:[%s12397_s1 + $0x5d8] sm:$0xff]  ;;  %v4864_v50 = vld [vmem:[%s12397_s1 + $0x590] sm:$0xff] }
 0x54e   :  { %3215 = vmatpush.msrb.mxu1 %v4857_v58  ;;  %3255 = vmatpush.msrb.mxu3 %v14069_v56  ;;  %v4865_v58 = vld [vmem:[%s12397_s1 + $0x598] sm:$0xff]  ;;  %v4866_v56 = vld [vmem:[%s12397_s1 + $0x550] sm:$0xff] }
 0x550   :  { %3216 = vmatpush.msrb.mxu1 %v4858_v26  ;;  %3256 = vmatpush.msrb.mxu3 %v14070_v29  ;;  %v4867_v26 = vld [vmem:[%s12397_s1 + $0x558] sm:$0xff]  ;;  %v4868_v29 = vld [vmem:[%s12397_s1 + $0x510] sm:$0xff] }
 0x552   :  { %3217 = vmatpush.msrb.mxu1 %v4859_v55  ;;  %3257 = vmatpush.msrb.mxu3 %v14071_v15  ;;  %v4869_v55 = vld [vmem:[%s12397_s1 + $0x518] sm:$0xff]  ;;  %v4870_v15 = vld [vmem:[%s12397_s1 + $0x4d0] sm:$0xff] }
 0x554   :  { %3218 = vmatpush.msrb.mxu1 %v4860_v25  ;;  %3258 = vmatpush.msrb.mxu3 %v4861_v21  ;;  %v4871_v25 = vld [vmem:[%s12397_s1 + $0x4d8] sm:$0xff]  ;;  %v4872_v21 = vld [vmem:[%s12397_s1 + $0x490] sm:$0xff] }
 0x556   :  { %3219 = vmatpush.msrb.mxu1 %v4862_v13  ;;  %3259 = vmatpush.msrb.mxu3 %v4863_v7  ;;  %v4873_v13 = vld [vmem:[%s12397_s1 + $0x498] sm:$0xff]  ;;  %v2669_v7 = vpop.f32.mrf.mxu0 }
 0x558   :  { %3220 = vmatpush.msrb.mxu1 %v4864_v50  ;;  %3260 = vmatpush.msrb.mxu3 %v4865_v58  ;;  %v3899_v58 = vld [vmem:[%s12398_s0 + $0xc0] sm:$0xff] }
 0x55a   :  { %3221 = vmatpush.msrb.mxu1 %v4866_v56  ;;  %3261 = vmatpush.msrb.mxu3 %v4867_v26  ;;  %v4874_v26 = vld [vmem:[%s12397_s1 + $0x450] sm:$0xff] }
 0x55c   :  { %3222 = vmatpush.msrb.mxu1 %v4868_v29  ;;  %3262 = vmatpush.msrb.mxu3 %v4869_v55  ;;  %v4875_v29 = vld [vmem:[%s12397_s1 + $0x458] sm:$0xff] }
 0x55e   :  { %3223 = vmatpush.msrb.mxu1 %v4870_v15  ;;  %3263 = vmatpush.msrb.mxu3 %v4871_v25  ;;  %v4876_v15 = vld [vmem:[%s12397_s1 + $0x410] sm:$0xff]  ;;  %v4877_v25 = vld [vmem:[%s12397_s1 + $0x418] sm:$0xff] }
 0x560   :  { %3224 = vmatpush.msrb.mxu1 %v4872_v21  ;;  %3264 = vmatpush.msrb.mxu3 %v4873_v13  ;;  %v2689_v50 = vpop.f32.mrf.mxu1  ;;  %v2709_v21 = vpop.f32.mrf.mxu2 }
 0x561   :  { %v2690_v56 = vadd.f32 %v2689_v50, %v2669_v7  ;;  %v3900_v50 = vld [vmem:[%s12398_s0 + $0xc8] sm:$0xff] }
 0x562   :  { %3225 = vmatpush.msrb.mxu1 %v4874_v26  ;;  %3265 = vmatpush.msrb.mxu3 %v4875_v29 }
 0x563   :  { %v3044_v55 = vadd.f32 %v3899_v58, %v2690_v56 }
 0x564   :  { %3226 = vmatpush.msrb.mxu1 %v4876_v15  ;;  %3266 = vmatpush.msrb.mxu3 %v4877_v25  ;;  %v3902_v25 = vld [vmem:[%s12398_s0 + $0xd8] sm:$0xff] }
 0x565   :  { %v3903_v13 = vmul.f32 -1.442695, %v3044_v55 }
 0x566   :  { %v2729_v7 = vpop.f32.mrf.mxu3 }
 0x567   :  { %4097 = vpow2.f32 %v3903_v13  ;;  %v2730_v26 = vadd.f32 %v2729_v7, %v2709_v21  ;;  %v2749_v13 = vpop.f32.mrf.mxu0 }
 0x568   :  { %v2789_v31 = vpop.f32.mrf.mxu2  ;;  %v2769_v0 = vpop.f32.mrf.mxu1 }
 0x569   :  { %v3045_v58 = vadd.f32 %v3900_v50, %v2730_v26  ;;  %v2770_v50 = vadd.f32 %v2769_v0, %v2749_v13 }
 0x56b   :  { %v3904_v56 = vmul.f32 -1.442695, %v3045_v58  ;;  %v3901_v58 = vld [vmem:[%s12398_s0 + $0xd0] sm:$0xff] }
 0x56d   :  { %v4098_v29 = vpop.eup %4097  ;;  %4099 = vpow2.f32 %v3904_v56 }
 0x56e   :  { %v3057_v15 = vadd.f32 1.0, %v4098_v29  ;;  %v2809_v36 = vpop.f32.mrf.mxu3 }
 0x56f   :  { %v2810_v60 = vadd.f32 %v2809_v36, %v2789_v31  ;;  %v3046_v31 = vadd.f32 %v3901_v58, %v2770_v50  ;;  %v2829_v13 = vpop.f32.mrf.mxu0 }
 0x570   :  { %4101 = vrcp.f32 %v3057_v15  ;;  %vm3065_vm5 = vweird.f32 %v3057_v15  ;;  %v3069_v8 = vand.u32 2147483647, %v3057_v15  ;;  %v2869_v0 = vpop.f32.mrf.mxu2 }
 0x571   :  { %v3047_v55 = vadd.f32 %v3902_v25, %v2810_v60 }
 0x572   :  { %vm3070_vm9 = vcmp.eq.f32.partialorder %v3069_v8, 8.507059e+37 }
 0x573   :  { %v4100_v61 = vpop.eup %4099  ;;  %v3905_v39 = vmul.f32 -1.442695, %v3047_v55 }
 0x574   :  { %v3058_v63 = vadd.f32 1.0, %v4100_v61  ;;  %v3071_v61 = vand.u32 2147483648, %v3057_v15 }
 0x575   :  { %4103 = vpow2.f32 %v3905_v39 }
 0x576   :  { %v4102_v21 = vpop.eup %4101  ;;  %4105 = vrcp.f32 %v3058_v63  ;;  %v3086_v35 = vand.u32 2147483648, %v3058_v63  ;;  %vm3080_vm8 = vweird.f32 %v3058_v63 }
 0x577   :  { %v3061_v7 = vmul.f32 %v4102_v21, %v3057_v15  ;;  %vm3066_vm4 = vweird.f32 %v4102_v21 }
 0x578   :  { %vm11518_vm6 = vmor %vm3065_vm5, %vm3066_vm4  ;;  %v3087_v32 = vor.u32 1.1754944e-38, %v3086_v35 }
 0x579   :  { %v3062_v26 = vsub.f32 1.0, %v3061_v7 }
 0x57b   :  { %v4104_v56 = vpop.eup %4103  ;;  %v3063_v29 = vmul.f32 %v4102_v21, %v3062_v26  ;;  %v3084_v26 = vand.u32 2147483647, %v3058_v63 }
 0x57c   :  { %v4106_v36 = vpop.eup %4105  ;;  %v3059_v60 = vadd.f32 1.0, %v4104_v56  ;;  %v3072_v56 = vor.u32 1.1754944e-38, %v3071_v61 }
 0x57d   :  { %v3076_v25 = vmul.f32 %v4106_v36, %v3058_v63  ;;  %v3064_v55 = vadd.f32 %v4102_v21, %v3063_v29  ;;  %vm3081_vm7 = vweird.f32 %v4106_v36  ;;  %vm3085_vm11 = vcmp.eq.f32.partialorder %v3084_v26, 8.507059e+37 }
 0x57e   :  { %4107 = vrcp.f32 %v3059_v60  ;;  %vm3082_vm10 = vmor %vm3080_vm8, %vm3081_vm7  ;;  %vm3095_vm13 = vweird.f32 %v3059_v60 }
 0x57f   :  { %v3077_v39 = vsub.f32 1.0, %v3076_v25  ;;  %4109 = vtanh.f32 %v3046_v31  ;;  %v3068_v50 = vsel %vm11518_vm6, %v4102_v21, %v3064_v55 }
 0x580   :  { %v3073_v47 = vsel %vm3070_vm9, %v3072_v56, %v3068_v50 }
 0x581   :  { %v3078_v7 = vmul.f32 %v4106_v36, %v3077_v39  ;;  %v2849_v58 = vpop.f32.mrf.mxu1 }
 0x582   :  { %v2850_v29 = vadd.f32 %v2849_v58, %v2829_v13 }
 0x583   :  { %v3079_v25 = vadd.f32 %v4106_v36, %v3078_v7 }
 0x584   :  { %v4108_v15 = vpop.eup %4107  ;;  %v2972_v33 = vadd.f32 %v2850_v29, %v6833_v12  ;;  %v2949_v12 = vpop.f32.mrf.mxu2 }
 0x585   :  { %v3083_v5 = vsel %vm3082_vm10, %v4106_v36, %v3079_v25  ;;  %v3091_v31 = vmul.f32 %v4108_v15, %v3059_v60  ;;  %v4110_v37 = vpop.eup %4109  ;;  %vm3096_vm12 = vweird.f32 %v4108_v15  ;;  %v11543_v25 = vld [vmem:[%s12397_s1 + $0x3e8] sm:$0xff] }
 0x586   :  { %v3088_v39 = vsel %vm3085_vm11, %v3087_v32, %v3083_v5  ;;  %v3107_v55 = vmul.f32 %v4110_v37, %v3073_v47  ;;  %v3896_v35 = vmul.f32 -1.442695, %v2972_v33  ;;  %v3101_v5 = vand.u32 2147483648, %v3059_v60  ;;  %vm3097_vm14 = vmor %vm3095_vm13, %vm3096_vm12 }
 0x587   :  { %v3106_v21 = vmul.f32 %v3088_v39, %v10785_v53  ;;  %v3092_v61 = vsub.f32 1.0, %v3091_v31  ;;  %v2889_v13 = vpop.f32.mrf.mxu3  ;;  %v3099_v32 = vand.u32 2147483647, %v3059_v60  ;;  %v11537_v60 = vld [vmem:[%s12397_s1 + $0x3e0] sm:$0xff]  ;;  %v11557_v39 = vld [vmem:[%s12397_s1 + $0x3a8] sm:$0xff] }
 0x588   :  { %v2890_v63 = vadd.f32 %v2889_v13, %v2869_v0  ;;  %v3102_v37 = vor.u32 1.1754944e-38, %v3101_v5  ;;  %v11551_v31 = vld [vmem:[%s12397_s1 + $0x3a0] sm:$0xff]  ;;  %v11584_v13 = vld [vmem:[%s12397_s1 + $0x328] sm:$0xff] }
 0x589   :  { %v11526_v8 = vadd.f32 %v3107_v55, %v3106_v21  ;;  %v3093_v7 = vmul.f32 %v4108_v15, %v3092_v61  ;;  %vm3100_vm15 = vcmp.eq.f32.partialorder %v3099_v32, 8.507059e+37  ;;  %v11565_v21 = vld [vmem:[%s12397_s1 + $0x360] sm:$0xff]  ;;  %v11571_v55 = vld [vmem:[%s12397_s1 + $0x368] sm:$0xff] }
 0x58a   :  { %v2973_v36 = vadd.f32 %v2890_v63, %v6828_v1  ;;  %v11578_v61 = vld [vmem:[%s12397_s1 + $0x320] sm:$0xff]  ;;  %v11625_v32 = vld [vmem:[%s12397_s1 + $0x268] sm:$0xff] }
 0x58b   :  { %14074 = vst [vmem:[#allocation15_spill] sm:$0xff] %v11526_v8  ;;  %4111 = vtanh.f32 %v11526_v8  ;;  %v3094_v50 = vadd.f32 %v4108_v15, %v3093_v7  ;;  %v11593_v63 = vld [vmem:[%s12397_s1 + $0x2e0] sm:$0xff]  ;;  %v11599_v7 = vld [vmem:[%s12397_s1 + $0x2e8] sm:$0xff]  ;;  %v2909_v8 = vpop.f32.mrf.mxu0 }
 0x58c   :  { %v3897_v26 = vmul.f32 -1.442695, %v2973_v36  ;;  %4113 = vpow2.f32 %v3896_v35  ;;  %v11605_v35 = vld [vmem:[%s12397_s1 + $0x2a0] sm:$0xff]  ;;  %v11611_v36 = vld [vmem:[%s12397_s1 + $0x2a8] sm:$0xff] }
 0x58d   :  { %v3098_v53 = vsel %vm3097_vm14, %v4108_v15, %v3094_v50  ;;  %v11619_v5 = vld [vmem:[%s12397_s1 + $0x260] sm:$0xff]  ;;  %v11655_v1 = vld [vmem:[%s12397_s1 + $0x1e8] sm:$0xff] }
 0x58e   :  { %4115 = vpow2.f32 %v3897_v26  ;;  %v3103_v58 = vsel %vm3100_vm15, %v3102_v37, %v3098_v53  ;;  %v11633_v53 = vld [vmem:[%s12397_s1 + $0x220] sm:$0xff]  ;;  %v11639_v37 = vld [vmem:[%s12397_s1 + $0x228] sm:$0xff]  ;;  %14077 = vst [vmem:[#allocation20_spill] sm:$0xff] %v11655_v1 }
 0x58f   :  { %14075 = vst [vmem:[#allocation18_spill] sm:$0xff] %v11639_v37 }
 0x591   :  { %v4112_v47 = vpop.eup %4111 }
 0x592   :  { %v11530_v56 = vmul.f32 %v4112_v47, %v3103_v58  ;;  %v4114_v33 = vpop.eup %4113 }
 0x593   :  { %v11546_v15 = vadd.f32 1.0, %v4114_v33 }
 0x594   :  { %3127 = vmatmul.f32.vlgmr.msra.gmra.mxu0 %v11530_v56  ;;  %3167 = vmatmul.f32.vlgmr.msra.gmra.mxu2 %v11530_v56  ;;  %v4116_v29 = vpop.eup %4115 }
 0x595   :  { %3271 = vmatpush.msra.mxu0 %v11537_v60  ;;  %3311 = vmatpush.msra.mxu2 %v11543_v25  ;;  %v11560_v0 = vadd.f32 1.0, %v4116_v29  ;;  %4117 = vrcp.f32 %v11546_v15  ;;  %v11649_v29 = vld [vmem:[%s12397_s1 + $0x1e0] sm:$0xff]  ;;  %vm2993_vm2 = vweird.f32 %v11546_v15 }
 0x596   :  { %14076 = vst [vmem:[#allocation17_spill] sm:$0xff] %v11649_v29 }
 0x597   :  { %3272 = vmatpush.msra.mxu0 %v11551_v31  ;;  %3312 = vmatpush.msra.mxu2 %v11557_v39  ;;  %4119 = vrcp.f32 %v11560_v0  ;;  %vm3008_vm3 = vweird.f32 %v11560_v0 }
 0x599   :  { %3273 = vmatpush.msra.mxu0 %v11565_v21  ;;  %3313 = vmatpush.msra.mxu2 %v11571_v55 }
 0x59b   :  { %3274 = vmatpush.msra.mxu0 %v11578_v61  ;;  %3314 = vmatpush.msra.mxu2 %v11584_v13  ;;  %v11614_v50 = vpop.eup %4117 }
 0x59c   :  { %3207 = vmatmul.f32.vlgmr.msrb.gmra.mxu0 %v11530_v56  ;;  %3247 = vmatmul.f32.vlgmr.msrb.gmra.mxu2 %v11530_v56  ;;  %v2989_v47 = vmul.f32 %v11614_v50, %v11546_v15  ;;  %vm2994_vm0 = vweird.f32 %v11614_v50 }
 0x59d   :  { %3275 = vmatpush.msra.mxu0 %v11593_v63  ;;  %3315 = vmatpush.msra.mxu2 %v11599_v7  ;;  %v11628_v26 = vpop.eup %4119  ;;  %vm11742_vm4 = vmor %vm2993_vm2, %vm2994_vm0 }
 0x59e   :  { %v3004_v58 = vmul.f32 %v11628_v26, %v11560_v0  ;;  %vm3009_vm1 = vweird.f32 %v11628_v26 }
 0x59f   :  { %3276 = vmatpush.msra.mxu0 %v11605_v35  ;;  %3316 = vmatpush.msra.mxu2 %v11611_v36  ;;  %vm11762_vm5 = vmor %vm3008_vm3, %vm3009_vm1 }
 0x5a0   :  { %v3005_v62 = vsub.f32 1.0, %v3004_v58 }
 0x5a1   :  { %3277 = vmatpush.msra.mxu0 %v11619_v5  ;;  %3317 = vmatpush.msra.mxu2 %v11625_v32  ;;  %v2929_v33 = vpop.f32.mrf.mxu1 }
 0x5a2   :  { %v3006_v58 = vmul.f32 %v11628_v26, %v3005_v62  ;;  %v11713_v62 = vld [vmem:[%s12397_s1 + $0xa0] sm:$0xff] }
 0x5a3   :  { %3278 = vmatpush.msra.mxu0 %v11633_v53  ;;  %3318 = vmatpush.msra.mxu2 %v11639_v37  ;;  %v11673_v37 = vld [vmem:[%s12397_s1 + $0x160] sm:$0xff]  ;;  %14083 = vst [vmem:[#allocation28_spill] sm:$0xff] %v11713_v62 }
 0x5a5   :  { %3279 = vmatpush.msra.mxu0 %v11649_v29  ;;  %3319 = vmatpush.msra.mxu2 %v11655_v1  ;;  %v2930_v29 = vadd.f32 %v2929_v33, %v2909_v8  ;;  %v2990_v1 = vsub.f32 1.0, %v2989_v47  ;;  %v11701_v33 = vld [vmem:[%s12397_s1 + $0xe0] sm:$0xff] }
 0x5a6   :  { %14081 = vst [vmem:[#allocation26_spill] sm:$0xff] %v11701_v33 }
 0x5a7   :  { %v2969_v38 = vpop.f32.mrf.mxu3  ;;  %3280 = vmatpush.msra.mxu0 %v11661_v11  ;;  %3320 = vmatpush.msra.mxu2 %v11667_v2  ;;  %v11679_v11 = vld [vmem:[%s12397_s1 + $0x168] sm:$0xff]  ;;  %v2974_v8 = vadd.f32 %v2930_v29, %v13935_v59  ;;  %v3007_v29 = vadd.f32 %v11628_v26, %v3006_v58  ;;  %v2999_v58 = vand.u32 2147483648, %v11546_v15 }
 0x5a8   :  { %v2970_v41 = vadd.f32 %v2969_v38, %v2949_v12  ;;  %v11686_v12 = vld [vmem:[%s12397_s1 + $0x120] sm:$0xff]  ;;  %v11692_v38 = vld [vmem:[%s12397_s1 + $0x128] sm:$0xff] }
 0x5a9   :  { %3281 = vmatpush.msra.mxu0 %v11673_v37  ;;  %3321 = vmatpush.msra.mxu2 %v11679_v11  ;;  %14080 = vst [vmem:[#allocation23_spill] sm:$0xff] %v11692_v38  ;;  %v11735_v59 = vld [vmem:[%s12397_s1 + $0x68] sm:$0xff] }
 0x5aa   :  { %v2975_v2 = vadd.f32 %v2970_v41, %v13932_v30  ;;  %v2991_v41 = vmul.f32 %v11614_v50, %v2990_v1  ;;  %v11707_v30 = vld [vmem:[%s12397_s1 + $0xe8] sm:$0xff]  ;;  %14086 = vst [vmem:[#allocation32_spill] sm:$0xff] %v11735_v59 }
 0x5ab   :  { %3282 = vmatpush.msra.mxu0 %v11686_v12  ;;  %3322 = vmatpush.msra.mxu2 %v11692_v38  ;;  %14082 = vst [vmem:[#allocation19_spill] sm:$0xff] %v11707_v30  ;;  %v11719_v1 = vld [vmem:[%s12397_s1 + $0xa8] sm:$0xff]  ;;  %v11783_v38 = vld [vmem:[%s12397_s1 + $0x3f8] sm:$0xff] }
 0x5ac   :  { %v3898_v47 = vmul.f32 -1.442695, %v2975_v2  ;;  %14084 = vst [vmem:[#allocation27_spill] sm:$0xff] %v11719_v1  ;;  %v2992_v2 = vadd.f32 %v11614_v50, %v2991_v41  ;;  %v3000_v41 = vor.u32 1.1754944e-38, %v2999_v58 }
 0x5ad   :  { %3283 = vmatpush.msra.mxu0 %v11701_v33  ;;  %3323 = vmatpush.msra.mxu2 %v11707_v30  ;;  %v11777_v33 = vld [vmem:[%s12397_s1 + $0x3f0] sm:$0xff] }
 0x5ae   :  { %4121 = vpow2.f32 %v3898_v47  ;;  %v11729_v47 = vld [vmem:[%s12397_s1 + $0x60] sm:$0xff] }
 0x5af   :  { %3284 = vmatpush.msra.mxu0 %v11713_v62  ;;  %3324 = vmatpush.msra.mxu2 %v11719_v1  ;;  %4123 = vtanh.f32 %v2974_v8  ;;  %14085 = vst [vmem:[#allocation24_spill] sm:$0xff] %v11729_v47  ;;  %v3014_v8 = vand.u32 2147483648, %v11560_v0  ;;  %v3012_v1 = vand.u32 2147483647, %v11560_v0  ;;  %v11757_v62 = vld [vmem:[%s12397_s1 + $0x28] sm:$0xff]  ;;  %v2996_v0 = vsel %vm11742_vm4, %v11614_v50, %v2992_v2 }
 0x5b0   :  { %14090 = vst [vmem:[#allocation25_spill] sm:$0xff] %v11757_v62 }
 0x5b1   :  { %3285 = vmatpush.msra.mxu0 %v11729_v47  ;;  %3325 = vmatpush.msra.mxu2 %v11735_v59  ;;  %v2997_v47 = vand.u32 2147483647, %v11546_v15  ;;  %v11751_v59 = vld [vmem:[%s12397_s1 + $0x20] sm:$0xff]  ;;  %v3015_v2 = vor.u32 1.1754944e-38, %v3014_v8  ;;  %vm3013_vm7 = vcmp.eq.f32.partialorder %v3012_v1, 8.507059e+37  ;;  %v11801_v1 = vld [vmem:[%s12397_s1 + $0x370] sm:$0xff] }
 0x5b2   :  { %14089 = vst [vmem:[#allocation31_spill] sm:$0xff] %v11751_v59 }
 0x5b3   :  { %3286 = vmatpush.msra.mxu0 %v11751_v59  ;;  %3326 = vmatpush.msra.mxu2 %v11757_v62  ;;  %v3011_v59 = vsel %vm11762_vm5, %v11628_v26, %v3007_v29  ;;  %vm2998_vm6 = vcmp.eq.f32.partialorder %v2997_v47, 8.507059e+37  ;;  %v11795_v26 = vld [vmem:[%s12397_s1 + $0x3b8] sm:$0xff] }
 0x5b4   :  { %v4122_v30 = vpop.eup %4121  ;;  %3287 = vmatmul.f32.vlgmr.msra.gmra.mxu0 %v11530_v56  ;;  %3327 = vmatmul.f32.vlgmr.msra.gmra.mxu2 %v11530_v56  ;;  %v3001_v29 = vsel %vm2998_vm6, %v3000_v41, %v2996_v0  ;;  %v3016_v8 = vsel %vm3013_vm7, %v3015_v2, %v3011_v59  ;;  %v11807_v47 = vld [vmem:[%s12397_s1 + $0x378] sm:$0xff]  ;;  %v11814_v59 = vld [vmem:[%s12397_s1 + $0x330] sm:$0xff] }
 0x5b5   :  { %v2987_v62 = vadd.f32 1.0, %v4122_v30  ;;  %3351 = vmatpush.msrb.mxu0 %v11777_v33  ;;  %3391 = vmatpush.msrb.mxu2 %v11783_v38  ;;  %v4124_v50 = vpop.eup %4123  ;;  %v11789_v30 = vld [vmem:[%s12397_s1 + $0x3b0] sm:$0xff]  ;;  %v3034_v15 = vmul.f32 %v3016_v8, %v10882_v6  ;;  %14093 = vst [vmem:[#allocation34_spill] sm:$0xff] %v11814_v59  ;;  %v11820_v0 = vld [vmem:[%s12397_s1 + $0x338] sm:$0xff] }
 0x5b6   :  { %v3035_v58 = vmul.f32 %v4124_v50, %v3001_v29  ;;  %14094 = vst [vmem:[#allocation30_spill] sm:$0xff] %v11820_v0  ;;  %v11828_v6 = vld [vmem:[%s12397_s1 + $0x2f0] sm:$0xff]  ;;  %v11834_v41 = vld [vmem:[%s12397_s1 + $0x2f8] sm:$0xff] }
 0x5b7   :  { %4125 = vrcp.f32 %v2987_v62  ;;  %3352 = vmatpush.msrb.mxu0 %v11789_v30  ;;  %3392 = vmatpush.msrb.mxu2 %v11795_v26  ;;  %14096 = vst [vmem:[#allocation39_spill] sm:$0xff] %v11828_v6  ;;  %v11840_v8 = vld [vmem:[%s12397_s1 + $0x2b0] sm:$0xff]  ;;  %vm3023_vm9 = vweird.f32 %v2987_v62 }
 0x5b8   :  { %v11823_v2 = vadd.f32 %v3035_v58, %v3034_v15  ;;  %14097 = vst [vmem:[#allocation33_spill] sm:$0xff] %v11834_v41  ;;  %v11846_v58 = vld [vmem:[%s12397_s1 + $0x2b8] sm:$0xff] }
 0x5b9   :  { %3353 = vmatpush.msrb.mxu0 %v11801_v1  ;;  %3393 = vmatpush.msrb.mxu2 %v11807_v47  ;;  %14098 = vst [vmem:[#allocation35_spill] sm:$0xff] %v11840_v8 }
 0x5ba   :  { %14095 = vst [vmem:[#allocation29_spill] sm:$0xff] %v11823_v2  ;;  %4127 = vtanh.f32 %v11823_v2  ;;  %v11865_v2 = vld [vmem:[%s12397_s1 + $0x230] sm:$0xff] }
 0x5bb   :  { %3354 = vmatpush.msrb.mxu0 %v11814_v59  ;;  %3394 = vmatpush.msrb.mxu2 %v11820_v0  ;;  %14099 = vst [vmem:[#allocation40_spill] sm:$0xff] %v11846_v58 }
 0x5bc   :  { %14102 = vst [vmem:[#allocation38_spill] sm:$0xff] %v11865_v2 }
 0x5bd   :  { %v4126_v50 = vpop.eup %4125  ;;  %3355 = vmatpush.msrb.mxu0 %v11828_v6  ;;  %3395 = vmatpush.msrb.mxu2 %v11834_v41  ;;  %v3029_v6 = vand.u32 2147483648, %v2987_v62  ;;  %v11853_v41 = vld [vmem:[%s12397_s1 + $0x270] sm:$0xff] }
 0x5be   :  { %v3019_v29 = vmul.f32 %v4126_v50, %v2987_v62  ;;  %14100 = vst [vmem:[#allocation37_spill] sm:$0xff] %v11853_v41  ;;  %vm3024_vm8 = vweird.f32 %v4126_v50 }
 0x5bf   :  { %3356 = vmatpush.msrb.mxu0 %v11840_v8  ;;  %3396 = vmatpush.msrb.mxu2 %v11846_v58  ;;  %v11859_v8 = vld [vmem:[%s12397_s1 + $0x278] sm:$0xff]  ;;  %vm3025_vm10 = vmor %vm3023_vm9, %vm3024_vm8 }
 0x5c0   :  { %v3020_v15 = vsub.f32 1.0, %v3019_v29  ;;  %14101 = vst [vmem:[#allocation36_spill] sm:$0xff] %v11859_v8  ;;  %v3027_v29 = vand.u32 2147483647, %v2987_v62 }
 0x5c1   :  { %3357 = vmatpush.msrb.mxu0 %v11853_v41  ;;  %3397 = vmatpush.msrb.mxu2 %v11859_v8  ;;  %v11871_v41 = vld [vmem:[%s12397_s1 + $0x238] sm:$0xff]  ;;  %v11877_v8 = vld [vmem:[%s12397_s1 + $0x1f0] sm:$0xff] }
 0x5c2   :  { %v3021_v0 = vmul.f32 %v4126_v50, %v3020_v15  ;;  %14103 = vst [vmem:[#allocation41_spill] sm:$0xff] %v11871_v41  ;;  %v3030_v15 = vor.u32 1.1754944e-38, %v3029_v6  ;;  %vm3028_vm11 = vcmp.eq.f32.partialorder %v3027_v29, 8.507059e+37  ;;  %v11889_v6 = vld [vmem:[%s12397_s1 + $0x1b0] sm:$0xff]  ;;  %v11925_v29 = vld [vmem:[%s12397_s1 + $0x138] sm:$0xff] }
 0x5c3   :  { %3358 = vmatpush.msrb.mxu0 %v11865_v2  ;;  %3398 = vmatpush.msrb.mxu2 %v11871_v41  ;;  %14104 = vst [vmem:[#allocation43_spill] sm:$0xff] %v11877_v8  ;;  %v11883_v2 = vld [vmem:[%s12397_s1 + $0x1f8] sm:$0xff] }
 0x5c4   :  { %v3022_v58 = vadd.f32 %v4126_v50, %v3021_v0  ;;  %v4128_v0 = vpop.eup %4127 }
 0x5c5   :  { %3359 = vmatpush.msrb.mxu0 %v11877_v8  ;;  %3399 = vmatpush.msrb.mxu2 %v11883_v2  ;;  %v11895_v8 = vld [vmem:[%s12397_s1 + $0x1b8] sm:$0xff] }
 0x5c6   :  { %v3026_v59 = vsel %vm3025_vm10, %v4126_v50, %v3022_v58  ;;  %v11909_v50 = vld [vmem:[%s12397_s1 + $0x178] sm:$0xff]  ;;  %v11919_v58 = vld [vmem:[%s12397_s1 + $0x130] sm:$0xff] }
 0x5c7   :  { %v3031_v62 = vsel %vm3028_vm11, %v3030_v15, %v3026_v59  ;;  %3360 = vmatpush.msrb.mxu0 %v11889_v6  ;;  %3400 = vmatpush.msrb.mxu2 %v11895_v8  ;;  %v11903_v59 = vld [vmem:[%s12397_s1 + $0x170] sm:$0xff]  ;;  %v14146_v15 = vld [vmem:[#allocation30_spill] sm:$0xff] }
 0x5c8   :  { %v11898_v41 = vmul.f32 %v4128_v0, %v3031_v62  ;;  %v14147_v0 = vld [vmem:[#allocation10_spill] sm:$0xff]  ;;  %v14150_v62 = vld [vmem:[#allocation33_spill] sm:$0xff] }
 0x5c9   :  { %3361 = vmatpush.msrb.mxu0 %v11903_v59  ;;  %3401 = vmatpush.msrb.mxu2 %v11909_v50 }
 0x5ca   :  { %3147 = vmatmul.f32.vlgmr.msra.gmra.mxu1 %v11898_v41  ;;  %3187 = vmatmul.f32.vlgmr.msra.gmra.mxu3 %v11898_v41 }
 0x5cb   :  { %3291 = vmatpush.msra.mxu1 %v10906_v24  ;;  %3331 = vmatpush.msra.mxu3 %v10912_v28  ;;  %v11933_v24 = vld [vmem:[%s12397_s1 + $0xf0] sm:$0xff]  ;;  %v11939_v28 = vld [vmem:[%s12397_s1 + $0xf8] sm:$0xff] }
 0x5cc   :  { %3362 = vmatpush.msrb.mxu0 %v11919_v58  ;;  %3402 = vmatpush.msrb.mxu2 %v11925_v29 }
 0x5cd   :  { %3292 = vmatpush.msra.mxu1 %v10920_v40  ;;  %3332 = vmatpush.msra.mxu3 %v10926_v46  ;;  %v11947_v40 = vld [vmem:[%s12397_s1 + $0xb0] sm:$0xff]  ;;  %v11953_v46 = vld [vmem:[%s12397_s1 + $0xb8] sm:$0xff] }
 0x5ce   :  { %3363 = vmatpush.msrb.mxu0 %v11933_v24  ;;  %3403 = vmatpush.msrb.mxu2 %v11939_v28 }
 0x5cf   :  { %3293 = vmatpush.msra.mxu1 %v10934_v19  ;;  %3333 = vmatpush.msra.mxu3 %v10940_v9  ;;  %v11965_v19 = vld [vmem:[%s12397_s1 + $0x70] sm:$0xff]  ;;  %v11971_v9 = vld [vmem:[%s12397_s1 + $0x78] sm:$0xff] }
 0x5d0   :  { %3364 = vmatpush.msrb.mxu0 %v11947_v40  ;;  %3404 = vmatpush.msrb.mxu2 %v11953_v46 }
 0x5d1   :  { %3294 = vmatpush.msra.mxu1 %v10948_v20  ;;  %3334 = vmatpush.msra.mxu3 %v10954_v54  ;;  %v11979_v20 = vld [vmem:[%s12397_s1 + $0x30] sm:$0xff]  ;;  %v11985_v54 = vld [vmem:[%s12397_s1 + $0x38] sm:$0xff] }
 0x5d2   :  { %3227 = vmatmul.f32.vlgmr.msrb.gmra.mxu1 %v11898_v41  ;;  %3267 = vmatmul.f32.vlgmr.msrb.gmra.mxu3 %v11898_v41 }
 0x5d3   :  { %3295 = vmatpush.msra.mxu1 %v10962_v34  ;;  %3335 = vmatpush.msra.mxu3 %v10968_v3  ;;  %v14105_v34 = vld [vmem:[#allocation18_spill] sm:$0xff]  ;;  %v14106_v3 = vld [vmem:[#allocation92_spill] sm:$0xff] }
 0x5d4   :  { %3365 = vmatpush.msrb.mxu0 %v11965_v19  ;;  %3405 = vmatpush.msrb.mxu2 %v11971_v9 }
 0x5d5   :  { %3296 = vmatpush.msra.mxu1 %v10976_v17  ;;  %3336 = vmatpush.msra.mxu3 %v10982_v16  ;;  %v14107_v17 = vld [vmem:[#allocation94_spill] sm:$0xff]  ;;  %v14108_v16 = vld [vmem:[#allocation17_spill] sm:$0xff] }
 0x5d6   :  { %3366 = vmatpush.msrb.mxu0 %v11979_v20  ;;  %3406 = vmatpush.msrb.mxu2 %v11985_v54 }
 0x5d7   :  { %3367 = vmatmul.f32.vlgmr.msrb.gmra.mxu0 %v11530_v56  ;;  %3407 = vmatmul.f32.vlgmr.msrb.gmra.mxu2 %v11530_v56  ;;  %v14125_v56 = vld [vmem:[#allocation118_spill] sm:$0xff] }
 0x5d8   :  { %3297 = vmatpush.msra.mxu1 %v10992_v10  ;;  %3337 = vmatpush.msra.mxu3 %v10998_v52  ;;  %v14109_v10 = vld [vmem:[#allocation20_spill] sm:$0xff] }
 0x5d9   :  { %3570 = vmatpush.msra.mxu0 %v11537_v60  ;;  %3610 = vmatpush.msra.mxu2 %v11543_v25  ;;  %v14110_v52 = vld [vmem:[#allocation96_spill] sm:$0xff]  ;;  %v14128_v25 = vld [vmem:[#allocation27_spill] sm:$0xff] }
 0x5da   :  { %3298 = vmatpush.msra.mxu1 %v11006_v23  ;;  %3338 = vmatpush.msra.mxu3 %v11012_v48  ;;  %v14111_v23 = vld [vmem:[#allocation98_spill] sm:$0xff]  ;;  %v14112_v48 = vld [vmem:[#allocation100_spill] sm:$0xff] }
 0x5db   :  { %3571 = vmatpush.msra.mxu0 %v11551_v31  ;;  %3611 = vmatpush.msra.mxu2 %v11557_v39  ;;  %v14126_v60 = vld [vmem:[#allocation120_spill] sm:$0xff]  ;;  %v14129_v31 = vld [vmem:[#allocation122_spill] sm:$0xff]  ;;  %v14130_v39 = vld [vmem:[#allocation123_spill] sm:$0xff] }
 0x5dc   :  { %3299 = vmatpush.msra.mxu1 %v11020_v27  ;;  %3339 = vmatpush.msra.mxu3 %v11026_v18  ;;  %v14113_v27 = vld [vmem:[#allocation102_spill] sm:$0xff] }
 0x5dd   :  { %3572 = vmatpush.msra.mxu0 %v11565_v21  ;;  %3612 = vmatpush.msra.mxu2 %v11571_v55  ;;  %v14114_v18 = vld [vmem:[#allocation22_spill] sm:$0xff]  ;;  %v14131_v21 = vld [vmem:[#allocation24_spill] sm:$0xff] }
 0x5de   :  { %3300 = vmatpush.msra.mxu1 %v11034_v43  ;;  %3340 = vmatpush.msra.mxu3 %v11040_v44  ;;  %v14115_v43 = vld [vmem:[#allocation21_spill] sm:$0xff]  ;;  %v14116_v44 = vld [vmem:[#allocation104_spill] sm:$0xff] }
 0x5df   :  { %3573 = vmatpush.msra.mxu0 %v11578_v61  ;;  %3613 = vmatpush.msra.mxu2 %v11584_v13  ;;  %v14132_v55 = vld [vmem:[#allocation32_spill] sm:$0xff]  ;;  %v14133_v61 = vld [vmem:[#allocation125_spill] sm:$0xff]  ;;  %v14134_v13 = vld [vmem:[#allocation126_spill] sm:$0xff] }
 0x5e0   :  { %3301 = vmatpush.msra.mxu1 %v11048_v49  ;;  %3341 = vmatpush.msra.mxu3 %v11054_v51  ;;  %v14117_v49 = vld [vmem:[#allocation106_spill] sm:$0xff]  ;;  %v14118_v51 = vld [vmem:[#allocation108_spill] sm:$0xff] }
 0x5e1   :  { %3574 = vmatpush.msra.mxu0 %v11593_v63  ;;  %3614 = vmatpush.msra.mxu2 %v11599_v7  ;;  %v14135_v63 = vld [vmem:[#allocation31_spill] sm:$0xff]  ;;  %v14136_v7 = vld [vmem:[#allocation25_spill] sm:$0xff] }
 0x5e2   :  { %3302 = vmatpush.msra.mxu1 %v11062_v42  ;;  %3342 = vmatpush.msra.mxu3 %v11068_v22  ;;  %v14119_v42 = vld [vmem:[#allocation110_spill] sm:$0xff]  ;;  %v14120_v22 = vld [vmem:[#allocation23_spill] sm:$0xff] }
 0x5e3   :  { %3575 = vmatpush.msra.mxu0 %v11605_v35  ;;  %3615 = vmatpush.msra.mxu2 %v11611_v36  ;;  %v14137_v35 = vld [vmem:[#allocation127_spill] sm:$0xff]  ;;  %v14138_v36 = vld [vmem:[#allocation128_spill] sm:$0xff] }
 0x5e4   :  { %3303 = vmatpush.msra.mxu1 %v11076_v45  ;;  %3343 = vmatpush.msra.mxu3 %v11082_v57  ;;  %v14121_v45 = vld [vmem:[#allocation112_spill] sm:$0xff]  ;;  %v14122_v57 = vld [vmem:[#allocation114_spill] sm:$0xff] }
 0x5e5   :  { %3576 = vmatpush.msra.mxu0 %v11619_v5  ;;  %3616 = vmatpush.msra.mxu2 %v11625_v32  ;;  %v14139_v5 = vld [vmem:[#allocation129_spill] sm:$0xff]  ;;  %v14140_v32 = vld [vmem:[#allocation3_spill] sm:$0xff] }
 0x5e6   :  { %3304 = vmatpush.msra.mxu1 %v11090_v14  ;;  %3344 = vmatpush.msra.mxu3 %v11096_v4  ;;  %v14123_v14 = vld [vmem:[#allocation26_spill] sm:$0xff]  ;;  %v14124_v4 = vld [vmem:[#allocation19_spill] sm:$0xff] }
 0x5e7   :  { %3577 = vmatpush.msra.mxu0 %v11633_v53  ;;  %3617 = vmatpush.msra.mxu2 %v14105_v34  ;;  %v14141_v53 = vld [vmem:[#allocation6_spill] sm:$0xff]  ;;  %v14151_v34 = vld [vmem:[#allocation12_spill] sm:$0xff] }
 0x5e8   :  { %3305 = vmatpush.msra.mxu1 %v14106_v3  ;;  %3345 = vmatpush.msra.mxu3 %v14107_v17  ;;  %v14154_v3 = vld [vmem:[#allocation40_spill] sm:$0xff] }
 0x5e9   :  { %3578 = vmatpush.msra.mxu0 %v14108_v16  ;;  %3618 = vmatpush.msra.mxu2 %v14109_v10  ;;  %v12085_v17 = vld [vmem:[%s12397_s1 + $0x4b0] sm:$0xff]  ;;  %v14155_v16 = vld [vmem:[#allocation14_spill] sm:$0xff]  ;;  %v14156_v10 = vld [vmem:[#allocation37_spill] sm:$0xff] }
 0x5ea   :  { %3306 = vmatpush.msra.mxu1 %v14110_v52  ;;  %3346 = vmatpush.msra.mxu3 %v14111_v23  ;;  %v14157_v52 = vld [vmem:[#allocation36_spill] sm:$0xff] }
 0x5eb   :  { %3307 = vmatmul.f32.vlgmr.msra.gmra.mxu1 %v11898_v41  ;;  %3347 = vmatmul.f32.vlgmr.msra.gmra.mxu3 %v11898_v41  ;;  %v12094_v23 = vld [vmem:[%s12397_s1 + $0x470] sm:$0xff] }
 0x5ec   :  { %3371 = vmatpush.msrb.mxu1 %v14112_v48  ;;  %3411 = vmatpush.msrb.mxu3 %v14113_v27  ;;  %v14158_v48 = vld [vmem:[#allocation13_spill] sm:$0xff]  ;;  %v14159_v27 = vld [vmem:[#allocation38_spill] sm:$0xff] }
 0x5ed   :  { %3579 = vmatpush.msra.mxu0 %v14114_v18  ;;  %3619 = vmatpush.msra.mxu2 %v14115_v43  ;;  %v14160_v18 = vld [vmem:[#allocation41_spill] sm:$0xff]  ;;  %v12103_v43 = vld [vmem:[%s12397_s1 + $0x430] sm:$0xff] }
 0x5ee   :  { %3372 = vmatpush.msrb.mxu1 %v14116_v44  ;;  %3412 = vmatpush.msrb.mxu3 %v14117_v49  ;;  %v14161_v44 = vld [vmem:[#allocation16_spill] sm:$0xff]  ;;  %v14162_v49 = vld [vmem:[#allocation43_spill] sm:$0xff] }
 0x5ef   :  { %3580 = vmatpush.msra.mxu0 %v11673_v37  ;;  %3620 = vmatpush.msra.mxu2 %v11679_v11  ;;  %v14127_v11 = vld [vmem:[#allocation28_spill] sm:$0xff]  ;;  %v14142_v37 = vld [vmem:[#allocation5_spill] sm:$0xff] }
 0x5f0   :  { %3373 = vmatpush.msrb.mxu1 %v14118_v51  ;;  %3413 = vmatpush.msrb.mxu3 %v14119_v42  ;;  %v4945_v51 = vld [vmem:[%s12397_s1 + $0x7e0] sm:$0xff]  ;;  %v4946_v42 = vld [vmem:[%s12397_s1 + $0x7e8] sm:$0xff] }
 0x5f1   :  { %3581 = vmatpush.msra.mxu0 %v11686_v12  ;;  %3621 = vmatpush.msra.mxu2 %v14120_v22  ;;  %v14143_v12 = vld [vmem:[#allocation8_spill] sm:$0xff]  ;;  %v4961_v22 = vld [vmem:[%s12397_s1 + $0x5e0] sm:$0xff] }
 0x5f2   :  { %3374 = vmatpush.msrb.mxu1 %v14121_v45  ;;  %3414 = vmatpush.msrb.mxu3 %v14122_v57  ;;  %v4964_v45 = vld [vmem:[%s12397_s1 + $0x5a8] sm:$0xff]  ;;  %v4965_v57 = vld [vmem:[%s12397_s1 + $0x560] sm:$0xff] }
 0x5f3   :  { %3582 = vmatpush.msra.mxu0 %v14123_v14  ;;  %3622 = vmatpush.msra.mxu2 %v14124_v4  ;;  %v4966_v14 = vld [vmem:[%s12397_s1 + $0x568] sm:$0xff]  ;;  %v4967_v4 = vld [vmem:[%s12397_s1 + $0x520] sm:$0xff] }
 0x5f4   :  { %3375 = vmatpush.msrb.mxu1 %v14125_v56  ;;  %3415 = vmatpush.msrb.mxu3 %v14126_v60  ;;  %v4968_v56 = vld [vmem:[%s12397_s1 + $0x528] sm:$0xff]  ;;  %v4969_v60 = vld [vmem:[%s12397_s1 + $0x4e0] sm:$0xff] }
 0x5f5   :  { %3583 = vmatpush.msra.mxu0 %v14127_v11  ;;  %3623 = vmatpush.msra.mxu2 %v14128_v25  ;;  %v4970_v11 = vld [vmem:[%s12397_s1 + $0x4e8] sm:$0xff]  ;;  %v4971_v25 = vld [vmem:[%s12397_s1 + $0x4a0] sm:$0xff] }
 0x5f6   :  { %3376 = vmatpush.msrb.mxu1 %v14129_v31  ;;  %3416 = vmatpush.msrb.mxu3 %v14130_v39  ;;  %v4972_v31 = vld [vmem:[%s12397_s1 + $0x4a8] sm:$0xff]  ;;  %v4973_v39 = vld [vmem:[%s12397_s1 + $0x460] sm:$0xff] }
 0x5f7   :  { %3584 = vmatpush.msra.mxu0 %v14131_v21  ;;  %3624 = vmatpush.msra.mxu2 %v14132_v55  ;;  %v4974_v21 = vld [vmem:[%s12397_s1 + $0x468] sm:$0xff]  ;;  %v4975_v55 = vld [vmem:[%s12397_s1 + $0x420] sm:$0xff] }
 0x5f8   :  { %3377 = vmatpush.msrb.mxu1 %v14133_v61  ;;  %3417 = vmatpush.msrb.mxu3 %v14134_v13  ;;  %v4976_v61 = vld [vmem:[%s12397_s1 + $0x428] sm:$0xff]  ;;  %v4977_v13 = vld [vmem:[%s12397_s1 + $0x7f0] sm:$0xff] }
 0x5f9   :  { %3585 = vmatpush.msra.mxu0 %v14135_v63  ;;  %3625 = vmatpush.msra.mxu2 %v14136_v7  ;;  %v4978_v63 = vld [vmem:[%s12397_s1 + $0x7f8] sm:$0xff]  ;;  %v4979_v7 = vld [vmem:[%s12397_s1 + $0x7b0] sm:$0xff] }
 0x5fa   :  { %3378 = vmatpush.msrb.mxu1 %v14137_v35  ;;  %3418 = vmatpush.msrb.mxu3 %v14138_v36  ;;  %v4980_v35 = vld [vmem:[%s12397_s1 + $0x7b8] sm:$0xff]  ;;  %v4981_v36 = vld [vmem:[%s12397_s1 + $0x770] sm:$0xff] }
 0x5fb   :  { %3650 = vmatpush.msrb.mxu0 %v11777_v33  ;;  %3690 = vmatpush.msrb.mxu2 %v11783_v38  ;;  %v14144_v33 = vld [vmem:[#allocation7_spill] sm:$0xff]  ;;  %v14145_v38 = vld [vmem:[#allocation34_spill] sm:$0xff] }
 0x5fc   :  { %3379 = vmatpush.msrb.mxu1 %v14139_v5  ;;  %3419 = vmatpush.msrb.mxu3 %v14140_v32  ;;  %v4982_v5 = vld [vmem:[%s12397_s1 + $0x778] sm:$0xff]  ;;  %v4983_v32 = vld [vmem:[%s12397_s1 + $0x730] sm:$0xff] }
 0x5fd   :  { %3651 = vmatpush.msrb.mxu0 %v11789_v30  ;;  %3691 = vmatpush.msrb.mxu2 %v11795_v26  ;;  %v14148_v30 = vld [vmem:[#allocation9_spill] sm:$0xff]  ;;  %v14149_v26 = vld [vmem:[#allocation39_spill] sm:$0xff] }
 0x5fe   :  { %3380 = vmatpush.msrb.mxu1 %v14141_v53  ;;  %3420 = vmatpush.msrb.mxu3 %v14142_v37  ;;  %v4984_v53 = vld [vmem:[%s12397_s1 + $0x738] sm:$0xff]  ;;  %v4985_v37 = vld [vmem:[%s12397_s1 + $0x6f0] sm:$0xff] }
 0x5ff   :  { %3652 = vmatpush.msrb.mxu0 %v11801_v1  ;;  %3692 = vmatpush.msrb.mxu2 %v11807_v47  ;;  %v14152_v1 = vld [vmem:[#allocation11_spill] sm:$0xff] }
 0x600   :  { %3381 = vmatpush.msrb.mxu1 %v14143_v12  ;;  %3421 = vmatpush.msrb.mxu3 %v14144_v33  ;;  %v14153_v47 = vld [vmem:[#allocation35_spill] sm:$0xff]  ;;  %v4986_v12 = vld [vmem:[%s12397_s1 + $0x6f8] sm:$0xff]  ;;  %v4987_v33 = vld [vmem:[%s12397_s1 + $0x6b0] sm:$0xff] }
 0x601   :  { %3653 = vmatpush.msrb.mxu0 %v14145_v38  ;;  %3693 = vmatpush.msrb.mxu2 %v14146_v15  ;;  %v4988_v38 = vld [vmem:[%s12397_s1 + $0x6b8] sm:$0xff]  ;;  %v4989_v15 = vld [vmem:[%s12397_s1 + $0x670] sm:$0xff] }
 0x602   :  { %3382 = vmatpush.msrb.mxu1 %v14147_v0  ;;  %3422 = vmatpush.msrb.mxu3 %v14148_v30  ;;  %v4990_v0 = vld [vmem:[%s12397_s1 + $0x678] sm:$0xff]  ;;  %v4991_v30 = vld [vmem:[%s12397_s1 + $0x630] sm:$0xff] }
 0x603   :  { %3654 = vmatpush.msrb.mxu0 %v14149_v26  ;;  %3694 = vmatpush.msrb.mxu2 %v14150_v62  ;;  %v4992_v26 = vld [vmem:[%s12397_s1 + $0x638] sm:$0xff]  ;;  %v4993_v62 = vld [vmem:[%s12397_s1 + $0x5f0] sm:$0xff] }
 0x604   :  { %3383 = vmatpush.msrb.mxu1 %v14151_v34  ;;  %3423 = vmatpush.msrb.mxu3 %v14152_v1  ;;  %v4994_v34 = vld [vmem:[%s12397_s1 + $0x5f8] sm:$0xff]  ;;  %v4995_v1 = vld [vmem:[%s12397_s1 + $0x5b0] sm:$0xff] }
 0x605   :  { %3655 = vmatpush.msrb.mxu0 %v14153_v47  ;;  %3695 = vmatpush.msrb.mxu2 %v14154_v3  ;;  %v4996_v47 = vld [vmem:[%s12397_s1 + $0x5b8] sm:$0xff]  ;;  %v4997_v3 = vld [vmem:[%s12397_s1 + $0x570] sm:$0xff] }
 0x606   :  { %3384 = vmatpush.msrb.mxu1 %v12085_v17  ;;  %3424 = vmatpush.msrb.mxu3 %v14155_v16  ;;  %v4998_v16 = vld [vmem:[%s12397_s1 + $0x578] sm:$0xff] }
 0x607   :  { %3656 = vmatpush.msrb.mxu0 %v14156_v10  ;;  %3696 = vmatpush.msrb.mxu2 %v14157_v52  ;;  %v4999_v10 = vld [vmem:[%s12397_s1 + $0x530] sm:$0xff]  ;;  %v5000_v52 = vld [vmem:[%s12397_s1 + $0x538] sm:$0xff] }
 0x608   :  { %3385 = vmatpush.msrb.mxu1 %v12094_v23  ;;  %3425 = vmatpush.msrb.mxu3 %v14158_v48  ;;  %v5001_v48 = vld [vmem:[%s12397_s1 + $0x4f0] sm:$0xff] }
 0x609   :  { %3657 = vmatpush.msrb.mxu0 %v14159_v27  ;;  %3697 = vmatpush.msrb.mxu2 %v14160_v18  ;;  %v5002_v27 = vld [vmem:[%s12397_s1 + $0x4f8] sm:$0xff] }
 0x60a   :  { %3386 = vmatpush.msrb.mxu1 %v12103_v43  ;;  %3426 = vmatpush.msrb.mxu3 %v14161_v44  ;;  %v5003_v18 = vld [vmem:[%s12397_s1 + $0x4b8] sm:$0xff] }
 0x60b   :  { %3387 = vmatmul.f32.vlgmr.msrb.gmra.mxu1 %v11898_v41  ;;  %3427 = vmatmul.f32.vlgmr.msrb.gmra.mxu3 %v11898_v41  ;;  %v4947_v41 = vld [vmem:[%s12397_s1 + $0x7a0] sm:$0xff] }
 0x60c   :  { %3658 = vmatpush.msrb.mxu0 %v14162_v49  ;;  %3698 = vmatpush.msrb.mxu2 %v11883_v2  ;;  %v4948_v2 = vld [vmem:[%s12397_s1 + $0x7a8] sm:$0xff] }
 0x60d   :  { %3590 = vmatpush.msra.mxu1 %v4945_v51  ;;  %3630 = vmatpush.msra.mxu3 %v4946_v42  ;;  %v3909_v51 = vld [vmem:[%s12398_s0 + $0xe0] sm:$0xff] }
 0x60e   :  { %3659 = vmatpush.msrb.mxu0 %v11889_v6  ;;  %3699 = vmatpush.msrb.mxu2 %v11895_v8  ;;  %v4949_v6 = vld [vmem:[%s12397_s1 + $0x760] sm:$0xff]  ;;  %v4950_v8 = vld [vmem:[%s12397_s1 + $0x768] sm:$0xff] }
 0x60f   :  { %3591 = vmatpush.msra.mxu1 %v4947_v41  ;;  %3631 = vmatpush.msra.mxu3 %v4948_v2  ;;  %v5004_v41 = vld [vmem:[%s12397_s1 + $0x478] sm:$0xff] }
 0x610   :  { %3660 = vmatpush.msrb.mxu0 %v11903_v59  ;;  %3700 = vmatpush.msrb.mxu2 %v11909_v50  ;;  %v4951_v59 = vld [vmem:[%s12397_s1 + $0x720] sm:$0xff]  ;;  %v4952_v50 = vld [vmem:[%s12397_s1 + $0x728] sm:$0xff]  ;;  %v5005_v2 = vld [vmem:[%s12397_s1 + $0x438] sm:$0xff] }
 0x611   :  { %3592 = vmatpush.msra.mxu1 %v4949_v6  ;;  %3632 = vmatpush.msra.mxu3 %v4950_v8  ;;  %v3128_v44 = vpop.f32.mrf.mxu0 }
 0x612   :  { %3661 = vmatpush.msrb.mxu0 %v11919_v58  ;;  %3701 = vmatpush.msrb.mxu2 %v11925_v29  ;;  %v4953_v58 = vld [vmem:[%s12397_s1 + $0x6e0] sm:$0xff]  ;;  %v4954_v29 = vld [vmem:[%s12397_s1 + $0x6e8] sm:$0xff] }
 0x613   :  { %3593 = vmatpush.msra.mxu1 %v4951_v59  ;;  %3633 = vmatpush.msra.mxu3 %v4952_v50 }
 0x614   :  { %3662 = vmatpush.msrb.mxu0 %v11933_v24  ;;  %3702 = vmatpush.msrb.mxu2 %v11939_v28  ;;  %v4955_v24 = vld [vmem:[%s12397_s1 + $0x6a0] sm:$0xff]  ;;  %v4956_v28 = vld [vmem:[%s12397_s1 + $0x6a8] sm:$0xff] }
 0x615   :  { %3594 = vmatpush.msra.mxu1 %v4953_v58  ;;  %3634 = vmatpush.msra.mxu3 %v4954_v29 }
 0x616   :  { %3663 = vmatpush.msrb.mxu0 %v11947_v40  ;;  %3703 = vmatpush.msrb.mxu2 %v11953_v46  ;;  %v4957_v40 = vld [vmem:[%s12397_s1 + $0x660] sm:$0xff]  ;;  %v4958_v46 = vld [vmem:[%s12397_s1 + $0x668] sm:$0xff] }
 0x617   :  { %3595 = vmatpush.msra.mxu1 %v4955_v24  ;;  %3635 = vmatpush.msra.mxu3 %v4956_v28  ;;  %v3168_v6 = vpop.f32.mrf.mxu2 }
 0x618   :  { %3664 = vmatpush.msrb.mxu0 %v11965_v19  ;;  %3704 = vmatpush.msrb.mxu2 %v11971_v9  ;;  %v4959_v19 = vld [vmem:[%s12397_s1 + $0x620] sm:$0xff]  ;;  %v4960_v9 = vld [vmem:[%s12397_s1 + $0x628] sm:$0xff] }
 0x619   :  { %3596 = vmatpush.msra.mxu1 %v4957_v40  ;;  %3636 = vmatpush.msra.mxu3 %v4958_v46  ;;  %v3912_v46 = vld [vmem:[%s12398_s0 + $0xf8] sm:$0xff] }
 0x61a   :  { %3665 = vmatpush.msrb.mxu0 %v11979_v20  ;;  %3705 = vmatpush.msrb.mxu2 %v11985_v54  ;;  %v4962_v20 = vld [vmem:[%s12397_s1 + $0x5e8] sm:$0xff]  ;;  %v4963_v54 = vld [vmem:[%s12397_s1 + $0x5a0] sm:$0xff] }
 0x61b   :  { %3597 = vmatpush.msra.mxu1 %v4959_v19  ;;  %3637 = vmatpush.msra.mxu3 %v4960_v9 }
 0x61d   :  { %3598 = vmatpush.msra.mxu1 %v4961_v22  ;;  %3638 = vmatpush.msra.mxu3 %v4962_v20 }
 0x61f   :  { %3599 = vmatpush.msra.mxu1 %v4963_v54  ;;  %3639 = vmatpush.msra.mxu3 %v4964_v45  ;;  %v3248_v28 = vpop.f32.mrf.mxu2 }
 0x621   :  { %3600 = vmatpush.msra.mxu1 %v4965_v57  ;;  %3640 = vmatpush.msra.mxu3 %v4966_v14  ;;  %v3208_v14 = vpop.f32.mrf.mxu0 }
 0x623   :  { %3601 = vmatpush.msra.mxu1 %v4967_v4  ;;  %3641 = vmatpush.msra.mxu3 %v4968_v56 }
 0x625   :  { %3602 = vmatpush.msra.mxu1 %v4969_v60  ;;  %3642 = vmatpush.msra.mxu3 %v4970_v11  ;;  %v3911_v11 = vld [vmem:[%s12398_s0 + $0xf0] sm:$0xff] }
 0x627   :  { %3603 = vmatpush.msra.mxu1 %v4971_v25  ;;  %3643 = vmatpush.msra.mxu3 %v4972_v31 }
 0x629   :  { %3604 = vmatpush.msra.mxu1 %v4973_v39  ;;  %3644 = vmatpush.msra.mxu3 %v4974_v21 }
 0x62b   :  { %3605 = vmatpush.msra.mxu1 %v4975_v55  ;;  %3645 = vmatpush.msra.mxu3 %v4976_v61 }
 0x62d   :  { %3670 = vmatpush.msrb.mxu1 %v4977_v13  ;;  %3710 = vmatpush.msrb.mxu3 %v4978_v63 }
 0x62f   :  { %3671 = vmatpush.msrb.mxu1 %v4979_v7  ;;  %3711 = vmatpush.msrb.mxu3 %v4980_v35 }
 0x631   :  { %3672 = vmatpush.msrb.mxu1 %v4981_v36  ;;  %3712 = vmatpush.msrb.mxu3 %v4982_v5 }
 0x633   :  { %3673 = vmatpush.msrb.mxu1 %v4983_v32  ;;  %3713 = vmatpush.msrb.mxu3 %v4984_v53  ;;  %v3288_v32 = vpop.f32.mrf.mxu0 }
 0x635   :  { %3674 = vmatpush.msrb.mxu1 %v4985_v37  ;;  %3714 = vmatpush.msrb.mxu3 %v4986_v12 }
 0x637   :  { %3675 = vmatpush.msrb.mxu1 %v4987_v33  ;;  %3715 = vmatpush.msrb.mxu3 %v4988_v38 }
 0x639   :  { %3676 = vmatpush.msrb.mxu1 %v4989_v15  ;;  %3716 = vmatpush.msrb.mxu3 %v4990_v0 }
 0x63b   :  { %3677 = vmatpush.msrb.mxu1 %v4991_v30  ;;  %3717 = vmatpush.msrb.mxu3 %v4992_v26 }
 0x63d   :  { %3678 = vmatpush.msrb.mxu1 %v4993_v62  ;;  %3718 = vmatpush.msrb.mxu3 %v4994_v34 }
 0x63f   :  { %3679 = vmatpush.msrb.mxu1 %v4995_v1  ;;  %3719 = vmatpush.msrb.mxu3 %v4996_v47 }
 0x641   :  { %3680 = vmatpush.msrb.mxu1 %v4997_v3  ;;  %3720 = vmatpush.msrb.mxu3 %v4998_v16  ;;  %v14165_v16 = vld [vmem:[#allocation131_spill] sm:$0xff] }
 0x643   :  { %3681 = vmatpush.msrb.mxu1 %v4999_v10  ;;  %3721 = vmatpush.msrb.mxu3 %v5000_v52  ;;  %v3328_v52 = vpop.f32.mrf.mxu2 }
 0x645   :  { %3682 = vmatpush.msrb.mxu1 %v5001_v48  ;;  %3722 = vmatpush.msrb.mxu3 %v5002_v27  ;;  %v14166_v48 = vld [vmem:[#allocation15_spill] sm:$0xff] }
 0x647   :  { %3683 = vmatpush.msrb.mxu1 %v12085_v17  ;;  %3723 = vmatpush.msrb.mxu3 %v5003_v18  ;;  %v3148_v49 = vpop.f32.mrf.mxu1 }
 0x648   :  { %v3149_v42 = vadd.f32 %v3148_v49, %v3128_v44 }
 0x649   :  { %3684 = vmatpush.msrb.mxu1 %v12094_v23  ;;  %3724 = vmatpush.msrb.mxu3 %v5004_v41  ;;  %v3910_v23 = vld [vmem:[%s12398_s0 + $0xe8] sm:$0xff] }
 0x64a   :  { %v3503_v17 = vadd.f32 %v3909_v51, %v3149_v42 }
 0x64b   :  { %3685 = vmatpush.msrb.mxu1 %v12103_v43  ;;  %3725 = vmatpush.msrb.mxu3 %v5005_v2  ;;  %v14167_v2 = vld [vmem:[#allocation130_spill] sm:$0xff] }
 0x64c   :  { %v3913_v8 = vmul.f32 -1.442695, %v3503_v17 }
 0x64d   :  { %v3188_v59 = vpop.f32.mrf.mxu3 }
 0x64e   :  { %4129 = vpow2.f32 %v3913_v8  ;;  %v3189_v50 = vadd.f32 %v3188_v59, %v3168_v6 }
 0x64f   :  { %v3228_v45 = vpop.f32.mrf.mxu1 }
 0x650   :  { %v3504_v58 = vadd.f32 %v3910_v23, %v3189_v50  ;;  %v3229_v56 = vadd.f32 %v3228_v45, %v3208_v14 }
 0x652   :  { %v3914_v29 = vmul.f32 -1.442695, %v3504_v58  ;;  %v3505_v21 = vadd.f32 %v3911_v11, %v3229_v56 }
 0x654   :  { %v4130_v24 = vpop.eup %4129  ;;  %4131 = vpow2.f32 %v3914_v29  ;;  %v3368_v14 = vpop.f32.mrf.mxu0 }
 0x655   :  { %v3516_v43 = vadd.f32 1.0, %v4130_v24  ;;  %v3268_v40 = vpop.f32.mrf.mxu3 }
 0x656   :  { %v3269_v19 = vadd.f32 %v3268_v40, %v3248_v28 }
 0x657   :  { %4133 = vrcp.f32 %v3516_v43  ;;  %v3530_v63 = vand.u32 2147483648, %v3516_v43  ;;  %vm3524_vm13 = vweird.f32 %v3516_v43  ;;  %v3528_v35 = vand.u32 2147483647, %v3516_v43 }
 0x658   :  { %v3506_v9 = vadd.f32 %v3912_v46, %v3269_v19 }
 0x659   :  { %v3531_v38 = vor.u32 1.1754944e-38, %v3530_v63  ;;  %vm3529_vm1 = vcmp.eq.f32.partialorder %v3528_v35, 8.507059e+37 }
 0x65a   :  { %v4132_v22 = vpop.eup %4131  ;;  %v3915_v20 = vmul.f32 -1.442695, %v3506_v9 }
 0x65b   :  { %v3517_v54 = vadd.f32 1.0, %v4132_v22 }
 0x65c   :  { %4135 = vpow2.f32 %v3915_v20 }
 0x65d   :  { %v4134_v57 = vpop.eup %4133  ;;  %4137 = vrcp.f32 %v3517_v54  ;;  %v3545_v36 = vand.u32 2147483648, %v3517_v54  ;;  %v3543_v12 = vand.u32 2147483647, %v3517_v54  ;;  %vm3539_vm0 = vweird.f32 %v3517_v54 }
 0x65e   :  { %v3520_v4 = vmul.f32 %v4134_v57, %v3516_v43  ;;  %vm3525_vm12 = vweird.f32 %v4134_v57 }
 0x65f   :  { %vm12323_vm14 = vmor %vm3524_vm13, %vm3525_vm12  ;;  %v3546_v26 = vor.u32 1.1754944e-38, %v3545_v36  ;;  %vm3544_vm3 = vcmp.eq.f32.partialorder %v3543_v12, 8.507059e+37 }
 0x660   :  { %v3521_v60 = vsub.f32 1.0, %v3520_v4  ;;  %v3408_v4 = vpop.f32.mrf.mxu2 }
 0x662   :  { %v4136_v25 = vpop.eup %4135  ;;  %v3522_v31 = vmul.f32 %v4134_v57, %v3521_v60 }
 0x663   :  { %v4138_v39 = vpop.eup %4137  ;;  %v3518_v55 = vadd.f32 1.0, %v4136_v25 }
 0x664   :  { %v3535_v61 = vmul.f32 %v4138_v39, %v3517_v54  ;;  %v3523_v13 = vadd.f32 %v4134_v57, %v3522_v31  ;;  %vm3540_vm15 = vweird.f32 %v4138_v39 }
 0x665   :  { %4139 = vrcp.f32 %v3518_v55  ;;  %vm3541_vm2 = vmor %vm3539_vm0, %vm3540_vm15  ;;  %v3560_v8 = vand.u32 2147483648, %v3518_v55  ;;  %vm3554_vm5 = vweird.f32 %v3518_v55  ;;  %v3558_v50 = vand.u32 2147483647, %v3518_v55 }
 0x666   :  { %v3536_v7 = vsub.f32 1.0, %v3535_v61  ;;  %4141 = vtanh.f32 %v3505_v21  ;;  %v3527_v37 = vsel %vm12323_vm14, %v4134_v57, %v3523_v13 }
 0x667   :  { %v3532_v62 = vsel %vm3529_vm1, %v3531_v38, %v3527_v37  ;;  %v3561_v29 = vor.u32 1.1754944e-38, %v3560_v8  ;;  %vm3559_vm7 = vcmp.eq.f32.partialorder %v3558_v50, 8.507059e+37  ;;  %v3810_v50 = vld [vmem:[%s12401_s3 + $0x68] sm:$0xff] }
 0x668   :  { %v3537_v53 = vmul.f32 %v4138_v39, %v3536_v7  ;;  %v3308_v33 = vpop.f32.mrf.mxu1 }
 0x669   :  { %v3309_v15 = vadd.f32 %v3308_v33, %v3288_v32 }
 0x66a   :  { %v3538_v0 = vadd.f32 %v4138_v39, %v3537_v53 }
 0x66b   :  { %v4140_v30 = vpop.eup %4139  ;;  %v3431_v10 = vadd.f32 %v3309_v15, %v14165_v16 }
 0x66c   :  { %v3542_v34 = vsel %vm3541_vm2, %v4138_v39, %v3538_v0  ;;  %v3550_v1 = vmul.f32 %v4140_v30, %v3518_v55  ;;  %v4142_v47 = vpop.eup %4141  ;;  %vm3555_vm4 = vweird.f32 %v4140_v30  ;;  %v14168_v39 = vld [vmem:[#allocation2_spill] sm:$0xff]  ;;  %v14169_v55 = vld [vmem:[#allocation4_spill] sm:$0xff] }
 0x66d   :  { %v3547_v3 = vsel %vm3544_vm3, %v3546_v26, %v3542_v34  ;;  %v3566_v18 = vmul.f32 %v4142_v47, %v3532_v62  ;;  %v3906_v17 = vmul.f32 -1.442695, %v3431_v10  ;;  %vm3556_vm6 = vmor %vm3554_vm5, %vm3555_vm4  ;;  %v14170_v47 = vld [vmem:[#allocation29_spill] sm:$0xff] }
 0x66e   :  { %v3565_v27 = vmul.f32 %v3547_v3, %v14166_v48  ;;  %v3551_v44 = vsub.f32 1.0, %v3550_v1  ;;  %v3348_v49 = vpop.f32.mrf.mxu3 }
 0x66f   :  { %v3349_v51 = vadd.f32 %v3348_v49, %v3328_v52 }
 0x670   :  { %v3567_v42 = vadd.f32 %v3566_v18, %v3565_v27  ;;  %v3552_v41 = vmul.f32 %v4140_v30, %v3551_v44 }
 0x671   :  { %v3432_v6 = vadd.f32 %v3349_v51, %v14167_v2 }
 0x672   :  { %4143 = vtanh.f32 %v3567_v42  ;;  %v3553_v59 = vadd.f32 %v4140_v30, %v3552_v41 }
 0x673   :  { %v3907_v23 = vmul.f32 -1.442695, %v3432_v6  ;;  %4145 = vpow2.f32 %v3906_v17 }
 0x674   :  { %v3557_v58 = vsel %vm3556_vm6, %v4140_v30, %v3553_v59  ;;  %v3812_v59 = vld [vmem:[%s12401_s3 + $0x78] sm:$0xff] }
 0x675   :  { %4147 = vpow2.f32 %v3907_v23  ;;  %v3562_v28 = vsel %vm3559_vm7, %v3561_v29, %v3557_v58  ;;  %v3811_v23 = vld [vmem:[%s12401_s3 + $0x70] sm:$0xff]  ;;  %v3809_v58 = vld [vmem:[%s12401_s3 + $0x60] sm:$0xff]  ;;  %v3808_v29 = vld [vmem:[%s12401_s3 + $0x58] sm:$0xff] }
 0x678   :  { %v4144_v24 = vpop.eup %4143 }
 0x679   :  { %v3569_v43 = vmul.f32 %v4144_v24, %v3562_v28  ;;  %v4146_v40 = vpop.eup %4145  ;;  %v3807_v24 = vld [vmem:[%s12401_s3 + $0x50] sm:$0xff] }
 0x67a   :  { %v3444_v19 = vadd.f32 1.0, %v4146_v40 }
 0x67b   :  { %3586 = vmatmul.f32.vlgmr.msra.gmra.mxu0 %v3569_v43  ;;  %3626 = vmatmul.f32.vlgmr.msra.gmra.mxu2 %v3569_v43  ;;  %v4148_v46 = vpop.eup %4147 }
 0x67c   :  { %v3445_v9 = vadd.f32 1.0, %v4148_v46  ;;  %4149 = vrcp.f32 %v3444_v19  ;;  %vm3452_vm10 = vweird.f32 %v3444_v19  ;;  %v3458_v32 = vand.u32 2147483648, %v3444_v19  ;;  %3817 = vmatpush.msra.mxu0 %v3812_v59  ;;  %v3806_v46 = vld [vmem:[%s12401_s3 + $0x48] sm:$0xff] }
 0x67d   :  { %v3456_v53 = vand.u32 2147483647, %v3444_v19 }
 0x67e   :  { %4151 = vrcp.f32 %v3445_v9  ;;  %v3473_v5 = vand.u32 2147483648, %v3445_v9  ;;  %vm3467_vm11 = vweird.f32 %v3445_v9  ;;  %v3471_v37 = vand.u32 2147483647, %v3445_v9  ;;  %3818 = vmatpush.msra.mxu0 %v3811_v23 }
 0x67f   :  { %v3459_v26 = vor.u32 1.1754944e-38, %v3458_v32  ;;  %vm3457_vm14 = vcmp.eq.f32.partialorder %v3456_v53, 8.507059e+37 }
 0x680   :  { %v3474_v30 = vor.u32 1.1754944e-38, %v3473_v5  ;;  %vm3472_vm15 = vcmp.eq.f32.partialorder %v3471_v37, 8.507059e+37  ;;  %3819 = vmatpush.msra.mxu0 %v3810_v50 }
 0x682   :  { %v4150_v22 = vpop.eup %4149  ;;  %3820 = vmatpush.msra.mxu0 %v3809_v58 }
 0x683   :  { %3666 = vmatmul.f32.vlgmr.msrb.gmra.mxu0 %v3569_v43  ;;  %3706 = vmatmul.f32.vlgmr.msrb.gmra.mxu2 %v3569_v43  ;;  %v3448_v54 = vmul.f32 %v4150_v22, %v3444_v19  ;;  %vm3453_vm8 = vweird.f32 %v4150_v22 }
 0x684   :  { %v4152_v20 = vpop.eup %4151  ;;  %vm3454_vm12 = vmor %vm3452_vm10, %vm3453_vm8  ;;  %3821 = vmatpush.msra.mxu0 %v3808_v29 }
 0x685   :  { %v3463_v45 = vmul.f32 %v4152_v20, %v3445_v9  ;;  %v3449_v25 = vsub.f32 1.0, %v3448_v54  ;;  %vm3468_vm9 = vweird.f32 %v4152_v20  ;;  %v3805_v9 = vld [vmem:[%s12401_s3 + $0x40] sm:$0xff]  ;;  %v3804_v54 = vld [vmem:[%s12401_s3 + $0x38] sm:$0xff] }
 0x686   :  { %vm3469_vm13 = vmor %vm3467_vm11, %vm3468_vm9  ;;  %3822 = vmatpush.msra.mxu0 %v3807_v24 }
 0x687   :  { %v3464_v31 = vsub.f32 1.0, %v3463_v45  ;;  %v3450_v7 = vmul.f32 %v4150_v22, %v3449_v25 }
 0x688   :  { %v3388_v57 = vpop.f32.mrf.mxu1  ;;  %3823 = vmatpush.msra.mxu0 %v3806_v46 }
 0x689   :  { %v3389_v60 = vadd.f32 %v3388_v57, %v3368_v14  ;;  %v3465_v63 = vmul.f32 %v4152_v20, %v3464_v31  ;;  %v3451_v35 = vadd.f32 %v4150_v22, %v3450_v7  ;;  %v3803_v14 = vld [vmem:[%s12401_s3 + $0x30] sm:$0xff] }
 0x68a   :  { %3824 = vmatpush.msra.mxu0 %v3805_v9 }
 0x68b   :  { %v3433_v61 = vadd.f32 %v3389_v60, %v14169_v55  ;;  %v3466_v36 = vadd.f32 %v4152_v20, %v3465_v63  ;;  %v3455_v33 = vsel %vm3454_vm12, %v4150_v22, %v3451_v35  ;;  %v3801_v60 = vld [vmem:[%s12401_s3 + $0x20] sm:$0xff]  ;;  %v3798_v63 = vld [vmem:[%s12401_s3 + $0x8] sm:$0xff] }
 0x68c   :  { %v3460_v62 = vsel %vm3457_vm14, %v3459_v26, %v3455_v33  ;;  %3825 = vmatpush.msra.mxu0 %v3804_v54  ;;  %v3797_v35 = vld [vmem:[%s12401_s3] sm:$0xff] }
 0x68d   :  { %v3470_v38 = vsel %vm3469_vm13, %v4152_v20, %v3466_v36 }
 0x68e   :  { %v3428_v56 = vpop.f32.mrf.mxu3  ;;  %v3475_v34 = vsel %vm3472_vm15, %v3474_v30, %v3470_v38  ;;  %3826 = vmatpush.msra.mxu0 %v3803_v14 }
 0x68f   :  { %v3429_v11 = vadd.f32 %v3428_v56, %v3408_v4  ;;  %v3493_v3 = vmul.f32 %v3475_v34, %v14170_v47  ;;  %v3802_v4 = vld [vmem:[%s12401_s3 + $0x28] sm:$0xff] }
 0x690   :  { %3827 = vmatpush.msra.mxu0 %v3802_v4 }
 0x691   :  { %v3434_v21 = vadd.f32 %v3429_v11, %v14168_v39  ;;  %v3800_v11 = vld [vmem:[%s12401_s3 + $0x18] sm:$0xff] }
 0x692   :  { %3828 = vmatpush.msra.mxu0 %v3801_v60 }
 0x693   :  { %v3908_v13 = vmul.f32 -1.442695, %v3434_v21 }
 0x694   :  { %3829 = vmatpush.msra.mxu0 %v3800_v11 }
 0x695   :  { %4153 = vpow2.f32 %v3908_v13 }
 0x696   :  { %4155 = vtanh.f32 %v3433_v61 }
 0x69b   :  { %v4154_v12 = vpop.eup %4153 }
 0x69c   :  { %v3446_v15 = vadd.f32 1.0, %v4154_v12  ;;  %v4156_v0 = vpop.eup %4155 }
 0x69d   :  { %v3494_v1 = vmul.f32 %v4156_v0, %v3460_v62 }
 0x69e   :  { %4157 = vrcp.f32 %v3446_v15  ;;  %v3488_v18 = vand.u32 2147483648, %v3446_v15  ;;  %v3486_v49 = vand.u32 2147483647, %v3446_v15  ;;  %vm3482_vm1 = vweird.f32 %v3446_v15 }
 0x69f   :  { %v12335_v52 = vadd.f32 %v3494_v1, %v3493_v3 }
 0x6a0   :  { %v3489_v42 = vor.u32 1.1754944e-38, %v3488_v18  ;;  %vm3487_vm3 = vcmp.eq.f32.partialorder %v3486_v49, 8.507059e+37 }
 0x6a1   :  { %4159 = vtanh.f32 %v12335_v52 }
 0x6a4   :  { %v4158_v10 = vpop.eup %4157 }
 0x6a5   :  { %v3478_v48 = vmul.f32 %v4158_v10, %v3446_v15  ;;  %vm3483_vm0 = vweird.f32 %v4158_v10 }
 0x6a6   :  { %vm3484_vm2 = vmor %vm3482_vm1, %vm3483_vm0  ;;  %vm3837_vm0 = vcmask 64512  }
 0x6a7   :  { %v3479_v27 = vsub.f32 1.0, %v3478_v48  ;;  %v4160_v17 = vpop.eup %4159 }
 0x6a9   :  { %v3480_v44 = vmul.f32 %v4158_v10, %v3479_v27 }
 0x6ab   :  { %v3481_v51 = vadd.f32 %v4158_v10, %v3480_v44 }
 0x6ad   :  { %v3485_v41 = vsel %vm3484_vm2, %v4158_v10, %v3481_v51 }
 0x6ae   :  { %v3490_v6 = vsel %vm3487_vm3, %v3489_v42, %v3485_v41 }
 0x6af   :  { %v3497_v8 = vmul.f32 %v4160_v17, %v3490_v6 }
 0x6b1   :  { %3606 = vmatmul.f32.vlgmr.msra.gmra.mxu1 %v3497_v8  ;;  %3646 = vmatmul.f32.vlgmr.msra.gmra.mxu3 %v3497_v8 }
 0x6b9   :  { %3686 = vmatmul.f32.vlgmr.msrb.gmra.mxu1 %v3497_v8  ;;  %3726 = vmatmul.f32.vlgmr.msrb.gmra.mxu3 %v3497_v8 }
 0x6f8   :  { %v3587_v28 = vpop.f32.mrf.mxu0 }
 0x6fe   :  { %v3627_v22 = vpop.f32.mrf.mxu2 }
 0x700   :  { %v3667_v12 = vpop.f32.mrf.mxu0 }
 0x706   :  { %v3707_v31 = vpop.f32.mrf.mxu2 }
 0x72e   :  { %v3607_v43 = vpop.f32.mrf.mxu1 }
 0x72f   :  { %v3608_v40 = vadd.f32 %v3607_v43, %v3587_v28 }
 0x731   :  { %v3730_v19 = vadd.f32 %v3608_v40, %v14165_v16 }
 0x733   :  { %v3916_v20 = vmul.f32 -1.442695, %v3730_v19 }
 0x734   :  { %v3647_v45 = vpop.f32.mrf.mxu3 }
 0x735   :  { %4161 = vpow2.f32 %v3916_v20  ;;  %v3648_v57 = vadd.f32 %v3647_v45, %v3627_v22 }
 0x736   :  { %v3687_v53 = vpop.f32.mrf.mxu1 }
 0x737   :  { %v3731_v16 = vadd.f32 %v3648_v57, %v14167_v2  ;;  %v3799_v2 = vld [vmem:[%s12401_s3 + $0x10] sm:$0xff]  ;;  %v3688_v38 = vadd.f32 %v3687_v53, %v3667_v12 }
 0x738   :  { %3830 = vmatpush.msra.mxu0 %v3799_v2 }
 0x739   :  { %v3917_v56 = vmul.f32 -1.442695, %v3731_v16  ;;  %v3732_v26 = vadd.f32 %v3688_v38, %v14169_v55 }
 0x73a   :  { %3831 = vmatpush.msra.mxu0 %v3798_v63 }
 0x73b   :  { %v4162_v25 = vpop.eup %4161  ;;  %4163 = vpow2.f32 %v3917_v56 }
 0x73c   :  { %v3743_v21 = vadd.f32 1.0, %v4162_v25  ;;  %v3727_v61 = vpop.f32.mrf.mxu3  ;;  %3832 = vmatpush.msra.mxu0 %v3797_v35 }
 0x73d   :  { %v3728_v13 = vadd.f32 %v3727_v61, %v3707_v31 }
 0x73e   :  { %4165 = vrcp.f32 %v3743_v21  ;;  %v3757_v47 = vand.u32 2147483648, %v3743_v21  ;;  %vm3751_vm5 = vweird.f32 %v3743_v21  ;;  %v3755_v10 = vand.u32 2147483647, %v3743_v21 }
 0x73f   :  { %v3733_v7 = vadd.f32 %v3728_v13, %v14168_v39 }
 0x740   :  { %v3758_v49 = vor.u32 1.1754944e-38, %v3757_v47  ;;  %vm3756_vm9 = vcmp.eq.f32.partialorder %v3755_v10, 8.507059e+37 }
 0x741   :  { %v4164_v36 = vpop.eup %4163  ;;  %v3918_v5 = vmul.f32 -1.442695, %v3733_v7 }
 0x742   :  { %v3744_v32 = vadd.f32 1.0, %v4164_v36 }
 0x743   :  { %4167 = vpow2.f32 %v3918_v5 }
 0x744   :  { %v4166_v37 = vpop.eup %4165  ;;  %4169 = vrcp.f32 %v3744_v32  ;;  %v3772_v48 = vand.u32 2147483648, %v3744_v32  ;;  %v3770_v44 = vand.u32 2147483647, %v3744_v32  ;;  %vm3766_vm8 = vweird.f32 %v3744_v32 }
 0x745   :  { %v3747_v33 = vmul.f32 %v4166_v37, %v3743_v21  ;;  %vm3752_vm4 = vweird.f32 %v4166_v37 }
 0x746   :  { %vm3753_vm6 = vmor %vm3751_vm5, %vm3752_vm4  ;;  %v3773_v42 = vor.u32 1.1754944e-38, %v3772_v48  ;;  %vm3771_vm11 = vcmp.eq.f32.partialorder %v3770_v44, 8.507059e+37 }
 0x747   :  { %v3748_v15 = vsub.f32 1.0, %v3747_v33 }
 0x749   :  { %v4168_v0 = vpop.eup %4167  ;;  %v3749_v30 = vmul.f32 %v4166_v37, %v3748_v15 }
 0x74a   :  { %v4170_v39 = vpop.eup %4169  ;;  %v3745_v62 = vadd.f32 1.0, %v4168_v0 }
 0x74b   :  { %v3762_v34 = vmul.f32 %v4170_v39, %v3744_v32  ;;  %v3750_v1 = vadd.f32 %v4166_v37, %v3749_v30  ;;  %vm3767_vm7 = vweird.f32 %v4170_v39 }
 0x74c   :  { %4171 = vrcp.f32 %v3745_v62  ;;  %vm3768_vm10 = vmor %vm3766_vm8, %vm3767_vm7  ;;  %v3787_v28 = vand.u32 2147483648, %v3745_v62  ;;  %vm3781_vm13 = vweird.f32 %v3745_v62  ;;  %v3785_v40 = vand.u32 2147483647, %v3745_v62 }
 0x74d   :  { %v3763_v3 = vsub.f32 1.0, %v3762_v34  ;;  %4173 = vtanh.f32 %v3732_v26  ;;  %v3754_v18 = vsel %vm3753_vm6, %v4166_v37, %v3750_v1 }
 0x74e   :  { %v3759_v41 = vsel %vm3756_vm9, %v3758_v49, %v3754_v18  ;;  %v3788_v19 = vor.u32 1.1754944e-38, %v3787_v28  ;;  %vm3786_vm15 = vcmp.eq.f32.partialorder %v3785_v40, 8.507059e+37 }
 0x74f   :  { %v3764_v27 = vmul.f32 %v4170_v39, %v3763_v3 }
 0x751   :  { %v3765_v55 = vadd.f32 %v4170_v39, %v3764_v27 }
 0x752   :  { %v4172_v51 = vpop.eup %4171 }
 0x753   :  { %v3769_v17 = vsel %vm3768_vm10, %v4170_v39, %v3765_v55  ;;  %v3777_v6 = vmul.f32 %v4172_v51, %v3745_v62  ;;  %v4174_v8 = vpop.eup %4173  ;;  %vm3782_vm12 = vweird.f32 %v4172_v51 }
 0x754   :  { %v3774_v59 = vsel %vm3771_vm11, %v3773_v42, %v3769_v17  ;;  %v3793_v50 = vmul.f32 %v4174_v8, %v3759_v41  ;;  %vm3783_vm14 = vmor %vm3781_vm13, %vm3782_vm12 }
 0x755   :  { %v3792_v23 = vmul.f32 %v3774_v59, %v12335_v52  ;;  %v3778_v58 = vsub.f32 1.0, %v3777_v6  ;;  %v3920_v52 = vld [vmem:[%s12400_s4] ss:$0 sm:$0xff] }
 0x757   :  { %v3794_v29 = vadd.f32 %v3793_v50, %v3792_v23  ;;  %v3779_v24 = vmul.f32 %v4172_v51, %v3778_v58 }
 0x759   :  { %4175 = vtanh.f32 %v3794_v29  ;;  %v3780_v43 = vadd.f32 %v4172_v51, %v3779_v24 }
 0x75b   :  { %v3784_v46 = vsel %vm3783_vm14, %v4172_v51, %v3780_v43 }
 0x75c   :  { %v3789_v22 = vsel %vm3786_vm15, %v3788_v19, %v3784_v46 }
 0x75f   :  { %v4176_v9 = vpop.eup %4175 }
 0x760   :  { %v3796_v20 = vmul.f32 %v4176_v9, %v3789_v22 }
 0x762   :  { %3833 = vmatmul.f32.vlgmr.msra.gmra.mxu0 %v3796_v20 }
 0x7df   :  { %v3834_v54 = vpop.f32.mrf.mxu0 }
 0x7e0   :  { %v3835_v45 = vadd.f32 %v3920_v52, %v3834_v54 }
 0x7e2   :  { %3838 = vst.msk [vmem:[%s12402_s5] sm:$0xff] %vm3837_vm0, %v3835_v45 }

</bundles_post_ra>
